<compile_context>
chip_gen: v7x
topology: tpu7x:2x2x1
jax: 0.10.0
libtpu: 0.0.40
codegen_flags: <defaults>
</compile_context>

<pallas_src>
import functools
import math

import jax
import jax.numpy as jnp
from jax.experimental import pallas as pl
from jax.experimental.pallas import tpu as pltpu


def _round_up(x, m):
    return (x + m - 1) // m * m


_ROW_TILES = (512, 256, 128, 64, 32, 16, 8)


def _pick_row_tile(m):
    """Largest tile dividing m; prefer >=2 grid blocks (megacore) for tiles >=32."""
    best = None
    for t in _ROW_TILES:
        if m % t:
            continue
        if best is None:
            best = t
        if t >= 32 and m // t >= 2:
            return t
    return best


# ----------------------------------------------------------------------------
# Pallas kernels
# ----------------------------------------------------------------------------

def _mm_kernel(*refs, act, has_res):
    """One MXU dot per grid step (full K, full N) + fused f32 epilogue."""
    if has_res:
        a_ref, b_ref, s_ref, c_ref, r_ref, o_ref = refs
    else:
        a_ref, b_ref, s_ref, c_ref, o_ref = refs
        r_ref = None
    out = jnp.dot(a_ref[...], b_ref[...], preferred_element_type=jnp.float32)
    out = out * s_ref[...] + c_ref[...]
    if r_ref is not None:
        out = out + r_ref[...].astype(jnp.float32)
    if act == "relu":
        out = jnp.maximum(out, 0.0)
    o_ref[...] = out.astype(o_ref.dtype)


def pallas_matmul(a, b, scale=None, bias=None, act=None, residual=None,
                  out_dtype=jnp.bfloat16):
    """(M,K) @ (K,N): bf16 operands, f32 accumulation, fused
    out = act(dot*scale + bias [+ residual]).  K/N are single full blocks."""
    M, K = a.shape
    Kb, N = b.shape
    assert K == Kb
    a = a.astype(jnp.bfloat16)
    b = b.astype(jnp.bfloat16)
    s = (jnp.ones((1, N), jnp.float32) if scale is None
         else scale.reshape(1, N).astype(jnp.float32))
    c = (jnp.zeros((1, N), jnp.float32) if bias is None
         else bias.reshape(1, N).astype(jnp.float32))
    r = None if residual is None else residual.reshape(M, N).astype(jnp.bfloat16)

    tm = _pick_row_tile(M)
    if tm is None:                      # M not a multiple of 8 (rare): pad rows.
        Mp = _round_up(M, 16)
        a = jnp.pad(a, ((0, Mp - M), (0, 0)))
        if r is not None:
            r = jnp.pad(r, ((0, Mp - M), (0, 0)))
        tm = _pick_row_tile(Mp)
    Mp = a.shape[0]

    in_specs = [pl.BlockSpec((tm, K), lambda i: (i, 0)),
                pl.BlockSpec((K, N), lambda i: (0, 0)),
                pl.BlockSpec((1, N), lambda i: (0, 0)),
                pl.BlockSpec((1, N), lambda i: (0, 0))]
    args = [a, b, s, c]
    if r is not None:
        in_specs.append(pl.BlockSpec((tm, N), lambda i: (i, 0)))
        args.append(r)

    out_bytes = Mp * N * jnp.dtype(out_dtype).itemsize
    bytes_accessed = Mp * K * 2 + K * N * 2 + 8 * N + out_bytes
    if r is not None:
        bytes_accessed += Mp * N * 2
    cost = pl.CostEstimate(flops=2 * Mp * K * N, transcendentals=0,
                           bytes_accessed=bytes_accessed)

    out = pl.pallas_call(
        functools.partial(_mm_kernel, act=act, has_res=r is not None),
        out_shape=jax.ShapeDtypeStruct((Mp, N), out_dtype),
        grid=(Mp // tm,),
        in_specs=in_specs,
        out_specs=pl.BlockSpec((tm, N), lambda i: (i, 0)),
        compiler_params=pltpu.CompilerParams(dimension_semantics=("parallel",)),
        cost_estimate=cost,
    )(*args)
    return out if Mp == M else out[:M]


def _dw_kernel(x_ref, w_ref, s_ref, b_ref, o_ref, *, kk):
    # x_ref: (KK, tr, L) bf16 taps; w_ref: (KK, 1, L); s/b: (1, L) — lane-dense.
    acc = x_ref[0].astype(jnp.float32) * w_ref[0]
    for t in range(1, kk):
        acc = acc + x_ref[t].astype(jnp.float32) * w_ref[t]
    o_ref[...] = (acc * s_ref[...] + b_ref[...]).astype(o_ref.dtype)


def pallas_depthwise_reduce(flat, w_lane, s_lane, b_lane):
    """flat: (KK, total) bf16 shifted taps flattened (m-major, c-minor);
    w/s/b pre-replicated to lane width L (multiple of 128 and of C)."""
    KK, total = flat.shape
    lane = w_lane.shape[-1]
    totp = _round_up(total, 8 * lane)
    if totp != total:
        flat = jnp.pad(flat, ((0, 0), (0, totp - total)))
    R = totp // lane
    x3 = flat.reshape(KK, R, lane)
    tr = _pick_row_tile(R)
    out = pl.pallas_call(
        functools.partial(_dw_kernel, kk=KK),
        out_shape=jax.ShapeDtypeStruct((R, lane), jnp.bfloat16),
        grid=(R // tr,),
        in_specs=[pl.BlockSpec((KK, tr, lane), lambda i: (0, i, 0)),
                  pl.BlockSpec((KK, 1, lane), lambda i: (0, 0, 0)),
                  pl.BlockSpec((1, lane), lambda i: (0, 0)),
                  pl.BlockSpec((1, lane), lambda i: (0, 0))],
        out_specs=pl.BlockSpec((tr, lane), lambda i: (i, 0)),
        compiler_params=pltpu.CompilerParams(dimension_semantics=("parallel",)),
    )(x3, w_lane, s_lane, b_lane)
    return out.reshape(-1)[:total]


def _max_kernel(x_ref, o_ref, *, kk):
    acc = x_ref[0]
    for t in range(1, kk):
        acc = jnp.maximum(acc, x_ref[t])
    o_ref[...] = acc


def pallas_max_reduce_flat(flat, lane=128):
    """flat: (KK, total) — elementwise max over KK taps, lane-dense layout."""
    KK, total = flat.shape
    totp = _round_up(total, 8 * lane)
    if totp != total:
        flat = jnp.pad(flat, ((0, 0), (0, totp - total)))
    R = totp // lane
    x3 = flat.reshape(KK, R, lane)
    tr = _pick_row_tile(R)
    out = pl.pallas_call(
        functools.partial(_max_kernel, kk=KK),
        out_shape=jax.ShapeDtypeStruct((R, lane), flat.dtype),
        grid=(R // tr,),
        in_specs=[pl.BlockSpec((KK, tr, lane), lambda i: (0, i, 0))],
        out_specs=pl.BlockSpec((tr, lane), lambda i: (i, 0)),
        compiler_params=pltpu.CompilerParams(dimension_semantics=("parallel",)),
    )(x3)
    return out.reshape(-1)[:total]


def _sattn_res_kernel(x_ref, a_ref, r_ref, o_ref):
    # out = relu(x * sigmoid(a) + residual), attention a broadcast over channels.
    gate = jax.nn.sigmoid(a_ref[...])
    val = x_ref[...].astype(jnp.float32) * gate + r_ref[...].astype(jnp.float32)
    o_ref[...] = jnp.maximum(val, 0.0).astype(o_ref.dtype)


def pallas_sattn_residual(x, logits, res):
    """x, res: (M, C) bf16; logits: (M, 1) f32."""
    M, C = x.shape
    tm = _pick_row_tile(M) or M
    return pl.pallas_call(
        _sattn_res_kernel,
        out_shape=jax.ShapeDtypeStruct((M, C), jnp.bfloat16),
        grid=(M // tm,),
        in_specs=[pl.BlockSpec((tm, C), lambda i: (i, 0)),
                  pl.BlockSpec((tm, 1), lambda i: (i, 0)),
                  pl.BlockSpec((tm, C), lambda i: (i, 0))],
        out_specs=pl.BlockSpec((tm, C), lambda i: (i, 0)),
        compiler_params=pltpu.CompilerParams(dimension_semantics=("parallel",)),
    )(x, logits, res)


# ----------------------------------------------------------------------------
# Convolution / pooling / attention wrappers (slicing & tiny FCs are JAX glue;
# all heavy tensor math runs in the Pallas kernels above).
# ----------------------------------------------------------------------------

def temporal_conv3(x, w, scale, bias, act=None, residual=None):
    """Conv3d kernel (3,1,1), padding (1,0,0) + folded BN (+optional fused
    residual add and ReLU in the matmul epilogue)."""
    B, T, H, W, Cin = x.shape
    Cout = w.shape[1]
    xp = jnp.pad(x, ((0, 0), (1, 1), (0, 0), (0, 0), (0, 0)))
    pats = jnp.concatenate([xp[:, kt:kt + T] for kt in range(3)], axis=-1)
    res2d = None if residual is None else residual.reshape(-1, Cout)
    out = pallas_matmul(pats.reshape(-1, 3 * Cin), w, scale, bias,
                        act=act, residual=res2d)
    return out.reshape(B, T, H, W, Cout)


def conv3x3x3_stride2(x, w, scale, bias, act=None):
    # TODO(synk): NormalConv source not provided; assumed Conv3d(3,3,3),
    # stride (1,2,2), padding 1, + BN + ReLU.
    B, T, H, W, Cin = x.shape
    Ho, Wo = (H - 1) // 2 + 1, (W - 1) // 2 + 1
    xp = jnp.pad(x, ((0, 0), (1, 1), (1, 1), (1, 1), (0, 0)))
    sl = []
    for kt in range(3):
        for kh in range(3):
            for kw in range(3):
                sl.append(xp[:, kt:kt + T, kh:kh + 2 * Ho:2, kw:kw + 2 * Wo:2, :])
    pats = jnp.concatenate(sl, axis=-1)
    Cout = w.shape[1]
    out = pallas_matmul(pats.reshape(-1, 27 * Cin), w, scale, bias, act=act)
    return out.reshape(B, T, Ho, Wo, Cout)


def depthwise_conv_hw(x, g, stride):
    """Depthwise Conv3d kernel (1,k,k), stride (1,s,s), same padding, +folded BN."""
    B, T, H, W, C = x.shape
    k = g["k"]
    p = (k - 1) // 2
    Ho = (H + 2 * p - k) // stride + 1
    Wo = (W + 2 * p - k) // stride + 1
    xp = jnp.pad(x, ((0, 0), (0, 0), (p, p), (p, p), (0, 0)))
    taps = [xp[:, :, kh:kh + stride * Ho:stride, kw:kw + stride * Wo:stride, :]
            for kh in range(k) for kw in range(k)]
    flat = jnp.stack(taps, axis=0).reshape(k * k, -1)       # (KK, B*T*Ho*Wo*C)
    out_flat = pallas_depthwise_reduce(flat, g["w_lane"], g["s_lane"], g["b_lane"])
    return out_flat.reshape(B, T, Ho, Wo, C)


def maxpool_hw(x):
    """MaxPool3d kernel (1,3,3), stride (1,2,2), padding (0,1,1)."""
    B, T, H, W, C = x.shape
    Ho, Wo = (H - 1) // 2 + 1, (W - 1) // 2 + 1
    xp = jnp.pad(x, ((0, 0), (0, 0), (1, 1), (1, 1), (0, 0)),
                 constant_values=-jnp.inf)
    taps = [xp[:, :, kh:kh + 2 * Ho:2, kw:kw + 2 * Wo:2, :]
            for kh in range(3) for kw in range(3)]
    flat = jnp.stack(taps, axis=0).reshape(9, -1)
    out_flat = pallas_max_reduce_flat(flat)
    return out_flat.reshape(B, T, Ho, Wo, C)


def channel_attention_scale(x, p):
    # TODO(synk): ChannnelAttention source not provided; assumed squeeze-excite:
    # global avg pool over (T,H,W) -> FC-ReLU-FC-Sigmoid.  Tiny FCs run in plain
    # jnp per perf review (M = batch = 2; a padded MXU tile would be ~99% zeros).
    pooled = jnp.mean(x.astype(jnp.float32), axis=(1, 2, 3))          # (B, C)
    h = jax.nn.relu(pooled @ p["ca_w1"] + p["ca_b1"])
    return jax.nn.sigmoid(h @ p["ca_w2"] + p["ca_b2"])                # (B, C)


def spatial_attention_logits(out, w, b, k):
    # TODO(synk): SpatialAttention source not provided; assumed CBAM-style:
    # channel max+mean -> Conv3d(2,1,(1,k,k)).  The tiny 2->1 channel conv on the
    # (B,T,H,W,2) map is plain jnp; sigmoid*out + residual + ReLU is fused in
    # pallas_sattn_residual.
    B, T, H, W, _ = out.shape
    f = out.astype(jnp.float32)
    feat = jnp.concatenate([jnp.max(f, axis=-1, keepdims=True),
                            jnp.mean(f, axis=-1, keepdims=True)], axis=-1)
    p_ = (k - 1) // 2
    fp = jnp.pad(feat, ((0, 0), (0, 0), (p_, p_), (p_, p_), (0, 0)))
    pats = jnp.concatenate([fp[:, :, kh:kh + H, kw:kw + W, :]
                            for kh in range(k) for kw in range(k)], axis=-1)
    return (pats.reshape(-1, 2 * k * k) @ w + b).astype(jnp.float32)  # (M, 1)


# ----------------------------------------------------------------------------
# InvResLayerMD / InvResLayer3D / InvResNetMD forward
# ----------------------------------------------------------------------------

def inv_res_layer(x, p, stride):
    has_sattn = "sa_w" in p

    # Residual path first so it can be fused into the main-path epilogues.
    xr = x
    if stride > 1:
        xr = maxpool_hw(xr)
    if "adj_w" in p:                       # adjust_layer: Conv3d 1x1x1 + BN
        Br, Tr, Hr, Wr, Cr = xr.shape
        xr = pallas_matmul(xr.reshape(-1, Cr), p["adj_w"],
                           p["adj_scale"], p["adj_bias"]).reshape(Br, Tr, Hr, Wr, -1)

    # pointwise_conv1: Conv3d(3,1,1) + BN + ReLU fused in one MXU matmul.
    out = temporal_conv3(x, p["pw1_w"], p["pw1_scale"], p["pw1_bias"], act="relu")

    # depthwise_conv: MDConv (per-group mixed kernels) or plain (1,3,3), +BN fused.
    pieces, start = [], 0
    for g in p["dw_groups"]:
        pieces.append(depthwise_conv_hw(out[..., start:start + g["c"]], g, stride))
        start += g["c"]
    out = pieces[0] if len(pieces) == 1 else jnp.concatenate(pieces, axis=-1)

    # ChannelAttention (SE); channel scaling folds into the pw2 patch glue.
    a = channel_attention_scale(out, p)
    out = out * a[:, None, None, None, :].astype(out.dtype)

    if has_sattn:
        # pointwise_conv2 (+BN), then spatial attention * out + residual + ReLU
        # fused in one elementwise Pallas kernel.
        out = temporal_conv3(out, p["pw2_w"], p["pw2_scale"], p["pw2_bias"])
        logits = spatial_attention_logits(out, p["sa_w"], p["sa_b"], p["sa_k"])
        Bo, To, Ho, Wo, Co = out.shape
        res = pallas_sattn_residual(out.reshape(-1, Co), logits, xr.reshape(-1, Co))
        return res.reshape(Bo, To, Ho, Wo, Co)

    # No spatial attention: residual add + ReLU fused into the pw2 matmul epilogue.
    return temporal_conv3(out, p["pw2_w"], p["pw2_scale"], p["pw2_bias"],
                          act="relu", residual=xr)


def invresnet_md_forward(x, params):
    """x: (B, C, H, W, T) — same convention as the PyTorch module."""
    # x.permute(0,1,4,2,3) -> NCTHW, then channels-last (B,T,H,W,C), bf16 activations.
    x = jnp.transpose(x, (0, 4, 2, 3, 1)).astype(jnp.bfloat16)

    out = conv3x3x3_stride2(x, params["nc_w"], params["nc_scale"],
                            params["nc_bias"], act="relu")
    # nn.Dropout layers are identity in eval mode.
    out = inv_res_layer(out, params["layer1"], stride=2)   # InvResLayerMD (sa k=7)
    out = inv_res_layer(out, params["layer2"], stride=2)   # InvResLayerMD (sa k=5)
    out = inv_res_layer(out, params["layer3"], stride=2)   # InvResLayer3D (no s_attn)

    out = jnp.mean(out.astype(jnp.float32), axis=(2, 3))   # mean over (H, W) -> (B,T,C)

    # out_layer: Conv1d(C, out_channels, kernel_size=1) == per-step matmul
    B, T, C = out.shape
    y = pallas_matmul(out.reshape(-1, C), params["out_w"], bias=params["out_b"],
                      out_dtype=jnp.float32)
    return jnp.transpose(y.reshape(B, T, -1), (0, 2, 1))   # (B, out_channels, T)


# ----------------------------------------------------------------------------
# Deterministic parameter initialization (synthetic weights, eval-mode BN folded,
# layouts pre-computed: bf16 matmul weights, lane-replicated depthwise weights).
# ----------------------------------------------------------------------------

class KeyGen:
    def __init__(self, seed):
        self._k = jax.random.PRNGKey(seed)

    def __call__(self):
        self._k, sub = jax.random.split(self._k)
        return sub


def _randn(kg, shape, scale=1.0):
    return scale * jax.random.normal(kg(), shape, dtype=jnp.float32)


def _bn_affine(kg, c, eps=1e-5):
    # NormLayer3D ("bn", eval): running_mean=0, running_var=1, gamma/beta random.
    gamma = 1.0 + 0.1 * jax.random.normal(kg(), (c,), dtype=jnp.float32)
    beta = 0.1 * jax.random.normal(kg(), (c,), dtype=jnp.float32)
    return gamma / jnp.sqrt(1.0 + eps), beta


def _fused_conv_bn(kg, k_in, cout):
    """Conv weight (k_in, cout) bf16 + folded BN -> (w, scale(1,C), bias(1,C))."""
    w = _randn(kg, (k_in, cout), 1.0 / float(k_in) ** 0.5)
    cb = _randn(kg, (cout,), 0.02)
    s, sh = _bn_affine(kg, cout)
    return w.astype(jnp.bfloat16), s.reshape(1, cout), (cb * s + sh).reshape(1, cout)


def _dw_group(kg, k, c, bn_scale, bn_shift):
    """Depthwise group: weights/BN replicated to a lane-dense tile of width
    L = lcm(c, 128) (c is a multiple of 8 in practice, so L stays small)."""
    lane = c * 128 // math.gcd(c, 128)
    rep = lane // c
    w = _randn(kg, (k * k, c), 1.0 / float(k * k) ** 0.5)
    cb = _randn(kg, (c,), 0.02)
    bias = cb * bn_scale + bn_shift
    return dict(
        k=k, c=c,
        w_lane=jnp.tile(w.reshape(k * k, 1, c), (1, 1, rep)),
        s_lane=jnp.tile(bn_scale.reshape(1, c), (1, rep)),
        b_lane=jnp.tile(bias.reshape(1, c), (1, rep)),
    )


def init_inv_res_layer(kg, cin, cout, n_groups, up_scale, sq_r, sa_k, md):
    hidden = int(cin * up_scale)
    p = {}
    p["pw1_w"], p["pw1_scale"], p["pw1_bias"] = _fused_conv_bn(kg, 3 * cin, hidden)

    bn_s, bn_sh = _bn_affine(kg, hidden)
    groups = []
    if md:  # MDConv: group i uses spatial kernel 2*i+3, depthwise within the split
        assert hidden % n_groups == 0, "MDConv requires hidden % n_groups == 0"
        split = hidden // n_groups
        for i in range(n_groups):
            sl = slice(i * split, (i + 1) * split)
            groups.append(_dw_group(kg, 2 * i + 3, split, bn_s[sl], bn_sh[sl]))
    else:   # InvResLayer3D: plain (1,3,3) depthwise over all hidden channels
        # TODO(synk): InvResLayer3D source not provided; assumed plain depthwise.
        groups.append(_dw_group(kg, 3, hidden, bn_s, bn_sh))
    p["dw_groups"] = groups

    hr = max(hidden // sq_r, 1)
    p["ca_w1"] = _randn(kg, (hidden, hr), 1.0 / float(hidden) ** 0.5)
    p["ca_b1"] = _randn(kg, (hr,), 0.02)
    p["ca_w2"] = _randn(kg, (hr, hidden), 1.0 / float(hr) ** 0.5)
    p["ca_b2"] = _randn(kg, (hidden,), 0.02)

    p["pw2_w"], p["pw2_scale"], p["pw2_bias"] = _fused_conv_bn(kg, 3 * hidden, cout)

    if sa_k is not None:
        p["sa_w"] = _randn(kg, (2 * sa_k * sa_k, 1),
                           1.0 / float(2 * sa_k * sa_k) ** 0.5)
        p["sa_b"] = _randn(kg, (1,), 0.02)
        p["sa_k"] = sa_k

    if cin != cout:  # adjust_layer: Conv3d 1x1x1 + BN
        p["adj_w"], p["adj_scale"], p["adj_bias"] = _fused_conv_bn(kg, cin, cout)
    return p


def init_params(seed, in_channels, out_channels, inner_channels, n_groups,
                up_scale, sq_r, n_add_channels):
    kg = KeyGen(seed)
    params = {}
    # NormalConv: Conv3d(in, inner, (3,3,3), stride=(1,2,2), padding=1) + BN + ReLU
    params["nc_w"], params["nc_scale"], params["nc_bias"] = _fused_conv_bn(
        kg, 27 * in_channels, inner_channels)
    c1 = inner_channels + n_add_channels
    c2 = inner_channels + 2 * n_add_channels
    c3 = inner_channels + 3 * n_add_channels
    params["layer1"] = init_inv_res_layer(kg, inner_channels, c1, n_groups,
                                          up_scale, sq_r, sa_k=7, md=True)
    params["layer2"] = init_inv_res_layer(kg, c1, c2, n_groups, up_scale,
                                          sq_r, sa_k=5, md=True)
    params["layer3"] = init_inv_res_layer(kg, c2, c3, n_groups, up_scale,
                                          sq_r, sa_k=None, md=False)
    # out_layer: Conv1d(c3, out_channels, kernel_size=1)
    params["out_w"] = _randn(kg, (c3, out_channels),
                             1.0 / float(c3) ** 0.5).astype(jnp.bfloat16)
    params["out_b"] = _randn(kg, (1, out_channels), 0.02)
    return params


# ----------------------------------------------------------------------------

if __name__ == "__main__":
    # Small, shape-consistent configuration.
    B, Cin, H, W, T = 2, 1, 16, 16, 8          # x: (B, C, H, W, T)
    inner_channels, n_add_channels, out_channels = 8, 4, 10
    n_groups, up_scale, sq_r = 2, 2, 2

    params = init_params(seed=0, in_channels=Cin, out_channels=out_channels,
                         inner_channels=inner_channels, n_groups=n_groups,
                         up_scale=up_scale, sq_r=sq_r,
                         n_add_channels=n_add_channels)

    x = jax.random.normal(jax.random.PRNGKey(0), (B, Cin, H, W, T),
                          dtype=jnp.float32)

    fwd = jax.jit(lambda inp: invresnet_md_forward(inp, params))
    y = jax.block_until_ready(fwd(x))

    assert y.shape == (B, out_channels, T), y.shape
    assert bool(jnp.all(jnp.isfinite(y)))
    print("KERNEL_OK")
</pallas_src>

<mosaic_0001>
module attributes {stable_mosaic.version = 11 : i64} {
  func.func @_mm_kernel(%arg0: i32, %arg1: memref<512x27xbf16, #tpu.memory_space<vmem>>, %arg2: memref<27x8xbf16, #tpu.memory_space<vmem>>, %arg3: memref<1x8xf32, #tpu.memory_space<vmem>>, %arg4: memref<1x8xf32, #tpu.memory_space<vmem>>, %arg5: memref<512x8xbf16, #tpu.memory_space<vmem>>) attributes {dimension_semantics = [#tpu.dimension_semantics<parallel>], iteration_bounds = array<i64: 2>, scalar_prefetch = 0 : i64, scratch_operands = 0 : i64, tpu.core_type = #tpu.core_type<tc>, window_params = [{transform_indices = @transform_0, window_bounds = array<i64: 512, 27>}, {pipeline_mode = #tpu.pipeline_mode<synchronous>, transform_indices = @transform_1, window_bounds = array<i64: 27, 8>}, {pipeline_mode = #tpu.pipeline_mode<synchronous>, transform_indices = @transform_2, window_bounds = array<i64: 1, 8>}, {pipeline_mode = #tpu.pipeline_mode<synchronous>, transform_indices = @transform_3, window_bounds = array<i64: 1, 8>}, {transform_indices = @transform_4, window_bounds = array<i64: 512, 8>}]} {
    %c0 = arith.constant 0 : index
    %c0_0 = arith.constant 0 : index
    %0 = vector.load %arg1[%c0, %c0_0] : memref<512x27xbf16, #tpu.memory_space<vmem>>, vector<512x27xbf16>
    %c0_1 = arith.constant 0 : index
    %c0_2 = arith.constant 0 : index
    %1 = vector.load %arg2[%c0_1, %c0_2] : memref<27x8xbf16, #tpu.memory_space<vmem>>, vector<27x8xbf16>
    %cst = arith.constant dense<0.000000e+00> : vector<512x8xf32>
    %2 = tpu.matmul %0, %1, %cst {dimension_numbers = #tpu.dot_dimension_numbers<[1], [0], [0], [1], [0, 0, 1, 1], [], []>} : vector<512x27xbf16>, vector<27x8xbf16>, vector<512x8xf32> -> vector<512x8xf32>
    %c0_3 = arith.constant 0 : index
    %c0_4 = arith.constant 0 : index
    %3 = vector.load %arg3[%c0_3, %c0_4] : memref<1x8xf32, #tpu.memory_space<vmem>>, vector<1x8xf32>
    %4 = vector.broadcast %3 : vector<1x8xf32> to vector<512x8xf32>
    %5 = arith.mulf %2, %4 : vector<512x8xf32>
    %c0_5 = arith.constant 0 : index
    %c0_6 = arith.constant 0 : index
    %6 = vector.load %arg4[%c0_5, %c0_6] : memref<1x8xf32, #tpu.memory_space<vmem>>, vector<1x8xf32>
    %7 = vector.broadcast %6 : vector<1x8xf32> to vector<512x8xf32>
    %8 = arith.addf %5, %7 : vector<512x8xf32>
    %cst_7 = arith.constant 0.000000e+00 : f32
    %9 = vector.broadcast %cst_7 : f32 to vector<512x8xf32>
    %10 = arith.maximumf %8, %9 : vector<512x8xf32>
    %11 = arith.truncf %10 : vector<512x8xf32> to vector<512x8xbf16>
    %c0_8 = arith.constant 0 : index
    %c0_9 = arith.constant 0 : index
    %12 = vector.load %arg5[%c0_8, %c0_9] : memref<512x8xbf16, #tpu.memory_space<vmem>>, vector<512x8xbf16>
    tpu.vector_store %arg5[%c0_8, %c0_9], %11 {strides = array<i32>} : memref<512x8xbf16, #tpu.memory_space<vmem>>, vector<512x8xbf16>,
    return
  }
  func.func @transform_0(%arg0: i32) -> (i32, i32) {
    %c0_i32 = arith.constant 0 : i32
    %c0_i32_0 = arith.constant 0 : i32
    return %arg0, %c0_i32 : i32, i32
  }
  func.func @transform_1(%arg0: i32) -> (i32, i32) {
    %c0_i32 = arith.constant 0 : i32
    %c0_i32_0 = arith.constant 0 : i32
    %c0_i32_1 = arith.constant 0 : i32
    return %c0_i32, %c0_i32_0 : i32, i32
  }
  func.func @transform_2(%arg0: i32) -> (i32, i32) {
    %c0_i32 = arith.constant 0 : i32
    %c0_i32_0 = arith.constant 0 : i32
    %c0_i32_1 = arith.constant 0 : i32
    return %c0_i32, %c0_i32_0 : i32, i32
  }
  func.func @transform_3(%arg0: i32) -> (i32, i32) {
    %c0_i32 = arith.constant 0 : i32
    %c0_i32_0 = arith.constant 0 : i32
    %c0_i32_1 = arith.constant 0 : i32
    return %c0_i32, %c0_i32_0 : i32, i32
  }
  func.func @transform_4(%arg0: i32) -> (i32, i32) {
    %c0_i32 = arith.constant 0 : i32
    %c0_i32_0 = arith.constant 0 : i32
    return %arg0, %c0_i32 : i32, i32
  }
}

module attributes {stable_mosaic.version = 11 : i64} {
  func.func @_max_kernel(%arg0: i32, %arg1: memref<9x16x128xbf16, #tpu.memory_space<vmem>>, %arg2: memref<16x128xbf16, #tpu.memory_space<vmem>>) attributes {dimension_semantics = [#tpu.dimension_semantics<parallel>], iteration_bounds = array<i64: 1>, scalar_prefetch = 0 : i64, scratch_operands = 0 : i64, tpu.core_type = #tpu.core_type<tc>, window_params = [{transform_indices = @transform_0, window_bounds = array<i64: 9, 16, 128>}, {transform_indices = @transform_1, window_bounds = array<i64: 16, 128>}]} {
    %c0 = arith.constant 0 : index
    %c0_0 = arith.constant 0 : index
    %c0_1 = arith.constant 0 : index
    %0 = vector.load %arg1[%c0, %c0_0, %c0_1] : memref<9x16x128xbf16, #tpu.memory_space<vmem>>, vector<1x16x128xbf16>
    %1 = vector.shape_cast %0 : vector<1x16x128xbf16> to vector<16x128xbf16>
    %c1 = arith.constant 1 : index
    %c0_2 = arith.constant 0 : index
    %c0_3 = arith.constant 0 : index
    %2 = vector.load %arg1[%c1, %c0_2, %c0_3] : memref<9x16x128xbf16, #tpu.memory_space<vmem>>, vector<1x16x128xbf16>
    %3 = vector.shape_cast %2 : vector<1x16x128xbf16> to vector<16x128xbf16>
    %4 = arith.maximumf %1, %3 : vector<16x128xbf16>
    %c2 = arith.constant 2 : index
    %c0_4 = arith.constant 0 : index
    %c0_5 = arith.constant 0 : index
    %5 = vector.load %arg1[%c2, %c0_4, %c0_5] : memref<9x16x128xbf16, #tpu.memory_space<vmem>>, vector<1x16x128xbf16>
    %6 = vector.shape_cast %5 : vector<1x16x128xbf16> to vector<16x128xbf16>
    %7 = arith.maximumf %4, %6 : vector<16x128xbf16>
    %c3 = arith.constant 3 : index
    %c0_6 = arith.constant 0 : index
    %c0_7 = arith.constant 0 : index
    %8 = vector.load %arg1[%c3, %c0_6, %c0_7] : memref<9x16x128xbf16, #tpu.memory_space<vmem>>, vector<1x16x128xbf16>
    %9 = vector.shape_cast %8 : vector<1x16x128xbf16> to vector<16x128xbf16>
    %10 = arith.maximumf %7, %9 : vector<16x128xbf16>
    %c4 = arith.constant 4 : index
    %c0_8 = arith.constant 0 : index
    %c0_9 = arith.constant 0 : index
    %11 = vector.load %arg1[%c4, %c0_8, %c0_9] : memref<9x16x128xbf16, #tpu.memory_space<vmem>>, vector<1x16x128xbf16>
    %12 = vector.shape_cast %11 : vector<1x16x128xbf16> to vector<16x128xbf16>
    %13 = arith.maximumf %10, %12 : vector<16x128xbf16>
    %c5 = arith.constant 5 : index
    %c0_10 = arith.constant 0 : index
    %c0_11 = arith.constant 0 : index
    %14 = vector.load %arg1[%c5, %c0_10, %c0_11] : memref<9x16x128xbf16, #tpu.memory_space<vmem>>, vector<1x16x128xbf16>
    %15 = vector.shape_cast %14 : vector<1x16x128xbf16> to vector<16x128xbf16>
    %16 = arith.maximumf %13, %15 : vector<16x128xbf16>
    %c6 = arith.constant 6 : index
    %c0_12 = arith.constant 0 : index
    %c0_13 = arith.constant 0 : index
    %17 = vector.load %arg1[%c6, %c0_12, %c0_13] : memref<9x16x128xbf16, #tpu.memory_space<vmem>>, vector<1x16x128xbf16>
    %18 = vector.shape_cast %17 : vector<1x16x128xbf16> to vector<16x128xbf16>
    %19 = arith.maximumf %16, %18 : vector<16x128xbf16>
    %c7 = arith.constant 7 : index
    %c0_14 = arith.constant 0 : index
    %c0_15 = arith.constant 0 : index
    %20 = vector.load %arg1[%c7, %c0_14, %c0_15] : memref<9x16x128xbf16, #tpu.memory_space<vmem>>, vector<1x16x128xbf16>
    %21 = vector.shape_cast %20 : vector<1x16x128xbf16> to vector<16x128xbf16>
    %22 = arith.maximumf %19, %21 : vector<16x128xbf16>
    %c8 = arith.constant 8 : index
    %c0_16 = arith.constant 0 : index
    %c0_17 = arith.constant 0 : index
    %23 = vector.load %arg1[%c8, %c0_16, %c0_17] : memref<9x16x128xbf16, #tpu.memory_space<vmem>>, vector<1x16x128xbf16>
    %24 = vector.shape_cast %23 : vector<1x16x128xbf16> to vector<16x128xbf16>
    %25 = arith.maximumf %22, %24 : vector<16x128xbf16>
    %c0_18 = arith.constant 0 : index
    %c0_19 = arith.constant 0 : index
    %26 = vector.load %arg2[%c0_18, %c0_19] : memref<16x128xbf16, #tpu.memory_space<vmem>>, vector<16x128xbf16>
    tpu.vector_store %arg2[%c0_18, %c0_19], %25 {strides = array<i32>} : memref<16x128xbf16, #tpu.memory_space<vmem>>, vector<16x128xbf16>,
    return
  }
  func.func @transform_0(%arg0: i32) -> (i32, i32, i32) {
    %c0_i32 = arith.constant 0 : i32
    %c0_i32_0 = arith.constant 0 : i32
    %c0_i32_1 = arith.constant 0 : i32
    return %c0_i32, %arg0, %c0_i32_0 : i32, i32, i32
  }
  func.func @transform_1(%arg0: i32) -> (i32, i32) {
    %c0_i32 = arith.constant 0 : i32
    %c0_i32_0 = arith.constant 0 : i32
    return %arg0, %c0_i32 : i32, i32
  }
}

module attributes {stable_mosaic.version = 11 : i64} {
  func.func @_mm_kernel(%arg0: i32, %arg1: memref<128x8xbf16, #tpu.memory_space<vmem>>, %arg2: memref<8x12xbf16, #tpu.memory_space<vmem>>, %arg3: memref<1x12xf32, #tpu.memory_space<vmem>>, %arg4: memref<1x12xf32, #tpu.memory_space<vmem>>, %arg5: memref<128x12xbf16, #tpu.memory_space<vmem>>) attributes {dimension_semantics = [#tpu.dimension_semantics<parallel>], iteration_bounds = array<i64: 2>, scalar_prefetch = 0 : i64, scratch_operands = 0 : i64, tpu.core_type = #tpu.core_type<tc>, window_params = [{transform_indices = @transform_0, window_bounds = array<i64: 128, 8>}, {pipeline_mode = #tpu.pipeline_mode<synchronous>, transform_indices = @transform_1, window_bounds = array<i64: 8, 12>}, {pipeline_mode = #tpu.pipeline_mode<synchronous>, transform_indices = @transform_2, window_bounds = array<i64: 1, 12>}, {pipeline_mode = #tpu.pipeline_mode<synchronous>, transform_indices = @transform_3, window_bounds = array<i64: 1, 12>}, {transform_indices = @transform_4, window_bounds = array<i64: 128, 12>}]} {
    %c0 = arith.constant 0 : index
    %c0_0 = arith.constant 0 : index
    %0 = vector.load %arg1[%c0, %c0_0] : memref<128x8xbf16, #tpu.memory_space<vmem>>, vector<128x8xbf16>
    %c0_1 = arith.constant 0 : index
    %c0_2 = arith.constant 0 : index
    %1 = vector.load %arg2[%c0_1, %c0_2] : memref<8x12xbf16, #tpu.memory_space<vmem>>, vector<8x12xbf16>
    %cst = arith.constant dense<0.000000e+00> : vector<128x12xf32>
    %2 = tpu.matmul %0, %1, %cst {dimension_numbers = #tpu.dot_dimension_numbers<[1], [0], [0], [1], [0, 0, 1, 1], [], []>} : vector<128x8xbf16>, vector<8x12xbf16>, vector<128x12xf32> -> vector<128x12xf32>
    %c0_3 = arith.constant 0 : index
    %c0_4 = arith.constant 0 : index
    %3 = vector.load %arg3[%c0_3, %c0_4] : memref<1x12xf32, #tpu.memory_space<vmem>>, vector<1x12xf32>
    %4 = vector.broadcast %3 : vector<1x12xf32> to vector<128x12xf32>
    %5 = arith.mulf %2, %4 : vector<128x12xf32>
    %c0_5 = arith.constant 0 : index
    %c0_6 = arith.constant 0 : index
    %6 = vector.load %arg4[%c0_5, %c0_6] : memref<1x12xf32, #tpu.memory_space<vmem>>, vector<1x12xf32>
    %7 = vector.broadcast %6 : vector<1x12xf32> to vector<128x12xf32>
    %8 = arith.addf %5, %7 : vector<128x12xf32>
    %9 = arith.truncf %8 : vector<128x12xf32> to vector<128x12xbf16>
    %c0_7 = arith.constant 0 : index
    %c0_8 = arith.constant 0 : index
    %10 = vector.load %arg5[%c0_7, %c0_8] : memref<128x12xbf16, #tpu.memory_space<vmem>>, vector<128x12xbf16>
    tpu.vector_store %arg5[%c0_7, %c0_8], %9 {strides = array<i32>} : memref<128x12xbf16, #tpu.memory_space<vmem>>, vector<128x12xbf16>,
    return
  }
  func.func @transform_0(%arg0: i32) -> (i32, i32) {
    %c0_i32 = arith.constant 0 : i32
    %c0_i32_0 = arith.constant 0 : i32
    return %arg0, %c0_i32 : i32, i32
  }
  func.func @transform_1(%arg0: i32) -> (i32, i32) {
    %c0_i32 = arith.constant 0 : i32
    %c0_i32_0 = arith.constant 0 : i32
    %c0_i32_1 = arith.constant 0 : i32
    return %c0_i32, %c0_i32_0 : i32, i32
  }
  func.func @transform_2(%arg0: i32) -> (i32, i32) {
    %c0_i32 = arith.constant 0 : i32
    %c0_i32_0 = arith.constant 0 : i32
    %c0_i32_1 = arith.constant 0 : i32
    return %c0_i32, %c0_i32_0 : i32, i32
  }
  func.func @transform_3(%arg0: i32) -> (i32, i32) {
    %c0_i32 = arith.constant 0 : i32
    %c0_i32_0 = arith.constant 0 : i32
    %c0_i32_1 = arith.constant 0 : i32
    return %c0_i32, %c0_i32_0 : i32, i32
  }
  func.func @transform_4(%arg0: i32) -> (i32, i32) {
    %c0_i32 = arith.constant 0 : i32
    %c0_i32_0 = arith.constant 0 : i32
    return %arg0, %c0_i32 : i32, i32
  }
}

module attributes {stable_mosaic.version = 11 : i64} {
  func.func @_mm_kernel(%arg0: i32, %arg1: memref<512x24xbf16, #tpu.memory_space<vmem>>, %arg2: memref<24x16xbf16, #tpu.memory_space<vmem>>, %arg3: memref<1x16xf32, #tpu.memory_space<vmem>>, %arg4: memref<1x16xf32, #tpu.memory_space<vmem>>, %arg5: memref<512x16xbf16, #tpu.memory_space<vmem>>) attributes {dimension_semantics = [#tpu.dimension_semantics<parallel>], iteration_bounds = array<i64: 2>, scalar_prefetch = 0 : i64, scratch_operands = 0 : i64, tpu.core_type = #tpu.core_type<tc>, window_params = [{transform_indices = @transform_0, window_bounds = array<i64: 512, 24>}, {pipeline_mode = #tpu.pipeline_mode<synchronous>, transform_indices = @transform_1, window_bounds = array<i64: 24, 16>}, {pipeline_mode = #tpu.pipeline_mode<synchronous>, transform_indices = @transform_2, window_bounds = array<i64: 1, 16>}, {pipeline_mode = #tpu.pipeline_mode<synchronous>, transform_indices = @transform_3, window_bounds = array<i64: 1, 16>}, {transform_indices = @transform_4, window_bounds = array<i64: 512, 16>}]} {
    %c0 = arith.constant 0 : index
    %c0_0 = arith.constant 0 : index
    %0 = vector.load %arg1[%c0, %c0_0] : memref<512x24xbf16, #tpu.memory_space<vmem>>, vector<512x24xbf16>
    %c0_1 = arith.constant 0 : index
    %c0_2 = arith.constant 0 : index
    %1 = vector.load %arg2[%c0_1, %c0_2] : memref<24x16xbf16, #tpu.memory_space<vmem>>, vector<24x16xbf16>
    %cst = arith.constant dense<0.000000e+00> : vector<512x16xf32>
    %2 = tpu.matmul %0, %1, %cst {dimension_numbers = #tpu.dot_dimension_numbers<[1], [0], [0], [1], [0, 0, 1, 1], [], []>} : vector<512x24xbf16>, vector<24x16xbf16>, vector<512x16xf32> -> vector<512x16xf32>
    %c0_3 = arith.constant 0 : index
    %c0_4 = arith.constant 0 : index
    %3 = vector.load %arg3[%c0_3, %c0_4] : memref<1x16xf32, #tpu.memory_space<vmem>>, vector<1x16xf32>
    %4 = vector.broadcast %3 : vector<1x16xf32> to vector<512x16xf32>
    %5 = arith.mulf %2, %4 : vector<512x16xf32>
    %c0_5 = arith.constant 0 : index
    %c0_6 = arith.constant 0 : index
    %6 = vector.load %arg4[%c0_5, %c0_6] : memref<1x16xf32, #tpu.memory_space<vmem>>, vector<1x16xf32>
    %7 = vector.broadcast %6 : vector<1x16xf32> to vector<512x16xf32>
    %8 = arith.addf %5, %7 : vector<512x16xf32>
    %cst_7 = arith.constant 0.000000e+00 : f32
    %9 = vector.broadcast %cst_7 : f32 to vector<512x16xf32>
    %10 = arith.maximumf %8, %9 : vector<512x16xf32>
    %11 = arith.truncf %10 : vector<512x16xf32> to vector<512x16xbf16>
    %c0_8 = arith.constant 0 : index
    %c0_9 = arith.constant 0 : index
    %12 = vector.load %arg5[%c0_8, %c0_9] : memref<512x16xbf16, #tpu.memory_space<vmem>>, vector<512x16xbf16>
    tpu.vector_store %arg5[%c0_8, %c0_9], %11 {strides = array<i32>} : memref<512x16xbf16, #tpu.memory_space<vmem>>, vector<512x16xbf16>,
    return
  }
  func.func @transform_0(%arg0: i32) -> (i32, i32) {
    %c0_i32 = arith.constant 0 : i32
    %c0_i32_0 = arith.constant 0 : i32
    return %arg0, %c0_i32 : i32, i32
  }
  func.func @transform_1(%arg0: i32) -> (i32, i32) {
    %c0_i32 = arith.constant 0 : i32
    %c0_i32_0 = arith.constant 0 : i32
    %c0_i32_1 = arith.constant 0 : i32
    return %c0_i32, %c0_i32_0 : i32, i32
  }
  func.func @transform_2(%arg0: i32) -> (i32, i32) {
    %c0_i32 = arith.constant 0 : i32
    %c0_i32_0 = arith.constant 0 : i32
    %c0_i32_1 = arith.constant 0 : i32
    return %c0_i32, %c0_i32_0 : i32, i32
  }
  func.func @transform_3(%arg0: i32) -> (i32, i32) {
    %c0_i32 = arith.constant 0 : i32
    %c0_i32_0 = arith.constant 0 : i32
    %c0_i32_1 = arith.constant 0 : i32
    return %c0_i32, %c0_i32_0 : i32, i32
  }
  func.func @transform_4(%arg0: i32) -> (i32, i32) {
    %c0_i32 = arith.constant 0 : i32
    %c0_i32_0 = arith.constant 0 : i32
    return %arg0, %c0_i32 : i32, i32
  }
}

module attributes {stable_mosaic.version = 11 : i64} {
  func.func @_dw_kernel(%arg0: i32, %arg1: memref<9x16x128xbf16, #tpu.memory_space<vmem>>, %arg2: memref<9x1x128xf32, #tpu.memory_space<vmem>>, %arg3: memref<1x128xf32, #tpu.memory_space<vmem>>, %arg4: memref<1x128xf32, #tpu.memory_space<vmem>>, %arg5: memref<16x128xbf16, #tpu.memory_space<vmem>>) attributes {dimension_semantics = [#tpu.dimension_semantics<parallel>], iteration_bounds = array<i64: 1>, scalar_prefetch = 0 : i64, scratch_operands = 0 : i64, tpu.core_type = #tpu.core_type<tc>, window_params = [{transform_indices = @transform_0, window_bounds = array<i64: 9, 16, 128>}, {pipeline_mode = #tpu.pipeline_mode<synchronous>, transform_indices = @transform_1, window_bounds = array<i64: 9, 1, 128>}, {pipeline_mode = #tpu.pipeline_mode<synchronous>, transform_indices = @transform_2, window_bounds = array<i64: 1, 128>}, {pipeline_mode = #tpu.pipeline_mode<synchronous>, transform_indices = @transform_3, window_bounds = array<i64: 1, 128>}, {transform_indices = @transform_4, window_bounds = array<i64: 16, 128>}]} {
    %c0 = arith.constant 0 : index
    %c0_0 = arith.constant 0 : index
    %c0_1 = arith.constant 0 : index
    %0 = vector.load %arg1[%c0, %c0_0, %c0_1] : memref<9x16x128xbf16, #tpu.memory_space<vmem>>, vector<1x16x128xbf16>
    %1 = vector.shape_cast %0 : vector<1x16x128xbf16> to vector<16x128xbf16>
    %2 = arith.extf %1 : vector<16x128xbf16> to vector<16x128xf32>
    %c0_2 = arith.constant 0 : index
    %c0_3 = arith.constant 0 : index
    %c0_4 = arith.constant 0 : index
    %3 = vector.load %arg2[%c0_2, %c0_3, %c0_4] : memref<9x1x128xf32, #tpu.memory_space<vmem>>, vector<1x1x128xf32>
    %4 = vector.shape_cast %3 : vector<1x1x128xf32> to vector<1x128xf32>
    %5 = vector.broadcast %4 : vector<1x128xf32> to vector<16x128xf32>
    %6 = arith.mulf %2, %5 : vector<16x128xf32>
    %c1 = arith.constant 1 : index
    %c0_5 = arith.constant 0 : index
    %c0_6 = arith.constant 0 : index
    %7 = vector.load %arg1[%c1, %c0_5, %c0_6] : memref<9x16x128xbf16, #tpu.memory_space<vmem>>, vector<1x16x128xbf16>
    %8 = vector.shape_cast %7 : vector<1x16x128xbf16> to vector<16x128xbf16>
    %9 = arith.extf %8 : vector<16x128xbf16> to vector<16x128xf32>
    %c1_7 = arith.constant 1 : index
    %c0_8 = arith.constant 0 : index
    %c0_9 = arith.constant 0 : index
    %10 = vector.load %arg2[%c1_7, %c0_8, %c0_9] : memref<9x1x128xf32, #tpu.memory_space<vmem>>, vector<1x1x128xf32>
    %11 = vector.shape_cast %10 : vector<1x1x128xf32> to vector<1x128xf32>
    %12 = vector.broadcast %11 : vector<1x128xf32> to vector<16x128xf32>
    %13 = arith.mulf %9, %12 : vector<16x128xf32>
    %14 = arith.addf %6, %13 : vector<16x128xf32>
    %c2 = arith.constant 2 : index
    %c0_10 = arith.constant 0 : index
    %c0_11 = arith.constant 0 : index
    %15 = vector.load %arg1[%c2, %c0_10, %c0_11] : memref<9x16x128xbf16, #tpu.memory_space<vmem>>, vector<1x16x128xbf16>
    %16 = vector.shape_cast %15 : vector<1x16x128xbf16> to vector<16x128xbf16>
    %17 = arith.extf %16 : vector<16x128xbf16> to vector<16x128xf32>
    %c2_12 = arith.constant 2 : index
    %c0_13 = arith.constant 0 : index
    %c0_14 = arith.constant 0 : index
    %18 = vector.load %arg2[%c2_12, %c0_13, %c0_14] : memref<9x1x128xf32, #tpu.memory_space<vmem>>, vector<1x1x128xf32>
    %19 = vector.shape_cast %18 : vector<1x1x128xf32> to vector<1x128xf32>
    %20 = vector.broadcast %19 : vector<1x128xf32> to vector<16x128xf32>
    %21 = arith.mulf %17, %20 : vector<16x128xf32>
    %22 = arith.addf %14, %21 : vector<16x128xf32>
    %c3 = arith.constant 3 : index
    %c0_15 = arith.constant 0 : index
    %c0_16 = arith.constant 0 : index
    %23 = vector.load %arg1[%c3, %c0_15, %c0_16] : memref<9x16x128xbf16, #tpu.memory_space<vmem>>, vector<1x16x128xbf16>
    %24 = vector.shape_cast %23 : vector<1x16x128xbf16> to vector<16x128xbf16>
    %25 = arith.extf %24 : vector<16x128xbf16> to vector<16x128xf32>
    %c3_17 = arith.constant 3 : index
    %c0_18 = arith.constant 0 : index
    %c0_19 = arith.constant 0 : index
    %26 = vector.load %arg2[%c3_17, %c0_18, %c0_19] : memref<9x1x128xf32, #tpu.memory_space<vmem>>, vector<1x1x128xf32>
    %27 = vector.shape_cast %26 : vector<1x1x128xf32> to vector<1x128xf32>
    %28 = vector.broadcast %27 : vector<1x128xf32> to vector<16x128xf32>
    %29 = arith.mulf %25, %28 : vector<16x128xf32>
    %30 = arith.addf %22, %29 : vector<16x128xf32>
    %c4 = arith.constant 4 : index
    %c0_20 = arith.constant 0 : index
    %c0_21 = arith.constant 0 : index
    %31 = vector.load %arg1[%c4, %c0_20, %c0_21] : memref<9x16x128xbf16, #tpu.memory_space<vmem>>, vector<1x16x128xbf16>
    %32 = vector.shape_cast %31 : vector<1x16x128xbf16> to vector<16x128xbf16>
    %33 = arith.extf %32 : vector<16x128xbf16> to vector<16x128xf32>
    %c4_22 = arith.constant 4 : index
    %c0_23 = arith.constant 0 : index
    %c0_24 = arith.constant 0 : index
    %34 = vector.load %arg2[%c4_22, %c0_23, %c0_24] : memref<9x1x128xf32, #tpu.memory_space<vmem>>, vector<1x1x128xf32>
    %35 = vector.shape_cast %34 : vector<1x1x128xf32> to vector<1x128xf32>
    %36 = vector.broadcast %35 : vector<1x128xf32> to vector<16x128xf32>
    %37 = arith.mulf %33, %36 : vector<16x128xf32>
    %38 = arith.addf %30, %37 : vector<16x128xf32>
    %c5 = arith.constant 5 : index
    %c0_25 = arith.constant 0 : index
    %c0_26 = arith.constant 0 : index
    %39 = vector.load %arg1[%c5, %c0_25, %c0_26] : memref<9x16x128xbf16, #tpu.memory_space<vmem>>, vector<1x16x128xbf16>
    %40 = vector.shape_cast %39 : vector<1x16x128xbf16> to vector<16x128xbf16>
    %41 = arith.extf %40 : vector<16x128xbf16> to vector<16x128xf32>
    %c5_27 = arith.constant 5 : index
    %c0_28 = arith.constant 0 : index
    %c0_29 = arith.constant 0 : index
    %42 = vector.load %arg2[%c5_27, %c0_28, %c0_29] : memref<9x1x128xf32, #tpu.memory_space<vmem>>, vector<1x1x128xf32>
    %43 = vector.shape_cast %42 : vector<1x1x128xf32> to vector<1x128xf32>
    %44 = vector.broadcast %43 : vector<1x128xf32> to vector<16x128xf32>
    %45 = arith.mulf %41, %44 : vector<16x128xf32>
    %46 = arith.addf %38, %45 : vector<16x128xf32>
    %c6 = arith.constant 6 : index
    %c0_30 = arith.constant 0 : index
    %c0_31 = arith.constant 0 : index
    %47 = vector.load %arg1[%c6, %c0_30, %c0_31] : memref<9x16x128xbf16, #tpu.memory_space<vmem>>, vector<1x16x128xbf16>
    %48 = vector.shape_cast %47 : vector<1x16x128xbf16> to vector<16x128xbf16>
    %49 = arith.extf %48 : vector<16x128xbf16> to vector<16x128xf32>
    %c6_32 = arith.constant 6 : index
    %c0_33 = arith.constant 0 : index
    %c0_34 = arith.constant 0 : index
    %50 = vector.load %arg2[%c6_32, %c0_33, %c0_34] : memref<9x1x128xf32, #tpu.memory_space<vmem>>, vector<1x1x128xf32>
    %51 = vector.shape_cast %50 : vector<1x1x128xf32> to vector<1x128xf32>
    %52 = vector.broadcast %51 : vector<1x128xf32> to vector<16x128xf32>
    %53 = arith.mulf %49, %52 : vector<16x128xf32>
    %54 = arith.addf %46, %53 : vector<16x128xf32>
    %c7 = arith.constant 7 : index
    %c0_35 = arith.constant 0 : index
    %c0_36 = arith.constant 0 : index
    %55 = vector.load %arg1[%c7, %c0_35, %c0_36] : memref<9x16x128xbf16, #tpu.memory_space<vmem>>, vector<1x16x128xbf16>
    %56 = vector.shape_cast %55 : vector<1x16x128xbf16> to vector<16x128xbf16>
    %57 = arith.extf %56 : vector<16x128xbf16> to vector<16x128xf32>
    %c7_37 = arith.constant 7 : index
    %c0_38 = arith.constant 0 : index
    %c0_39 = arith.constant 0 : index
    %58 = vector.load %arg2[%c7_37, %c0_38, %c0_39] : memref<9x1x128xf32, #tpu.memory_space<vmem>>, vector<1x1x128xf32>
    %59 = vector.shape_cast %58 : vector<1x1x128xf32> to vector<1x128xf32>
    %60 = vector.broadcast %59 : vector<1x128xf32> to vector<16x128xf32>
    %61 = arith.mulf %57, %60 : vector<16x128xf32>
    %62 = arith.addf %54, %61 : vector<16x128xf32>
    %c8 = arith.constant 8 : index
    %c0_40 = arith.constant 0 : index
    %c0_41 = arith.constant 0 : index
    %63 = vector.load %arg1[%c8, %c0_40, %c0_41] : memref<9x16x128xbf16, #tpu.memory_space<vmem>>, vector<1x16x128xbf16>
    %64 = vector.shape_cast %63 : vector<1x16x128xbf16> to vector<16x128xbf16>
    %65 = arith.extf %64 : vector<16x128xbf16> to vector<16x128xf32>
    %c8_42 = arith.constant 8 : index
    %c0_43 = arith.constant 0 : index
    %c0_44 = arith.constant 0 : index
    %66 = vector.load %arg2[%c8_42, %c0_43, %c0_44] : memref<9x1x128xf32, #tpu.memory_space<vmem>>, vector<1x1x128xf32>
    %67 = vector.shape_cast %66 : vector<1x1x128xf32> to vector<1x128xf32>
    %68 = vector.broadcast %67 : vector<1x128xf32> to vector<16x128xf32>
    %69 = arith.mulf %65, %68 : vector<16x128xf32>
    %70 = arith.addf %62, %69 : vector<16x128xf32>
    %c0_45 = arith.constant 0 : index
    %c0_46 = arith.constant 0 : index
    %71 = vector.load %arg3[%c0_45, %c0_46] : memref<1x128xf32, #tpu.memory_space<vmem>>, vector<1x128xf32>
    %72 = vector.broadcast %71 : vector<1x128xf32> to vector<16x128xf32>
    %73 = arith.mulf %70, %72 : vector<16x128xf32>
    %c0_47 = arith.constant 0 : index
    %c0_48 = arith.constant 0 : index
    %74 = vector.load %arg4[%c0_47, %c0_48] : memref<1x128xf32, #tpu.memory_space<vmem>>, vector<1x128xf32>
    %75 = vector.broadcast %74 : vector<1x128xf32> to vector<16x128xf32>
    %76 = arith.addf %73, %75 : vector<16x128xf32>
    %77 = arith.truncf %76 : vector<16x128xf32> to vector<16x128xbf16>
    %c0_49 = arith.constant 0 : index
    %c0_50 = arith.constant 0 : index
    %78 = vector.load %arg5[%c0_49, %c0_50] : memref<16x128xbf16, #tpu.memory_space<vmem>>, vector<16x128xbf16>
    tpu.vector_store %arg5[%c0_49, %c0_50], %77 {strides = array<i32>} : memref<16x128xbf16, #tpu.memory_space<vmem>>, vector<16x128xbf16>,
    return
  }
  func.func @transform_0(%arg0: i32) -> (i32, i32, i32) {
    %c0_i32 = arith.constant 0 : i32
    %c0_i32_0 = arith.constant 0 : i32
    %c0_i32_1 = arith.constant 0 : i32
    return %c0_i32, %arg0, %c0_i32_0 : i32, i32, i32
  }
  func.func @transform_1(%arg0: i32) -> (i32, i32, i32) {
    %c0_i32 = arith.constant 0 : i32
    %c0_i32_0 = arith.constant 0 : i32
    %c0_i32_1 = arith.constant 0 : i32
    %c0_i32_2 = arith.constant 0 : i32
    return %c0_i32, %c0_i32_0, %c0_i32_1 : i32, i32, i32
  }
  func.func @transform_2(%arg0: i32) -> (i32, i32) {
    %c0_i32 = arith.constant 0 : i32
    %c0_i32_0 = arith.constant 0 : i32
    %c0_i32_1 = arith.constant 0 : i32
    return %c0_i32, %c0_i32_0 : i32, i32
  }
  func.func @transform_3(%arg0: i32) -> (i32, i32) {
    %c0_i32 = arith.constant 0 : i32
    %c0_i32_0 = arith.constant 0 : i32
    %c0_i32_1 = arith.constant 0 : i32
    return %c0_i32, %c0_i32_0 : i32, i32
  }
  func.func @transform_4(%arg0: i32) -> (i32, i32) {
    %c0_i32 = arith.constant 0 : i32
    %c0_i32_0 = arith.constant 0 : i32
    return %arg0, %c0_i32 : i32, i32
  }
}

module attributes {stable_mosaic.version = 11 : i64} {
  func.func @_dw_kernel(%arg0: i32, %arg1: memref<25x16x128xbf16, #tpu.memory_space<vmem>>, %arg2: memref<25x1x128xf32, #tpu.memory_space<vmem>>, %arg3: memref<1x128xf32, #tpu.memory_space<vmem>>, %arg4: memref<1x128xf32, #tpu.memory_space<vmem>>, %arg5: memref<16x128xbf16, #tpu.memory_space<vmem>>) attributes {dimension_semantics = [#tpu.dimension_semantics<parallel>], iteration_bounds = array<i64: 1>, scalar_prefetch = 0 : i64, scratch_operands = 0 : i64, tpu.core_type = #tpu.core_type<tc>, window_params = [{transform_indices = @transform_0, window_bounds = array<i64: 25, 16, 128>}, {pipeline_mode = #tpu.pipeline_mode<synchronous>, transform_indices = @transform_1, window_bounds = array<i64: 25, 1, 128>}, {pipeline_mode = #tpu.pipeline_mode<synchronous>, transform_indices = @transform_2, window_bounds = array<i64: 1, 128>}, {pipeline_mode = #tpu.pipeline_mode<synchronous>, transform_indices = @transform_3, window_bounds = array<i64: 1, 128>}, {transform_indices = @transform_4, window_bounds = array<i64: 16, 128>}]} {
    %c0 = arith.constant 0 : index
    %c0_0 = arith.constant 0 : index
    %c0_1 = arith.constant 0 : index
    %0 = vector.load %arg1[%c0, %c0_0, %c0_1] : memref<25x16x128xbf16, #tpu.memory_space<vmem>>, vector<1x16x128xbf16>
    %1 = vector.shape_cast %0 : vector<1x16x128xbf16> to vector<16x128xbf16>
    %2 = arith.extf %1 : vector<16x128xbf16> to vector<16x128xf32>
    %c0_2 = arith.constant 0 : index
    %c0_3 = arith.constant 0 : index
    %c0_4 = arith.constant 0 : index
    %3 = vector.load %arg2[%c0_2, %c0_3, %c0_4] : memref<25x1x128xf32, #tpu.memory_space<vmem>>, vector<1x1x128xf32>
    %4 = vector.shape_cast %3 : vector<1x1x128xf32> to vector<1x128xf32>
    %5 = vector.broadcast %4 : vector<1x128xf32> to vector<16x128xf32>
    %6 = arith.mulf %2, %5 : vector<16x128xf32>
    %c1 = arith.constant 1 : index
    %c0_5 = arith.constant 0 : index
    %c0_6 = arith.constant 0 : index
    %7 = vector.load %arg1[%c1, %c0_5, %c0_6] : memref<25x16x128xbf16, #tpu.memory_space<vmem>>, vector<1x16x128xbf16>
    %8 = vector.shape_cast %7 : vector<1x16x128xbf16> to vector<16x128xbf16>
    %9 = arith.extf %8 : vector<16x128xbf16> to vector<16x128xf32>
    %c1_7 = arith.constant 1 : index
    %c0_8 = arith.constant 0 : index
    %c0_9 = arith.constant 0 : index
    %10 = vector.load %arg2[%c1_7, %c0_8, %c0_9] : memref<25x1x128xf32, #tpu.memory_space<vmem>>, vector<1x1x128xf32>
    %11 = vector.shape_cast %10 : vector<1x1x128xf32> to vector<1x128xf32>
    %12 = vector.broadcast %11 : vector<1x128xf32> to vector<16x128xf32>
    %13 = arith.mulf %9, %12 : vector<16x128xf32>
    %14 = arith.addf %6, %13 : vector<16x128xf32>
    %c2 = arith.constant 2 : index
    %c0_10 = arith.constant 0 : index
    %c0_11 = arith.constant 0 : index
    %15 = vector.load %arg1[%c2, %c0_10, %c0_11] : memref<25x16x128xbf16, #tpu.memory_space<vmem>>, vector<1x16x128xbf16>
    %16 = vector.shape_cast %15 : vector<1x16x128xbf16> to vector<16x128xbf16>
    %17 = arith.extf %16 : vector<16x128xbf16> to vector<16x128xf32>
    %c2_12 = arith.constant 2 : index
    %c0_13 = arith.constant 0 : index
    %c0_14 = arith.constant 0 : index
    %18 = vector.load %arg2[%c2_12, %c0_13, %c0_14] : memref<25x1x128xf32, #tpu.memory_space<vmem>>, vector<1x1x128xf32>
    %19 = vector.shape_cast %18 : vector<1x1x128xf32> to vector<1x128xf32>
    %20 = vector.broadcast %19 : vector<1x128xf32> to vector<16x128xf32>
    %21 = arith.mulf %17, %20 : vector<16x128xf32>
    %22 = arith.addf %14, %21 : vector<16x128xf32>
    %c3 = arith.constant 3 : index
    %c0_15 = arith.constant 0 : index
    %c0_16 = arith.constant 0 : index
    %23 = vector.load %arg1[%c3, %c0_15, %c0_16] : memref<25x16x128xbf16, #tpu.memory_space<vmem>>, vector<1x16x128xbf16>
    %24 = vector.shape_cast %23 : vector<1x16x128xbf16> to vector<16x128xbf16>
    %25 = arith.extf %24 : vector<16x128xbf16> to vector<16x128xf32>
    %c3_17 = arith.constant 3 : index
    %c0_18 = arith.constant 0 : index
    %c0_19 = arith.constant 0 : index
    %26 = vector.load %arg2[%c3_17, %c0_18, %c0_19] : memref<25x1x128xf32, #tpu.memory_space<vmem>>, vector<1x1x128xf32>
    %27 = vector.shape_cast %26 : vector<1x1x128xf32> to vector<1x128xf32>
    %28 = vector.broadcast %27 : vector<1x128xf32> to vector<16x128xf32>
    %29 = arith.mulf %25, %28 : vector<16x128xf32>
    %30 = arith.addf %22, %29 : vector<16x128xf32>
    %c4 = arith.constant 4 : index
    %c0_20 = arith.constant 0 : index
    %c0_21 = arith.constant 0 : index
    %31 = vector.load %arg1[%c4, %c0_20, %c0_21] : memref<25x16x128xbf16, #tpu.memory_space<vmem>>, vector<1x16x128xbf16>
    %32 = vector.shape_cast %31 : vector<1x16x128xbf16> to vector<16x128xbf16>
    %33 = arith.extf %32 : vector<16x128xbf16> to vector<16x128xf32>
    %c4_22 = arith.constant 4 : index
    %c0_23 = arith.constant 0 : index
    %c0_24 = arith.constant 0 : index
    %34 = vector.load %arg2[%c4_22, %c0_23, %c0_24] : memref<25x1x128xf32, #tpu.memory_space<vmem>>, vector<1x1x128xf32>
    %35 = vector.shape_cast %34 : vector<1x1x128xf32> to vector<1x128xf32>
    %36 = vector.broadcast %35 : vector<1x128xf32> to vector<16x128xf32>
    %37 = arith.mulf %33, %36 : vector<16x128xf32>
    %38 = arith.addf %30, %37 : vector<16x128xf32>
    %c5 = arith.constant 5 : index
    %c0_25 = arith.constant 0 : index
    %c0_26 = arith.constant 0 : index
    %39 = vector.load %arg1[%c5, %c0_25, %c0_26] : memref<25x16x128xbf16, #tpu.memory_space<vmem>>, vector<1x16x128xbf16>
    %40 = vector.shape_cast %39 : vector<1x16x128xbf16> to vector<16x128xbf16>
    %41 = arith.extf %40 : vector<16x128xbf16> to vector<16x128xf32>
    %c5_27 = arith.constant 5 : index
    %c0_28 = arith.constant 0 : index
    %c0_29 = arith.constant 0 : index
    %42 = vector.load %arg2[%c5_27, %c0_28, %c0_29] : memref<25x1x128xf32, #tpu.memory_space<vmem>>, vector<1x1x128xf32>
    %43 = vector.shape_cast %42 : vector<1x1x128xf32> to vector<1x128xf32>
    %44 = vector.broadcast %43 : vector<1x128xf32> to vector<16x128xf32>
    %45 = arith.mulf %41, %44 : vector<16x128xf32>
    %46 = arith.addf %38, %45 : vector<16x128xf32>
    %c6 = arith.constant 6 : index
    %c0_30 = arith.constant 0 : index
    %c0_31 = arith.constant 0 : index
    %47 = vector.load %arg1[%c6, %c0_30, %c0_31] : memref<25x16x128xbf16, #tpu.memory_space<vmem>>, vector<1x16x128xbf16>
    %48 = vector.shape_cast %47 : vector<1x16x128xbf16> to vector<16x128xbf16>
    %49 = arith.extf %48 : vector<16x128xbf16> to vector<16x128xf32>
    %c6_32 = arith.constant 6 : index
    %c0_33 = arith.constant 0 : index
    %c0_34 = arith.constant 0 : index
    %50 = vector.load %arg2[%c6_32, %c0_33, %c0_34] : memref<25x1x128xf32, #tpu.memory_space<vmem>>, vector<1x1x128xf32>
    %51 = vector.shape_cast %50 : vector<1x1x128xf32> to vector<1x128xf32>
    %52 = vector.broadcast %51 : vector<1x128xf32> to vector<16x128xf32>
    %53 = arith.mulf %49, %52 : vector<16x128xf32>
    %54 = arith.addf %46, %53 : vector<16x128xf32>
    %c7 = arith.constant 7 : index
    %c0_35 = arith.constant 0 : index
    %c0_36 = arith.constant 0 : index
    %55 = vector.load %arg1[%c7, %c0_35, %c0_36] : memref<25x16x128xbf16, #tpu.memory_space<vmem>>, vector<1x16x128xbf16>
    %56 = vector.shape_cast %55 : vector<1x16x128xbf16> to vector<16x128xbf16>
    %57 = arith.extf %56 : vector<16x128xbf16> to vector<16x128xf32>
    %c7_37 = arith.constant 7 : index
    %c0_38 = arith.constant 0 : index
    %c0_39 = arith.constant 0 : index
    %58 = vector.load %arg2[%c7_37, %c0_38, %c0_39] : memref<25x1x128xf32, #tpu.memory_space<vmem>>, vector<1x1x128xf32>
    %59 = vector.shape_cast %58 : vector<1x1x128xf32> to vector<1x128xf32>
    %60 = vector.broadcast %59 : vector<1x128xf32> to vector<16x128xf32>
    %61 = arith.mulf %57, %60 : vector<16x128xf32>
    %62 = arith.addf %54, %61 : vector<16x128xf32>
    %c8 = arith.constant 8 : index
    %c0_40 = arith.constant 0 : index
    %c0_41 = arith.constant 0 : index
    %63 = vector.load %arg1[%c8, %c0_40, %c0_41] : memref<25x16x128xbf16, #tpu.memory_space<vmem>>, vector<1x16x128xbf16>
    %64 = vector.shape_cast %63 : vector<1x16x128xbf16> to vector<16x128xbf16>
    %65 = arith.extf %64 : vector<16x128xbf16> to vector<16x128xf32>
    %c8_42 = arith.constant 8 : index
    %c0_43 = arith.constant 0 : index
    %c0_44 = arith.constant 0 : index
    %66 = vector.load %arg2[%c8_42, %c0_43, %c0_44] : memref<25x1x128xf32, #tpu.memory_space<vmem>>, vector<1x1x128xf32>
    %67 = vector.shape_cast %66 : vector<1x1x128xf32> to vector<1x128xf32>
    %68 = vector.broadcast %67 : vector<1x128xf32> to vector<16x128xf32>
    %69 = arith.mulf %65, %68 : vector<16x128xf32>
    %70 = arith.addf %62, %69 : vector<16x128xf32>
    %c9 = arith.constant 9 : index
    %c0_45 = arith.constant 0 : index
    %c0_46 = arith.constant 0 : index
    %71 = vector.load %arg1[%c9, %c0_45, %c0_46] : memref<25x16x128xbf16, #tpu.memory_space<vmem>>, vector<1x16x128xbf16>
    %72 = vector.shape_cast %71 : vector<1x16x128xbf16> to vector<16x128xbf16>
    %73 = arith.extf %72 : vector<16x128xbf16> to vector<16x128xf32>
    %c9_47 = arith.constant 9 : index
    %c0_48 = arith.constant 0 : index
    %c0_49 = arith.constant 0 : index
    %74 = vector.load %arg2[%c9_47, %c0_48, %c0_49] : memref<25x1x128xf32, #tpu.memory_space<vmem>>, vector<1x1x128xf32>
    %75 = vector.shape_cast %74 : vector<1x1x128xf32> to vector<1x128xf32>
    %76 = vector.broadcast %75 : vector<1x128xf32> to vector<16x128xf32>
    %77 = arith.mulf %73, %76 : vector<16x128xf32>
    %78 = arith.addf %70, %77 : vector<16x128xf32>
    %c10 = arith.constant 10 : index
    %c0_50 = arith.constant 0 : index
    %c0_51 = arith.constant 0 : index
    %79 = vector.load %arg1[%c10, %c0_50, %c0_51] : memref<25x16x128xbf16, #tpu.memory_space<vmem>>, vector<1x16x128xbf16>
    %80 = vector.shape_cast %79 : vector<1x16x128xbf16> to vector<16x128xbf16>
    %81 = arith.extf %80 : vector<16x128xbf16> to vector<16x128xf32>
    %c10_52 = arith.constant 10 : index
    %c0_53 = arith.constant 0 : index
    %c0_54 = arith.constant 0 : index
    %82 = vector.load %arg2[%c10_52, %c0_53, %c0_54] : memref<25x1x128xf32, #tpu.memory_space<vmem>>, vector<1x1x128xf32>
    %83 = vector.shape_cast %82 : vector<1x1x128xf32> to vector<1x128xf32>
    %84 = vector.broadcast %83 : vector<1x128xf32> to vector<16x128xf32>
    %85 = arith.mulf %81, %84 : vector<16x128xf32>
    %86 = arith.addf %78, %85 : vector<16x128xf32>
    %c11 = arith.constant 11 : index
    %c0_55 = arith.constant 0 : index
    %c0_56 = arith.constant 0 : index
    %87 = vector.load %arg1[%c11, %c0_55, %c0_56] : memref<25x16x128xbf16, #tpu.memory_space<vmem>>, vector<1x16x128xbf16>
    %88 = vector.shape_cast %87 : vector<1x16x128xbf16> to vector<16x128xbf16>
    %89 = arith.extf %88 : vector<16x128xbf16> to vector<16x128xf32>
    %c11_57 = arith.constant 11 : index
    %c0_58 = arith.constant 0 : index
    %c0_59 = arith.constant 0 : index
    %90 = vector.load %arg2[%c11_57, %c0_58, %c0_59] : memref<25x1x128xf32, #tpu.memory_space<vmem>>, vector<1x1x128xf32>
    %91 = vector.shape_cast %90 : vector<1x1x128xf32> to vector<1x128xf32>
    %92 = vector.broadcast %91 : vector<1x128xf32> to vector<16x128xf32>
    %93 = arith.mulf %89, %92 : vector<16x128xf32>
    %94 = arith.addf %86, %93 : vector<16x128xf32>
    %c12 = arith.constant 12 : index
    %c0_60 = arith.constant 0 : index
    %c0_61 = arith.constant 0 : index
    %95 = vector.load %arg1[%c12, %c0_60, %c0_61] : memref<25x16x128xbf16, #tpu.memory_space<vmem>>, vector<1x16x128xbf16>
    %96 = vector.shape_cast %95 : vector<1x16x128xbf16> to vector<16x128xbf16>
    %97 = arith.extf %96 : vector<16x128xbf16> to vector<16x128xf32>
    %c12_62 = arith.constant 12 : index
    %c0_63 = arith.constant 0 : index
    %c0_64 = arith.constant 0 : index
    %98 = vector.load %arg2[%c12_62, %c0_63, %c0_64] : memref<25x1x128xf32, #tpu.memory_space<vmem>>, vector<1x1x128xf32>
    %99 = vector.shape_cast %98 : vector<1x1x128xf32> to vector<1x128xf32>
    %100 = vector.broadcast %99 : vector<1x128xf32> to vector<16x128xf32>
    %101 = arith.mulf %97, %100 : vector<16x128xf32>
    %102 = arith.addf %94, %101 : vector<16x128xf32>
    %c13 = arith.constant 13 : index
    %c0_65 = arith.constant 0 : index
    %c0_66 = arith.constant 0 : index
    %103 = vector.load %arg1[%c13, %c0_65, %c0_66] : memref<25x16x128xbf16, #tpu.memory_space<vmem>>, vector<1x16x128xbf16>
    %104 = vector.shape_cast %103 : vector<1x16x128xbf16> to vector<16x128xbf16>
    %105 = arith.extf %104 : vector<16x128xbf16> to vector<16x128xf32>
    %c13_67 = arith.constant 13 : index
    %c0_68 = arith.constant 0 : index
    %c0_69 = arith.constant 0 : index
    %106 = vector.load %arg2[%c13_67, %c0_68, %c0_69] : memref<25x1x128xf32, #tpu.memory_space<vmem>>, vector<1x1x128xf32>
    %107 = vector.shape_cast %106 : vector<1x1x128xf32> to vector<1x128xf32>
    %108 = vector.broadcast %107 : vector<1x128xf32> to vector<16x128xf32>
    %109 = arith.mulf %105, %108 : vector<16x128xf32>
    %110 = arith.addf %102, %109 : vector<16x128xf32>
    %c14 = arith.constant 14 : index
    %c0_70 = arith.constant 0 : index
    %c0_71 = arith.constant 0 : index
    %111 = vector.load %arg1[%c14, %c0_70, %c0_71] : memref<25x16x128xbf16, #tpu.memory_space<vmem>>, vector<1x16x128xbf16>
    %112 = vector.shape_cast %111 : vector<1x16x128xbf16> to vector<16x128xbf16>
    %113 = arith.extf %112 : vector<16x128xbf16> to vector<16x128xf32>
    %c14_72 = arith.constant 14 : index
    %c0_73 = arith.constant 0 : index
    %c0_74 = arith.constant 0 : index
    %114 = vector.load %arg2[%c14_72, %c0_73, %c0_74] : memref<25x1x128xf32, #tpu.memory_space<vmem>>, vector<1x1x128xf32>
    %115 = vector.shape_cast %114 : vector<1x1x128xf32> to vector<1x128xf32>
    %116 = vector.broadcast %115 : vector<1x128xf32> to vector<16x128xf32>
    %117 = arith.mulf %113, %116 : vector<16x128xf32>
    %118 = arith.addf %110, %117 : vector<16x128xf32>
    %c15 = arith.constant 15 : index
    %c0_75 = arith.constant 0 : index
    %c0_76 = arith.constant 0 : index
    %119 = vector.load %arg1[%c15, %c0_75, %c0_76] : memref<25x16x128xbf16, #tpu.memory_space<vmem>>, vector<1x16x128xbf16>
    %120 = vector.shape_cast %119 : vector<1x16x128xbf16> to vector<16x128xbf16>
    %121 = arith.extf %120 : vector<16x128xbf16> to vector<16x128xf32>
    %c15_77 = arith.constant 15 : index
    %c0_78 = arith.constant 0 : index
    %c0_79 = arith.constant 0 : index
    %122 = vector.load %arg2[%c15_77, %c0_78, %c0_79] : memref<25x1x128xf32, #tpu.memory_space<vmem>>, vector<1x1x128xf32>
    %123 = vector.shape_cast %122 : vector<1x1x128xf32> to vector<1x128xf32>
    %124 = vector.broadcast %123 : vector<1x128xf32> to vector<16x128xf32>
    %125 = arith.mulf %121, %124 : vector<16x128xf32>
    %126 = arith.addf %118, %125 : vector<16x128xf32>
    %c16 = arith.constant 16 : index
    %c0_80 = arith.constant 0 : index
    %c0_81 = arith.constant 0 : index
    %127 = vector.load %arg1[%c16, %c0_80, %c0_81] : memref<25x16x128xbf16, #tpu.memory_space<vmem>>, vector<1x16x128xbf16>
    %128 = vector.shape_cast %127 : vector<1x16x128xbf16> to vector<16x128xbf16>
    %129 = arith.extf %128 : vector<16x128xbf16> to vector<16x128xf32>
    %c16_82 = arith.constant 16 : index
    %c0_83 = arith.constant 0 : index
    %c0_84 = arith.constant 0 : index
    %130 = vector.load %arg2[%c16_82, %c0_83, %c0_84] : memref<25x1x128xf32, #tpu.memory_space<vmem>>, vector<1x1x128xf32>
    %131 = vector.shape_cast %130 : vector<1x1x128xf32> to vector<1x128xf32>
    %132 = vector.broadcast %131 : vector<1x128xf32> to vector<16x128xf32>
    %133 = arith.mulf %129, %132 : vector<16x128xf32>
    %134 = arith.addf %126, %133 : vector<16x128xf32>
    %c17 = arith.constant 17 : index
    %c0_85 = arith.constant 0 : index
    %c0_86 = arith.constant 0 : index
    %135 = vector.load %arg1[%c17, %c0_85, %c0_86] : memref<25x16x128xbf16, #tpu.memory_space<vmem>>, vector<1x16x128xbf16>
    %136 = vector.shape_cast %135 : vector<1x16x128xbf16> to vector<16x128xbf16>
    %137 = arith.extf %136 : vector<16x128xbf16> to vector<16x128xf32>
    %c17_87 = arith.constant 17 : index
    %c0_88 = arith.constant 0 : index
    %c0_89 = arith.constant 0 : index
    %138 = vector.load %arg2[%c17_87, %c0_88, %c0_89] : memref<25x1x128xf32, #tpu.memory_space<vmem>>, vector<1x1x128xf32>
    %139 = vector.shape_cast %138 : vector<1x1x128xf32> to vector<1x128xf32>
    %140 = vector.broadcast %139 : vector<1x128xf32> to vector<16x128xf32>
    %141 = arith.mulf %137, %140 : vector<16x128xf32>
    %142 = arith.addf %134, %141 : vector<16x128xf32>
    %c18 = arith.constant 18 : index
    %c0_90 = arith.constant 0 : index
    %c0_91 = arith.constant 0 : index
    %143 = vector.load %arg1[%c18, %c0_90, %c0_91] : memref<25x16x128xbf16, #tpu.memory_space<vmem>>, vector<1x16x128xbf16>
    %144 = vector.shape_cast %143 : vector<1x16x128xbf16> to vector<16x128xbf16>
    %145 = arith.extf %144 : vector<16x128xbf16> to vector<16x128xf32>
    %c18_92 = arith.constant 18 : index
    %c0_93 = arith.constant 0 : index
    %c0_94 = arith.constant 0 : index
    %146 = vector.load %arg2[%c18_92, %c0_93, %c0_94] : memref<25x1x128xf32, #tpu.memory_space<vmem>>, vector<1x1x128xf32>
    %147 = vector.shape_cast %146 : vector<1x1x128xf32> to vector<1x128xf32>
    %148 = vector.broadcast %147 : vector<1x128xf32> to vector<16x128xf32>
    %149 = arith.mulf %145, %148 : vector<16x128xf32>
    %150 = arith.addf %142, %149 : vector<16x128xf32>
    %c19 = arith.constant 19 : index
    %c0_95 = arith.constant 0 : index
    %c0_96 = arith.constant 0 : index
    %151 = vector.load %arg1[%c19, %c0_95, %c0_96] : memref<25x16x128xbf16, #tpu.memory_space<vmem>>, vector<1x16x128xbf16>
    %152 = vector.shape_cast %151 : vector<1x16x128xbf16> to vector<16x128xbf16>
    %153 = arith.extf %152 : vector<16x128xbf16> to vector<16x128xf32>
    %c19_97 = arith.constant 19 : index
    %c0_98 = arith.constant 0 : index
    %c0_99 = arith.constant 0 : index
    %154 = vector.load %arg2[%c19_97, %c0_98, %c0_99] : memref<25x1x128xf32, #tpu.memory_space<vmem>>, vector<1x1x128xf32>
    %155 = vector.shape_cast %154 : vector<1x1x128xf32> to vector<1x128xf32>
    %156 = vector.broadcast %155 : vector<1x128xf32> to vector<16x128xf32>
    %157 = arith.mulf %153, %156 : vector<16x128xf32>
    %158 = arith.addf %150, %157 : vector<16x128xf32>
    %c20 = arith.constant 20 : index
    %c0_100 = arith.constant 0 : index
    %c0_101 = arith.constant 0 : index
    %159 = vector.load %arg1[%c20, %c0_100, %c0_101] : memref<25x16x128xbf16, #tpu.memory_space<vmem>>, vector<1x16x128xbf16>
    %160 = vector.shape_cast %159 : vector<1x16x128xbf16> to vector<16x128xbf16>
    %161 = arith.extf %160 : vector<16x128xbf16> to vector<16x128xf32>
    %c20_102 = arith.constant 20 : index
    %c0_103 = arith.constant 0 : index
    %c0_104 = arith.constant 0 : index
    %162 = vector.load %arg2[%c20_102, %c0_103, %c0_104] : memref<25x1x128xf32, #tpu.memory_space<vmem>>, vector<1x1x128xf32>
    %163 = vector.shape_cast %162 : vector<1x1x128xf32> to vector<1x128xf32>
    %164 = vector.broadcast %163 : vector<1x128xf32> to vector<16x128xf32>
    %165 = arith.mulf %161, %164 : vector<16x128xf32>
    %166 = arith.addf %158, %165 : vector<16x128xf32>
    %c21 = arith.constant 21 : index
    %c0_105 = arith.constant 0 : index
    %c0_106 = arith.constant 0 : index
    %167 = vector.load %arg1[%c21, %c0_105, %c0_106] : memref<25x16x128xbf16, #tpu.memory_space<vmem>>, vector<1x16x128xbf16>
    %168 = vector.shape_cast %167 : vector<1x16x128xbf16> to vector<16x128xbf16>
    %169 = arith.extf %168 : vector<16x128xbf16> to vector<16x128xf32>
    %c21_107 = arith.constant 21 : index
    %c0_108 = arith.constant 0 : index
    %c0_109 = arith.constant 0 : index
    %170 = vector.load %arg2[%c21_107, %c0_108, %c0_109] : memref<25x1x128xf32, #tpu.memory_space<vmem>>, vector<1x1x128xf32>
    %171 = vector.shape_cast %170 : vector<1x1x128xf32> to vector<1x128xf32>
    %172 = vector.broadcast %171 : vector<1x128xf32> to vector<16x128xf32>
    %173 = arith.mulf %169, %172 : vector<16x128xf32>
    %174 = arith.addf %166, %173 : vector<16x128xf32>
    %c22 = arith.constant 22 : index
    %c0_110 = arith.constant 0 : index
    %c0_111 = arith.constant 0 : index
    %175 = vector.load %arg1[%c22, %c0_110, %c0_111] : memref<25x16x128xbf16, #tpu.memory_space<vmem>>, vector<1x16x128xbf16>
    %176 = vector.shape_cast %175 : vector<1x16x128xbf16> to vector<16x128xbf16>
    %177 = arith.extf %176 : vector<16x128xbf16> to vector<16x128xf32>
    %c22_112 = arith.constant 22 : index
    %c0_113 = arith.constant 0 : index
    %c0_114 = arith.constant 0 : index
    %178 = vector.load %arg2[%c22_112, %c0_113, %c0_114] : memref<25x1x128xf32, #tpu.memory_space<vmem>>, vector<1x1x128xf32>
    %179 = vector.shape_cast %178 : vector<1x1x128xf32> to vector<1x128xf32>
    %180 = vector.broadcast %179 : vector<1x128xf32> to vector<16x128xf32>
    %181 = arith.mulf %177, %180 : vector<16x128xf32>
    %182 = arith.addf %174, %181 : vector<16x128xf32>
    %c23 = arith.constant 23 : index
    %c0_115 = arith.constant 0 : index
    %c0_116 = arith.constant 0 : index
    %183 = vector.load %arg1[%c23, %c0_115, %c0_116] : memref<25x16x128xbf16, #tpu.memory_space<vmem>>, vector<1x16x128xbf16>
    %184 = vector.shape_cast %183 : vector<1x16x128xbf16> to vector<16x128xbf16>
    %185 = arith.extf %184 : vector<16x128xbf16> to vector<16x128xf32>
    %c23_117 = arith.constant 23 : index
    %c0_118 = arith.constant 0 : index
    %c0_119 = arith.constant 0 : index
    %186 = vector.load %arg2[%c23_117, %c0_118, %c0_119] : memref<25x1x128xf32, #tpu.memory_space<vmem>>, vector<1x1x128xf32>
    %187 = vector.shape_cast %186 : vector<1x1x128xf32> to vector<1x128xf32>
    %188 = vector.broadcast %187 : vector<1x128xf32> to vector<16x128xf32>
    %189 = arith.mulf %185, %188 : vector<16x128xf32>
    %190 = arith.addf %182, %189 : vector<16x128xf32>
    %c24 = arith.constant 24 : index
    %c0_120 = arith.constant 0 : index
    %c0_121 = arith.constant 0 : index
    %191 = vector.load %arg1[%c24, %c0_120, %c0_121] : memref<25x16x128xbf16, #tpu.memory_space<vmem>>, vector<1x16x128xbf16>
    %192 = vector.shape_cast %191 : vector<1x16x128xbf16> to vector<16x128xbf16>
    %193 = arith.extf %192 : vector<16x128xbf16> to vector<16x128xf32>
    %c24_122 = arith.constant 24 : index
    %c0_123 = arith.constant 0 : index
    %c0_124 = arith.constant 0 : index
    %194 = vector.load %arg2[%c24_122, %c0_123, %c0_124] : memref<25x1x128xf32, #tpu.memory_space<vmem>>, vector<1x1x128xf32>
    %195 = vector.shape_cast %194 : vector<1x1x128xf32> to vector<1x128xf32>
    %196 = vector.broadcast %195 : vector<1x128xf32> to vector<16x128xf32>
    %197 = arith.mulf %193, %196 : vector<16x128xf32>
    %198 = arith.addf %190, %197 : vector<16x128xf32>
    %c0_125 = arith.constant 0 : index
    %c0_126 = arith.constant 0 : index
    %199 = vector.load %arg3[%c0_125, %c0_126] : memref<1x128xf32, #tpu.memory_space<vmem>>, vector<1x128xf32>
    %200 = vector.broadcast %199 : vector<1x128xf32> to vector<16x128xf32>
    %201 = arith.mulf %198, %200 : vector<16x128xf32>
    %c0_127 = arith.constant 0 : index
    %c0_128 = arith.constant 0 : index
    %202 = vector.load %arg4[%c0_127, %c0_128] : memref<1x128xf32, #tpu.memory_space<vmem>>, vector<1x128xf32>
    %203 = vector.broadcast %202 : vector<1x128xf32> to vector<16x128xf32>
    %204 = arith.addf %201, %203 : vector<16x128xf32>
    %205 = arith.truncf %204 : vector<16x128xf32> to vector<16x128xbf16>
    %c0_129 = arith.constant 0 : index
    %c0_130 = arith.constant 0 : index
    %206 = vector.load %arg5[%c0_129, %c0_130] : memref<16x128xbf16, #tpu.memory_space<vmem>>, vector<16x128xbf16>
    tpu.vector_store %arg5[%c0_129, %c0_130], %205 {strides = array<i32>} : memref<16x128xbf16, #tpu.memory_space<vmem>>, vector<16x128xbf16>,
    return
  }
  func.func @transform_0(%arg0: i32) -> (i32, i32, i32) {
    %c0_i32 = arith.constant 0 : i32
    %c0_i32_0 = arith.constant 0 : i32
    %c0_i32_1 = arith.constant 0 : i32
    return %c0_i32, %arg0, %c0_i32_0 : i32, i32, i32
  }
  func.func @transform_1(%arg0: i32) -> (i32, i32, i32) {
    %c0_i32 = arith.constant 0 : i32
    %c0_i32_0 = arith.constant 0 : i32
    %c0_i32_1 = arith.constant 0 : i32
    %c0_i32_2 = arith.constant 0 : i32
    return %c0_i32, %c0_i32_0, %c0_i32_1 : i32, i32, i32
  }
  func.func @transform_2(%arg0: i32) -> (i32, i32) {
    %c0_i32 = arith.constant 0 : i32
    %c0_i32_0 = arith.constant 0 : i32
    %c0_i32_1 = arith.constant 0 : i32
    return %c0_i32, %c0_i32_0 : i32, i32
  }
  func.func @transform_3(%arg0: i32) -> (i32, i32) {
    %c0_i32 = arith.constant 0 : i32
    %c0_i32_0 = arith.constant 0 : i32
    %c0_i32_1 = arith.constant 0 : i32
    return %c0_i32, %c0_i32_0 : i32, i32
  }
  func.func @transform_4(%arg0: i32) -> (i32, i32) {
    %c0_i32 = arith.constant 0 : i32
    %c0_i32_0 = arith.constant 0 : i32
    return %arg0, %c0_i32 : i32, i32
  }
}

module attributes {stable_mosaic.version = 11 : i64} {
  func.func @_mm_kernel(%arg0: i32, %arg1: memref<128x48xbf16, #tpu.memory_space<vmem>>, %arg2: memref<48x12xbf16, #tpu.memory_space<vmem>>, %arg3: memref<1x12xf32, #tpu.memory_space<vmem>>, %arg4: memref<1x12xf32, #tpu.memory_space<vmem>>, %arg5: memref<128x12xbf16, #tpu.memory_space<vmem>>) attributes {dimension_semantics = [#tpu.dimension_semantics<parallel>], iteration_bounds = array<i64: 2>, scalar_prefetch = 0 : i64, scratch_operands = 0 : i64, tpu.core_type = #tpu.core_type<tc>, window_params = [{transform_indices = @transform_0, window_bounds = array<i64: 128, 48>}, {pipeline_mode = #tpu.pipeline_mode<synchronous>, transform_indices = @transform_1, window_bounds = array<i64: 48, 12>}, {pipeline_mode = #tpu.pipeline_mode<synchronous>, transform_indices = @transform_2, window_bounds = array<i64: 1, 12>}, {pipeline_mode = #tpu.pipeline_mode<synchronous>, transform_indices = @transform_3, window_bounds = array<i64: 1, 12>}, {transform_indices = @transform_4, window_bounds = array<i64: 128, 12>}]} {
    %c0 = arith.constant 0 : index
    %c0_0 = arith.constant 0 : index
    %0 = vector.load %arg1[%c0, %c0_0] : memref<128x48xbf16, #tpu.memory_space<vmem>>, vector<128x48xbf16>
    %c0_1 = arith.constant 0 : index
    %c0_2 = arith.constant 0 : index
    %1 = vector.load %arg2[%c0_1, %c0_2] : memref<48x12xbf16, #tpu.memory_space<vmem>>, vector<48x12xbf16>
    %cst = arith.constant dense<0.000000e+00> : vector<128x12xf32>
    %2 = tpu.matmul %0, %1, %cst {dimension_numbers = #tpu.dot_dimension_numbers<[1], [0], [0], [1], [0, 0, 1, 1], [], []>} : vector<128x48xbf16>, vector<48x12xbf16>, vector<128x12xf32> -> vector<128x12xf32>
    %c0_3 = arith.constant 0 : index
    %c0_4 = arith.constant 0 : index
    %3 = vector.load %arg3[%c0_3, %c0_4] : memref<1x12xf32, #tpu.memory_space<vmem>>, vector<1x12xf32>
    %4 = vector.broadcast %3 : vector<1x12xf32> to vector<128x12xf32>
    %5 = arith.mulf %2, %4 : vector<128x12xf32>
    %c0_5 = arith.constant 0 : index
    %c0_6 = arith.constant 0 : index
    %6 = vector.load %arg4[%c0_5, %c0_6] : memref<1x12xf32, #tpu.memory_space<vmem>>, vector<1x12xf32>
    %7 = vector.broadcast %6 : vector<1x12xf32> to vector<128x12xf32>
    %8 = arith.addf %5, %7 : vector<128x12xf32>
    %9 = arith.truncf %8 : vector<128x12xf32> to vector<128x12xbf16>
    %c0_7 = arith.constant 0 : index
    %c0_8 = arith.constant 0 : index
    %10 = vector.load %arg5[%c0_7, %c0_8] : memref<128x12xbf16, #tpu.memory_space<vmem>>, vector<128x12xbf16>
    tpu.vector_store %arg5[%c0_7, %c0_8], %9 {strides = array<i32>} : memref<128x12xbf16, #tpu.memory_space<vmem>>, vector<128x12xbf16>,
    return
  }
  func.func @transform_0(%arg0: i32) -> (i32, i32) {
    %c0_i32 = arith.constant 0 : i32
    %c0_i32_0 = arith.constant 0 : i32
    return %arg0, %c0_i32 : i32, i32
  }
  func.func @transform_1(%arg0: i32) -> (i32, i32) {
    %c0_i32 = arith.constant 0 : i32
    %c0_i32_0 = arith.constant 0 : i32
    %c0_i32_1 = arith.constant 0 : i32
    return %c0_i32, %c0_i32_0 : i32, i32
  }
  func.func @transform_2(%arg0: i32) -> (i32, i32) {
    %c0_i32 = arith.constant 0 : i32
    %c0_i32_0 = arith.constant 0 : i32
    %c0_i32_1 = arith.constant 0 : i32
    return %c0_i32, %c0_i32_0 : i32, i32
  }
  func.func @transform_3(%arg0: i32) -> (i32, i32) {
    %c0_i32 = arith.constant 0 : i32
    %c0_i32_0 = arith.constant 0 : i32
    %c0_i32_1 = arith.constant 0 : i32
    return %c0_i32, %c0_i32_0 : i32, i32
  }
  func.func @transform_4(%arg0: i32) -> (i32, i32) {
    %c0_i32 = arith.constant 0 : i32
    %c0_i32_0 = arith.constant 0 : i32
    return %arg0, %c0_i32 : i32, i32
  }
}

module attributes {stable_mosaic.version = 11 : i64} {
  func.func @_sattn_res_kernel(%arg0: i32, %arg1: memref<128x12xbf16, #tpu.memory_space<vmem>>, %arg2: memref<128x1xf32, #tpu.memory_space<vmem>>, %arg3: memref<128x12xbf16, #tpu.memory_space<vmem>>, %arg4: memref<128x12xbf16, #tpu.memory_space<vmem>>) attributes {dimension_semantics = [#tpu.dimension_semantics<parallel>], iteration_bounds = array<i64: 2>, scalar_prefetch = 0 : i64, scratch_operands = 0 : i64, tpu.core_type = #tpu.core_type<tc>, window_params = [{transform_indices = @transform_0, window_bounds = array<i64: 128, 12>}, {transform_indices = @transform_1, window_bounds = array<i64: 128, 1>}, {transform_indices = @transform_2, window_bounds = array<i64: 128, 12>}, {transform_indices = @transform_3, window_bounds = array<i64: 128, 12>}]} {
    %c0 = arith.constant 0 : index
    %c0_0 = arith.constant 0 : index
    %0 = vector.load %arg2[%c0, %c0_0] : memref<128x1xf32, #tpu.memory_space<vmem>>, vector<128x1xf32>
    %1 = arith.negf %0 : vector<128x1xf32>
    %2 = math.exp %1 : vector<128x1xf32>
    %cst = arith.constant 1.000000e+00 : f32
    %3 = vector.broadcast %cst : f32 to vector<128x1xf32>
    %4 = arith.addf %3, %2 : vector<128x1xf32>
    %5 = arith.divf %3, %4 : vector<128x1xf32>
    %c0_1 = arith.constant 0 : index
    %c0_2 = arith.constant 0 : index
    %6 = vector.load %arg1[%c0_1, %c0_2] : memref<128x12xbf16, #tpu.memory_space<vmem>>, vector<128x12xbf16>
    %7 = arith.extf %6 : vector<128x12xbf16> to vector<128x12xf32>
    %8 = vector.broadcast %5 : vector<128x1xf32> to vector<128x12xf32>
    %9 = arith.mulf %7, %8 : vector<128x12xf32>
    %c0_3 = arith.constant 0 : index
    %c0_4 = arith.constant 0 : index
    %10 = vector.load %arg3[%c0_3, %c0_4] : memref<128x12xbf16, #tpu.memory_space<vmem>>, vector<128x12xbf16>
    %11 = arith.extf %10 : vector<128x12xbf16> to vector<128x12xf32>
    %12 = arith.addf %9, %11 : vector<128x12xf32>
    %cst_5 = arith.constant 0.000000e+00 : f32
    %13 = vector.broadcast %cst_5 : f32 to vector<128x12xf32>
    %14 = arith.maximumf %12, %13 : vector<128x12xf32>
    %15 = arith.truncf %14 : vector<128x12xf32> to vector<128x12xbf16>
    %c0_6 = arith.constant 0 : index
    %c0_7 = arith.constant 0 : index
    %16 = vector.load %arg4[%c0_6, %c0_7] : memref<128x12xbf16, #tpu.memory_space<vmem>>, vector<128x12xbf16>
    tpu.vector_store %arg4[%c0_6, %c0_7], %15 {strides = array<i32>} : memref<128x12xbf16, #tpu.memory_space<vmem>>, vector<128x12xbf16>,
    return
  }
  func.func @transform_0(%arg0: i32) -> (i32, i32) {
    %c0_i32 = arith.constant 0 : i32
    %c0_i32_0 = arith.constant 0 : i32
    return %arg0, %c0_i32 : i32, i32
  }
  func.func @transform_1(%arg0: i32) -> (i32, i32) {
    %c0_i32 = arith.constant 0 : i32
    %c0_i32_0 = arith.constant 0 : i32
    return %arg0, %c0_i32 : i32, i32
  }
  func.func @transform_2(%arg0: i32) -> (i32, i32) {
    %c0_i32 = arith.constant 0 : i32
    %c0_i32_0 = arith.constant 0 : i32
    return %arg0, %c0_i32 : i32, i32
  }
  func.func @transform_3(%arg0: i32) -> (i32, i32) {
    %c0_i32 = arith.constant 0 : i32
    %c0_i32_0 = arith.constant 0 : i32
    return %arg0, %c0_i32 : i32, i32
  }
}

module attributes {stable_mosaic.version = 11 : i64} {
  func.func @_max_kernel(%arg0: i32, %arg1: memref<9x8x128xbf16, #tpu.memory_space<vmem>>, %arg2: memref<8x128xbf16, #tpu.memory_space<vmem>>) attributes {dimension_semantics = [#tpu.dimension_semantics<parallel>], iteration_bounds = array<i64: 1>, scalar_prefetch = 0 : i64, scratch_operands = 0 : i64, tpu.core_type = #tpu.core_type<tc>, window_params = [{transform_indices = @transform_0, window_bounds = array<i64: 9, 8, 128>}, {transform_indices = @transform_1, window_bounds = array<i64: 8, 128>}]} {
    %c0 = arith.constant 0 : index
    %c0_0 = arith.constant 0 : index
    %c0_1 = arith.constant 0 : index
    %0 = vector.load %arg1[%c0, %c0_0, %c0_1] : memref<9x8x128xbf16, #tpu.memory_space<vmem>>, vector<1x8x128xbf16>
    %1 = vector.shape_cast %0 : vector<1x8x128xbf16> to vector<8x128xbf16>
    %c1 = arith.constant 1 : index
    %c0_2 = arith.constant 0 : index
    %c0_3 = arith.constant 0 : index
    %2 = vector.load %arg1[%c1, %c0_2, %c0_3] : memref<9x8x128xbf16, #tpu.memory_space<vmem>>, vector<1x8x128xbf16>
    %3 = vector.shape_cast %2 : vector<1x8x128xbf16> to vector<8x128xbf16>
    %4 = arith.maximumf %1, %3 : vector<8x128xbf16>
    %c2 = arith.constant 2 : index
    %c0_4 = arith.constant 0 : index
    %c0_5 = arith.constant 0 : index
    %5 = vector.load %arg1[%c2, %c0_4, %c0_5] : memref<9x8x128xbf16, #tpu.memory_space<vmem>>, vector<1x8x128xbf16>
    %6 = vector.shape_cast %5 : vector<1x8x128xbf16> to vector<8x128xbf16>
    %7 = arith.maximumf %4, %6 : vector<8x128xbf16>
    %c3 = arith.constant 3 : index
    %c0_6 = arith.constant 0 : index
    %c0_7 = arith.constant 0 : index
    %8 = vector.load %arg1[%c3, %c0_6, %c0_7] : memref<9x8x128xbf16, #tpu.memory_space<vmem>>, vector<1x8x128xbf16>
    %9 = vector.shape_cast %8 : vector<1x8x128xbf16> to vector<8x128xbf16>
    %10 = arith.maximumf %7, %9 : vector<8x128xbf16>
    %c4 = arith.constant 4 : index
    %c0_8 = arith.constant 0 : index
    %c0_9 = arith.constant 0 : index
    %11 = vector.load %arg1[%c4, %c0_8, %c0_9] : memref<9x8x128xbf16, #tpu.memory_space<vmem>>, vector<1x8x128xbf16>
    %12 = vector.shape_cast %11 : vector<1x8x128xbf16> to vector<8x128xbf16>
    %13 = arith.maximumf %10, %12 : vector<8x128xbf16>
    %c5 = arith.constant 5 : index
    %c0_10 = arith.constant 0 : index
    %c0_11 = arith.constant 0 : index
    %14 = vector.load %arg1[%c5, %c0_10, %c0_11] : memref<9x8x128xbf16, #tpu.memory_space<vmem>>, vector<1x8x128xbf16>
    %15 = vector.shape_cast %14 : vector<1x8x128xbf16> to vector<8x128xbf16>
    %16 = arith.maximumf %13, %15 : vector<8x128xbf16>
    %c6 = arith.constant 6 : index
    %c0_12 = arith.constant 0 : index
    %c0_13 = arith.constant 0 : index
    %17 = vector.load %arg1[%c6, %c0_12, %c0_13] : memref<9x8x128xbf16, #tpu.memory_space<vmem>>, vector<1x8x128xbf16>
    %18 = vector.shape_cast %17 : vector<1x8x128xbf16> to vector<8x128xbf16>
    %19 = arith.maximumf %16, %18 : vector<8x128xbf16>
    %c7 = arith.constant 7 : index
    %c0_14 = arith.constant 0 : index
    %c0_15 = arith.constant 0 : index
    %20 = vector.load %arg1[%c7, %c0_14, %c0_15] : memref<9x8x128xbf16, #tpu.memory_space<vmem>>, vector<1x8x128xbf16>
    %21 = vector.shape_cast %20 : vector<1x8x128xbf16> to vector<8x128xbf16>
    %22 = arith.maximumf %19, %21 : vector<8x128xbf16>
    %c8 = arith.constant 8 : index
    %c0_16 = arith.constant 0 : index
    %c0_17 = arith.constant 0 : index
    %23 = vector.load %arg1[%c8, %c0_16, %c0_17] : memref<9x8x128xbf16, #tpu.memory_space<vmem>>, vector<1x8x128xbf16>
    %24 = vector.shape_cast %23 : vector<1x8x128xbf16> to vector<8x128xbf16>
    %25 = arith.maximumf %22, %24 : vector<8x128xbf16>
    %c0_18 = arith.constant 0 : index
    %c0_19 = arith.constant 0 : index
    %26 = vector.load %arg2[%c0_18, %c0_19] : memref<8x128xbf16, #tpu.memory_space<vmem>>, vector<8x128xbf16>
    tpu.vector_store %arg2[%c0_18, %c0_19], %25 {strides = array<i32>} : memref<8x128xbf16, #tpu.memory_space<vmem>>, vector<8x128xbf16>,
    return
  }
  func.func @transform_0(%arg0: i32) -> (i32, i32, i32) {
    %c0_i32 = arith.constant 0 : i32
    %c0_i32_0 = arith.constant 0 : i32
    %c0_i32_1 = arith.constant 0 : i32
    return %c0_i32, %arg0, %c0_i32_0 : i32, i32, i32
  }
  func.func @transform_1(%arg0: i32) -> (i32, i32) {
    %c0_i32 = arith.constant 0 : i32
    %c0_i32_0 = arith.constant 0 : i32
    return %arg0, %c0_i32 : i32, i32
  }
}

module attributes {stable_mosaic.version = 11 : i64} {
  func.func @_mm_kernel(%arg0: i32, %arg1: memref<32x12xbf16, #tpu.memory_space<vmem>>, %arg2: memref<12x16xbf16, #tpu.memory_space<vmem>>, %arg3: memref<1x16xf32, #tpu.memory_space<vmem>>, %arg4: memref<1x16xf32, #tpu.memory_space<vmem>>, %arg5: memref<32x16xbf16, #tpu.memory_space<vmem>>) attributes {dimension_semantics = [#tpu.dimension_semantics<parallel>], iteration_bounds = array<i64: 2>, scalar_prefetch = 0 : i64, scratch_operands = 0 : i64, tpu.core_type = #tpu.core_type<tc>, window_params = [{transform_indices = @transform_0, window_bounds = array<i64: 32, 12>}, {pipeline_mode = #tpu.pipeline_mode<synchronous>, transform_indices = @transform_1, window_bounds = array<i64: 12, 16>}, {pipeline_mode = #tpu.pipeline_mode<synchronous>, transform_indices = @transform_2, window_bounds = array<i64: 1, 16>}, {pipeline_mode = #tpu.pipeline_mode<synchronous>, transform_indices = @transform_3, window_bounds = array<i64: 1, 16>}, {transform_indices = @transform_4, window_bounds = array<i64: 32, 16>}]} {
    %c0 = arith.constant 0 : index
    %c0_0 = arith.constant 0 : index
    %0 = vector.load %arg1[%c0, %c0_0] : memref<32x12xbf16, #tpu.memory_space<vmem>>, vector<32x12xbf16>
    %c0_1 = arith.constant 0 : index
    %c0_2 = arith.constant 0 : index
    %1 = vector.load %arg2[%c0_1, %c0_2] : memref<12x16xbf16, #tpu.memory_space<vmem>>, vector<12x16xbf16>
    %cst = arith.constant dense<0.000000e+00> : vector<32x16xf32>
    %2 = tpu.matmul %0, %1, %cst {dimension_numbers = #tpu.dot_dimension_numbers<[1], [0], [0], [1], [0, 0, 1, 1], [], []>} : vector<32x12xbf16>, vector<12x16xbf16>, vector<32x16xf32> -> vector<32x16xf32>
    %c0_3 = arith.constant 0 : index
    %c0_4 = arith.constant 0 : index
    %3 = vector.load %arg3[%c0_3, %c0_4] : memref<1x16xf32, #tpu.memory_space<vmem>>, vector<1x16xf32>
    %4 = vector.broadcast %3 : vector<1x16xf32> to vector<32x16xf32>
    %5 = arith.mulf %2, %4 : vector<32x16xf32>
    %c0_5 = arith.constant 0 : index
    %c0_6 = arith.constant 0 : index
    %6 = vector.load %arg4[%c0_5, %c0_6] : memref<1x16xf32, #tpu.memory_space<vmem>>, vector<1x16xf32>
    %7 = vector.broadcast %6 : vector<1x16xf32> to vector<32x16xf32>
    %8 = arith.addf %5, %7 : vector<32x16xf32>
    %9 = arith.truncf %8 : vector<32x16xf32> to vector<32x16xbf16>
    %c0_7 = arith.constant 0 : index
    %c0_8 = arith.constant 0 : index
    %10 = vector.load %arg5[%c0_7, %c0_8] : memref<32x16xbf16, #tpu.memory_space<vmem>>, vector<32x16xbf16>
    tpu.vector_store %arg5[%c0_7, %c0_8], %9 {strides = array<i32>} : memref<32x16xbf16, #tpu.memory_space<vmem>>, vector<32x16xbf16>,
    return
  }
  func.func @transform_0(%arg0: i32) -> (i32, i32) {
    %c0_i32 = arith.constant 0 : i32
    %c0_i32_0 = arith.constant 0 : i32
    return %arg0, %c0_i32 : i32, i32
  }
  func.func @transform_1(%arg0: i32) -> (i32, i32) {
    %c0_i32 = arith.constant 0 : i32
    %c0_i32_0 = arith.constant 0 : i32
    %c0_i32_1 = arith.constant 0 : i32
    return %c0_i32, %c0_i32_0 : i32, i32
  }
  func.func @transform_2(%arg0: i32) -> (i32, i32) {
    %c0_i32 = arith.constant 0 : i32
    %c0_i32_0 = arith.constant 0 : i32
    %c0_i32_1 = arith.constant 0 : i32
    return %c0_i32, %c0_i32_0 : i32, i32
  }
  func.func @transform_3(%arg0: i32) -> (i32, i32) {
    %c0_i32 = arith.constant 0 : i32
    %c0_i32_0 = arith.constant 0 : i32
    %c0_i32_1 = arith.constant 0 : i32
    return %c0_i32, %c0_i32_0 : i32, i32
  }
  func.func @transform_4(%arg0: i32) -> (i32, i32) {
    %c0_i32 = arith.constant 0 : i32
    %c0_i32_0 = arith.constant 0 : i32
    return %arg0, %c0_i32 : i32, i32
  }
}

module attributes {stable_mosaic.version = 11 : i64} {
  func.func @_mm_kernel(%arg0: i32, %arg1: memref<128x36xbf16, #tpu.memory_space<vmem>>, %arg2: memref<36x24xbf16, #tpu.memory_space<vmem>>, %arg3: memref<1x24xf32, #tpu.memory_space<vmem>>, %arg4: memref<1x24xf32, #tpu.memory_space<vmem>>, %arg5: memref<128x24xbf16, #tpu.memory_space<vmem>>) attributes {dimension_semantics = [#tpu.dimension_semantics<parallel>], iteration_bounds = array<i64: 2>, scalar_prefetch = 0 : i64, scratch_operands = 0 : i64, tpu.core_type = #tpu.core_type<tc>, window_params = [{transform_indices = @transform_0, window_bounds = array<i64: 128, 36>}, {pipeline_mode = #tpu.pipeline_mode<synchronous>, transform_indices = @transform_1, window_bounds = array<i64: 36, 24>}, {pipeline_mode = #tpu.pipeline_mode<synchronous>, transform_indices = @transform_2, window_bounds = array<i64: 1, 24>}, {pipeline_mode = #tpu.pipeline_mode<synchronous>, transform_indices = @transform_3, window_bounds = array<i64: 1, 24>}, {transform_indices = @transform_4, window_bounds = array<i64: 128, 24>}]} {
    %c0 = arith.constant 0 : index
    %c0_0 = arith.constant 0 : index
    %0 = vector.load %arg1[%c0, %c0_0] : memref<128x36xbf16, #tpu.memory_space<vmem>>, vector<128x36xbf16>
    %c0_1 = arith.constant 0 : index
    %c0_2 = arith.constant 0 : index
    %1 = vector.load %arg2[%c0_1, %c0_2] : memref<36x24xbf16, #tpu.memory_space<vmem>>, vector<36x24xbf16>
    %cst = arith.constant dense<0.000000e+00> : vector<128x24xf32>
    %2 = tpu.matmul %0, %1, %cst {dimension_numbers = #tpu.dot_dimension_numbers<[1], [0], [0], [1], [0, 0, 1, 1], [], []>} : vector<128x36xbf16>, vector<36x24xbf16>, vector<128x24xf32> -> vector<128x24xf32>
    %c0_3 = arith.constant 0 : index
    %c0_4 = arith.constant 0 : index
    %3 = vector.load %arg3[%c0_3, %c0_4] : memref<1x24xf32, #tpu.memory_space<vmem>>, vector<1x24xf32>
    %4 = vector.broadcast %3 : vector<1x24xf32> to vector<128x24xf32>
    %5 = arith.mulf %2, %4 : vector<128x24xf32>
    %c0_5 = arith.constant 0 : index
    %c0_6 = arith.constant 0 : index
    %6 = vector.load %arg4[%c0_5, %c0_6] : memref<1x24xf32, #tpu.memory_space<vmem>>, vector<1x24xf32>
    %7 = vector.broadcast %6 : vector<1x24xf32> to vector<128x24xf32>
    %8 = arith.addf %5, %7 : vector<128x24xf32>
    %cst_7 = arith.constant 0.000000e+00 : f32
    %9 = vector.broadcast %cst_7 : f32 to vector<128x24xf32>
    %10 = arith.maximumf %8, %9 : vector<128x24xf32>
    %11 = arith.truncf %10 : vector<128x24xf32> to vector<128x24xbf16>
    %c0_8 = arith.constant 0 : index
    %c0_9 = arith.constant 0 : index
    %12 = vector.load %arg5[%c0_8, %c0_9] : memref<128x24xbf16, #tpu.memory_space<vmem>>, vector<128x24xbf16>
    tpu.vector_store %arg5[%c0_8, %c0_9], %11 {strides = array<i32>} : memref<128x24xbf16, #tpu.memory_space<vmem>>, vector<128x24xbf16>,
    return
  }
  func.func @transform_0(%arg0: i32) -> (i32, i32) {
    %c0_i32 = arith.constant 0 : i32
    %c0_i32_0 = arith.constant 0 : i32
    return %arg0, %c0_i32 : i32, i32
  }
  func.func @transform_1(%arg0: i32) -> (i32, i32) {
    %c0_i32 = arith.constant 0 : i32
    %c0_i32_0 = arith.constant 0 : i32
    %c0_i32_1 = arith.constant 0 : i32
    return %c0_i32, %c0_i32_0 : i32, i32
  }
  func.func @transform_2(%arg0: i32) -> (i32, i32) {
    %c0_i32 = arith.constant 0 : i32
    %c0_i32_0 = arith.constant 0 : i32
    %c0_i32_1 = arith.constant 0 : i32
    return %c0_i32, %c0_i32_0 : i32, i32
  }
  func.func @transform_3(%arg0: i32) -> (i32, i32) {
    %c0_i32 = arith.constant 0 : i32
    %c0_i32_0 = arith.constant 0 : i32
    %c0_i32_1 = arith.constant 0 : i32
    return %c0_i32, %c0_i32_0 : i32, i32
  }
  func.func @transform_4(%arg0: i32) -> (i32, i32) {
    %c0_i32 = arith.constant 0 : i32
    %c0_i32_0 = arith.constant 0 : i32
    return %arg0, %c0_i32 : i32, i32
  }
}

module attributes {stable_mosaic.version = 11 : i64} {
  func.func @_dw_kernel(%arg0: i32, %arg1: memref<9x8x384xbf16, #tpu.memory_space<vmem>>, %arg2: memref<9x1x384xf32, #tpu.memory_space<vmem>>, %arg3: memref<1x384xf32, #tpu.memory_space<vmem>>, %arg4: memref<1x384xf32, #tpu.memory_space<vmem>>, %arg5: memref<8x384xbf16, #tpu.memory_space<vmem>>) attributes {dimension_semantics = [#tpu.dimension_semantics<parallel>], iteration_bounds = array<i64: 1>, scalar_prefetch = 0 : i64, scratch_operands = 0 : i64, tpu.core_type = #tpu.core_type<tc>, window_params = [{transform_indices = @transform_0, window_bounds = array<i64: 9, 8, 384>}, {pipeline_mode = #tpu.pipeline_mode<synchronous>, transform_indices = @transform_1, window_bounds = array<i64: 9, 1, 384>}, {pipeline_mode = #tpu.pipeline_mode<synchronous>, transform_indices = @transform_2, window_bounds = array<i64: 1, 384>}, {pipeline_mode = #tpu.pipeline_mode<synchronous>, transform_indices = @transform_3, window_bounds = array<i64: 1, 384>}, {transform_indices = @transform_4, window_bounds = array<i64: 8, 384>}]} {
    %c0 = arith.constant 0 : index
    %c0_0 = arith.constant 0 : index
    %c0_1 = arith.constant 0 : index
    %0 = vector.load %arg1[%c0, %c0_0, %c0_1] : memref<9x8x384xbf16, #tpu.memory_space<vmem>>, vector<1x8x384xbf16>
    %1 = vector.shape_cast %0 : vector<1x8x384xbf16> to vector<8x384xbf16>
    %2 = arith.extf %1 : vector<8x384xbf16> to vector<8x384xf32>
    %c0_2 = arith.constant 0 : index
    %c0_3 = arith.constant 0 : index
    %c0_4 = arith.constant 0 : index
    %3 = vector.load %arg2[%c0_2, %c0_3, %c0_4] : memref<9x1x384xf32, #tpu.memory_space<vmem>>, vector<1x1x384xf32>
    %4 = vector.shape_cast %3 : vector<1x1x384xf32> to vector<1x384xf32>
    %5 = vector.broadcast %4 : vector<1x384xf32> to vector<8x384xf32>
    %6 = arith.mulf %2, %5 : vector<8x384xf32>
    %c1 = arith.constant 1 : index
    %c0_5 = arith.constant 0 : index
    %c0_6 = arith.constant 0 : index
    %7 = vector.load %arg1[%c1, %c0_5, %c0_6] : memref<9x8x384xbf16, #tpu.memory_space<vmem>>, vector<1x8x384xbf16>
    %8 = vector.shape_cast %7 : vector<1x8x384xbf16> to vector<8x384xbf16>
    %9 = arith.extf %8 : vector<8x384xbf16> to vector<8x384xf32>
    %c1_7 = arith.constant 1 : index
    %c0_8 = arith.constant 0 : index
    %c0_9 = arith.constant 0 : index
    %10 = vector.load %arg2[%c1_7, %c0_8, %c0_9] : memref<9x1x384xf32, #tpu.memory_space<vmem>>, vector<1x1x384xf32>
    %11 = vector.shape_cast %10 : vector<1x1x384xf32> to vector<1x384xf32>
    %12 = vector.broadcast %11 : vector<1x384xf32> to vector<8x384xf32>
    %13 = arith.mulf %9, %12 : vector<8x384xf32>
    %14 = arith.addf %6, %13 : vector<8x384xf32>
    %c2 = arith.constant 2 : index
    %c0_10 = arith.constant 0 : index
    %c0_11 = arith.constant 0 : index
    %15 = vector.load %arg1[%c2, %c0_10, %c0_11] : memref<9x8x384xbf16, #tpu.memory_space<vmem>>, vector<1x8x384xbf16>
    %16 = vector.shape_cast %15 : vector<1x8x384xbf16> to vector<8x384xbf16>
    %17 = arith.extf %16 : vector<8x384xbf16> to vector<8x384xf32>
    %c2_12 = arith.constant 2 : index
    %c0_13 = arith.constant 0 : index
    %c0_14 = arith.constant 0 : index
    %18 = vector.load %arg2[%c2_12, %c0_13, %c0_14] : memref<9x1x384xf32, #tpu.memory_space<vmem>>, vector<1x1x384xf32>
    %19 = vector.shape_cast %18 : vector<1x1x384xf32> to vector<1x384xf32>
    %20 = vector.broadcast %19 : vector<1x384xf32> to vector<8x384xf32>
    %21 = arith.mulf %17, %20 : vector<8x384xf32>
    %22 = arith.addf %14, %21 : vector<8x384xf32>
    %c3 = arith.constant 3 : index
    %c0_15 = arith.constant 0 : index
    %c0_16 = arith.constant 0 : index
    %23 = vector.load %arg1[%c3, %c0_15, %c0_16] : memref<9x8x384xbf16, #tpu.memory_space<vmem>>, vector<1x8x384xbf16>
    %24 = vector.shape_cast %23 : vector<1x8x384xbf16> to vector<8x384xbf16>
    %25 = arith.extf %24 : vector<8x384xbf16> to vector<8x384xf32>
    %c3_17 = arith.constant 3 : index
    %c0_18 = arith.constant 0 : index
    %c0_19 = arith.constant 0 : index
    %26 = vector.load %arg2[%c3_17, %c0_18, %c0_19] : memref<9x1x384xf32, #tpu.memory_space<vmem>>, vector<1x1x384xf32>
    %27 = vector.shape_cast %26 : vector<1x1x384xf32> to vector<1x384xf32>
    %28 = vector.broadcast %27 : vector<1x384xf32> to vector<8x384xf32>
    %29 = arith.mulf %25, %28 : vector<8x384xf32>
    %30 = arith.addf %22, %29 : vector<8x384xf32>
    %c4 = arith.constant 4 : index
    %c0_20 = arith.constant 0 : index
    %c0_21 = arith.constant 0 : index
    %31 = vector.load %arg1[%c4, %c0_20, %c0_21] : memref<9x8x384xbf16, #tpu.memory_space<vmem>>, vector<1x8x384xbf16>
    %32 = vector.shape_cast %31 : vector<1x8x384xbf16> to vector<8x384xbf16>
    %33 = arith.extf %32 : vector<8x384xbf16> to vector<8x384xf32>
    %c4_22 = arith.constant 4 : index
    %c0_23 = arith.constant 0 : index
    %c0_24 = arith.constant 0 : index
    %34 = vector.load %arg2[%c4_22, %c0_23, %c0_24] : memref<9x1x384xf32, #tpu.memory_space<vmem>>, vector<1x1x384xf32>
    %35 = vector.shape_cast %34 : vector<1x1x384xf32> to vector<1x384xf32>
    %36 = vector.broadcast %35 : vector<1x384xf32> to vector<8x384xf32>
    %37 = arith.mulf %33, %36 : vector<8x384xf32>
    %38 = arith.addf %30, %37 : vector<8x384xf32>
    %c5 = arith.constant 5 : index
    %c0_25 = arith.constant 0 : index
    %c0_26 = arith.constant 0 : index
    %39 = vector.load %arg1[%c5, %c0_25, %c0_26] : memref<9x8x384xbf16, #tpu.memory_space<vmem>>, vector<1x8x384xbf16>
    %40 = vector.shape_cast %39 : vector<1x8x384xbf16> to vector<8x384xbf16>
    %41 = arith.extf %40 : vector<8x384xbf16> to vector<8x384xf32>
    %c5_27 = arith.constant 5 : index
    %c0_28 = arith.constant 0 : index
    %c0_29 = arith.constant 0 : index
    %42 = vector.load %arg2[%c5_27, %c0_28, %c0_29] : memref<9x1x384xf32, #tpu.memory_space<vmem>>, vector<1x1x384xf32>
    %43 = vector.shape_cast %42 : vector<1x1x384xf32> to vector<1x384xf32>
    %44 = vector.broadcast %43 : vector<1x384xf32> to vector<8x384xf32>
    %45 = arith.mulf %41, %44 : vector<8x384xf32>
    %46 = arith.addf %38, %45 : vector<8x384xf32>
    %c6 = arith.constant 6 : index
    %c0_30 = arith.constant 0 : index
    %c0_31 = arith.constant 0 : index
    %47 = vector.load %arg1[%c6, %c0_30, %c0_31] : memref<9x8x384xbf16, #tpu.memory_space<vmem>>, vector<1x8x384xbf16>
    %48 = vector.shape_cast %47 : vector<1x8x384xbf16> to vector<8x384xbf16>
    %49 = arith.extf %48 : vector<8x384xbf16> to vector<8x384xf32>
    %c6_32 = arith.constant 6 : index
    %c0_33 = arith.constant 0 : index
    %c0_34 = arith.constant 0 : index
    %50 = vector.load %arg2[%c6_32, %c0_33, %c0_34] : memref<9x1x384xf32, #tpu.memory_space<vmem>>, vector<1x1x384xf32>
    %51 = vector.shape_cast %50 : vector<1x1x384xf32> to vector<1x384xf32>
    %52 = vector.broadcast %51 : vector<1x384xf32> to vector<8x384xf32>
    %53 = arith.mulf %49, %52 : vector<8x384xf32>
    %54 = arith.addf %46, %53 : vector<8x384xf32>
    %c7 = arith.constant 7 : index
    %c0_35 = arith.constant 0 : index
    %c0_36 = arith.constant 0 : index
    %55 = vector.load %arg1[%c7, %c0_35, %c0_36] : memref<9x8x384xbf16, #tpu.memory_space<vmem>>, vector<1x8x384xbf16>
    %56 = vector.shape_cast %55 : vector<1x8x384xbf16> to vector<8x384xbf16>
    %57 = arith.extf %56 : vector<8x384xbf16> to vector<8x384xf32>
    %c7_37 = arith.constant 7 : index
    %c0_38 = arith.constant 0 : index
    %c0_39 = arith.constant 0 : index
    %58 = vector.load %arg2[%c7_37, %c0_38, %c0_39] : memref<9x1x384xf32, #tpu.memory_space<vmem>>, vector<1x1x384xf32>
    %59 = vector.shape_cast %58 : vector<1x1x384xf32> to vector<1x384xf32>
    %60 = vector.broadcast %59 : vector<1x384xf32> to vector<8x384xf32>
    %61 = arith.mulf %57, %60 : vector<8x384xf32>
    %62 = arith.addf %54, %61 : vector<8x384xf32>
    %c8 = arith.constant 8 : index
    %c0_40 = arith.constant 0 : index
    %c0_41 = arith.constant 0 : index
    %63 = vector.load %arg1[%c8, %c0_40, %c0_41] : memref<9x8x384xbf16, #tpu.memory_space<vmem>>, vector<1x8x384xbf16>
    %64 = vector.shape_cast %63 : vector<1x8x384xbf16> to vector<8x384xbf16>
    %65 = arith.extf %64 : vector<8x384xbf16> to vector<8x384xf32>
    %c8_42 = arith.constant 8 : index
    %c0_43 = arith.constant 0 : index
    %c0_44 = arith.constant 0 : index
    %66 = vector.load %arg2[%c8_42, %c0_43, %c0_44] : memref<9x1x384xf32, #tpu.memory_space<vmem>>, vector<1x1x384xf32>
    %67 = vector.shape_cast %66 : vector<1x1x384xf32> to vector<1x384xf32>
    %68 = vector.broadcast %67 : vector<1x384xf32> to vector<8x384xf32>
    %69 = arith.mulf %65, %68 : vector<8x384xf32>
    %70 = arith.addf %62, %69 : vector<8x384xf32>
    %c0_45 = arith.constant 0 : index
    %c0_46 = arith.constant 0 : index
    %71 = vector.load %arg3[%c0_45, %c0_46] : memref<1x384xf32, #tpu.memory_space<vmem>>, vector<1x384xf32>
    %72 = vector.broadcast %71 : vector<1x384xf32> to vector<8x384xf32>
    %73 = arith.mulf %70, %72 : vector<8x384xf32>
    %c0_47 = arith.constant 0 : index
    %c0_48 = arith.constant 0 : index
    %74 = vector.load %arg4[%c0_47, %c0_48] : memref<1x384xf32, #tpu.memory_space<vmem>>, vector<1x384xf32>
    %75 = vector.broadcast %74 : vector<1x384xf32> to vector<8x384xf32>
    %76 = arith.addf %73, %75 : vector<8x384xf32>
    %77 = arith.truncf %76 : vector<8x384xf32> to vector<8x384xbf16>
    %c0_49 = arith.constant 0 : index
    %c0_50 = arith.constant 0 : index
    %78 = vector.load %arg5[%c0_49, %c0_50] : memref<8x384xbf16, #tpu.memory_space<vmem>>, vector<8x384xbf16>
    tpu.vector_store %arg5[%c0_49, %c0_50], %77 {strides = array<i32>} : memref<8x384xbf16, #tpu.memory_space<vmem>>, vector<8x384xbf16>,
    return
  }
  func.func @transform_0(%arg0: i32) -> (i32, i32, i32) {
    %c0_i32 = arith.constant 0 : i32
    %c0_i32_0 = arith.constant 0 : i32
    %c0_i32_1 = arith.constant 0 : i32
    return %c0_i32, %arg0, %c0_i32_0 : i32, i32, i32
  }
  func.func @transform_1(%arg0: i32) -> (i32, i32, i32) {
    %c0_i32 = arith.constant 0 : i32
    %c0_i32_0 = arith.constant 0 : i32
    %c0_i32_1 = arith.constant 0 : i32
    %c0_i32_2 = arith.constant 0 : i32
    return %c0_i32, %c0_i32_0, %c0_i32_1 : i32, i32, i32
  }
  func.func @transform_2(%arg0: i32) -> (i32, i32) {
    %c0_i32 = arith.constant 0 : i32
    %c0_i32_0 = arith.constant 0 : i32
    %c0_i32_1 = arith.constant 0 : i32
    return %c0_i32, %c0_i32_0 : i32, i32
  }
  func.func @transform_3(%arg0: i32) -> (i32, i32) {
    %c0_i32 = arith.constant 0 : i32
    %c0_i32_0 = arith.constant 0 : i32
    %c0_i32_1 = arith.constant 0 : i32
    return %c0_i32, %c0_i32_0 : i32, i32
  }
  func.func @transform_4(%arg0: i32) -> (i32, i32) {
    %c0_i32 = arith.constant 0 : i32
    %c0_i32_0 = arith.constant 0 : i32
    return %arg0, %c0_i32 : i32, i32
  }
}

module attributes {stable_mosaic.version = 11 : i64} {
  func.func @_dw_kernel(%arg0: i32, %arg1: memref<25x8x384xbf16, #tpu.memory_space<vmem>>, %arg2: memref<25x1x384xf32, #tpu.memory_space<vmem>>, %arg3: memref<1x384xf32, #tpu.memory_space<vmem>>, %arg4: memref<1x384xf32, #tpu.memory_space<vmem>>, %arg5: memref<8x384xbf16, #tpu.memory_space<vmem>>) attributes {dimension_semantics = [#tpu.dimension_semantics<parallel>], iteration_bounds = array<i64: 1>, scalar_prefetch = 0 : i64, scratch_operands = 0 : i64, tpu.core_type = #tpu.core_type<tc>, window_params = [{transform_indices = @transform_0, window_bounds = array<i64: 25, 8, 384>}, {pipeline_mode = #tpu.pipeline_mode<synchronous>, transform_indices = @transform_1, window_bounds = array<i64: 25, 1, 384>}, {pipeline_mode = #tpu.pipeline_mode<synchronous>, transform_indices = @transform_2, window_bounds = array<i64: 1, 384>}, {pipeline_mode = #tpu.pipeline_mode<synchronous>, transform_indices = @transform_3, window_bounds = array<i64: 1, 384>}, {transform_indices = @transform_4, window_bounds = array<i64: 8, 384>}]} {
    %c0 = arith.constant 0 : index
    %c0_0 = arith.constant 0 : index
    %c0_1 = arith.constant 0 : index
    %0 = vector.load %arg1[%c0, %c0_0, %c0_1] : memref<25x8x384xbf16, #tpu.memory_space<vmem>>, vector<1x8x384xbf16>
    %1 = vector.shape_cast %0 : vector<1x8x384xbf16> to vector<8x384xbf16>
    %2 = arith.extf %1 : vector<8x384xbf16> to vector<8x384xf32>
    %c0_2 = arith.constant 0 : index
    %c0_3 = arith.constant 0 : index
    %c0_4 = arith.constant 0 : index
    %3 = vector.load %arg2[%c0_2, %c0_3, %c0_4] : memref<25x1x384xf32, #tpu.memory_space<vmem>>, vector<1x1x384xf32>
    %4 = vector.shape_cast %3 : vector<1x1x384xf32> to vector<1x384xf32>
    %5 = vector.broadcast %4 : vector<1x384xf32> to vector<8x384xf32>
    %6 = arith.mulf %2, %5 : vector<8x384xf32>
    %c1 = arith.constant 1 : index
    %c0_5 = arith.constant 0 : index
    %c0_6 = arith.constant 0 : index
    %7 = vector.load %arg1[%c1, %c0_5, %c0_6] : memref<25x8x384xbf16, #tpu.memory_space<vmem>>, vector<1x8x384xbf16>
    %8 = vector.shape_cast %7 : vector<1x8x384xbf16> to vector<8x384xbf16>
    %9 = arith.extf %8 : vector<8x384xbf16> to vector<8x384xf32>
    %c1_7 = arith.constant 1 : index
    %c0_8 = arith.constant 0 : index
    %c0_9 = arith.constant 0 : index
    %10 = vector.load %arg2[%c1_7, %c0_8, %c0_9] : memref<25x1x384xf32, #tpu.memory_space<vmem>>, vector<1x1x384xf32>
    %11 = vector.shape_cast %10 : vector<1x1x384xf32> to vector<1x384xf32>
    %12 = vector.broadcast %11 : vector<1x384xf32> to vector<8x384xf32>
    %13 = arith.mulf %9, %12 : vector<8x384xf32>
    %14 = arith.addf %6, %13 : vector<8x384xf32>
    %c2 = arith.constant 2 : index
    %c0_10 = arith.constant 0 : index
    %c0_11 = arith.constant 0 : index
    %15 = vector.load %arg1[%c2, %c0_10, %c0_11] : memref<25x8x384xbf16, #tpu.memory_space<vmem>>, vector<1x8x384xbf16>
    %16 = vector.shape_cast %15 : vector<1x8x384xbf16> to vector<8x384xbf16>
    %17 = arith.extf %16 : vector<8x384xbf16> to vector<8x384xf32>
    %c2_12 = arith.constant 2 : index
    %c0_13 = arith.constant 0 : index
    %c0_14 = arith.constant 0 : index
    %18 = vector.load %arg2[%c2_12, %c0_13, %c0_14] : memref<25x1x384xf32, #tpu.memory_space<vmem>>, vector<1x1x384xf32>
    %19 = vector.shape_cast %18 : vector<1x1x384xf32> to vector<1x384xf32>
    %20 = vector.broadcast %19 : vector<1x384xf32> to vector<8x384xf32>
    %21 = arith.mulf %17, %20 : vector<8x384xf32>
    %22 = arith.addf %14, %21 : vector<8x384xf32>
    %c3 = arith.constant 3 : index
    %c0_15 = arith.constant 0 : index
    %c0_16 = arith.constant 0 : index
    %23 = vector.load %arg1[%c3, %c0_15, %c0_16] : memref<25x8x384xbf16, #tpu.memory_space<vmem>>, vector<1x8x384xbf16>
    %24 = vector.shape_cast %23 : vector<1x8x384xbf16> to vector<8x384xbf16>
    %25 = arith.extf %24 : vector<8x384xbf16> to vector<8x384xf32>
    %c3_17 = arith.constant 3 : index
    %c0_18 = arith.constant 0 : index
    %c0_19 = arith.constant 0 : index
    %26 = vector.load %arg2[%c3_17, %c0_18, %c0_19] : memref<25x1x384xf32, #tpu.memory_space<vmem>>, vector<1x1x384xf32>
    %27 = vector.shape_cast %26 : vector<1x1x384xf32> to vector<1x384xf32>
    %28 = vector.broadcast %27 : vector<1x384xf32> to vector<8x384xf32>
    %29 = arith.mulf %25, %28 : vector<8x384xf32>
    %30 = arith.addf %22, %29 : vector<8x384xf32>
    %c4 = arith.constant 4 : index
    %c0_20 = arith.constant 0 : index
    %c0_21 = arith.constant 0 : index
    %31 = vector.load %arg1[%c4, %c0_20, %c0_21] : memref<25x8x384xbf16, #tpu.memory_space<vmem>>, vector<1x8x384xbf16>
    %32 = vector.shape_cast %31 : vector<1x8x384xbf16> to vector<8x384xbf16>
    %33 = arith.extf %32 : vector<8x384xbf16> to vector<8x384xf32>
    %c4_22 = arith.constant 4 : index
    %c0_23 = arith.constant 0 : index
    %c0_24 = arith.constant 0 : index
    %34 = vector.load %arg2[%c4_22, %c0_23, %c0_24] : memref<25x1x384xf32, #tpu.memory_space<vmem>>, vector<1x1x384xf32>
    %35 = vector.shape_cast %34 : vector<1x1x384xf32> to vector<1x384xf32>
    %36 = vector.broadcast %35 : vector<1x384xf32> to vector<8x384xf32>
    %37 = arith.mulf %33, %36 : vector<8x384xf32>
    %38 = arith.addf %30, %37 : vector<8x384xf32>
    %c5 = arith.constant 5 : index
    %c0_25 = arith.constant 0 : index
    %c0_26 = arith.constant 0 : index
    %39 = vector.load %arg1[%c5, %c0_25, %c0_26] : memref<25x8x384xbf16, #tpu.memory_space<vmem>>, vector<1x8x384xbf16>
    %40 = vector.shape_cast %39 : vector<1x8x384xbf16> to vector<8x384xbf16>
    %41 = arith.extf %40 : vector<8x384xbf16> to vector<8x384xf32>
    %c5_27 = arith.constant 5 : index
    %c0_28 = arith.constant 0 : index
    %c0_29 = arith.constant 0 : index
    %42 = vector.load %arg2[%c5_27, %c0_28, %c0_29] : memref<25x1x384xf32, #tpu.memory_space<vmem>>, vector<1x1x384xf32>
    %43 = vector.shape_cast %42 : vector<1x1x384xf32> to vector<1x384xf32>
    %44 = vector.broadcast %43 : vector<1x384xf32> to vector<8x384xf32>
    %45 = arith.mulf %41, %44 : vector<8x384xf32>
    %46 = arith.addf %38, %45 : vector<8x384xf32>
    %c6 = arith.constant 6 : index
    %c0_30 = arith.constant 0 : index
    %c0_31 = arith.constant 0 : index
    %47 = vector.load %arg1[%c6, %c0_30, %c0_31] : memref<25x8x384xbf16, #tpu.memory_space<vmem>>, vector<1x8x384xbf16>
    %48 = vector.shape_cast %47 : vector<1x8x384xbf16> to vector<8x384xbf16>
    %49 = arith.extf %48 : vector<8x384xbf16> to vector<8x384xf32>
    %c6_32 = arith.constant 6 : index
    %c0_33 = arith.constant 0 : index
    %c0_34 = arith.constant 0 : index
    %50 = vector.load %arg2[%c6_32, %c0_33, %c0_34] : memref<25x1x384xf32, #tpu.memory_space<vmem>>, vector<1x1x384xf32>
    %51 = vector.shape_cast %50 : vector<1x1x384xf32> to vector<1x384xf32>
    %52 = vector.broadcast %51 : vector<1x384xf32> to vector<8x384xf32>
    %53 = arith.mulf %49, %52 : vector<8x384xf32>
    %54 = arith.addf %46, %53 : vector<8x384xf32>
    %c7 = arith.constant 7 : index
    %c0_35 = arith.constant 0 : index
    %c0_36 = arith.constant 0 : index
    %55 = vector.load %arg1[%c7, %c0_35, %c0_36] : memref<25x8x384xbf16, #tpu.memory_space<vmem>>, vector<1x8x384xbf16>
    %56 = vector.shape_cast %55 : vector<1x8x384xbf16> to vector<8x384xbf16>
    %57 = arith.extf %56 : vector<8x384xbf16> to vector<8x384xf32>
    %c7_37 = arith.constant 7 : index
    %c0_38 = arith.constant 0 : index
    %c0_39 = arith.constant 0 : index
    %58 = vector.load %arg2[%c7_37, %c0_38, %c0_39] : memref<25x1x384xf32, #tpu.memory_space<vmem>>, vector<1x1x384xf32>
    %59 = vector.shape_cast %58 : vector<1x1x384xf32> to vector<1x384xf32>
    %60 = vector.broadcast %59 : vector<1x384xf32> to vector<8x384xf32>
    %61 = arith.mulf %57, %60 : vector<8x384xf32>
    %62 = arith.addf %54, %61 : vector<8x384xf32>
    %c8 = arith.constant 8 : index
    %c0_40 = arith.constant 0 : index
    %c0_41 = arith.constant 0 : index
    %63 = vector.load %arg1[%c8, %c0_40, %c0_41] : memref<25x8x384xbf16, #tpu.memory_space<vmem>>, vector<1x8x384xbf16>
    %64 = vector.shape_cast %63 : vector<1x8x384xbf16> to vector<8x384xbf16>
    %65 = arith.extf %64 : vector<8x384xbf16> to vector<8x384xf32>
    %c8_42 = arith.constant 8 : index
    %c0_43 = arith.constant 0 : index
    %c0_44 = arith.constant 0 : index
    %66 = vector.load %arg2[%c8_42, %c0_43, %c0_44] : memref<25x1x384xf32, #tpu.memory_space<vmem>>, vector<1x1x384xf32>
    %67 = vector.shape_cast %66 : vector<1x1x384xf32> to vector<1x384xf32>
    %68 = vector.broadcast %67 : vector<1x384xf32> to vector<8x384xf32>
    %69 = arith.mulf %65, %68 : vector<8x384xf32>
    %70 = arith.addf %62, %69 : vector<8x384xf32>
    %c9 = arith.constant 9 : index
    %c0_45 = arith.constant 0 : index
    %c0_46 = arith.constant 0 : index
    %71 = vector.load %arg1[%c9, %c0_45, %c0_46] : memref<25x8x384xbf16, #tpu.memory_space<vmem>>, vector<1x8x384xbf16>
    %72 = vector.shape_cast %71 : vector<1x8x384xbf16> to vector<8x384xbf16>
    %73 = arith.extf %72 : vector<8x384xbf16> to vector<8x384xf32>
    %c9_47 = arith.constant 9 : index
    %c0_48 = arith.constant 0 : index
    %c0_49 = arith.constant 0 : index
    %74 = vector.load %arg2[%c9_47, %c0_48, %c0_49] : memref<25x1x384xf32, #tpu.memory_space<vmem>>, vector<1x1x384xf32>
    %75 = vector.shape_cast %74 : vector<1x1x384xf32> to vector<1x384xf32>
    %76 = vector.broadcast %75 : vector<1x384xf32> to vector<8x384xf32>
    %77 = arith.mulf %73, %76 : vector<8x384xf32>
    %78 = arith.addf %70, %77 : vector<8x384xf32>
    %c10 = arith.constant 10 : index
    %c0_50 = arith.constant 0 : index
    %c0_51 = arith.constant 0 : index
    %79 = vector.load %arg1[%c10, %c0_50, %c0_51] : memref<25x8x384xbf16, #tpu.memory_space<vmem>>, vector<1x8x384xbf16>
    %80 = vector.shape_cast %79 : vector<1x8x384xbf16> to vector<8x384xbf16>
    %81 = arith.extf %80 : vector<8x384xbf16> to vector<8x384xf32>
    %c10_52 = arith.constant 10 : index
    %c0_53 = arith.constant 0 : index
    %c0_54 = arith.constant 0 : index
    %82 = vector.load %arg2[%c10_52, %c0_53, %c0_54] : memref<25x1x384xf32, #tpu.memory_space<vmem>>, vector<1x1x384xf32>
    %83 = vector.shape_cast %82 : vector<1x1x384xf32> to vector<1x384xf32>
    %84 = vector.broadcast %83 : vector<1x384xf32> to vector<8x384xf32>
    %85 = arith.mulf %81, %84 : vector<8x384xf32>
    %86 = arith.addf %78, %85 : vector<8x384xf32>
    %c11 = arith.constant 11 : index
    %c0_55 = arith.constant 0 : index
    %c0_56 = arith.constant 0 : index
    %87 = vector.load %arg1[%c11, %c0_55, %c0_56] : memref<25x8x384xbf16, #tpu.memory_space<vmem>>, vector<1x8x384xbf16>
    %88 = vector.shape_cast %87 : vector<1x8x384xbf16> to vector<8x384xbf16>
    %89 = arith.extf %88 : vector<8x384xbf16> to vector<8x384xf32>
    %c11_57 = arith.constant 11 : index
    %c0_58 = arith.constant 0 : index
    %c0_59 = arith.constant 0 : index
    %90 = vector.load %arg2[%c11_57, %c0_58, %c0_59] : memref<25x1x384xf32, #tpu.memory_space<vmem>>, vector<1x1x384xf32>
    %91 = vector.shape_cast %90 : vector<1x1x384xf32> to vector<1x384xf32>
    %92 = vector.broadcast %91 : vector<1x384xf32> to vector<8x384xf32>
    %93 = arith.mulf %89, %92 : vector<8x384xf32>
    %94 = arith.addf %86, %93 : vector<8x384xf32>
    %c12 = arith.constant 12 : index
    %c0_60 = arith.constant 0 : index
    %c0_61 = arith.constant 0 : index
    %95 = vector.load %arg1[%c12, %c0_60, %c0_61] : memref<25x8x384xbf16, #tpu.memory_space<vmem>>, vector<1x8x384xbf16>
    %96 = vector.shape_cast %95 : vector<1x8x384xbf16> to vector<8x384xbf16>
    %97 = arith.extf %96 : vector<8x384xbf16> to vector<8x384xf32>
    %c12_62 = arith.constant 12 : index
    %c0_63 = arith.constant 0 : index
    %c0_64 = arith.constant 0 : index
    %98 = vector.load %arg2[%c12_62, %c0_63, %c0_64] : memref<25x1x384xf32, #tpu.memory_space<vmem>>, vector<1x1x384xf32>
    %99 = vector.shape_cast %98 : vector<1x1x384xf32> to vector<1x384xf32>
    %100 = vector.broadcast %99 : vector<1x384xf32> to vector<8x384xf32>
    %101 = arith.mulf %97, %100 : vector<8x384xf32>
    %102 = arith.addf %94, %101 : vector<8x384xf32>
    %c13 = arith.constant 13 : index
    %c0_65 = arith.constant 0 : index
    %c0_66 = arith.constant 0 : index
    %103 = vector.load %arg1[%c13, %c0_65, %c0_66] : memref<25x8x384xbf16, #tpu.memory_space<vmem>>, vector<1x8x384xbf16>
    %104 = vector.shape_cast %103 : vector<1x8x384xbf16> to vector<8x384xbf16>
    %105 = arith.extf %104 : vector<8x384xbf16> to vector<8x384xf32>
    %c13_67 = arith.constant 13 : index
    %c0_68 = arith.constant 0 : index
    %c0_69 = arith.constant 0 : index
    %106 = vector.load %arg2[%c13_67, %c0_68, %c0_69] : memref<25x1x384xf32, #tpu.memory_space<vmem>>, vector<1x1x384xf32>
    %107 = vector.shape_cast %106 : vector<1x1x384xf32> to vector<1x384xf32>
    %108 = vector.broadcast %107 : vector<1x384xf32> to vector<8x384xf32>
    %109 = arith.mulf %105, %108 : vector<8x384xf32>
    %110 = arith.addf %102, %109 : vector<8x384xf32>
    %c14 = arith.constant 14 : index
    %c0_70 = arith.constant 0 : index
    %c0_71 = arith.constant 0 : index
    %111 = vector.load %arg1[%c14, %c0_70, %c0_71] : memref<25x8x384xbf16, #tpu.memory_space<vmem>>, vector<1x8x384xbf16>
    %112 = vector.shape_cast %111 : vector<1x8x384xbf16> to vector<8x384xbf16>
    %113 = arith.extf %112 : vector<8x384xbf16> to vector<8x384xf32>
    %c14_72 = arith.constant 14 : index
    %c0_73 = arith.constant 0 : index
    %c0_74 = arith.constant 0 : index
    %114 = vector.load %arg2[%c14_72, %c0_73, %c0_74] : memref<25x1x384xf32, #tpu.memory_space<vmem>>, vector<1x1x384xf32>
    %115 = vector.shape_cast %114 : vector<1x1x384xf32> to vector<1x384xf32>
    %116 = vector.broadcast %115 : vector<1x384xf32> to vector<8x384xf32>
    %117 = arith.mulf %113, %116 : vector<8x384xf32>
    %118 = arith.addf %110, %117 : vector<8x384xf32>
    %c15 = arith.constant 15 : index
    %c0_75 = arith.constant 0 : index
    %c0_76 = arith.constant 0 : index
    %119 = vector.load %arg1[%c15, %c0_75, %c0_76] : memref<25x8x384xbf16, #tpu.memory_space<vmem>>, vector<1x8x384xbf16>
    %120 = vector.shape_cast %119 : vector<1x8x384xbf16> to vector<8x384xbf16>
    %121 = arith.extf %120 : vector<8x384xbf16> to vector<8x384xf32>
    %c15_77 = arith.constant 15 : index
    %c0_78 = arith.constant 0 : index
    %c0_79 = arith.constant 0 : index
    %122 = vector.load %arg2[%c15_77, %c0_78, %c0_79] : memref<25x1x384xf32, #tpu.memory_space<vmem>>, vector<1x1x384xf32>
    %123 = vector.shape_cast %122 : vector<1x1x384xf32> to vector<1x384xf32>
    %124 = vector.broadcast %123 : vector<1x384xf32> to vector<8x384xf32>
    %125 = arith.mulf %121, %124 : vector<8x384xf32>
    %126 = arith.addf %118, %125 : vector<8x384xf32>
    %c16 = arith.constant 16 : index
    %c0_80 = arith.constant 0 : index
    %c0_81 = arith.constant 0 : index
    %127 = vector.load %arg1[%c16, %c0_80, %c0_81] : memref<25x8x384xbf16, #tpu.memory_space<vmem>>, vector<1x8x384xbf16>
    %128 = vector.shape_cast %127 : vector<1x8x384xbf16> to vector<8x384xbf16>
    %129 = arith.extf %128 : vector<8x384xbf16> to vector<8x384xf32>
    %c16_82 = arith.constant 16 : index
    %c0_83 = arith.constant 0 : index
    %c0_84 = arith.constant 0 : index
    %130 = vector.load %arg2[%c16_82, %c0_83, %c0_84] : memref<25x1x384xf32, #tpu.memory_space<vmem>>, vector<1x1x384xf32>
    %131 = vector.shape_cast %130 : vector<1x1x384xf32> to vector<1x384xf32>
    %132 = vector.broadcast %131 : vector<1x384xf32> to vector<8x384xf32>
    %133 = arith.mulf %129, %132 : vector<8x384xf32>
    %134 = arith.addf %126, %133 : vector<8x384xf32>
    %c17 = arith.constant 17 : index
    %c0_85 = arith.constant 0 : index
    %c0_86 = arith.constant 0 : index
    %135 = vector.load %arg1[%c17, %c0_85, %c0_86] : memref<25x8x384xbf16, #tpu.memory_space<vmem>>, vector<1x8x384xbf16>
    %136 = vector.shape_cast %135 : vector<1x8x384xbf16> to vector<8x384xbf16>
    %137 = arith.extf %136 : vector<8x384xbf16> to vector<8x384xf32>
    %c17_87 = arith.constant 17 : index
    %c0_88 = arith.constant 0 : index
    %c0_89 = arith.constant 0 : index
    %138 = vector.load %arg2[%c17_87, %c0_88, %c0_89] : memref<25x1x384xf32, #tpu.memory_space<vmem>>, vector<1x1x384xf32>
    %139 = vector.shape_cast %138 : vector<1x1x384xf32> to vector<1x384xf32>
    %140 = vector.broadcast %139 : vector<1x384xf32> to vector<8x384xf32>
    %141 = arith.mulf %137, %140 : vector<8x384xf32>
    %142 = arith.addf %134, %141 : vector<8x384xf32>
    %c18 = arith.constant 18 : index
    %c0_90 = arith.constant 0 : index
    %c0_91 = arith.constant 0 : index
    %143 = vector.load %arg1[%c18, %c0_90, %c0_91] : memref<25x8x384xbf16, #tpu.memory_space<vmem>>, vector<1x8x384xbf16>
    %144 = vector.shape_cast %143 : vector<1x8x384xbf16> to vector<8x384xbf16>
    %145 = arith.extf %144 : vector<8x384xbf16> to vector<8x384xf32>
    %c18_92 = arith.constant 18 : index
    %c0_93 = arith.constant 0 : index
    %c0_94 = arith.constant 0 : index
    %146 = vector.load %arg2[%c18_92, %c0_93, %c0_94] : memref<25x1x384xf32, #tpu.memory_space<vmem>>, vector<1x1x384xf32>
    %147 = vector.shape_cast %146 : vector<1x1x384xf32> to vector<1x384xf32>
    %148 = vector.broadcast %147 : vector<1x384xf32> to vector<8x384xf32>
    %149 = arith.mulf %145, %148 : vector<8x384xf32>
    %150 = arith.addf %142, %149 : vector<8x384xf32>
    %c19 = arith.constant 19 : index
    %c0_95 = arith.constant 0 : index
    %c0_96 = arith.constant 0 : index
    %151 = vector.load %arg1[%c19, %c0_95, %c0_96] : memref<25x8x384xbf16, #tpu.memory_space<vmem>>, vector<1x8x384xbf16>
    %152 = vector.shape_cast %151 : vector<1x8x384xbf16> to vector<8x384xbf16>
    %153 = arith.extf %152 : vector<8x384xbf16> to vector<8x384xf32>
    %c19_97 = arith.constant 19 : index
    %c0_98 = arith.constant 0 : index
    %c0_99 = arith.constant 0 : index
    %154 = vector.load %arg2[%c19_97, %c0_98, %c0_99] : memref<25x1x384xf32, #tpu.memory_space<vmem>>, vector<1x1x384xf32>
    %155 = vector.shape_cast %154 : vector<1x1x384xf32> to vector<1x384xf32>
    %156 = vector.broadcast %155 : vector<1x384xf32> to vector<8x384xf32>
    %157 = arith.mulf %153, %156 : vector<8x384xf32>
    %158 = arith.addf %150, %157 : vector<8x384xf32>
    %c20 = arith.constant 20 : index
    %c0_100 = arith.constant 0 : index
    %c0_101 = arith.constant 0 : index
    %159 = vector.load %arg1[%c20, %c0_100, %c0_101] : memref<25x8x384xbf16, #tpu.memory_space<vmem>>, vector<1x8x384xbf16>
    %160 = vector.shape_cast %159 : vector<1x8x384xbf16> to vector<8x384xbf16>
    %161 = arith.extf %160 : vector<8x384xbf16> to vector<8x384xf32>
    %c20_102 = arith.constant 20 : index
    %c0_103 = arith.constant 0 : index
    %c0_104 = arith.constant 0 : index
    %162 = vector.load %arg2[%c20_102, %c0_103, %c0_104] : memref<25x1x384xf32, #tpu.memory_space<vmem>>, vector<1x1x384xf32>
    %163 = vector.shape_cast %162 : vector<1x1x384xf32> to vector<1x384xf32>
    %164 = vector.broadcast %163 : vector<1x384xf32> to vector<8x384xf32>
    %165 = arith.mulf %161, %164 : vector<8x384xf32>
    %166 = arith.addf %158, %165 : vector<8x384xf32>
    %c21 = arith.constant 21 : index
    %c0_105 = arith.constant 0 : index
    %c0_106 = arith.constant 0 : index
    %167 = vector.load %arg1[%c21, %c0_105, %c0_106] : memref<25x8x384xbf16, #tpu.memory_space<vmem>>, vector<1x8x384xbf16>
    %168 = vector.shape_cast %167 : vector<1x8x384xbf16> to vector<8x384xbf16>
    %169 = arith.extf %168 : vector<8x384xbf16> to vector<8x384xf32>
    %c21_107 = arith.constant 21 : index
    %c0_108 = arith.constant 0 : index
    %c0_109 = arith.constant 0 : index
    %170 = vector.load %arg2[%c21_107, %c0_108, %c0_109] : memref<25x1x384xf32, #tpu.memory_space<vmem>>, vector<1x1x384xf32>
    %171 = vector.shape_cast %170 : vector<1x1x384xf32> to vector<1x384xf32>
    %172 = vector.broadcast %171 : vector<1x384xf32> to vector<8x384xf32>
    %173 = arith.mulf %169, %172 : vector<8x384xf32>
    %174 = arith.addf %166, %173 : vector<8x384xf32>
    %c22 = arith.constant 22 : index
    %c0_110 = arith.constant 0 : index
    %c0_111 = arith.constant 0 : index
    %175 = vector.load %arg1[%c22, %c0_110, %c0_111] : memref<25x8x384xbf16, #tpu.memory_space<vmem>>, vector<1x8x384xbf16>
    %176 = vector.shape_cast %175 : vector<1x8x384xbf16> to vector<8x384xbf16>
    %177 = arith.extf %176 : vector<8x384xbf16> to vector<8x384xf32>
    %c22_112 = arith.constant 22 : index
    %c0_113 = arith.constant 0 : index
    %c0_114 = arith.constant 0 : index
    %178 = vector.load %arg2[%c22_112, %c0_113, %c0_114] : memref<25x1x384xf32, #tpu.memory_space<vmem>>, vector<1x1x384xf32>
    %179 = vector.shape_cast %178 : vector<1x1x384xf32> to vector<1x384xf32>
    %180 = vector.broadcast %179 : vector<1x384xf32> to vector<8x384xf32>
    %181 = arith.mulf %177, %180 : vector<8x384xf32>
    %182 = arith.addf %174, %181 : vector<8x384xf32>
    %c23 = arith.constant 23 : index
    %c0_115 = arith.constant 0 : index
    %c0_116 = arith.constant 0 : index
    %183 = vector.load %arg1[%c23, %c0_115, %c0_116] : memref<25x8x384xbf16, #tpu.memory_space<vmem>>, vector<1x8x384xbf16>
    %184 = vector.shape_cast %183 : vector<1x8x384xbf16> to vector<8x384xbf16>
    %185 = arith.extf %184 : vector<8x384xbf16> to vector<8x384xf32>
    %c23_117 = arith.constant 23 : index
    %c0_118 = arith.constant 0 : index
    %c0_119 = arith.constant 0 : index
    %186 = vector.load %arg2[%c23_117, %c0_118, %c0_119] : memref<25x1x384xf32, #tpu.memory_space<vmem>>, vector<1x1x384xf32>
    %187 = vector.shape_cast %186 : vector<1x1x384xf32> to vector<1x384xf32>
    %188 = vector.broadcast %187 : vector<1x384xf32> to vector<8x384xf32>
    %189 = arith.mulf %185, %188 : vector<8x384xf32>
    %190 = arith.addf %182, %189 : vector<8x384xf32>
    %c24 = arith.constant 24 : index
    %c0_120 = arith.constant 0 : index
    %c0_121 = arith.constant 0 : index
    %191 = vector.load %arg1[%c24, %c0_120, %c0_121] : memref<25x8x384xbf16, #tpu.memory_space<vmem>>, vector<1x8x384xbf16>
    %192 = vector.shape_cast %191 : vector<1x8x384xbf16> to vector<8x384xbf16>
    %193 = arith.extf %192 : vector<8x384xbf16> to vector<8x384xf32>
    %c24_122 = arith.constant 24 : index
    %c0_123 = arith.constant 0 : index
    %c0_124 = arith.constant 0 : index
    %194 = vector.load %arg2[%c24_122, %c0_123, %c0_124] : memref<25x1x384xf32, #tpu.memory_space<vmem>>, vector<1x1x384xf32>
    %195 = vector.shape_cast %194 : vector<1x1x384xf32> to vector<1x384xf32>
    %196 = vector.broadcast %195 : vector<1x384xf32> to vector<8x384xf32>
    %197 = arith.mulf %193, %196 : vector<8x384xf32>
    %198 = arith.addf %190, %197 : vector<8x384xf32>
    %c0_125 = arith.constant 0 : index
    %c0_126 = arith.constant 0 : index
    %199 = vector.load %arg3[%c0_125, %c0_126] : memref<1x384xf32, #tpu.memory_space<vmem>>, vector<1x384xf32>
    %200 = vector.broadcast %199 : vector<1x384xf32> to vector<8x384xf32>
    %201 = arith.mulf %198, %200 : vector<8x384xf32>
    %c0_127 = arith.constant 0 : index
    %c0_128 = arith.constant 0 : index
    %202 = vector.load %arg4[%c0_127, %c0_128] : memref<1x384xf32, #tpu.memory_space<vmem>>, vector<1x384xf32>
    %203 = vector.broadcast %202 : vector<1x384xf32> to vector<8x384xf32>
    %204 = arith.addf %201, %203 : vector<8x384xf32>
    %205 = arith.truncf %204 : vector<8x384xf32> to vector<8x384xbf16>
    %c0_129 = arith.constant 0 : index
    %c0_130 = arith.constant 0 : index
    %206 = vector.load %arg5[%c0_129, %c0_130] : memref<8x384xbf16, #tpu.memory_space<vmem>>, vector<8x384xbf16>
    tpu.vector_store %arg5[%c0_129, %c0_130], %205 {strides = array<i32>} : memref<8x384xbf16, #tpu.memory_space<vmem>>, vector<8x384xbf16>,
    return
  }
  func.func @transform_0(%arg0: i32) -> (i32, i32, i32) {
    %c0_i32 = arith.constant 0 : i32
    %c0_i32_0 = arith.constant 0 : i32
    %c0_i32_1 = arith.constant 0 : i32
    return %c0_i32, %arg0, %c0_i32_0 : i32, i32, i32
  }
  func.func @transform_1(%arg0: i32) -> (i32, i32, i32) {
    %c0_i32 = arith.constant 0 : i32
    %c0_i32_0 = arith.constant 0 : i32
    %c0_i32_1 = arith.constant 0 : i32
    %c0_i32_2 = arith.constant 0 : i32
    return %c0_i32, %c0_i32_0, %c0_i32_1 : i32, i32, i32
  }
  func.func @transform_2(%arg0: i32) -> (i32, i32) {
    %c0_i32 = arith.constant 0 : i32
    %c0_i32_0 = arith.constant 0 : i32
    %c0_i32_1 = arith.constant 0 : i32
    return %c0_i32, %c0_i32_0 : i32, i32
  }
  func.func @transform_3(%arg0: i32) -> (i32, i32) {
    %c0_i32 = arith.constant 0 : i32
    %c0_i32_0 = arith.constant 0 : i32
    %c0_i32_1 = arith.constant 0 : i32
    return %c0_i32, %c0_i32_0 : i32, i32
  }
  func.func @transform_4(%arg0: i32) -> (i32, i32) {
    %c0_i32 = arith.constant 0 : i32
    %c0_i32_0 = arith.constant 0 : i32
    return %arg0, %c0_i32 : i32, i32
  }
}

module attributes {stable_mosaic.version = 11 : i64} {
  func.func @_mm_kernel(%arg0: i32, %arg1: memref<32x72xbf16, #tpu.memory_space<vmem>>, %arg2: memref<72x16xbf16, #tpu.memory_space<vmem>>, %arg3: memref<1x16xf32, #tpu.memory_space<vmem>>, %arg4: memref<1x16xf32, #tpu.memory_space<vmem>>, %arg5: memref<32x16xbf16, #tpu.memory_space<vmem>>) attributes {dimension_semantics = [#tpu.dimension_semantics<parallel>], iteration_bounds = array<i64: 2>, scalar_prefetch = 0 : i64, scratch_operands = 0 : i64, tpu.core_type = #tpu.core_type<tc>, window_params = [{transform_indices = @transform_0, window_bounds = array<i64: 32, 72>}, {pipeline_mode = #tpu.pipeline_mode<synchronous>, transform_indices = @transform_1, window_bounds = array<i64: 72, 16>}, {pipeline_mode = #tpu.pipeline_mode<synchronous>, transform_indices = @transform_2, window_bounds = array<i64: 1, 16>}, {pipeline_mode = #tpu.pipeline_mode<synchronous>, transform_indices = @transform_3, window_bounds = array<i64: 1, 16>}, {transform_indices = @transform_4, window_bounds = array<i64: 32, 16>}]} {
    %c0 = arith.constant 0 : index
    %c0_0 = arith.constant 0 : index
    %0 = vector.load %arg1[%c0, %c0_0] : memref<32x72xbf16, #tpu.memory_space<vmem>>, vector<32x72xbf16>
    %c0_1 = arith.constant 0 : index
    %c0_2 = arith.constant 0 : index
    %1 = vector.load %arg2[%c0_1, %c0_2] : memref<72x16xbf16, #tpu.memory_space<vmem>>, vector<72x16xbf16>
    %cst = arith.constant dense<0.000000e+00> : vector<32x16xf32>
    %2 = tpu.matmul %0, %1, %cst {dimension_numbers = #tpu.dot_dimension_numbers<[1], [0], [0], [1], [0, 0, 1, 1], [], []>} : vector<32x72xbf16>, vector<72x16xbf16>, vector<32x16xf32> -> vector<32x16xf32>
    %c0_3 = arith.constant 0 : index
    %c0_4 = arith.constant 0 : index
    %3 = vector.load %arg3[%c0_3, %c0_4] : memref<1x16xf32, #tpu.memory_space<vmem>>, vector<1x16xf32>
    %4 = vector.broadcast %3 : vector<1x16xf32> to vector<32x16xf32>
    %5 = arith.mulf %2, %4 : vector<32x16xf32>
    %c0_5 = arith.constant 0 : index
    %c0_6 = arith.constant 0 : index
    %6 = vector.load %arg4[%c0_5, %c0_6] : memref<1x16xf32, #tpu.memory_space<vmem>>, vector<1x16xf32>
    %7 = vector.broadcast %6 : vector<1x16xf32> to vector<32x16xf32>
    %8 = arith.addf %5, %7 : vector<32x16xf32>
    %9 = arith.truncf %8 : vector<32x16xf32> to vector<32x16xbf16>
    %c0_7 = arith.constant 0 : index
    %c0_8 = arith.constant 0 : index
    %10 = vector.load %arg5[%c0_7, %c0_8] : memref<32x16xbf16, #tpu.memory_space<vmem>>, vector<32x16xbf16>
    tpu.vector_store %arg5[%c0_7, %c0_8], %9 {strides = array<i32>} : memref<32x16xbf16, #tpu.memory_space<vmem>>, vector<32x16xbf16>,
    return
  }
  func.func @transform_0(%arg0: i32) -> (i32, i32) {
    %c0_i32 = arith.constant 0 : i32
    %c0_i32_0 = arith.constant 0 : i32
    return %arg0, %c0_i32 : i32, i32
  }
  func.func @transform_1(%arg0: i32) -> (i32, i32) {
    %c0_i32 = arith.constant 0 : i32
    %c0_i32_0 = arith.constant 0 : i32
    %c0_i32_1 = arith.constant 0 : i32
    return %c0_i32, %c0_i32_0 : i32, i32
  }
  func.func @transform_2(%arg0: i32) -> (i32, i32) {
    %c0_i32 = arith.constant 0 : i32
    %c0_i32_0 = arith.constant 0 : i32
    %c0_i32_1 = arith.constant 0 : i32
    return %c0_i32, %c0_i32_0 : i32, i32
  }
  func.func @transform_3(%arg0: i32) -> (i32, i32) {
    %c0_i32 = arith.constant 0 : i32
    %c0_i32_0 = arith.constant 0 : i32
    %c0_i32_1 = arith.constant 0 : i32
    return %c0_i32, %c0_i32_0 : i32, i32
  }
  func.func @transform_4(%arg0: i32) -> (i32, i32) {
    %c0_i32 = arith.constant 0 : i32
    %c0_i32_0 = arith.constant 0 : i32
    return %arg0, %c0_i32 : i32, i32
  }
}

module attributes {stable_mosaic.version = 11 : i64} {
  func.func @_sattn_res_kernel(%arg0: i32, %arg1: memref<32x16xbf16, #tpu.memory_space<vmem>>, %arg2: memref<32x1xf32, #tpu.memory_space<vmem>>, %arg3: memref<32x16xbf16, #tpu.memory_space<vmem>>, %arg4: memref<32x16xbf16, #tpu.memory_space<vmem>>) attributes {dimension_semantics = [#tpu.dimension_semantics<parallel>], iteration_bounds = array<i64: 2>, scalar_prefetch = 0 : i64, scratch_operands = 0 : i64, tpu.core_type = #tpu.core_type<tc>, window_params = [{transform_indices = @transform_0, window_bounds = array<i64: 32, 16>}, {transform_indices = @transform_1, window_bounds = array<i64: 32, 1>}, {transform_indices = @transform_2, window_bounds = array<i64: 32, 16>}, {transform_indices = @transform_3, window_bounds = array<i64: 32, 16>}]} {
    %c0 = arith.constant 0 : index
    %c0_0 = arith.constant 0 : index
    %0 = vector.load %arg2[%c0, %c0_0] : memref<32x1xf32, #tpu.memory_space<vmem>>, vector<32x1xf32>
    %1 = arith.negf %0 : vector<32x1xf32>
    %2 = math.exp %1 : vector<32x1xf32>
    %cst = arith.constant 1.000000e+00 : f32
    %3 = vector.broadcast %cst : f32 to vector<32x1xf32>
    %4 = arith.addf %3, %2 : vector<32x1xf32>
    %5 = arith.divf %3, %4 : vector<32x1xf32>
    %c0_1 = arith.constant 0 : index
    %c0_2 = arith.constant 0 : index
    %6 = vector.load %arg1[%c0_1, %c0_2] : memref<32x16xbf16, #tpu.memory_space<vmem>>, vector<32x16xbf16>
    %7 = arith.extf %6 : vector<32x16xbf16> to vector<32x16xf32>
    %8 = vector.broadcast %5 : vector<32x1xf32> to vector<32x16xf32>
    %9 = arith.mulf %7, %8 : vector<32x16xf32>
    %c0_3 = arith.constant 0 : index
    %c0_4 = arith.constant 0 : index
    %10 = vector.load %arg3[%c0_3, %c0_4] : memref<32x16xbf16, #tpu.memory_space<vmem>>, vector<32x16xbf16>
    %11 = arith.extf %10 : vector<32x16xbf16> to vector<32x16xf32>
    %12 = arith.addf %9, %11 : vector<32x16xf32>
    %cst_5 = arith.constant 0.000000e+00 : f32
    %13 = vector.broadcast %cst_5 : f32 to vector<32x16xf32>
    %14 = arith.maximumf %12, %13 : vector<32x16xf32>
    %15 = arith.truncf %14 : vector<32x16xf32> to vector<32x16xbf16>
    %c0_6 = arith.constant 0 : index
    %c0_7 = arith.constant 0 : index
    %16 = vector.load %arg4[%c0_6, %c0_7] : memref<32x16xbf16, #tpu.memory_space<vmem>>, vector<32x16xbf16>
    tpu.vector_store %arg4[%c0_6, %c0_7], %15 {strides = array<i32>} : memref<32x16xbf16, #tpu.memory_space<vmem>>, vector<32x16xbf16>,
    return
  }
  func.func @transform_0(%arg0: i32) -> (i32, i32) {
    %c0_i32 = arith.constant 0 : i32
    %c0_i32_0 = arith.constant 0 : i32
    return %arg0, %c0_i32 : i32, i32
  }
  func.func @transform_1(%arg0: i32) -> (i32, i32) {
    %c0_i32 = arith.constant 0 : i32
    %c0_i32_0 = arith.constant 0 : i32
    return %arg0, %c0_i32 : i32, i32
  }
  func.func @transform_2(%arg0: i32) -> (i32, i32) {
    %c0_i32 = arith.constant 0 : i32
    %c0_i32_0 = arith.constant 0 : i32
    return %arg0, %c0_i32 : i32, i32
  }
  func.func @transform_3(%arg0: i32) -> (i32, i32) {
    %c0_i32 = arith.constant 0 : i32
    %c0_i32_0 = arith.constant 0 : i32
    return %arg0, %c0_i32 : i32, i32
  }
}

module attributes {stable_mosaic.version = 11 : i64} {
  func.func @_mm_kernel(%arg0: i32, %arg1: memref<16x16xbf16, #tpu.memory_space<vmem>>, %arg2: memref<16x20xbf16, #tpu.memory_space<vmem>>, %arg3: memref<1x20xf32, #tpu.memory_space<vmem>>, %arg4: memref<1x20xf32, #tpu.memory_space<vmem>>, %arg5: memref<16x20xbf16, #tpu.memory_space<vmem>>) attributes {dimension_semantics = [#tpu.dimension_semantics<parallel>], iteration_bounds = array<i64: 1>, scalar_prefetch = 0 : i64, scratch_operands = 0 : i64, tpu.core_type = #tpu.core_type<tc>, window_params = [{transform_indices = @transform_0, window_bounds = array<i64: 16, 16>}, {pipeline_mode = #tpu.pipeline_mode<synchronous>, transform_indices = @transform_1, window_bounds = array<i64: 16, 20>}, {pipeline_mode = #tpu.pipeline_mode<synchronous>, transform_indices = @transform_2, window_bounds = array<i64: 1, 20>}, {pipeline_mode = #tpu.pipeline_mode<synchronous>, transform_indices = @transform_3, window_bounds = array<i64: 1, 20>}, {transform_indices = @transform_4, window_bounds = array<i64: 16, 20>}]} {
    %c0 = arith.constant 0 : index
    %c0_0 = arith.constant 0 : index
    %0 = vector.load %arg1[%c0, %c0_0] : memref<16x16xbf16, #tpu.memory_space<vmem>>, vector<16x16xbf16>
    %c0_1 = arith.constant 0 : index
    %c0_2 = arith.constant 0 : index
    %1 = vector.load %arg2[%c0_1, %c0_2] : memref<16x20xbf16, #tpu.memory_space<vmem>>, vector<16x20xbf16>
    %cst = arith.constant dense<0.000000e+00> : vector<16x20xf32>
    %2 = tpu.matmul %0, %1, %cst {dimension_numbers = #tpu.dot_dimension_numbers<[1], [0], [0], [1], [0, 0, 1, 1], [], []>} : vector<16x16xbf16>, vector<16x20xbf16>, vector<16x20xf32> -> vector<16x20xf32>
    %c0_3 = arith.constant 0 : index
    %c0_4 = arith.constant 0 : index
    %3 = vector.load %arg3[%c0_3, %c0_4] : memref<1x20xf32, #tpu.memory_space<vmem>>, vector<1x20xf32>
    %4 = vector.broadcast %3 : vector<1x20xf32> to vector<16x20xf32>
    %5 = arith.mulf %2, %4 : vector<16x20xf32>
    %c0_5 = arith.constant 0 : index
    %c0_6 = arith.constant 0 : index
    %6 = vector.load %arg4[%c0_5, %c0_6] : memref<1x20xf32, #tpu.memory_space<vmem>>, vector<1x20xf32>
    %7 = vector.broadcast %6 : vector<1x20xf32> to vector<16x20xf32>
    %8 = arith.addf %5, %7 : vector<16x20xf32>
    %9 = arith.truncf %8 : vector<16x20xf32> to vector<16x20xbf16>
    %c0_7 = arith.constant 0 : index
    %c0_8 = arith.constant 0 : index
    %10 = vector.load %arg5[%c0_7, %c0_8] : memref<16x20xbf16, #tpu.memory_space<vmem>>, vector<16x20xbf16>
    tpu.vector_store %arg5[%c0_7, %c0_8], %9 {strides = array<i32>} : memref<16x20xbf16, #tpu.memory_space<vmem>>, vector<16x20xbf16>,
    return
  }
  func.func @transform_0(%arg0: i32) -> (i32, i32) {
    %c0_i32 = arith.constant 0 : i32
    %c0_i32_0 = arith.constant 0 : i32
    return %arg0, %c0_i32 : i32, i32
  }
  func.func @transform_1(%arg0: i32) -> (i32, i32) {
    %c0_i32 = arith.constant 0 : i32
    %c0_i32_0 = arith.constant 0 : i32
    %c0_i32_1 = arith.constant 0 : i32
    return %c0_i32, %c0_i32_0 : i32, i32
  }
  func.func @transform_2(%arg0: i32) -> (i32, i32) {
    %c0_i32 = arith.constant 0 : i32
    %c0_i32_0 = arith.constant 0 : i32
    %c0_i32_1 = arith.constant 0 : i32
    return %c0_i32, %c0_i32_0 : i32, i32
  }
  func.func @transform_3(%arg0: i32) -> (i32, i32) {
    %c0_i32 = arith.constant 0 : i32
    %c0_i32_0 = arith.constant 0 : i32
    %c0_i32_1 = arith.constant 0 : i32
    return %c0_i32, %c0_i32_0 : i32, i32
  }
  func.func @transform_4(%arg0: i32) -> (i32, i32) {
    %c0_i32 = arith.constant 0 : i32
    %c0_i32_0 = arith.constant 0 : i32
    return %arg0, %c0_i32 : i32, i32
  }
}

module attributes {stable_mosaic.version = 11 : i64} {
  func.func @_mm_kernel(%arg0: i32, %arg1: memref<32x48xbf16, #tpu.memory_space<vmem>>, %arg2: memref<48x32xbf16, #tpu.memory_space<vmem>>, %arg3: memref<1x32xf32, #tpu.memory_space<vmem>>, %arg4: memref<1x32xf32, #tpu.memory_space<vmem>>, %arg5: memref<32x32xbf16, #tpu.memory_space<vmem>>) attributes {dimension_semantics = [#tpu.dimension_semantics<parallel>], iteration_bounds = array<i64: 2>, scalar_prefetch = 0 : i64, scratch_operands = 0 : i64, tpu.core_type = #tpu.core_type<tc>, window_params = [{transform_indices = @transform_0, window_bounds = array<i64: 32, 48>}, {pipeline_mode = #tpu.pipeline_mode<synchronous>, transform_indices = @transform_1, window_bounds = array<i64: 48, 32>}, {pipeline_mode = #tpu.pipeline_mode<synchronous>, transform_indices = @transform_2, window_bounds = array<i64: 1, 32>}, {pipeline_mode = #tpu.pipeline_mode<synchronous>, transform_indices = @transform_3, window_bounds = array<i64: 1, 32>}, {transform_indices = @transform_4, window_bounds = array<i64: 32, 32>}]} {
    %c0 = arith.constant 0 : index
    %c0_0 = arith.constant 0 : index
    %0 = vector.load %arg1[%c0, %c0_0] : memref<32x48xbf16, #tpu.memory_space<vmem>>, vector<32x48xbf16>
    %c0_1 = arith.constant 0 : index
    %c0_2 = arith.constant 0 : index
    %1 = vector.load %arg2[%c0_1, %c0_2] : memref<48x32xbf16, #tpu.memory_space<vmem>>, vector<48x32xbf16>
    %cst = arith.constant dense<0.000000e+00> : vector<32x32xf32>
    %2 = tpu.matmul %0, %1, %cst {dimension_numbers = #tpu.dot_dimension_numbers<[1], [0], [0], [1], [0, 0, 1, 1], [], []>} : vector<32x48xbf16>, vector<48x32xbf16>, vector<32x32xf32> -> vector<32x32xf32>
    %c0_3 = arith.constant 0 : index
    %c0_4 = arith.constant 0 : index
    %3 = vector.load %arg3[%c0_3, %c0_4] : memref<1x32xf32, #tpu.memory_space<vmem>>, vector<1x32xf32>
    %4 = vector.broadcast %3 : vector<1x32xf32> to vector<32x32xf32>
    %5 = arith.mulf %2, %4 : vector<32x32xf32>
    %c0_5 = arith.constant 0 : index
    %c0_6 = arith.constant 0 : index
    %6 = vector.load %arg4[%c0_5, %c0_6] : memref<1x32xf32, #tpu.memory_space<vmem>>, vector<1x32xf32>
    %7 = vector.broadcast %6 : vector<1x32xf32> to vector<32x32xf32>
    %8 = arith.addf %5, %7 : vector<32x32xf32>
    %cst_7 = arith.constant 0.000000e+00 : f32
    %9 = vector.broadcast %cst_7 : f32 to vector<32x32xf32>
    %10 = arith.maximumf %8, %9 : vector<32x32xf32>
    %11 = arith.truncf %10 : vector<32x32xf32> to vector<32x32xbf16>
    %c0_8 = arith.constant 0 : index
    %c0_9 = arith.constant 0 : index
    %12 = vector.load %arg5[%c0_8, %c0_9] : memref<32x32xbf16, #tpu.memory_space<vmem>>, vector<32x32xbf16>
    tpu.vector_store %arg5[%c0_8, %c0_9], %11 {strides = array<i32>} : memref<32x32xbf16, #tpu.memory_space<vmem>>, vector<32x32xbf16>,
    return
  }
  func.func @transform_0(%arg0: i32) -> (i32, i32) {
    %c0_i32 = arith.constant 0 : i32
    %c0_i32_0 = arith.constant 0 : i32
    return %arg0, %c0_i32 : i32, i32
  }
  func.func @transform_1(%arg0: i32) -> (i32, i32) {
    %c0_i32 = arith.constant 0 : i32
    %c0_i32_0 = arith.constant 0 : i32
    %c0_i32_1 = arith.constant 0 : i32
    return %c0_i32, %c0_i32_0 : i32, i32
  }
  func.func @transform_2(%arg0: i32) -> (i32, i32) {
    %c0_i32 = arith.constant 0 : i32
    %c0_i32_0 = arith.constant 0 : i32
    %c0_i32_1 = arith.constant 0 : i32
    return %c0_i32, %c0_i32_0 : i32, i32
  }
  func.func @transform_3(%arg0: i32) -> (i32, i32) {
    %c0_i32 = arith.constant 0 : i32
    %c0_i32_0 = arith.constant 0 : i32
    %c0_i32_1 = arith.constant 0 : i32
    return %c0_i32, %c0_i32_0 : i32, i32
  }
  func.func @transform_4(%arg0: i32) -> (i32, i32) {
    %c0_i32 = arith.constant 0 : i32
    %c0_i32_0 = arith.constant 0 : i32
    return %arg0, %c0_i32 : i32, i32
  }
}

module attributes {stable_mosaic.version = 11 : i64} {
  func.func @_dw_kernel(%arg0: i32, %arg1: memref<9x8x128xbf16, #tpu.memory_space<vmem>>, %arg2: memref<9x1x128xf32, #tpu.memory_space<vmem>>, %arg3: memref<1x128xf32, #tpu.memory_space<vmem>>, %arg4: memref<1x128xf32, #tpu.memory_space<vmem>>, %arg5: memref<8x128xbf16, #tpu.memory_space<vmem>>) attributes {dimension_semantics = [#tpu.dimension_semantics<parallel>], iteration_bounds = array<i64: 1>, scalar_prefetch = 0 : i64, scratch_operands = 0 : i64, tpu.core_type = #tpu.core_type<tc>, window_params = [{transform_indices = @transform_0, window_bounds = array<i64: 9, 8, 128>}, {pipeline_mode = #tpu.pipeline_mode<synchronous>, transform_indices = @transform_1, window_bounds = array<i64: 9, 1, 128>}, {pipeline_mode = #tpu.pipeline_mode<synchronous>, transform_indices = @transform_2, window_bounds = array<i64: 1, 128>}, {pipeline_mode = #tpu.pipeline_mode<synchronous>, transform_indices = @transform_3, window_bounds = array<i64: 1, 128>}, {transform_indices = @transform_4, window_bounds = array<i64: 8, 128>}]} {
    %c0 = arith.constant 0 : index
    %c0_0 = arith.constant 0 : index
    %c0_1 = arith.constant 0 : index
    %0 = vector.load %arg1[%c0, %c0_0, %c0_1] : memref<9x8x128xbf16, #tpu.memory_space<vmem>>, vector<1x8x128xbf16>
    %1 = vector.shape_cast %0 : vector<1x8x128xbf16> to vector<8x128xbf16>
    %2 = arith.extf %1 : vector<8x128xbf16> to vector<8x128xf32>
    %c0_2 = arith.constant 0 : index
    %c0_3 = arith.constant 0 : index
    %c0_4 = arith.constant 0 : index
    %3 = vector.load %arg2[%c0_2, %c0_3, %c0_4] : memref<9x1x128xf32, #tpu.memory_space<vmem>>, vector<1x1x128xf32>
    %4 = vector.shape_cast %3 : vector<1x1x128xf32> to vector<1x128xf32>
    %5 = vector.broadcast %4 : vector<1x128xf32> to vector<8x128xf32>
    %6 = arith.mulf %2, %5 : vector<8x128xf32>
    %c1 = arith.constant 1 : index
    %c0_5 = arith.constant 0 : index
    %c0_6 = arith.constant 0 : index
    %7 = vector.load %arg1[%c1, %c0_5, %c0_6] : memref<9x8x128xbf16, #tpu.memory_space<vmem>>, vector<1x8x128xbf16>
    %8 = vector.shape_cast %7 : vector<1x8x128xbf16> to vector<8x128xbf16>
    %9 = arith.extf %8 : vector<8x128xbf16> to vector<8x128xf32>
    %c1_7 = arith.constant 1 : index
    %c0_8 = arith.constant 0 : index
    %c0_9 = arith.constant 0 : index
    %10 = vector.load %arg2[%c1_7, %c0_8, %c0_9] : memref<9x1x128xf32, #tpu.memory_space<vmem>>, vector<1x1x128xf32>
    %11 = vector.shape_cast %10 : vector<1x1x128xf32> to vector<1x128xf32>
    %12 = vector.broadcast %11 : vector<1x128xf32> to vector<8x128xf32>
    %13 = arith.mulf %9, %12 : vector<8x128xf32>
    %14 = arith.addf %6, %13 : vector<8x128xf32>
    %c2 = arith.constant 2 : index
    %c0_10 = arith.constant 0 : index
    %c0_11 = arith.constant 0 : index
    %15 = vector.load %arg1[%c2, %c0_10, %c0_11] : memref<9x8x128xbf16, #tpu.memory_space<vmem>>, vector<1x8x128xbf16>
    %16 = vector.shape_cast %15 : vector<1x8x128xbf16> to vector<8x128xbf16>
    %17 = arith.extf %16 : vector<8x128xbf16> to vector<8x128xf32>
    %c2_12 = arith.constant 2 : index
    %c0_13 = arith.constant 0 : index
    %c0_14 = arith.constant 0 : index
    %18 = vector.load %arg2[%c2_12, %c0_13, %c0_14] : memref<9x1x128xf32, #tpu.memory_space<vmem>>, vector<1x1x128xf32>
    %19 = vector.shape_cast %18 : vector<1x1x128xf32> to vector<1x128xf32>
    %20 = vector.broadcast %19 : vector<1x128xf32> to vector<8x128xf32>
    %21 = arith.mulf %17, %20 : vector<8x128xf32>
    %22 = arith.addf %14, %21 : vector<8x128xf32>
    %c3 = arith.constant 3 : index
    %c0_15 = arith.constant 0 : index
    %c0_16 = arith.constant 0 : index
    %23 = vector.load %arg1[%c3, %c0_15, %c0_16] : memref<9x8x128xbf16, #tpu.memory_space<vmem>>, vector<1x8x128xbf16>
    %24 = vector.shape_cast %23 : vector<1x8x128xbf16> to vector<8x128xbf16>
    %25 = arith.extf %24 : vector<8x128xbf16> to vector<8x128xf32>
    %c3_17 = arith.constant 3 : index
    %c0_18 = arith.constant 0 : index
    %c0_19 = arith.constant 0 : index
    %26 = vector.load %arg2[%c3_17, %c0_18, %c0_19] : memref<9x1x128xf32, #tpu.memory_space<vmem>>, vector<1x1x128xf32>
    %27 = vector.shape_cast %26 : vector<1x1x128xf32> to vector<1x128xf32>
    %28 = vector.broadcast %27 : vector<1x128xf32> to vector<8x128xf32>
    %29 = arith.mulf %25, %28 : vector<8x128xf32>
    %30 = arith.addf %22, %29 : vector<8x128xf32>
    %c4 = arith.constant 4 : index
    %c0_20 = arith.constant 0 : index
    %c0_21 = arith.constant 0 : index
    %31 = vector.load %arg1[%c4, %c0_20, %c0_21] : memref<9x8x128xbf16, #tpu.memory_space<vmem>>, vector<1x8x128xbf16>
    %32 = vector.shape_cast %31 : vector<1x8x128xbf16> to vector<8x128xbf16>
    %33 = arith.extf %32 : vector<8x128xbf16> to vector<8x128xf32>
    %c4_22 = arith.constant 4 : index
    %c0_23 = arith.constant 0 : index
    %c0_24 = arith.constant 0 : index
    %34 = vector.load %arg2[%c4_22, %c0_23, %c0_24] : memref<9x1x128xf32, #tpu.memory_space<vmem>>, vector<1x1x128xf32>
    %35 = vector.shape_cast %34 : vector<1x1x128xf32> to vector<1x128xf32>
    %36 = vector.broadcast %35 : vector<1x128xf32> to vector<8x128xf32>
    %37 = arith.mulf %33, %36 : vector<8x128xf32>
    %38 = arith.addf %30, %37 : vector<8x128xf32>
    %c5 = arith.constant 5 : index
    %c0_25 = arith.constant 0 : index
    %c0_26 = arith.constant 0 : index
    %39 = vector.load %arg1[%c5, %c0_25, %c0_26] : memref<9x8x128xbf16, #tpu.memory_space<vmem>>, vector<1x8x128xbf16>
    %40 = vector.shape_cast %39 : vector<1x8x128xbf16> to vector<8x128xbf16>
    %41 = arith.extf %40 : vector<8x128xbf16> to vector<8x128xf32>
    %c5_27 = arith.constant 5 : index
    %c0_28 = arith.constant 0 : index
    %c0_29 = arith.constant 0 : index
    %42 = vector.load %arg2[%c5_27, %c0_28, %c0_29] : memref<9x1x128xf32, #tpu.memory_space<vmem>>, vector<1x1x128xf32>
    %43 = vector.shape_cast %42 : vector<1x1x128xf32> to vector<1x128xf32>
    %44 = vector.broadcast %43 : vector<1x128xf32> to vector<8x128xf32>
    %45 = arith.mulf %41, %44 : vector<8x128xf32>
    %46 = arith.addf %38, %45 : vector<8x128xf32>
    %c6 = arith.constant 6 : index
    %c0_30 = arith.constant 0 : index
    %c0_31 = arith.constant 0 : index
    %47 = vector.load %arg1[%c6, %c0_30, %c0_31] : memref<9x8x128xbf16, #tpu.memory_space<vmem>>, vector<1x8x128xbf16>
    %48 = vector.shape_cast %47 : vector<1x8x128xbf16> to vector<8x128xbf16>
    %49 = arith.extf %48 : vector<8x128xbf16> to vector<8x128xf32>
    %c6_32 = arith.constant 6 : index
    %c0_33 = arith.constant 0 : index
    %c0_34 = arith.constant 0 : index
    %50 = vector.load %arg2[%c6_32, %c0_33, %c0_34] : memref<9x1x128xf32, #tpu.memory_space<vmem>>, vector<1x1x128xf32>
    %51 = vector.shape_cast %50 : vector<1x1x128xf32> to vector<1x128xf32>
    %52 = vector.broadcast %51 : vector<1x128xf32> to vector<8x128xf32>
    %53 = arith.mulf %49, %52 : vector<8x128xf32>
    %54 = arith.addf %46, %53 : vector<8x128xf32>
    %c7 = arith.constant 7 : index
    %c0_35 = arith.constant 0 : index
    %c0_36 = arith.constant 0 : index
    %55 = vector.load %arg1[%c7, %c0_35, %c0_36] : memref<9x8x128xbf16, #tpu.memory_space<vmem>>, vector<1x8x128xbf16>
    %56 = vector.shape_cast %55 : vector<1x8x128xbf16> to vector<8x128xbf16>
    %57 = arith.extf %56 : vector<8x128xbf16> to vector<8x128xf32>
    %c7_37 = arith.constant 7 : index
    %c0_38 = arith.constant 0 : index
    %c0_39 = arith.constant 0 : index
    %58 = vector.load %arg2[%c7_37, %c0_38, %c0_39] : memref<9x1x128xf32, #tpu.memory_space<vmem>>, vector<1x1x128xf32>
    %59 = vector.shape_cast %58 : vector<1x1x128xf32> to vector<1x128xf32>
    %60 = vector.broadcast %59 : vector<1x128xf32> to vector<8x128xf32>
    %61 = arith.mulf %57, %60 : vector<8x128xf32>
    %62 = arith.addf %54, %61 : vector<8x128xf32>
    %c8 = arith.constant 8 : index
    %c0_40 = arith.constant 0 : index
    %c0_41 = arith.constant 0 : index
    %63 = vector.load %arg1[%c8, %c0_40, %c0_41] : memref<9x8x128xbf16, #tpu.memory_space<vmem>>, vector<1x8x128xbf16>
    %64 = vector.shape_cast %63 : vector<1x8x128xbf16> to vector<8x128xbf16>
    %65 = arith.extf %64 : vector<8x128xbf16> to vector<8x128xf32>
    %c8_42 = arith.constant 8 : index
    %c0_43 = arith.constant 0 : index
    %c0_44 = arith.constant 0 : index
    %66 = vector.load %arg2[%c8_42, %c0_43, %c0_44] : memref<9x1x128xf32, #tpu.memory_space<vmem>>, vector<1x1x128xf32>
    %67 = vector.shape_cast %66 : vector<1x1x128xf32> to vector<1x128xf32>
    %68 = vector.broadcast %67 : vector<1x128xf32> to vector<8x128xf32>
    %69 = arith.mulf %65, %68 : vector<8x128xf32>
    %70 = arith.addf %62, %69 : vector<8x128xf32>
    %c0_45 = arith.constant 0 : index
    %c0_46 = arith.constant 0 : index
    %71 = vector.load %arg3[%c0_45, %c0_46] : memref<1x128xf32, #tpu.memory_space<vmem>>, vector<1x128xf32>
    %72 = vector.broadcast %71 : vector<1x128xf32> to vector<8x128xf32>
    %73 = arith.mulf %70, %72 : vector<8x128xf32>
    %c0_47 = arith.constant 0 : index
    %c0_48 = arith.constant 0 : index
    %74 = vector.load %arg4[%c0_47, %c0_48] : memref<1x128xf32, #tpu.memory_space<vmem>>, vector<1x128xf32>
    %75 = vector.broadcast %74 : vector<1x128xf32> to vector<8x128xf32>
    %76 = arith.addf %73, %75 : vector<8x128xf32>
    %77 = arith.truncf %76 : vector<8x128xf32> to vector<8x128xbf16>
    %c0_49 = arith.constant 0 : index
    %c0_50 = arith.constant 0 : index
    %78 = vector.load %arg5[%c0_49, %c0_50] : memref<8x128xbf16, #tpu.memory_space<vmem>>, vector<8x128xbf16>
    tpu.vector_store %arg5[%c0_49, %c0_50], %77 {strides = array<i32>} : memref<8x128xbf16, #tpu.memory_space<vmem>>, vector<8x128xbf16>,
    return
  }
  func.func @transform_0(%arg0: i32) -> (i32, i32, i32) {
    %c0_i32 = arith.constant 0 : i32
    %c0_i32_0 = arith.constant 0 : i32
    %c0_i32_1 = arith.constant 0 : i32
    return %c0_i32, %arg0, %c0_i32_0 : i32, i32, i32
  }
  func.func @transform_1(%arg0: i32) -> (i32, i32, i32) {
    %c0_i32 = arith.constant 0 : i32
    %c0_i32_0 = arith.constant 0 : i32
    %c0_i32_1 = arith.constant 0 : i32
    %c0_i32_2 = arith.constant 0 : i32
    return %c0_i32, %c0_i32_0, %c0_i32_1 : i32, i32, i32
  }
  func.func @transform_2(%arg0: i32) -> (i32, i32) {
    %c0_i32 = arith.constant 0 : i32
    %c0_i32_0 = arith.constant 0 : i32
    %c0_i32_1 = arith.constant 0 : i32
    return %c0_i32, %c0_i32_0 : i32, i32
  }
  func.func @transform_3(%arg0: i32) -> (i32, i32) {
    %c0_i32 = arith.constant 0 : i32
    %c0_i32_0 = arith.constant 0 : i32
    %c0_i32_1 = arith.constant 0 : i32
    return %c0_i32, %c0_i32_0 : i32, i32
  }
  func.func @transform_4(%arg0: i32) -> (i32, i32) {
    %c0_i32 = arith.constant 0 : i32
    %c0_i32_0 = arith.constant 0 : i32
    return %arg0, %c0_i32 : i32, i32
  }
}

module attributes {stable_mosaic.version = 11 : i64} {
  func.func @_mm_kernel(%arg0: i32, %arg1: memref<16x20xbf16, #tpu.memory_space<vmem>>, %arg2: memref<20x10xbf16, #tpu.memory_space<vmem>>, %arg3: memref<1x10xf32, #tpu.memory_space<vmem>>, %arg4: memref<1x10xf32, #tpu.memory_space<vmem>>, %arg5: memref<16x10xf32, #tpu.memory_space<vmem>>) attributes {dimension_semantics = [#tpu.dimension_semantics<parallel>], iteration_bounds = array<i64: 1>, scalar_prefetch = 0 : i64, scratch_operands = 0 : i64, tpu.core_type = #tpu.core_type<tc>, window_params = [{transform_indices = @transform_0, window_bounds = array<i64: 16, 20>}, {pipeline_mode = #tpu.pipeline_mode<synchronous>, transform_indices = @transform_1, window_bounds = array<i64: 20, 10>}, {pipeline_mode = #tpu.pipeline_mode<synchronous>, transform_indices = @transform_2, window_bounds = array<i64: 1, 10>}, {pipeline_mode = #tpu.pipeline_mode<synchronous>, transform_indices = @transform_3, window_bounds = array<i64: 1, 10>}, {transform_indices = @transform_4, window_bounds = array<i64: 16, 10>}]} {
    %c0 = arith.constant 0 : index
    %c0_0 = arith.constant 0 : index
    %0 = vector.load %arg1[%c0, %c0_0] : memref<16x20xbf16, #tpu.memory_space<vmem>>, vector<16x20xbf16>
    %c0_1 = arith.constant 0 : index
    %c0_2 = arith.constant 0 : index
    %1 = vector.load %arg2[%c0_1, %c0_2] : memref<20x10xbf16, #tpu.memory_space<vmem>>, vector<20x10xbf16>
    %cst = arith.constant dense<0.000000e+00> : vector<16x10xf32>
    %2 = tpu.matmul %0, %1, %cst {dimension_numbers = #tpu.dot_dimension_numbers<[1], [0], [0], [1], [0, 0, 1, 1], [], []>} : vector<16x20xbf16>, vector<20x10xbf16>, vector<16x10xf32> -> vector<16x10xf32>
    %c0_3 = arith.constant 0 : index
    %c0_4 = arith.constant 0 : index
    %3 = vector.load %arg3[%c0_3, %c0_4] : memref<1x10xf32, #tpu.memory_space<vmem>>, vector<1x10xf32>
    %4 = vector.broadcast %3 : vector<1x10xf32> to vector<16x10xf32>
    %5 = arith.mulf %2, %4 : vector<16x10xf32>
    %c0_5 = arith.constant 0 : index
    %c0_6 = arith.constant 0 : index
    %6 = vector.load %arg4[%c0_5, %c0_6] : memref<1x10xf32, #tpu.memory_space<vmem>>, vector<1x10xf32>
    %7 = vector.broadcast %6 : vector<1x10xf32> to vector<16x10xf32>
    %8 = arith.addf %5, %7 : vector<16x10xf32>
    %c0_7 = arith.constant 0 : index
    %c0_8 = arith.constant 0 : index
    %9 = vector.load %arg5[%c0_7, %c0_8] : memref<16x10xf32, #tpu.memory_space<vmem>>, vector<16x10xf32>
    tpu.vector_store %arg5[%c0_7, %c0_8], %8 {strides = array<i32>} : memref<16x10xf32, #tpu.memory_space<vmem>>, vector<16x10xf32>,
    return
  }
  func.func @transform_0(%arg0: i32) -> (i32, i32) {
    %c0_i32 = arith.constant 0 : i32
    %c0_i32_0 = arith.constant 0 : i32
    return %arg0, %c0_i32 : i32, i32
  }
  func.func @transform_1(%arg0: i32) -> (i32, i32) {
    %c0_i32 = arith.constant 0 : i32
    %c0_i32_0 = arith.constant 0 : i32
    %c0_i32_1 = arith.constant 0 : i32
    return %c0_i32, %c0_i32_0 : i32, i32
  }
  func.func @transform_2(%arg0: i32) -> (i32, i32) {
    %c0_i32 = arith.constant 0 : i32
    %c0_i32_0 = arith.constant 0 : i32
    %c0_i32_1 = arith.constant 0 : i32
    return %c0_i32, %c0_i32_0 : i32, i32
  }
  func.func @transform_3(%arg0: i32) -> (i32, i32) {
    %c0_i32 = arith.constant 0 : i32
    %c0_i32_0 = arith.constant 0 : i32
    %c0_i32_1 = arith.constant 0 : i32
    return %c0_i32, %c0_i32_0 : i32, i32
  }
  func.func @transform_4(%arg0: i32) -> (i32, i32) {
    %c0_i32 = arith.constant 0 : i32
    %c0_i32_0 = arith.constant 0 : i32
    return %arg0, %c0_i32 : i32, i32
  }
}

module attributes {stable_mosaic.version = 11 : i64} {
  func.func @_mm_kernel(%arg0: i32, %arg1: memref<16x96xbf16, #tpu.memory_space<vmem>>, %arg2: memref<96x20xbf16, #tpu.memory_space<vmem>>, %arg3: memref<1x20xf32, #tpu.memory_space<vmem>>, %arg4: memref<1x20xf32, #tpu.memory_space<vmem>>, %arg5: memref<16x20xbf16, #tpu.memory_space<vmem>>, %arg6: memref<16x20xbf16, #tpu.memory_space<vmem>>) attributes {dimension_semantics = [#tpu.dimension_semantics<parallel>], iteration_bounds = array<i64: 1>, scalar_prefetch = 0 : i64, scratch_operands = 0 : i64, tpu.core_type = #tpu.core_type<tc>, window_params = [{transform_indices = @transform_0, window_bounds = array<i64: 16, 96>}, {pipeline_mode = #tpu.pipeline_mode<synchronous>, transform_indices = @transform_1, window_bounds = array<i64: 96, 20>}, {pipeline_mode = #tpu.pipeline_mode<synchronous>, transform_indices = @transform_2, window_bounds = array<i64: 1, 20>}, {pipeline_mode = #tpu.pipeline_mode<synchronous>, transform_indices = @transform_3, window_bounds = array<i64: 1, 20>}, {transform_indices = @transform_4, window_bounds = array<i64: 16, 20>}, {transform_indices = @transform_5, window_bounds = array<i64: 16, 20>}]} {
    %c0 = arith.constant 0 : index
    %c0_0 = arith.constant 0 : index
    %0 = vector.load %arg1[%c0, %c0_0] : memref<16x96xbf16, #tpu.memory_space<vmem>>, vector<16x96xbf16>
    %c0_1 = arith.constant 0 : index
    %c0_2 = arith.constant 0 : index
    %1 = vector.load %arg2[%c0_1, %c0_2] : memref<96x20xbf16, #tpu.memory_space<vmem>>, vector<96x20xbf16>
    %cst = arith.constant dense<0.000000e+00> : vector<16x20xf32>
    %2 = tpu.matmul %0, %1, %cst {dimension_numbers = #tpu.dot_dimension_numbers<[1], [0], [0], [1], [0, 0, 1, 1], [], []>} : vector<16x96xbf16>, vector<96x20xbf16>, vector<16x20xf32> -> vector<16x20xf32>
    %c0_3 = arith.constant 0 : index
    %c0_4 = arith.constant 0 : index
    %3 = vector.load %arg3[%c0_3, %c0_4] : memref<1x20xf32, #tpu.memory_space<vmem>>, vector<1x20xf32>
    %4 = vector.broadcast %3 : vector<1x20xf32> to vector<16x20xf32>
    %5 = arith.mulf %2, %4 : vector<16x20xf32>
    %c0_5 = arith.constant 0 : index
    %c0_6 = arith.constant 0 : index
    %6 = vector.load %arg4[%c0_5, %c0_6] : memref<1x20xf32, #tpu.memory_space<vmem>>, vector<1x20xf32>
    %7 = vector.broadcast %6 : vector<1x20xf32> to vector<16x20xf32>
    %8 = arith.addf %5, %7 : vector<16x20xf32>
    %c0_7 = arith.constant 0 : index
    %c0_8 = arith.constant 0 : index
    %9 = vector.load %arg5[%c0_7, %c0_8] : memref<16x20xbf16, #tpu.memory_space<vmem>>, vector<16x20xbf16>
    %10 = arith.extf %9 : vector<16x20xbf16> to vector<16x20xf32>
    %11 = arith.addf %8, %10 : vector<16x20xf32>
    %cst_9 = arith.constant 0.000000e+00 : f32
    %12 = vector.broadcast %cst_9 : f32 to vector<16x20xf32>
    %13 = arith.maximumf %11, %12 : vector<16x20xf32>
    %14 = arith.truncf %13 : vector<16x20xf32> to vector<16x20xbf16>
    %c0_10 = arith.constant 0 : index
    %c0_11 = arith.constant 0 : index
    %15 = vector.load %arg6[%c0_10, %c0_11] : memref<16x20xbf16, #tpu.memory_space<vmem>>, vector<16x20xbf16>
    tpu.vector_store %arg6[%c0_10, %c0_11], %14 {strides = array<i32>} : memref<16x20xbf16, #tpu.memory_space<vmem>>, vector<16x20xbf16>,
    return
  }
  func.func @transform_0(%arg0: i32) -> (i32, i32) {
    %c0_i32 = arith.constant 0 : i32
    %c0_i32_0 = arith.constant 0 : i32
    return %arg0, %c0_i32 : i32, i32
  }
  func.func @transform_1(%arg0: i32) -> (i32, i32) {
    %c0_i32 = arith.constant 0 : i32
    %c0_i32_0 = arith.constant 0 : i32
    %c0_i32_1 = arith.constant 0 : i32
    return %c0_i32, %c0_i32_0 : i32, i32
  }
  func.func @transform_2(%arg0: i32) -> (i32, i32) {
    %c0_i32 = arith.constant 0 : i32
    %c0_i32_0 = arith.constant 0 : i32
    %c0_i32_1 = arith.constant 0 : i32
    return %c0_i32, %c0_i32_0 : i32, i32
  }
  func.func @transform_3(%arg0: i32) -> (i32, i32) {
    %c0_i32 = arith.constant 0 : i32
    %c0_i32_0 = arith.constant 0 : i32
    %c0_i32_1 = arith.constant 0 : i32
    return %c0_i32, %c0_i32_0 : i32, i32
  }
  func.func @transform_4(%arg0: i32) -> (i32, i32) {
    %c0_i32 = arith.constant 0 : i32
    %c0_i32_0 = arith.constant 0 : i32
    return %arg0, %c0_i32 : i32, i32
  }
  func.func @transform_5(%arg0: i32) -> (i32, i32) {
    %c0_i32 = arith.constant 0 : i32
    %c0_i32_0 = arith.constant 0 : i32
    return %arg0, %c0_i32 : i32, i32
  }
}

</mosaic_0001>

<bundles_post_ra>
// kernel: _lambda_.21
= control target key start
LH: loop header
LB: loop body
LE: loop exit
PB: predicated region body
PF: predicated region fallthrough
CT: control target
= control target key end

     0   :  { %s1807_s15 = smov 0   ;;  %s2171_s0 = inlined_call_operand.vmem [shape: bf16[1024,27], index: 0, kind: input, shape index: {}]   ;;  %s2172_s1 = inlined_call_operand.vmem [shape: bf16[27,8], index: 1, kind: input, shape index: {}]   ;;  %s2173_s2 = inlined_call_operand.vmem [shape: f32[1,8], index: 2, kind: input, shape index: {}]   ;;  %s2174_s3 = inlined_call_operand.vmem [shape: f32[1,8], index: 3, kind: input, shape index: {}]   ;;  %s2175_s4 = inlined_call_operand.vmem [shape: bf16[1024,8], index: 4, kind: output, shape index: {}]  }
   0x1 LB: > { %s1417_s16 = sadd.s32 4294967295, %s1779_s15   ;;  %p1421_p0 = scmp.ge.s32.totalorder %s1779_s15, 1  ;;  %s1779_s15 = sphi %s1807_s15, %s14_s15  }
   0x2   : > { %p163_p1 = scmp.lt.s32.totalorder %s1779_s15, 3 }
   0x4   : > { %p164_p2 = pnand %p1421_p0, %p163_p1 }
   0x5   : > { %v1739_v0 = vld [vmem:[%s2172_s1] sm:$0xff] (!%p164_p2)   ;;  %vm538_vm0 = vcmask (!%p164_p2), 1044480   ;;  %v1740_v1 = vld [vmem:[%s2172_s1 + $0x8] sm:$0x3f] (!%p164_p2)   ;;  %vm539_vm1 = vcmask (!%p164_p2), 1045504   ;;  %s1422_s21 = sshll.u32 (!%p164_p2), %s1417_s16, 6 }
   0x6   : > { %167 = sbr.rel (%p164_p2) target bundleno = 302 (0x12e), region = 36  ;;  %1658 = vmatprep.subr.bf16.mxu0 (!%p164_p2), %v1739_v0  ;;  %1726 = vmatprep.subr.bf16.mxu1 (!%p164_p2), %v1739_v0  ;;  %v1781_v2 = vmov (!%p164_p2), 65535   ;;  %p190_p3 = scmp.lt.s32.totalorder (!%p164_p2), %s1422_s21, 127  ;;  %vm441_vm2 = vcmask (!%p164_p2), 220160   ;;  %v1898_v38 = vld [vmem:[%s2173_s2] ss:$0 sm:$0xff] (!%p164_p2) }
   0x7   : > { %1659 = vmatpush3.bf16.msra.mxu0 (!%p164_p2), %v1739_v0  ;;  %1728 = vmatpush3.bf16.msra.mxu1 (!%p164_p2), %v1739_v0  ;;  %v540_v3 = vsel (!%p164_p2), %vm538_vm0, 4294967295, %v1781_v2  ;;  %v1903_v40 = vld [vmem:[%s2174_s3] ss:$0 sm:$0xff] (!%p164_p2)  ;;  %vm1296_vm3 = vcmask (!%p164_p2), 60416  }
   0x8   : > { %v541_v4 = vsel (!%p164_p2), %vm539_vm1, %v540_v3, 0 }
   0x9   : > { %v543_v5 = vand.u32 (!%p164_p2), %v1740_v1, %v541_v4 }
   0xb   : > { %1660 = vmatprep.subr.bf16.mxu0 (!%p164_p2), %v543_v5  ;;  %1727 = vmatprep.subr.bf16.mxu1 (!%p164_p2), %v543_v5 }
   0xc   : > { %1661 = vmatpush3.bf16.msra.mxu0 (!%p164_p2), %v543_v5  ;;  %1729 = vmatpush3.bf16.msra.mxu1 (!%p164_p2), %v543_v5 }
   0xd   : > { %s2177_s21 = smov (!%p190_p3, %s1422_s21), 127 }
   0xe   : > { %s1423_s22 = sshll.u32 %s2177_s21, 2 }
   0xf   : > { %s1829_s25 = scalar_lea.vmem %s2171_s0, %s1423_s22  ;;  %s1923_s6 = scalar_lea.vmem %s2175_s4, %s1423_s22 }
  0x10   : > { %v1741_v6 = vld [vmem:[%s1829_s25] sm:$0xff]   ;;  %v1743_v8 = vld [vmem:[%s1829_s25 + $0x8] sm:$0xff]   ;;  %v1745_v10 = vld [vmem:[%s1829_s25 + $0x10] sm:$0xff]  }
  0x11   : > { %v1742_v7 = vld [vmem:[%s1829_s25 + $0x80] sm:$0xff]   ;;  %1662 = vmatprep.mubr.msk.bf16.mxu0 %vm441_vm2, %v1741_v6  ;;  %v1744_v9 = vld [vmem:[%s1829_s25 + $0x88] sm:$0xff]   ;;  %v1746_v11 = vld [vmem:[%s1829_s25 + $0x90] sm:$0xff]  }
  0x12   : > { %1694 = vmatprep.mubr.msk.bf16.mxu1 %vm441_vm2, %v1742_v7  ;;  %1663 = vmatmul.mubr.msk.bf16.vlgmr.msra.gmra.mrb[0].mxu0 %vm441_vm2, %v1743_v8  ;;  %v1747_v12 = vld [vmem:[%s1829_s25 + $0x18] sm:$0xff]   ;;  %v1749_v14 = vld [vmem:[%s1829_s25 + $0x20] sm:$0xff]   ;;  %v1751_v16 = vld [vmem:[%s1829_s25 + $0x28] sm:$0xff]  }
  0x13   : > { %1695 = vmatmul.mubr.msk.bf16.vlgmr.msra.gmra.mrb[0].mxu1 %vm441_vm2, %v1744_v9  ;;  %1666 = vmatprep.mubr.msk.bf16.mxu0 %vm441_vm2, %v1745_v10  ;;  %v1748_v13 = vld [vmem:[%s1829_s25 + $0x98] sm:$0xff]   ;;  %v1750_v15 = vld [vmem:[%s1829_s25 + $0xa0] sm:$0xff]   ;;  %v1752_v17 = vld [vmem:[%s1829_s25 + $0xa8] sm:$0xff]  }
  0x14   : > { %1698 = vmatprep.mubr.msk.bf16.mxu1 %vm441_vm2, %v1746_v11  ;;  %v1753_v18 = vld [vmem:[%s1829_s25 + $0x30] sm:$0xff]   ;;  %v1755_v20 = vld [vmem:[%s1829_s25 + $0x38] sm:$0xff]   ;;  %v1757_v22 = vld [vmem:[%s1829_s25 + $0x40] sm:$0xff]  }
  0x15   : > { %v1754_v19 = vld [vmem:[%s1829_s25 + $0xb0] sm:$0xff]   ;;  %v1756_v21 = vld [vmem:[%s1829_s25 + $0xb8] sm:$0xff]   ;;  %v1758_v23 = vld [vmem:[%s1829_s25 + $0xc0] sm:$0xff]  }
  0x16   : > { %v1759_v24 = vld [vmem:[%s1829_s25 + $0x48] sm:$0xff]   ;;  %v1761_v26 = vld [vmem:[%s1829_s25 + $0x50] sm:$0xff]   ;;  %v1763_v28 = vld [vmem:[%s1829_s25 + $0x58] sm:$0xff]  }
  0x17   : > { %v1760_v25 = vld [vmem:[%s1829_s25 + $0xc8] sm:$0xff]   ;;  %v1762_v27 = vld [vmem:[%s1829_s25 + $0xd0] sm:$0xff]   ;;  %v1764_v29 = vld [vmem:[%s1829_s25 + $0xd8] sm:$0xff]  }
  0x18   : > { %v1765_v30 = vld [vmem:[%s1829_s25 + $0x60] sm:$0xff]   ;;  %v1767_v32 = vld [vmem:[%s1829_s25 + $0x68] sm:$0xff]   ;;  %v1769_v34 = vld [vmem:[%s1829_s25 + $0x70] sm:$0xff]  }
  0x19   : > { %v1766_v31 = vld [vmem:[%s1829_s25 + $0xe0] sm:$0xff]   ;;  %v1768_v33 = vld [vmem:[%s1829_s25 + $0xe8] sm:$0xff]   ;;  %v1770_v35 = vld [vmem:[%s1829_s25 + $0xf0] sm:$0xff]  }
  0x1a   : > { %1667 = vmatmul.mubr.msk.bf16.gmra.mrb[4].mxu0 %vm441_vm2, %v1747_v12  ;;  %v1771_v36 = vld [vmem:[%s1829_s25 + $0x78] sm:$0xff]  }
  0x1b   : > { %1699 = vmatmul.mubr.msk.bf16.gmra.mrb[4].mxu1 %vm441_vm2, %v1748_v13  ;;  %1670 = vmatprep.mubr.msk.bf16.mxu0 %vm441_vm2, %v1749_v14  ;;  %v1772_v37 = vld [vmem:[%s1829_s25 + $0xf8] sm:$0xff]  }
  0x1c   : > { %1702 = vmatprep.mubr.msk.bf16.mxu1 %vm441_vm2, %v1750_v15 }
  0x22   : > { %1671 = vmatmul.mubr.msk.bf16.gmra.mrb[8].mxu0 %vm441_vm2, %v1751_v16 }
  0x23   : > { %1703 = vmatmul.mubr.msk.bf16.gmra.mrb[8].mxu1 %vm441_vm2, %v1752_v17  ;;  %1674 = vmatprep.mubr.msk.bf16.mxu0 %vm441_vm2, %v1753_v18 }
  0x24   : > { %1706 = vmatprep.mubr.msk.bf16.mxu1 %vm441_vm2, %v1754_v19 }
  0x2a   : > { %1675 = vmatmul.mubr.msk.bf16.gmra.mrb[12].mxu0 %vm441_vm2, %v1755_v20 }
  0x2b   : > { %1707 = vmatmul.mubr.msk.bf16.gmra.mrb[12].mxu1 %vm441_vm2, %v1756_v21  ;;  %1678 = vmatprep.mubr.msk.bf16.mxu0 %vm441_vm2, %v1757_v22 }
  0x2c   : > { %1710 = vmatprep.mubr.msk.bf16.mxu1 %vm441_vm2, %v1758_v23 }
  0x32   : > { %1679 = vmatmul.mubr.msk.bf16.gmra.mrb[16].mxu0 %vm441_vm2, %v1759_v24 }
  0x33   : > { %1711 = vmatmul.mubr.msk.bf16.gmra.mrb[16].mxu1 %vm441_vm2, %v1760_v25  ;;  %1682 = vmatprep.mubr.msk.bf16.mxu0 %vm441_vm2, %v1761_v26 }
  0x34   : > { %1714 = vmatprep.mubr.msk.bf16.mxu1 %vm441_vm2, %v1762_v27 }
  0x3a   : > { %1683 = vmatmul.mubr.msk.bf16.gmra.mrb[20].mxu0 %vm441_vm2, %v1763_v28 }
  0x3b   : > { %1715 = vmatmul.mubr.msk.bf16.gmra.mrb[20].mxu1 %vm441_vm2, %v1764_v29  ;;  %1686 = vmatprep.mubr.msk.bf16.mxu0 %vm441_vm2, %v1765_v30 }
  0x3c   : > { %1718 = vmatprep.mubr.msk.bf16.mxu1 %vm441_vm2, %v1766_v31 }
  0x42   : > { %1687 = vmatmul.mubr.msk.bf16.gmra.mrb[24].mxu0 %vm441_vm2, %v1767_v32 }
  0x43   : > { %1719 = vmatmul.mubr.msk.bf16.gmra.mrb[24].mxu1 %vm441_vm2, %v1768_v33  ;;  %1690 = vmatprep.mubr.msk.bf16.mxu0 %vm441_vm2, %v1769_v34 }
  0x44   : > { %1722 = vmatprep.mubr.msk.bf16.mxu1 %vm441_vm2, %v1770_v35 }
  0x4a   : > { %1691 = vmatmul.mubr.msk.bf16.gmra.mrb[28].mxu0 %vm441_vm2, %v1771_v36 }
  0x4b   : > { %1723 = vmatmul.mubr.msk.bf16.gmra.mrb[28].mxu1 %vm441_vm2, %v1772_v37 }
  0xe5   : > { %v1664_v39 = vpop.f32.mrb[0].mxu0 }
  0xe6   : > { %v843_v41 = vmul.f32 %v1664_v39, %v1898_v38  ;;  %v1696_v42 = vpop.f32.mrb[0].mxu1  ;;  %v579_v43 = vpop.f32.mrb[1].mxu0 }
  0xe7   : > { %v875_v44 = vmul.f32 %v1696_v42, %v1898_v38  ;;  %v841_v45 = vmul.f32 %v1898_v38, %v579_v43  ;;  %v707_v46 = vpop.f32.mrb[1].mxu1  ;;  %v1665_v47 = vpop.f32.mrb[2].mxu0 }
  0xe8   : > { %v914_v48 = vadd.f32 %v1903_v40, %v843_v41  ;;  %v873_v49 = vmul.f32 %v1898_v38, %v707_v46  ;;  %v844_v50 = vmul.f32 %v1665_v47, %v1898_v38  ;;  %v1697_v51 = vpop.f32.mrb[2].mxu1  ;;  %v582_v52 = vpop.f32.mrb[3].mxu0 }
  0xe9   : > { %v946_v53 = vadd.f32 %v1903_v40, %v875_v44  ;;  %v912_v54 = vadd.f32 %v1903_v40, %v841_v45  ;;  %v876_v55 = vmul.f32 %v1697_v51, %v1898_v38  ;;  %v842_v56 = vmul.f32 %v1898_v38, %v582_v52  ;;  %v710_v57 = vpop.f32.mrb[3].mxu1 }
  0xea   : > { %v978_v58 = vmax.f32 %v914_v48, 0.0  ;;  %v944_v59 = vadd.f32 %v1903_v40, %v873_v49  ;;  %v915_v60 = vadd.f32 %v1903_v40, %v844_v50  ;;  %v874_v61 = vmul.f32 %v1898_v38, %v710_v57 }
  0xeb   : > { %v1010_v62 = vmax.f32 %v946_v53, 0.0  ;;  %v976_v63 = vmax.f32 %v912_v54, 0.0  ;;  %v947_v0 = vadd.f32 %v1903_v40, %v876_v55  ;;  %v913_v1 = vadd.f32 %v1903_v40, %v842_v56 }
  0xec   : > { %v1562_v2 = vpack.c.bf16 %v978_v58, %v978_v58  ;;  %v1008_v3 = vmax.f32 %v944_v59, 0.0  ;;  %v979_v4 = vmax.f32 %v915_v60, 0.0  ;;  %v945_v5 = vadd.f32 %v1903_v40, %v874_v61 }
  0xed   : > { %v1594_v6 = vpack.c.bf16 %v1010_v62, %v1010_v62  ;;  %v1560_v7 = vpack.c.bf16 %v976_v63, %v976_v63  ;;  %v1011_v8 = vmax.f32 %v947_v0, 0.0  ;;  %v977_v9 = vmax.f32 %v913_v1, 0.0  ;;  %v1668_v10 = vpop.f32.mrb[4].mxu0 }
  0xee   : > { %1299 = vst.msk [vmem:[%s1923_s6 + $0x8] sm:$0xf] %vm1296_vm3, %v1562_v2  ;;  %v1592_v11 = vpack.c.bf16 %v1008_v3, %v1008_v3  ;;  %v1563_v12 = vpack.c.bf16 %v979_v4, %v979_v4  ;;  %v1009_v13 = vmax.f32 %v945_v5, 0.0  ;;  %v847_v14 = vmul.f32 %v1668_v10, %v1898_v38  ;;  %v1700_v15 = vpop.f32.mrb[4].mxu1  ;;  %v595_v16 = vpop.f32.mrb[5].mxu0 }
  0xef   : > { %1331 = vst.msk [vmem:[%s1923_s6 + $0x88] sm:$0xf] %vm1296_vm3, %v1594_v6  ;;  %1297 = vst.msk [vmem:[%s1923_s6] sm:$0xf] %vm1296_vm3, %v1560_v7  ;;  %v1595_v17 = vpack.c.bf16 %v1011_v8, %v1011_v8  ;;  %v1561_v18 = vpack.c.bf16 %v977_v9, %v977_v9  ;;  %v879_v19 = vmul.f32 %v1700_v15, %v1898_v38  ;;  %v723_v21 = vpop.f32.mrb[5].mxu1  ;;  %v1669_v22 = vpop.f32.mrb[6].mxu0 }
  0xf0   : > { %v845_v20 = vmul.f32 %v1898_v38, %v595_v16  ;;  %1329 = vst.msk [vmem:[%s1923_s6 + $0x80] sm:$0xf] %vm1296_vm3, %v1592_v11  ;;  %1300 = vst.msk [vmem:[%s1923_s6 + $0xc] sm:$0xf] %vm1296_vm3, %v1563_v12  ;;  %v1593_v23 = vpack.c.bf16 %v1009_v13, %v1009_v13  ;;  %v918_v24 = vadd.f32 %v1903_v40, %v847_v14  ;;  %v1701_v27 = vpop.f32.mrb[6].mxu1  ;;  %v598_v28 = vpop.f32.mrb[7].mxu0 }
  0xf1   : > { %v877_v25 = vmul.f32 %v1898_v38, %v723_v21  ;;  %v848_v26 = vmul.f32 %v1669_v22, %v1898_v38  ;;  %1332 = vst.msk [vmem:[%s1923_s6 + $0x8c] sm:$0xf] %vm1296_vm3, %v1595_v17  ;;  %1298 = vst.msk [vmem:[%s1923_s6 + $0x4] sm:$0xf] %vm1296_vm3, %v1561_v18  ;;  %v950_v29 = vadd.f32 %v1903_v40, %v879_v19  ;;  %v726_v33 = vpop.f32.mrb[7].mxu1 }
  0xf2   : > { %v916_v30 = vadd.f32 %v1903_v40, %v845_v20  ;;  %v880_v31 = vmul.f32 %v1701_v27, %v1898_v38  ;;  %v846_v32 = vmul.f32 %v1898_v38, %v598_v28  ;;  %1330 = vst.msk [vmem:[%s1923_s6 + $0x84] sm:$0xf] %vm1296_vm3, %v1593_v23  ;;  %v982_v34 = vmax.f32 %v918_v24, 0.0 }
  0xf3   : > { %v948_v35 = vadd.f32 %v1903_v40, %v877_v25  ;;  %v919_v36 = vadd.f32 %v1903_v40, %v848_v26  ;;  %v878_v37 = vmul.f32 %v1898_v38, %v726_v33  ;;  %v1014_v39 = vmax.f32 %v950_v29, 0.0 }
  0xf4   : > { %v980_v41 = vmax.f32 %v916_v30, 0.0  ;;  %v951_v42 = vadd.f32 %v1903_v40, %v880_v31  ;;  %v917_v43 = vadd.f32 %v1903_v40, %v846_v32  ;;  %v1566_v44 = vpack.c.bf16 %v982_v34, %v982_v34 }
  0xf5   : > { %v1012_v45 = vmax.f32 %v948_v35, 0.0  ;;  %v983_v46 = vmax.f32 %v919_v36, 0.0  ;;  %v949_v47 = vadd.f32 %v1903_v40, %v878_v37  ;;  %v1598_v48 = vpack.c.bf16 %v1014_v39, %v1014_v39  ;;  %v1672_v52 = vpop.f32.mrb[8].mxu0 }
  0xf6   : > { %v1564_v49 = vpack.c.bf16 %v980_v41, %v980_v41  ;;  %v1015_v50 = vmax.f32 %v951_v42, 0.0  ;;  %v981_v51 = vmax.f32 %v917_v43, 0.0  ;;  %1303 = vst.msk [vmem:[%s1923_s6 + $0x18] sm:$0xf] %vm1296_vm3, %v1566_v44  ;;  %v851_v56 = vmul.f32 %v1672_v52, %v1898_v38  ;;  %v1704_v57 = vpop.f32.mrb[8].mxu1  ;;  %v611_v58 = vpop.f32.mrb[9].mxu0 }
  0xf7   : > { %v1596_v53 = vpack.c.bf16 %v1012_v45, %v1012_v45  ;;  %v1567_v54 = vpack.c.bf16 %v983_v46, %v983_v46  ;;  %v1013_v55 = vmax.f32 %v949_v47, 0.0  ;;  %1335 = vst.msk [vmem:[%s1923_s6 + $0x98] sm:$0xf] %vm1296_vm3, %v1598_v48  ;;  %v883_v61 = vmul.f32 %v1704_v57, %v1898_v38  ;;  %v739_v63 = vpop.f32.mrb[9].mxu1  ;;  %v1673_v0 = vpop.f32.mrb[10].mxu0 }
  0xf8   : > { %1301 = vst.msk [vmem:[%s1923_s6 + $0x10] sm:$0xf] %vm1296_vm3, %v1564_v49  ;;  %v1599_v59 = vpack.c.bf16 %v1015_v50, %v1015_v50  ;;  %v1565_v60 = vpack.c.bf16 %v981_v51, %v981_v51  ;;  %v849_v62 = vmul.f32 %v1898_v38, %v611_v58  ;;  %v922_v2 = vadd.f32 %v1903_v40, %v851_v56  ;;  %v1705_v5 = vpop.f32.mrb[10].mxu1  ;;  %v614_v6 = vpop.f32.mrb[11].mxu0 }
  0xf9   : > { %1333 = vst.msk [vmem:[%s1923_s6 + $0x90] sm:$0xf] %vm1296_vm3, %v1596_v53  ;;  %1304 = vst.msk [vmem:[%s1923_s6 + $0x1c] sm:$0xf] %vm1296_vm3, %v1567_v54  ;;  %v1597_v1 = vpack.c.bf16 %v1013_v55, %v1013_v55  ;;  %v881_v3 = vmul.f32 %v1898_v38, %v739_v63  ;;  %v852_v4 = vmul.f32 %v1673_v0, %v1898_v38  ;;  %v742_v11 = vpop.f32.mrb[11].mxu1 }
  0xfa   : > { %1336 = vst.msk [vmem:[%s1923_s6 + $0x9c] sm:$0xf] %vm1296_vm3, %v1599_v59  ;;  %1302 = vst.msk [vmem:[%s1923_s6 + $0x14] sm:$0xf] %vm1296_vm3, %v1565_v60  ;;  %v954_v7 = vadd.f32 %v1903_v40, %v883_v61  ;;  %v920_v8 = vadd.f32 %v1903_v40, %v849_v62  ;;  %v884_v9 = vmul.f32 %v1705_v5, %v1898_v38  ;;  %v986_v12 = vmax.f32 %v922_v2, 0.0 }
  0xfb   : > { %v850_v10 = vmul.f32 %v1898_v38, %v614_v6  ;;  %1334 = vst.msk [vmem:[%s1923_s6 + $0x94] sm:$0xf] %vm1296_vm3, %v1597_v1  ;;  %v952_v13 = vadd.f32 %v1903_v40, %v881_v3  ;;  %v923_v14 = vadd.f32 %v1903_v40, %v852_v4  ;;  %v882_v15 = vmul.f32 %v1898_v38, %v742_v11 }
  0xfc   : > { %v1018_v16 = vmax.f32 %v954_v7, 0.0  ;;  %v984_v17 = vmax.f32 %v920_v8, 0.0  ;;  %v955_v18 = vadd.f32 %v1903_v40, %v884_v9  ;;  %v1570_v20 = vpack.c.bf16 %v986_v12, %v986_v12 }
  0xfd   : > { %v921_v19 = vadd.f32 %v1903_v40, %v850_v10  ;;  %v1016_v21 = vmax.f32 %v952_v13, 0.0  ;;  %v987_v22 = vmax.f32 %v923_v14, 0.0  ;;  %v953_v23 = vadd.f32 %v1903_v40, %v882_v15  ;;  %v1676_v28 = vpop.f32.mrb[12].mxu0 }
  0xfe   : > { %v1602_v24 = vpack.c.bf16 %v1018_v16, %v1018_v16  ;;  %v1568_v25 = vpack.c.bf16 %v984_v17, %v984_v17  ;;  %v1019_v26 = vmax.f32 %v955_v18, 0.0  ;;  %1307 = vst.msk [vmem:[%s1923_s6 + $0x28] sm:$0xf] %vm1296_vm3, %v1570_v20  ;;  %v855_v32 = vmul.f32 %v1676_v28, %v1898_v38  ;;  %v1708_v33 = vpop.f32.mrb[12].mxu1  ;;  %v627_v34 = vpop.f32.mrb[13].mxu0 }
  0xff   : > { %v985_v27 = vmax.f32 %v921_v19, 0.0  ;;  %v1600_v29 = vpack.c.bf16 %v1016_v21, %v1016_v21  ;;  %v1571_v30 = vpack.c.bf16 %v987_v22, %v987_v22  ;;  %v1017_v31 = vmax.f32 %v953_v23, 0.0  ;;  %v755_v41 = vpop.f32.mrb[13].mxu1  ;;  %v1677_v42 = vpop.f32.mrb[14].mxu0 }
 0x100   : > { %1339 = vst.msk [vmem:[%s1923_s6 + $0xa8] sm:$0xf] %vm1296_vm3, %v1602_v24  ;;  %1305 = vst.msk [vmem:[%s1923_s6 + $0x20] sm:$0xf] %vm1296_vm3, %v1568_v25  ;;  %v1603_v35 = vpack.c.bf16 %v1019_v26, %v1019_v26  ;;  %v887_v37 = vmul.f32 %v1708_v33, %v1898_v38  ;;  %v853_v39 = vmul.f32 %v1898_v38, %v627_v34  ;;  %v1709_v47 = vpop.f32.mrb[14].mxu1  ;;  %v630_v48 = vpop.f32.mrb[15].mxu0 }
 0x101   : > { %v1569_v36 = vpack.c.bf16 %v985_v27, %v985_v27  ;;  %1337 = vst.msk [vmem:[%s1923_s6 + $0xa0] sm:$0xf] %vm1296_vm3, %v1600_v29  ;;  %1308 = vst.msk [vmem:[%s1923_s6 + $0x2c] sm:$0xf] %vm1296_vm3, %v1571_v30  ;;  %v1601_v43 = vpack.c.bf16 %v1017_v31, %v1017_v31  ;;  %v926_v44 = vadd.f32 %v1903_v40, %v855_v32  ;;  %v758_v53 = vpop.f32.mrb[15].mxu1 }
 0x102   : > { %v885_v45 = vmul.f32 %v1898_v38, %v755_v41  ;;  %v856_v46 = vmul.f32 %v1677_v42, %v1898_v38  ;;  %1340 = vst.msk [vmem:[%s1923_s6 + $0xac] sm:$0xf] %vm1296_vm3, %v1603_v35  ;;  %v958_v49 = vadd.f32 %v1903_v40, %v887_v37  ;;  %v924_v50 = vadd.f32 %v1903_v40, %v853_v39 }
 0x103   : > { %1306 = vst.msk [vmem:[%s1923_s6 + $0x24] sm:$0xf] %vm1296_vm3, %v1569_v36  ;;  %v888_v51 = vmul.f32 %v1709_v47, %v1898_v38  ;;  %v854_v52 = vmul.f32 %v1898_v38, %v630_v48  ;;  %1338 = vst.msk [vmem:[%s1923_s6 + $0xa4] sm:$0xf] %vm1296_vm3, %v1601_v43  ;;  %v990_v54 = vmax.f32 %v926_v44, 0.0  ;;  %v886_v57 = vmul.f32 %v1898_v38, %v758_v53 }
 0x104   : > { %v956_v55 = vadd.f32 %v1903_v40, %v885_v45  ;;  %v927_v56 = vadd.f32 %v1903_v40, %v856_v46  ;;  %v1022_v58 = vmax.f32 %v958_v49, 0.0  ;;  %v988_v59 = vmax.f32 %v924_v50, 0.0 }
 0x105   : > { %v959_v60 = vadd.f32 %v1903_v40, %v888_v51  ;;  %v925_v61 = vadd.f32 %v1903_v40, %v854_v52  ;;  %v1574_v62 = vpack.c.bf16 %v990_v54, %v990_v54  ;;  %v957_v1 = vadd.f32 %v1903_v40, %v886_v57  ;;  %v1680_v6 = vpop.f32.mrb[16].mxu0 }
 0x106   : > { %v1020_v63 = vmax.f32 %v956_v55, 0.0  ;;  %v991_v0 = vmax.f32 %v927_v56, 0.0  ;;  %v1606_v2 = vpack.c.bf16 %v1022_v58, %v1022_v58  ;;  %v1572_v3 = vpack.c.bf16 %v988_v59, %v988_v59  ;;  %v1712_v11 = vpop.f32.mrb[16].mxu1  ;;  %v643_v12 = vpop.f32.mrb[17].mxu0 }
 0x107   : > { %v1023_v4 = vmax.f32 %v959_v60, 0.0  ;;  %v989_v5 = vmax.f32 %v925_v61, 0.0  ;;  %1311 = vst.msk [vmem:[%s1923_s6 + $0x38] sm:$0xf] %vm1296_vm3, %v1574_v62  ;;  %v1021_v9 = vmax.f32 %v957_v1, 0.0  ;;  %v859_v10 = vmul.f32 %v1680_v6, %v1898_v38  ;;  %v771_v17 = vpop.f32.mrb[17].mxu1 }
 0x108   : > { %v1604_v7 = vpack.c.bf16 %v1020_v63, %v1020_v63  ;;  %v1575_v8 = vpack.c.bf16 %v991_v0, %v991_v0  ;;  %1343 = vst.msk [vmem:[%s1923_s6 + $0xb8] sm:$0xf] %vm1296_vm3, %v1606_v2  ;;  %1309 = vst.msk [vmem:[%s1923_s6 + $0x30] sm:$0xf] %vm1296_vm3, %v1572_v3  ;;  %v891_v15 = vmul.f32 %v1712_v11, %v1898_v38  ;;  %v1681_v18 = vpop.f32.mrb[18].mxu0  ;;  %v1713_v23 = vpop.f32.mrb[18].mxu1 }
 0x109   : > { %v1607_v13 = vpack.c.bf16 %v1023_v4, %v1023_v4  ;;  %v1573_v14 = vpack.c.bf16 %v989_v5, %v989_v5  ;;  %v857_v16 = vmul.f32 %v1898_v38, %v643_v12  ;;  %v1605_v19 = vpack.c.bf16 %v1021_v9, %v1021_v9  ;;  %v646_v24 = vpop.f32.mrb[19].mxu0  ;;  %v774_v29 = vpop.f32.mrb[19].mxu1 }
 0x10a   : > { %1341 = vst.msk [vmem:[%s1923_s6 + $0xb0] sm:$0xf] %vm1296_vm3, %v1604_v7  ;;  %1312 = vst.msk [vmem:[%s1923_s6 + $0x3c] sm:$0xf] %vm1296_vm3, %v1575_v8  ;;  %v930_v20 = vadd.f32 %v1903_v40, %v859_v10  ;;  %v889_v21 = vmul.f32 %v1898_v38, %v771_v17  ;;  %v860_v22 = vmul.f32 %v1681_v18, %v1898_v38 }
 0x10b   : > { %1344 = vst.msk [vmem:[%s1923_s6 + $0xbc] sm:$0xf] %vm1296_vm3, %v1607_v13  ;;  %1310 = vst.msk [vmem:[%s1923_s6 + $0x34] sm:$0xf] %vm1296_vm3, %v1573_v14  ;;  %v962_v25 = vadd.f32 %v1903_v40, %v891_v15  ;;  %v928_v26 = vadd.f32 %v1903_v40, %v857_v16  ;;  %v892_v27 = vmul.f32 %v1713_v23, %v1898_v38 }
 0x10c   : > { %v858_v28 = vmul.f32 %v1898_v38, %v646_v24  ;;  %1342 = vst.msk [vmem:[%s1923_s6 + $0xb4] sm:$0xf] %vm1296_vm3, %v1605_v19  ;;  %v994_v30 = vmax.f32 %v930_v20, 0.0  ;;  %v960_v31 = vadd.f32 %v1903_v40, %v889_v21  ;;  %v931_v32 = vadd.f32 %v1903_v40, %v860_v22 }
 0x10d   : > { %v890_v33 = vmul.f32 %v1898_v38, %v774_v29  ;;  %v1026_v34 = vmax.f32 %v962_v25, 0.0  ;;  %v992_v35 = vmax.f32 %v928_v26, 0.0  ;;  %v963_v36 = vadd.f32 %v1903_v40, %v892_v27  ;;  %v1684_v48 = vpop.f32.mrb[20].mxu0 }
 0x10e   : > { %v929_v37 = vadd.f32 %v1903_v40, %v858_v28  ;;  %v1578_v39 = vpack.c.bf16 %v994_v30, %v994_v30  ;;  %v1024_v41 = vmax.f32 %v960_v31, 0.0  ;;  %v995_v42 = vmax.f32 %v931_v32, 0.0  ;;  %v1716_v53 = vpop.f32.mrb[20].mxu1  ;;  %v659_v54 = vpop.f32.mrb[21].mxu0 }
 0x10f   : > { %v961_v43 = vadd.f32 %v1903_v40, %v890_v33  ;;  %v1610_v44 = vpack.c.bf16 %v1026_v34, %v1026_v34  ;;  %v1576_v45 = vpack.c.bf16 %v992_v35, %v992_v35  ;;  %v1027_v46 = vmax.f32 %v963_v36, 0.0  ;;  %v787_v59 = vpop.f32.mrb[21].mxu1  ;;  %v1685_v60 = vpop.f32.mrb[22].mxu0 }
 0x110   : > { %v993_v47 = vmax.f32 %v929_v37, 0.0  ;;  %1315 = vst.msk [vmem:[%s1923_s6 + $0x48] sm:$0xf] %vm1296_vm3, %v1578_v39  ;;  %v1608_v49 = vpack.c.bf16 %v1024_v41, %v1024_v41  ;;  %v1579_v50 = vpack.c.bf16 %v995_v42, %v995_v42  ;;  %v863_v52 = vmul.f32 %v1684_v48, %v1898_v38  ;;  %v1717_v1 = vpop.f32.mrb[22].mxu1  ;;  %v662_v2 = vpop.f32.mrb[23].mxu0 }
 0x111   : > { %v1025_v51 = vmax.f32 %v961_v43, 0.0  ;;  %1347 = vst.msk [vmem:[%s1923_s6 + $0xc8] sm:$0xf] %vm1296_vm3, %v1610_v44  ;;  %1313 = vst.msk [vmem:[%s1923_s6 + $0x40] sm:$0xf] %vm1296_vm3, %v1576_v45  ;;  %v1611_v55 = vpack.c.bf16 %v1027_v46, %v1027_v46  ;;  %v895_v57 = vmul.f32 %v1716_v53, %v1898_v38  ;;  %v861_v58 = vmul.f32 %v1898_v38, %v659_v54  ;;  %v790_v7 = vpop.f32.mrb[23].mxu1 }
 0x112   : > { %v1577_v56 = vpack.c.bf16 %v993_v47, %v993_v47  ;;  %1345 = vst.msk [vmem:[%s1923_s6 + $0xc0] sm:$0xf] %vm1296_vm3, %v1608_v49  ;;  %1316 = vst.msk [vmem:[%s1923_s6 + $0x4c] sm:$0xf] %vm1296_vm3, %v1579_v50  ;;  %v934_v62 = vadd.f32 %v1903_v40, %v863_v52  ;;  %v893_v63 = vmul.f32 %v1898_v38, %v787_v59 }
 0x113   : > { %v1609_v61 = vpack.c.bf16 %v1025_v51, %v1025_v51  ;;  %v864_v0 = vmul.f32 %v1685_v60, %v1898_v38  ;;  %1348 = vst.msk [vmem:[%s1923_s6 + $0xcc] sm:$0xf] %vm1296_vm3, %v1611_v55  ;;  %v966_v3 = vadd.f32 %v1903_v40, %v895_v57  ;;  %v932_v4 = vadd.f32 %v1903_v40, %v861_v58 }
 0x114   : > { %1314 = vst.msk [vmem:[%s1923_s6 + $0x44] sm:$0xf] %vm1296_vm3, %v1577_v56  ;;  %v896_v5 = vmul.f32 %v1717_v1, %v1898_v38  ;;  %v862_v6 = vmul.f32 %v1898_v38, %v662_v2  ;;  %v998_v8 = vmax.f32 %v934_v62, 0.0  ;;  %v964_v9 = vadd.f32 %v1903_v40, %v893_v63 }
 0x115   : > { %1346 = vst.msk [vmem:[%s1923_s6 + $0xc4] sm:$0xf] %vm1296_vm3, %v1609_v61  ;;  %v935_v10 = vadd.f32 %v1903_v40, %v864_v0  ;;  %v894_v11 = vmul.f32 %v1898_v38, %v790_v7  ;;  %v1030_v12 = vmax.f32 %v966_v3, 0.0  ;;  %v996_v13 = vmax.f32 %v932_v4, 0.0  ;;  %v1688_v24 = vpop.f32.mrb[24].mxu0 }
 0x116   : > { %v967_v14 = vadd.f32 %v1903_v40, %v896_v5  ;;  %v933_v15 = vadd.f32 %v1903_v40, %v862_v6  ;;  %v1582_v16 = vpack.c.bf16 %v998_v8, %v998_v8  ;;  %v1028_v17 = vmax.f32 %v964_v9, 0.0  ;;  %v1720_v29 = vpop.f32.mrb[24].mxu1  ;;  %v675_v30 = vpop.f32.mrb[25].mxu0 }
 0x117   : > { %v999_v18 = vmax.f32 %v935_v10, 0.0  ;;  %v965_v19 = vadd.f32 %v1903_v40, %v894_v11  ;;  %v1614_v20 = vpack.c.bf16 %v1030_v12, %v1030_v12  ;;  %v1580_v21 = vpack.c.bf16 %v996_v13, %v996_v13  ;;  %v803_v35 = vpop.f32.mrb[25].mxu1  ;;  %v1689_v36 = vpop.f32.mrb[26].mxu0 }
 0x118   : > { %v1031_v22 = vmax.f32 %v967_v14, 0.0  ;;  %v997_v23 = vmax.f32 %v933_v15, 0.0  ;;  %1319 = vst.msk [vmem:[%s1923_s6 + $0x58] sm:$0xf] %vm1296_vm3, %v1582_v16  ;;  %v1612_v25 = vpack.c.bf16 %v1028_v17, %v1028_v17  ;;  %v867_v28 = vmul.f32 %v1688_v24, %v1898_v38  ;;  %v1721_v43 = vpop.f32.mrb[26].mxu1  ;;  %v678_v44 = vpop.f32.mrb[27].mxu0 }
 0x119   : > { %v1583_v26 = vpack.c.bf16 %v999_v18, %v999_v18  ;;  %v1029_v27 = vmax.f32 %v965_v19, 0.0  ;;  %1351 = vst.msk [vmem:[%s1923_s6 + $0xd8] sm:$0xf] %vm1296_vm3, %v1614_v20  ;;  %1317 = vst.msk [vmem:[%s1923_s6 + $0x50] sm:$0xf] %vm1296_vm3, %v1580_v21  ;;  %v899_v33 = vmul.f32 %v1720_v29, %v1898_v38  ;;  %v865_v34 = vmul.f32 %v1898_v38, %v675_v30  ;;  %v806_v49 = vpop.f32.mrb[27].mxu1 }
 0x11a   : > { %v1615_v31 = vpack.c.bf16 %v1031_v22, %v1031_v22  ;;  %v1581_v32 = vpack.c.bf16 %v997_v23, %v997_v23  ;;  %1349 = vst.msk [vmem:[%s1923_s6 + $0xd0] sm:$0xf] %vm1296_vm3, %v1612_v25  ;;  %v938_v39 = vadd.f32 %v1903_v40, %v867_v28  ;;  %v897_v41 = vmul.f32 %v1898_v38, %v803_v35 }
 0x11b   : > { %1320 = vst.msk [vmem:[%s1923_s6 + $0x5c] sm:$0xf] %vm1296_vm3, %v1583_v26  ;;  %v1613_v37 = vpack.c.bf16 %v1029_v27, %v1029_v27  ;;  %v868_v42 = vmul.f32 %v1689_v36, %v1898_v38  ;;  %v970_v45 = vadd.f32 %v1903_v40, %v899_v33  ;;  %v936_v46 = vadd.f32 %v1903_v40, %v865_v34 }
 0x11c   : > { %1352 = vst.msk [vmem:[%s1923_s6 + $0xdc] sm:$0xf] %vm1296_vm3, %v1615_v31  ;;  %1318 = vst.msk [vmem:[%s1923_s6 + $0x54] sm:$0xf] %vm1296_vm3, %v1581_v32  ;;  %v900_v47 = vmul.f32 %v1721_v43, %v1898_v38  ;;  %v866_v48 = vmul.f32 %v1898_v38, %v678_v44  ;;  %v1002_v50 = vmax.f32 %v938_v39, 0.0  ;;  %v968_v51 = vadd.f32 %v1903_v40, %v897_v41 }
 0x11d   : > { %1350 = vst.msk [vmem:[%s1923_s6 + $0xd4] sm:$0xf] %vm1296_vm3, %v1613_v37  ;;  %v939_v52 = vadd.f32 %v1903_v40, %v868_v42  ;;  %v898_v53 = vmul.f32 %v1898_v38, %v806_v49  ;;  %v1034_v54 = vmax.f32 %v970_v45, 0.0  ;;  %v1000_v55 = vmax.f32 %v936_v46, 0.0  ;;  %v1692_v2 = vpop.f32.mrb[28].mxu0 }
 0x11e   : > { %v971_v56 = vadd.f32 %v1903_v40, %v900_v47  ;;  %v937_v57 = vadd.f32 %v1903_v40, %v866_v48  ;;  %v1586_v58 = vpack.c.bf16 %v1002_v50, %v1002_v50  ;;  %v1032_v59 = vmax.f32 %v968_v51, 0.0  ;;  %v1724_v7 = vpop.f32.mrb[28].mxu1  ;;  %v691_v8 = vpop.f32.mrb[29].mxu0 }
 0x11f   : > { %v1003_v60 = vmax.f32 %v939_v52, 0.0  ;;  %v969_v61 = vadd.f32 %v1903_v40, %v898_v53  ;;  %v1618_v62 = vpack.c.bf16 %v1034_v54, %v1034_v54  ;;  %v1584_v63 = vpack.c.bf16 %v1000_v55, %v1000_v55  ;;  %v819_v13 = vpop.f32.mrb[29].mxu1  ;;  %v1693_v14 = vpop.f32.mrb[30].mxu0 }
 0x120   : > { %v1035_v0 = vmax.f32 %v971_v56, 0.0  ;;  %v1001_v1 = vmax.f32 %v937_v57, 0.0  ;;  %1323 = vst.msk [vmem:[%s1923_s6 + $0x68] sm:$0xf] %vm1296_vm3, %v1586_v58  ;;  %v1616_v3 = vpack.c.bf16 %v1032_v59, %v1032_v59  ;;  %v871_v6 = vmul.f32 %v1692_v2, %v1898_v38  ;;  %v1725_v19 = vpop.f32.mrb[30].mxu1  ;;  %v694_v20 = vpop.f32.mrb[31].mxu0 }
 0x121   : > { %v1587_v4 = vpack.c.bf16 %v1003_v60, %v1003_v60  ;;  %v1033_v5 = vmax.f32 %v969_v61, 0.0  ;;  %1355 = vst.msk [vmem:[%s1923_s6 + $0xe8] sm:$0xf] %vm1296_vm3, %v1618_v62  ;;  %1321 = vst.msk [vmem:[%s1923_s6 + $0x60] sm:$0xf] %vm1296_vm3, %v1584_v63  ;;  %v903_v11 = vmul.f32 %v1724_v7, %v1898_v38  ;;  %v869_v12 = vmul.f32 %v1898_v38, %v691_v8  ;;  %v822_v25 = vpop.f32.mrb[31].mxu1 }
 0x122   : > { %v1619_v9 = vpack.c.bf16 %v1035_v0, %v1035_v0  ;;  %v1585_v10 = vpack.c.bf16 %v1001_v1, %v1001_v1  ;;  %1353 = vst.msk [vmem:[%s1923_s6 + $0xe0] sm:$0xf] %vm1296_vm3, %v1616_v3  ;;  %v942_v16 = vadd.f32 %v1903_v40, %v871_v6  ;;  %v901_v17 = vmul.f32 %v1898_v38, %v819_v13 }
 0x123   : > { %1324 = vst.msk [vmem:[%s1923_s6 + $0x6c] sm:$0xf] %vm1296_vm3, %v1587_v4  ;;  %v1617_v15 = vpack.c.bf16 %v1033_v5, %v1033_v5  ;;  %v872_v18 = vmul.f32 %v1693_v14, %v1898_v38  ;;  %v974_v21 = vadd.f32 %v1903_v40, %v903_v11  ;;  %v940_v22 = vadd.f32 %v1903_v40, %v869_v12 }
 0x124   : > { %1356 = vst.msk [vmem:[%s1923_s6 + $0xec] sm:$0xf] %vm1296_vm3, %v1619_v9  ;;  %1322 = vst.msk [vmem:[%s1923_s6 + $0x64] sm:$0xf] %vm1296_vm3, %v1585_v10  ;;  %v904_v23 = vmul.f32 %v1725_v19, %v1898_v38  ;;  %v870_v24 = vmul.f32 %v1898_v38, %v694_v20  ;;  %v1006_v26 = vmax.f32 %v942_v16, 0.0  ;;  %v972_v27 = vadd.f32 %v1903_v40, %v901_v17 }
 0x125   : > { %1354 = vst.msk [vmem:[%s1923_s6 + $0xe4] sm:$0xf] %vm1296_vm3, %v1617_v15  ;;  %v943_v28 = vadd.f32 %v1903_v40, %v872_v18  ;;  %v902_v29 = vmul.f32 %v1898_v38, %v822_v25  ;;  %v1038_v30 = vmax.f32 %v974_v21, 0.0  ;;  %v1004_v31 = vmax.f32 %v940_v22, 0.0 }
 0x126   : > { %v975_v32 = vadd.f32 %v1903_v40, %v904_v23  ;;  %v941_v33 = vadd.f32 %v1903_v40, %v870_v24  ;;  %v1590_v34 = vpack.c.bf16 %v1006_v26, %v1006_v26  ;;  %v1036_v35 = vmax.f32 %v972_v27, 0.0 }
 0x127   : > { %v1007_v36 = vmax.f32 %v943_v28, 0.0  ;;  %v973_v37 = vadd.f32 %v1903_v40, %v902_v29  ;;  %v1622_v39 = vpack.c.bf16 %v1038_v30, %v1038_v30  ;;  %v1588_v41 = vpack.c.bf16 %v1004_v31, %v1004_v31 }
 0x128   : > { %v1039_v38 = vmax.f32 %v975_v32, 0.0  ;;  %v1005_v42 = vmax.f32 %v941_v33, 0.0  ;;  %1327 = vst.msk [vmem:[%s1923_s6 + $0x78] sm:$0xf] %vm1296_vm3, %v1590_v34  ;;  %v1620_v43 = vpack.c.bf16 %v1036_v35, %v1036_v35 }
 0x129   : > { %v1591_v44 = vpack.c.bf16 %v1007_v36, %v1007_v36  ;;  %v1037_v45 = vmax.f32 %v973_v37, 0.0  ;;  %1359 = vst.msk [vmem:[%s1923_s6 + $0xf8] sm:$0xf] %vm1296_vm3, %v1622_v39  ;;  %1325 = vst.msk [vmem:[%s1923_s6 + $0x70] sm:$0xf] %vm1296_vm3, %v1588_v41 }
 0x12a   : > { %v1623_v46 = vpack.c.bf16 %v1039_v38, %v1039_v38  ;;  %v1589_v47 = vpack.c.bf16 %v1005_v42, %v1005_v42  ;;  %1357 = vst.msk [vmem:[%s1923_s6 + $0xf0] sm:$0xf] %vm1296_vm3, %v1620_v43 }
 0x12b   : > { %1328 = vst.msk [vmem:[%s1923_s6 + $0x7c] sm:$0xf] %vm1296_vm3, %v1591_v44  ;;  %v1621_v40 = vpack.c.bf16 %v1037_v45, %v1037_v45 }
 0x12c   : > { %1360 = vst.msk [vmem:[%s1923_s6 + $0xfc] sm:$0xf] %vm1296_vm3, %v1623_v46  ;;  %1326 = vst.msk [vmem:[%s1923_s6 + $0x74] sm:$0xf] %vm1296_vm3, %v1589_v47 }
 0x12d   : > { %1358 = vst.msk [vmem:[%s1923_s6 + $0xf4] sm:$0xf] %vm1296_vm3, %v1621_v40 }
 0x12e PF: > { %s14_s15 = sadd.s32 1, %s1779_s15  }
 0x12f   : > { %p11_p4 = scmp.ge.s32.totalorder %s14_s15, 4  }
 0x131   :  { %13 = sbr.rel (!%p11_p4) target bundleno = 1 (0x1), region = 66 }

// kernel: _lambda_.22
= control target key start
LH: loop header
LB: loop body
LE: loop exit
PB: predicated region body
PF: predicated region fallthrough
CT: control target
= control target key end

     0   :  { %s145_s0 = inlined_call_operand.vmem [shape: bf16[9,16,128], index: 0, kind: input, shape index: {}]   ;;  %s146_s1 = inlined_call_operand.vmem [shape: bf16[16,128], index: 1, kind: output, shape index: {}]  }
   0x1   :  { %v8_v0 = vld [vmem:[%s145_s0] sm:$0xf]  ;;  %v9_v1 = vld [vmem:[%s145_s0 + $0x4] sm:$0xf]  ;;  %v56_v2 = vld [vmem:[%s145_s0 + $0x8] sm:$0xf] }
   0x2   :  { %v57_v3 = vld [vmem:[%s145_s0 + $0xc] sm:$0xf]  ;;  %v13_v4 = vmax.bf16 %v56_v2, %v8_v0  ;;  %v58_v5 = vld [vmem:[%s145_s0 + $0x10] sm:$0xf]  ;;  %v59_v6 = vld [vmem:[%s145_s0 + $0x14] sm:$0xf] }
   0x3   :  { %v14_v7 = vmax.bf16 %v57_v3, %v9_v1  ;;  %v60_v8 = vld [vmem:[%s145_s0 + $0x18] sm:$0xf]  ;;  %v61_v10 = vld [vmem:[%s145_s0 + $0x1c] sm:$0xf]  ;;  %v62_v12 = vld [vmem:[%s145_s0 + $0x20] sm:$0xf] }
   0x4   :  { %v18_v9 = vmax.bf16 %v58_v5, %v13_v4  ;;  %v63_v14 = vld [vmem:[%s145_s0 + $0x24] sm:$0xf]  ;;  %v64_v16 = vld [vmem:[%s145_s0 + $0x28] sm:$0xf]  ;;  %v65_v18 = vld [vmem:[%s145_s0 + $0x2c] sm:$0xf] }
   0x5   :  { %v19_v11 = vmax.bf16 %v59_v6, %v14_v7  ;;  %v66_v20 = vld [vmem:[%s145_s0 + $0x30] sm:$0xf]  ;;  %v67_v22 = vld [vmem:[%s145_s0 + $0x34] sm:$0xf]  ;;  %v68_v24 = vld [vmem:[%s145_s0 + $0x38] sm:$0xf] }
   0x6   :  { %v23_v13 = vmax.bf16 %v60_v8, %v18_v9  ;;  %v69_v26 = vld [vmem:[%s145_s0 + $0x3c] sm:$0xf]  ;;  %v70_v28 = vld [vmem:[%s145_s0 + $0x40] sm:$0xf]  ;;  %v71_v30 = vld [vmem:[%s145_s0 + $0x44] sm:$0xf] }
   0x7   :  { %v24_v15 = vmax.bf16 %v61_v10, %v19_v11 }
   0x8   :  { %v28_v17 = vmax.bf16 %v62_v12, %v23_v13 }
   0x9   :  { %v29_v19 = vmax.bf16 %v63_v14, %v24_v15 }
   0xa   :  { %v33_v21 = vmax.bf16 %v64_v16, %v28_v17 }
   0xb   :  { %v34_v23 = vmax.bf16 %v65_v18, %v29_v19 }
   0xc   :  { %v38_v25 = vmax.bf16 %v66_v20, %v33_v21 }
   0xd   :  { %v39_v27 = vmax.bf16 %v67_v22, %v34_v23 }
   0xe   :  { %v43_v29 = vmax.bf16 %v68_v24, %v38_v25 }
   0xf   :  { %v44_v31 = vmax.bf16 %v69_v26, %v39_v27 }
  0x10   :  { %v48_v32 = vmax.bf16 %v70_v28, %v43_v29 }
  0x11   :  { %v49_v33 = vmax.bf16 %v71_v30, %v44_v31 }
  0x13   :  { %v77_v34 = vcombine.low %v48_v32, %v49_v33 }
  0x15   :  { %76 = vst [vmem:[%s146_s1] sm:$0xff] %v77_v34  }

// kernel: _lambda_.23
= control target key start
LH: loop header
LB: loop body
LE: loop exit
PB: predicated region body
PF: predicated region fallthrough
CT: control target
= control target key end

     0   :  { %s709_s15 = smov 0   ;;  %s820_s0 = inlined_call_operand.vmem [shape: bf16[256,8], index: 0, kind: input, shape index: {}]   ;;  %s821_s1 = inlined_call_operand.vmem [shape: bf16[8,12], index: 1, kind: input, shape index: {}]   ;;  %s822_s2 = inlined_call_operand.vmem [shape: f32[1,12], index: 2, kind: input, shape index: {}]   ;;  %s823_s3 = inlined_call_operand.vmem [shape: f32[1,12], index: 3, kind: input, shape index: {}]   ;;  %s824_s4 = inlined_call_operand.vmem [shape: bf16[256,12], index: 4, kind: output, shape index: {}]  }
   0x1 LB: > { %s568_s16 = sadd.s32 4294967295, %s682_s15   ;;  %p572_p0 = scmp.ge.s32.totalorder %s682_s15, 1  ;;  %s682_s15 = sphi %s709_s15, %s14_s15  }
   0x2   : > { %p163_p1 = scmp.lt.s32.totalorder %s682_s15, 3 }
   0x4   : > { %p164_p2 = pnand %p572_p0, %p163_p1 }
   0x5   : > { %v218_v0 = vld [vmem:[%s821_s1] sm:$0xf] (!%p164_p2)  ;;  %vm284_vm0 = vcmask (!%p164_p2), 1043456   ;;  %s573_s19 = sshll.u32 (!%p164_p2), %s568_s16, 4  ;;  %vm259_vm1 = vcmask (!%p164_p2), 64512   ;;  %vm495_vm2 = vcmask (!%p164_p2), 93184  }
   0x6   : > { %167 = sbr.rel (%p164_p2) target bundleno = 249 (0xf9), region = 36  ;;  %658 = vmatprep.subr.msk.bf16.mxu0 (!%p164_p2), %vm284_vm0, %v218_v0  ;;  %659 = vmatprep.subr.msk.bf16.mxu1 (!%p164_p2), %vm284_vm0, %v218_v0  ;;  %v286_v1 = vsel (!%p164_p2), %vm284_vm0, %v218_v0, 0  ;;  %p190_p3 = scmp.lt.s32.totalorder (!%p164_p2), %s573_s19, 31  ;;  %v739_v10 = vld [vmem:[%s822_s2] ss:$0 sm:$0xff] (!%p164_p2) }
   0x7   : > { %639 = vmatpush3.bf16.msra.mxu0 (!%p164_p2), %v286_v1  ;;  %657 = vmatpush3.bf16.msra.mxu1 (!%p164_p2), %v286_v1  ;;  %v744_v12 = vld [vmem:[%s823_s3] ss:$0 sm:$0xff] (!%p164_p2) }
   0xd   : > { %s826_s19 = smov (!%p190_p3, %s573_s19), 31 }
   0xe   : > { %s574_s20 = sshll.u32 %s826_s19, 2 }
   0xf   : > { %s193_s23 = scalar_lea.vmem %s820_s0, %s574_s20  ;;  %s757_s30 = scalar_lea.vmem %s824_s4, %s574_s20 }
  0x10   : > { %v668_v2 = vld [vmem:[%s193_s23] sm:$0xff]   ;;  %v670_v4 = vld [vmem:[%s193_s23 + $0x8] sm:$0xff]   ;;  %v672_v6 = vld [vmem:[%s193_s23 + $0x10] sm:$0xff]  }
  0x11   : > { %v669_v3 = vld [vmem:[%s193_s23 + $0x20] sm:$0xff]   ;;  %640 = vmatprep.mubr.msk.bf16.mxu0 %vm259_vm1, %v668_v2  ;;  %v671_v5 = vld [vmem:[%s193_s23 + $0x28] sm:$0xff]   ;;  %v673_v7 = vld [vmem:[%s193_s23 + $0x30] sm:$0xff]  }
  0x12   : > { %648 = vmatprep.mubr.msk.bf16.mxu1 %vm259_vm1, %v669_v3  ;;  %641 = vmatmul.mubr.msk.bf16.vlgmr.msra.gmra.mrb[0].mxu0 %vm259_vm1, %v670_v4  ;;  %v674_v8 = vld [vmem:[%s193_s23 + $0x18] sm:$0xff]  }
  0x13   : > { %649 = vmatmul.mubr.msk.bf16.vlgmr.msra.gmra.mrb[0].mxu1 %vm259_vm1, %v671_v5  ;;  %644 = vmatprep.mubr.msk.bf16.mxu0 %vm259_vm1, %v672_v6  ;;  %v675_v9 = vld [vmem:[%s193_s23 + $0x38] sm:$0xff]  }
  0x14   : > { %652 = vmatprep.mubr.msk.bf16.mxu1 %vm259_vm1, %v673_v7 }
  0x1a   : > { %645 = vmatmul.mubr.msk.bf16.gmra.mrb[4].mxu0 %vm259_vm1, %v674_v8 }
  0x1b   : > { %653 = vmatmul.mubr.msk.bf16.gmra.mrb[4].mxu1 %vm259_vm1, %v675_v9 }
  0xe5   : > { %v642_v11 = vpop.f32.mrb[0].mxu0 }
  0xe6   : > { %v394_v13 = vmul.f32 %v642_v11, %v739_v10  ;;  %v650_v14 = vpop.f32.mrb[0].mxu1  ;;  %v322_v15 = vpop.f32.mrb[1].mxu0 }
  0xe7   : > { %v402_v16 = vmul.f32 %v650_v14, %v739_v10  ;;  %v392_v17 = vmul.f32 %v739_v10, %v322_v15  ;;  %v354_v18 = vpop.f32.mrb[1].mxu1  ;;  %v643_v19 = vpop.f32.mrb[2].mxu0 }
  0xe8   : > { %v417_v20 = vadd.f32 %v744_v12, %v394_v13  ;;  %v400_v21 = vmul.f32 %v739_v10, %v354_v18  ;;  %v395_v22 = vmul.f32 %v643_v19, %v739_v10  ;;  %v651_v23 = vpop.f32.mrb[2].mxu1  ;;  %v325_v24 = vpop.f32.mrb[3].mxu0 }
  0xe9   : > { %v425_v25 = vadd.f32 %v744_v12, %v402_v16  ;;  %v415_v26 = vadd.f32 %v744_v12, %v392_v17  ;;  %v403_v27 = vmul.f32 %v651_v23, %v739_v10  ;;  %v393_v28 = vmul.f32 %v739_v10, %v325_v24  ;;  %v357_v29 = vpop.f32.mrb[3].mxu1 }
  0xea   : > { %v615_v30 = vpack.c.bf16 %v417_v20, %v417_v20  ;;  %v423_v31 = vadd.f32 %v744_v12, %v400_v21  ;;  %v418_v32 = vadd.f32 %v744_v12, %v395_v22  ;;  %v401_v33 = vmul.f32 %v739_v10, %v357_v29 }
  0xeb   : > { %v623_v34 = vpack.c.bf16 %v425_v25, %v425_v25  ;;  %v613_v35 = vpack.c.bf16 %v415_v26, %v415_v26  ;;  %v426_v36 = vadd.f32 %v744_v12, %v403_v27  ;;  %v416_v37 = vadd.f32 %v744_v12, %v393_v28 }
  0xec   : > { %498 = vst.msk [vmem:[%s757_s30 + $0x8] sm:$0xf] %vm495_vm2, %v615_v30  ;;  %v621_v38 = vpack.c.bf16 %v423_v31, %v423_v31  ;;  %v616_v39 = vpack.c.bf16 %v418_v32, %v418_v32  ;;  %v424_v40 = vadd.f32 %v744_v12, %v401_v33 }
  0xed   : > { %506 = vst.msk [vmem:[%s757_s30 + $0x28] sm:$0xf] %vm495_vm2, %v623_v34  ;;  %496 = vst.msk [vmem:[%s757_s30] sm:$0xf] %vm495_vm2, %v613_v35  ;;  %v624_v41 = vpack.c.bf16 %v426_v36, %v426_v36  ;;  %v614_v42 = vpack.c.bf16 %v416_v37, %v416_v37  ;;  %v646_v43 = vpop.f32.mrb[4].mxu0 }
  0xee   : > { %504 = vst.msk [vmem:[%s757_s30 + $0x20] sm:$0xf] %vm495_vm2, %v621_v38  ;;  %499 = vst.msk [vmem:[%s757_s30 + $0xc] sm:$0xf] %vm495_vm2, %v616_v39  ;;  %v622_v44 = vpack.c.bf16 %v424_v40, %v424_v40  ;;  %v398_v45 = vmul.f32 %v646_v43, %v739_v10  ;;  %v654_v46 = vpop.f32.mrb[4].mxu1  ;;  %v338_v47 = vpop.f32.mrb[5].mxu0 }
  0xef   : > { %507 = vst.msk [vmem:[%s757_s30 + $0x2c] sm:$0xf] %vm495_vm2, %v624_v41  ;;  %497 = vst.msk [vmem:[%s757_s30 + $0x4] sm:$0xf] %vm495_vm2, %v614_v42  ;;  %v406_v48 = vmul.f32 %v654_v46, %v739_v10  ;;  %v396_v49 = vmul.f32 %v739_v10, %v338_v47  ;;  %v370_v50 = vpop.f32.mrb[5].mxu1  ;;  %v647_v51 = vpop.f32.mrb[6].mxu0 }
  0xf0   : > { %505 = vst.msk [vmem:[%s757_s30 + $0x24] sm:$0xf] %vm495_vm2, %v622_v44  ;;  %v421_v52 = vadd.f32 %v744_v12, %v398_v45  ;;  %v404_v53 = vmul.f32 %v739_v10, %v370_v50  ;;  %v399_v54 = vmul.f32 %v647_v51, %v739_v10  ;;  %v655_v55 = vpop.f32.mrb[6].mxu1  ;;  %v341_v56 = vpop.f32.mrb[7].mxu0 }
  0xf1   : > { %v429_v57 = vadd.f32 %v744_v12, %v406_v48  ;;  %v419_v58 = vadd.f32 %v744_v12, %v396_v49  ;;  %v407_v59 = vmul.f32 %v655_v55, %v739_v10  ;;  %v397_v60 = vmul.f32 %v739_v10, %v341_v56  ;;  %v373_v61 = vpop.f32.mrb[7].mxu1 }
  0xf2   : > { %v619_v62 = vpack.c.bf16 %v421_v52, %v421_v52  ;;  %v427_v63 = vadd.f32 %v744_v12, %v404_v53  ;;  %v422_v0 = vadd.f32 %v744_v12, %v399_v54  ;;  %v405_v1 = vmul.f32 %v739_v10, %v373_v61 }
  0xf3   : > { %v627_v2 = vpack.c.bf16 %v429_v57, %v429_v57  ;;  %v617_v3 = vpack.c.bf16 %v419_v58, %v419_v58  ;;  %v430_v4 = vadd.f32 %v744_v12, %v407_v59  ;;  %v420_v5 = vadd.f32 %v744_v12, %v397_v60 }
  0xf4   : > { %502 = vst.msk [vmem:[%s757_s30 + $0x18] sm:$0xf] %vm495_vm2, %v619_v62  ;;  %v625_v6 = vpack.c.bf16 %v427_v63, %v427_v63  ;;  %v620_v7 = vpack.c.bf16 %v422_v0, %v422_v0  ;;  %v428_v8 = vadd.f32 %v744_v12, %v405_v1 }
  0xf5   : > { %510 = vst.msk [vmem:[%s757_s30 + $0x38] sm:$0xf] %vm495_vm2, %v627_v2  ;;  %500 = vst.msk [vmem:[%s757_s30 + $0x10] sm:$0xf] %vm495_vm2, %v617_v3  ;;  %v628_v9 = vpack.c.bf16 %v430_v4, %v430_v4  ;;  %v618_v10 = vpack.c.bf16 %v420_v5, %v420_v5 }
  0xf6   : > { %508 = vst.msk [vmem:[%s757_s30 + $0x30] sm:$0xf] %vm495_vm2, %v625_v6  ;;  %503 = vst.msk [vmem:[%s757_s30 + $0x1c] sm:$0xf] %vm495_vm2, %v620_v7  ;;  %v626_v11 = vpack.c.bf16 %v428_v8, %v428_v8 }
  0xf7   : > { %511 = vst.msk [vmem:[%s757_s30 + $0x3c] sm:$0xf] %vm495_vm2, %v628_v9  ;;  %501 = vst.msk [vmem:[%s757_s30 + $0x14] sm:$0xf] %vm495_vm2, %v618_v10 }
  0xf8   : > { %509 = vst.msk [vmem:[%s757_s30 + $0x34] sm:$0xf] %vm495_vm2, %v626_v11 }
  0xf9 PF: > { %s14_s15 = sadd.s32 1, %s682_s15  }
  0xfa   : > { %p11_p4 = scmp.ge.s32.totalorder %s14_s15, 4  }
  0xfc   :  { %13 = sbr.rel (!%p11_p4) target bundleno = 1 (0x1), region = 66 }

// kernel: _lambda_.24
= control target key start
LH: loop header
LB: loop body
LE: loop exit
PB: predicated region body
PF: predicated region fallthrough
CT: control target
= control target key end

     0   :  { %s1801_s15 = smov 0   ;;  %s2165_s0 = inlined_call_operand.vmem [shape: bf16[1024,24], index: 0, kind: input, shape index: {}]   ;;  %s2166_s1 = inlined_call_operand.vmem [shape: bf16[24,16], index: 1, kind: input, shape index: {}]   ;;  %s2167_s2 = inlined_call_operand.vmem [shape: f32[1,16], index: 2, kind: input, shape index: {}]   ;;  %s2168_s3 = inlined_call_operand.vmem [shape: f32[1,16], index: 3, kind: input, shape index: {}]   ;;  %s2169_s4 = inlined_call_operand.vmem [shape: bf16[1024,16], index: 4, kind: output, shape index: {}]  }
   0x1 LB: > { %s1411_s16 = sadd.s32 4294967295, %s1774_s15   ;;  %p1415_p0 = scmp.ge.s32.totalorder %s1774_s15, 1  ;;  %s1774_s15 = sphi %s1801_s15, %s14_s15  }
   0x2   : > { %p163_p1 = scmp.lt.s32.totalorder %s1774_s15, 3 }
   0x4   : > { %p164_p2 = pnand %p1415_p0, %p163_p1 }
   0x5   : > { %v1734_v0 = vld [vmem:[%s2166_s1] sm:$0xff] (!%p164_p2)   ;;  %v1735_v1 = vld [vmem:[%s2166_s1 + $0x8] ss:$0 sps:$4 sm:$0xff] (!%p164_p2)   ;;  %vm535_vm0 = vcmask (!%p164_p2), 1043456   ;;  %s1416_s21 = sshll.u32 (!%p164_p2), %s1411_s16, 6  ;;  %vm438_vm1 = vcmask (!%p164_p2), 195584  }
   0x6   : > { %167 = sbr.rel (%p164_p2) target bundleno = 302 (0x12e), region = 36  ;;  %1652 = vmatprep.subr.bf16.mxu0 (!%p164_p2), %v1734_v0  ;;  %1720 = vmatprep.subr.bf16.mxu1 (!%p164_p2), %v1734_v0  ;;  %p190_p3 = scmp.lt.s32.totalorder (!%p164_p2), %s1416_s21, 127  ;;  %v537_v2 = vsel (!%p164_p2), %vm535_vm0, %v1735_v1, 0  ;;  %v1892_v35 = vld [vmem:[%s2167_s2] ss:$0 sm:$0xff] (!%p164_p2)  ;;  %vm1290_vm2 = vcmask (!%p164_p2), 125952  }
   0x7   : > { %1653 = vmatpush3.bf16.msra.mxu0 (!%p164_p2), %v1734_v0  ;;  %1722 = vmatpush3.bf16.msra.mxu1 (!%p164_p2), %v1734_v0  ;;  %v1897_v37 = vld [vmem:[%s2168_s3] ss:$0 sm:$0xff] (!%p164_p2) }
   0x8   : > { %1724 = vmatprep.subr.msk.bf16.mxu0 (!%p164_p2), %vm535_vm0, %v1735_v1  ;;  %1725 = vmatprep.subr.msk.bf16.mxu1 (!%p164_p2), %vm535_vm0, %v1735_v1 }
   0xb   : > { %1655 = vmatpush3.bf16.msra.mxu0 (!%p164_p2), %v537_v2  ;;  %1723 = vmatpush3.bf16.msra.mxu1 (!%p164_p2), %v537_v2 }
   0xd   : > { %s2171_s21 = smov (!%p190_p3, %s1416_s21), 127 }
   0xe   : > { %s1417_s22 = sshll.u32 %s2171_s21, 2 }
   0xf   : > { %s1823_s25 = scalar_lea.vmem %s2165_s0, %s1417_s22  ;;  %s1917_s6 = scalar_lea.vmem %s2169_s4, %s1417_s22 }
  0x10   : > { %v1736_v3 = vld [vmem:[%s1823_s25] sm:$0xff]   ;;  %v1738_v5 = vld [vmem:[%s1823_s25 + $0x8] sm:$0xff]   ;;  %v1740_v7 = vld [vmem:[%s1823_s25 + $0x10] sm:$0xff]  }
  0x11   : > { %v1737_v4 = vld [vmem:[%s1823_s25 + $0x80] sm:$0xff]   ;;  %1656 = vmatprep.mubr.msk.bf16.mxu0 %vm438_vm1, %v1736_v3  ;;  %v1739_v6 = vld [vmem:[%s1823_s25 + $0x88] sm:$0xff]   ;;  %v1741_v8 = vld [vmem:[%s1823_s25 + $0x90] sm:$0xff]  }
  0x12   : > { %1688 = vmatprep.mubr.msk.bf16.mxu1 %vm438_vm1, %v1737_v4  ;;  %1657 = vmatmul.mubr.msk.bf16.vlgmr.msra.gmra.mrb[0].mxu0 %vm438_vm1, %v1738_v5  ;;  %v1742_v9 = vld [vmem:[%s1823_s25 + $0x18] sm:$0xff]   ;;  %v1744_v11 = vld [vmem:[%s1823_s25 + $0x20] sm:$0xff]   ;;  %v1746_v13 = vld [vmem:[%s1823_s25 + $0x28] sm:$0xff]  }
  0x13   : > { %1689 = vmatmul.mubr.msk.bf16.vlgmr.msra.gmra.mrb[0].mxu1 %vm438_vm1, %v1739_v6  ;;  %1660 = vmatprep.mubr.msk.bf16.mxu0 %vm438_vm1, %v1740_v7  ;;  %v1743_v10 = vld [vmem:[%s1823_s25 + $0x98] sm:$0xff]   ;;  %v1745_v12 = vld [vmem:[%s1823_s25 + $0xa0] sm:$0xff]   ;;  %v1747_v14 = vld [vmem:[%s1823_s25 + $0xa8] sm:$0xff]  }
  0x14   : > { %1692 = vmatprep.mubr.msk.bf16.mxu1 %vm438_vm1, %v1741_v8  ;;  %v1748_v15 = vld [vmem:[%s1823_s25 + $0x30] sm:$0xff]   ;;  %v1750_v17 = vld [vmem:[%s1823_s25 + $0x38] sm:$0xff]   ;;  %v1752_v19 = vld [vmem:[%s1823_s25 + $0x40] sm:$0xff]  }
  0x15   : > { %v1749_v16 = vld [vmem:[%s1823_s25 + $0xb0] sm:$0xff]   ;;  %v1751_v18 = vld [vmem:[%s1823_s25 + $0xb8] sm:$0xff]   ;;  %v1753_v20 = vld [vmem:[%s1823_s25 + $0xc0] sm:$0xff]  }
  0x16   : > { %v1754_v21 = vld [vmem:[%s1823_s25 + $0x48] sm:$0xff]   ;;  %v1756_v23 = vld [vmem:[%s1823_s25 + $0x50] sm:$0xff]   ;;  %v1758_v25 = vld [vmem:[%s1823_s25 + $0x58] sm:$0xff]  }
  0x17   : > { %v1755_v22 = vld [vmem:[%s1823_s25 + $0xc8] sm:$0xff]   ;;  %v1757_v24 = vld [vmem:[%s1823_s25 + $0xd0] sm:$0xff]   ;;  %v1759_v26 = vld [vmem:[%s1823_s25 + $0xd8] sm:$0xff]  }
  0x18   : > { %v1760_v27 = vld [vmem:[%s1823_s25 + $0x60] sm:$0xff]   ;;  %v1762_v29 = vld [vmem:[%s1823_s25 + $0x68] sm:$0xff]   ;;  %v1764_v31 = vld [vmem:[%s1823_s25 + $0x70] sm:$0xff]  }
  0x19   : > { %v1761_v28 = vld [vmem:[%s1823_s25 + $0xe0] sm:$0xff]   ;;  %v1763_v30 = vld [vmem:[%s1823_s25 + $0xe8] sm:$0xff]   ;;  %v1765_v32 = vld [vmem:[%s1823_s25 + $0xf0] sm:$0xff]  }
  0x1a   : > { %1661 = vmatmul.mubr.msk.bf16.gmra.mrb[4].mxu0 %vm438_vm1, %v1742_v9  ;;  %v1766_v33 = vld [vmem:[%s1823_s25 + $0x78] sm:$0xff]  }
  0x1b   : > { %1693 = vmatmul.mubr.msk.bf16.gmra.mrb[4].mxu1 %vm438_vm1, %v1743_v10  ;;  %1664 = vmatprep.mubr.msk.bf16.mxu0 %vm438_vm1, %v1744_v11  ;;  %v1767_v34 = vld [vmem:[%s1823_s25 + $0xf8] sm:$0xff]  }
  0x1c   : > { %1696 = vmatprep.mubr.msk.bf16.mxu1 %vm438_vm1, %v1745_v12 }
  0x22   : > { %1665 = vmatmul.mubr.msk.bf16.gmra.mrb[8].mxu0 %vm438_vm1, %v1746_v13 }
  0x23   : > { %1697 = vmatmul.mubr.msk.bf16.gmra.mrb[8].mxu1 %vm438_vm1, %v1747_v14  ;;  %1668 = vmatprep.mubr.msk.bf16.mxu0 %vm438_vm1, %v1748_v15 }
  0x24   : > { %1700 = vmatprep.mubr.msk.bf16.mxu1 %vm438_vm1, %v1749_v16 }
  0x2a   : > { %1669 = vmatmul.mubr.msk.bf16.gmra.mrb[12].mxu0 %vm438_vm1, %v1750_v17 }
  0x2b   : > { %1701 = vmatmul.mubr.msk.bf16.gmra.mrb[12].mxu1 %vm438_vm1, %v1751_v18  ;;  %1672 = vmatprep.mubr.msk.bf16.mxu0 %vm438_vm1, %v1752_v19 }
  0x2c   : > { %1704 = vmatprep.mubr.msk.bf16.mxu1 %vm438_vm1, %v1753_v20 }
  0x32   : > { %1673 = vmatmul.mubr.msk.bf16.gmra.mrb[16].mxu0 %vm438_vm1, %v1754_v21 }
  0x33   : > { %1705 = vmatmul.mubr.msk.bf16.gmra.mrb[16].mxu1 %vm438_vm1, %v1755_v22  ;;  %1676 = vmatprep.mubr.msk.bf16.mxu0 %vm438_vm1, %v1756_v23 }
  0x34   : > { %1708 = vmatprep.mubr.msk.bf16.mxu1 %vm438_vm1, %v1757_v24 }
  0x3a   : > { %1677 = vmatmul.mubr.msk.bf16.gmra.mrb[20].mxu0 %vm438_vm1, %v1758_v25 }
  0x3b   : > { %1709 = vmatmul.mubr.msk.bf16.gmra.mrb[20].mxu1 %vm438_vm1, %v1759_v26  ;;  %1680 = vmatprep.mubr.msk.bf16.mxu0 %vm438_vm1, %v1760_v27 }
  0x3c   : > { %1712 = vmatprep.mubr.msk.bf16.mxu1 %vm438_vm1, %v1761_v28 }
  0x42   : > { %1681 = vmatmul.mubr.msk.bf16.gmra.mrb[24].mxu0 %vm438_vm1, %v1762_v29 }
  0x43   : > { %1713 = vmatmul.mubr.msk.bf16.gmra.mrb[24].mxu1 %vm438_vm1, %v1763_v30  ;;  %1684 = vmatprep.mubr.msk.bf16.mxu0 %vm438_vm1, %v1764_v31 }
  0x44   : > { %1716 = vmatprep.mubr.msk.bf16.mxu1 %vm438_vm1, %v1765_v32 }
  0x4a   : > { %1685 = vmatmul.mubr.msk.bf16.gmra.mrb[28].mxu0 %vm438_vm1, %v1766_v33 }
  0x4b   : > { %1717 = vmatmul.mubr.msk.bf16.gmra.mrb[28].mxu1 %vm438_vm1, %v1767_v34 }
  0xe5   : > { %v1658_v36 = vpop.f32.mrb[0].mxu0 }
  0xe6   : > { %v837_v38 = vmul.f32 %v1658_v36, %v1892_v35  ;;  %v1690_v39 = vpop.f32.mrb[0].mxu1  ;;  %v573_v40 = vpop.f32.mrb[1].mxu0 }
  0xe7   : > { %v869_v41 = vmul.f32 %v1690_v39, %v1892_v35  ;;  %v835_v42 = vmul.f32 %v1892_v35, %v573_v40  ;;  %v701_v43 = vpop.f32.mrb[1].mxu1  ;;  %v1659_v44 = vpop.f32.mrb[2].mxu0 }
  0xe8   : > { %v908_v45 = vadd.f32 %v1897_v37, %v837_v38  ;;  %v867_v46 = vmul.f32 %v1892_v35, %v701_v43  ;;  %v838_v47 = vmul.f32 %v1659_v44, %v1892_v35  ;;  %v1691_v48 = vpop.f32.mrb[2].mxu1  ;;  %v576_v49 = vpop.f32.mrb[3].mxu0 }
  0xe9   : > { %v940_v50 = vadd.f32 %v1897_v37, %v869_v41  ;;  %v906_v51 = vadd.f32 %v1897_v37, %v835_v42  ;;  %v870_v52 = vmul.f32 %v1691_v48, %v1892_v35  ;;  %v836_v53 = vmul.f32 %v1892_v35, %v576_v49  ;;  %v704_v54 = vpop.f32.mrb[3].mxu1 }
  0xea   : > { %v972_v55 = vmax.f32 %v908_v45, 0.0  ;;  %v938_v56 = vadd.f32 %v1897_v37, %v867_v46  ;;  %v909_v57 = vadd.f32 %v1897_v37, %v838_v47  ;;  %v868_v58 = vmul.f32 %v1892_v35, %v704_v54 }
  0xeb   : > { %v1004_v59 = vmax.f32 %v940_v50, 0.0  ;;  %v970_v60 = vmax.f32 %v906_v51, 0.0  ;;  %v941_v61 = vadd.f32 %v1897_v37, %v870_v52  ;;  %v907_v62 = vadd.f32 %v1897_v37, %v836_v53 }
  0xec   : > { %v1556_v63 = vpack.c.bf16 %v972_v55, %v972_v55  ;;  %v1002_v0 = vmax.f32 %v938_v56, 0.0  ;;  %v973_v1 = vmax.f32 %v909_v57, 0.0  ;;  %v939_v2 = vadd.f32 %v1897_v37, %v868_v58 }
  0xed   : > { %v1588_v3 = vpack.c.bf16 %v1004_v59, %v1004_v59  ;;  %v1554_v4 = vpack.c.bf16 %v970_v60, %v970_v60  ;;  %v1005_v5 = vmax.f32 %v941_v61, 0.0  ;;  %v971_v6 = vmax.f32 %v907_v62, 0.0  ;;  %v1662_v7 = vpop.f32.mrb[4].mxu0 }
  0xee   : > { %1293 = vst.msk [vmem:[%s1917_s6 + $0x8] sm:$0xf] %vm1290_vm2, %v1556_v63  ;;  %v1586_v8 = vpack.c.bf16 %v1002_v0, %v1002_v0  ;;  %v1557_v9 = vpack.c.bf16 %v973_v1, %v973_v1  ;;  %v1003_v10 = vmax.f32 %v939_v2, 0.0  ;;  %v841_v11 = vmul.f32 %v1662_v7, %v1892_v35  ;;  %v1694_v12 = vpop.f32.mrb[4].mxu1  ;;  %v589_v13 = vpop.f32.mrb[5].mxu0 }
  0xef   : > { %1325 = vst.msk [vmem:[%s1917_s6 + $0x88] sm:$0xf] %vm1290_vm2, %v1588_v3  ;;  %1291 = vst.msk [vmem:[%s1917_s6] sm:$0xf] %vm1290_vm2, %v1554_v4  ;;  %v1589_v14 = vpack.c.bf16 %v1005_v5, %v1005_v5  ;;  %v1555_v15 = vpack.c.bf16 %v971_v6, %v971_v6  ;;  %v873_v16 = vmul.f32 %v1694_v12, %v1892_v35  ;;  %v717_v18 = vpop.f32.mrb[5].mxu1  ;;  %v1663_v19 = vpop.f32.mrb[6].mxu0 }
  0xf0   : > { %v839_v17 = vmul.f32 %v1892_v35, %v589_v13  ;;  %1323 = vst.msk [vmem:[%s1917_s6 + $0x80] sm:$0xf] %vm1290_vm2, %v1586_v8  ;;  %1294 = vst.msk [vmem:[%s1917_s6 + $0xc] sm:$0xf] %vm1290_vm2, %v1557_v9  ;;  %v1587_v20 = vpack.c.bf16 %v1003_v10, %v1003_v10  ;;  %v912_v21 = vadd.f32 %v1897_v37, %v841_v11  ;;  %v1695_v24 = vpop.f32.mrb[6].mxu1  ;;  %v592_v25 = vpop.f32.mrb[7].mxu0 }
  0xf1   : > { %v871_v22 = vmul.f32 %v1892_v35, %v717_v18  ;;  %v842_v23 = vmul.f32 %v1663_v19, %v1892_v35  ;;  %1326 = vst.msk [vmem:[%s1917_s6 + $0x8c] sm:$0xf] %vm1290_vm2, %v1589_v14  ;;  %1292 = vst.msk [vmem:[%s1917_s6 + $0x4] sm:$0xf] %vm1290_vm2, %v1555_v15  ;;  %v944_v26 = vadd.f32 %v1897_v37, %v873_v16  ;;  %v720_v30 = vpop.f32.mrb[7].mxu1 }
  0xf2   : > { %v910_v27 = vadd.f32 %v1897_v37, %v839_v17  ;;  %v874_v28 = vmul.f32 %v1695_v24, %v1892_v35  ;;  %v840_v29 = vmul.f32 %v1892_v35, %v592_v25  ;;  %1324 = vst.msk [vmem:[%s1917_s6 + $0x84] sm:$0xf] %vm1290_vm2, %v1587_v20  ;;  %v976_v31 = vmax.f32 %v912_v21, 0.0 }
  0xf3   : > { %v942_v32 = vadd.f32 %v1897_v37, %v871_v22  ;;  %v913_v33 = vadd.f32 %v1897_v37, %v842_v23  ;;  %v872_v34 = vmul.f32 %v1892_v35, %v720_v30  ;;  %v1008_v36 = vmax.f32 %v944_v26, 0.0 }
  0xf4   : > { %v974_v38 = vmax.f32 %v910_v27, 0.0  ;;  %v945_v39 = vadd.f32 %v1897_v37, %v874_v28  ;;  %v911_v40 = vadd.f32 %v1897_v37, %v840_v29  ;;  %v1560_v41 = vpack.c.bf16 %v976_v31, %v976_v31 }
  0xf5   : > { %v1006_v42 = vmax.f32 %v942_v32, 0.0  ;;  %v977_v43 = vmax.f32 %v913_v33, 0.0  ;;  %v943_v44 = vadd.f32 %v1897_v37, %v872_v34  ;;  %v1592_v45 = vpack.c.bf16 %v1008_v36, %v1008_v36  ;;  %v1666_v49 = vpop.f32.mrb[8].mxu0 }
  0xf6   : > { %v1558_v46 = vpack.c.bf16 %v974_v38, %v974_v38  ;;  %v1009_v47 = vmax.f32 %v945_v39, 0.0  ;;  %v975_v48 = vmax.f32 %v911_v40, 0.0  ;;  %1297 = vst.msk [vmem:[%s1917_s6 + $0x18] sm:$0xf] %vm1290_vm2, %v1560_v41  ;;  %v845_v53 = vmul.f32 %v1666_v49, %v1892_v35  ;;  %v1698_v54 = vpop.f32.mrb[8].mxu1  ;;  %v605_v55 = vpop.f32.mrb[9].mxu0 }
  0xf7   : > { %v1590_v50 = vpack.c.bf16 %v1006_v42, %v1006_v42  ;;  %v1561_v51 = vpack.c.bf16 %v977_v43, %v977_v43  ;;  %v1007_v52 = vmax.f32 %v943_v44, 0.0  ;;  %1329 = vst.msk [vmem:[%s1917_s6 + $0x98] sm:$0xf] %vm1290_vm2, %v1592_v45  ;;  %v877_v58 = vmul.f32 %v1698_v54, %v1892_v35  ;;  %v733_v60 = vpop.f32.mrb[9].mxu1  ;;  %v1667_v61 = vpop.f32.mrb[10].mxu0 }
  0xf8   : > { %1295 = vst.msk [vmem:[%s1917_s6 + $0x10] sm:$0xf] %vm1290_vm2, %v1558_v46  ;;  %v1593_v56 = vpack.c.bf16 %v1009_v47, %v1009_v47  ;;  %v1559_v57 = vpack.c.bf16 %v975_v48, %v975_v48  ;;  %v843_v59 = vmul.f32 %v1892_v35, %v605_v55  ;;  %v916_v63 = vadd.f32 %v1897_v37, %v845_v53  ;;  %v1699_v2 = vpop.f32.mrb[10].mxu1  ;;  %v608_v3 = vpop.f32.mrb[11].mxu0 }
  0xf9   : > { %1327 = vst.msk [vmem:[%s1917_s6 + $0x90] sm:$0xf] %vm1290_vm2, %v1590_v50  ;;  %1298 = vst.msk [vmem:[%s1917_s6 + $0x1c] sm:$0xf] %vm1290_vm2, %v1561_v51  ;;  %v1591_v62 = vpack.c.bf16 %v1007_v52, %v1007_v52  ;;  %v875_v0 = vmul.f32 %v1892_v35, %v733_v60  ;;  %v846_v1 = vmul.f32 %v1667_v61, %v1892_v35  ;;  %v736_v8 = vpop.f32.mrb[11].mxu1 }
  0xfa   : > { %1330 = vst.msk [vmem:[%s1917_s6 + $0x9c] sm:$0xf] %vm1290_vm2, %v1593_v56  ;;  %1296 = vst.msk [vmem:[%s1917_s6 + $0x14] sm:$0xf] %vm1290_vm2, %v1559_v57  ;;  %v948_v4 = vadd.f32 %v1897_v37, %v877_v58  ;;  %v914_v5 = vadd.f32 %v1897_v37, %v843_v59  ;;  %v878_v6 = vmul.f32 %v1699_v2, %v1892_v35  ;;  %v980_v9 = vmax.f32 %v916_v63, 0.0 }
  0xfb   : > { %v844_v7 = vmul.f32 %v1892_v35, %v608_v3  ;;  %1328 = vst.msk [vmem:[%s1917_s6 + $0x94] sm:$0xf] %vm1290_vm2, %v1591_v62  ;;  %v946_v10 = vadd.f32 %v1897_v37, %v875_v0  ;;  %v917_v11 = vadd.f32 %v1897_v37, %v846_v1  ;;  %v876_v12 = vmul.f32 %v1892_v35, %v736_v8 }
  0xfc   : > { %v1012_v13 = vmax.f32 %v948_v4, 0.0  ;;  %v978_v14 = vmax.f32 %v914_v5, 0.0  ;;  %v949_v15 = vadd.f32 %v1897_v37, %v878_v6  ;;  %v1564_v17 = vpack.c.bf16 %v980_v9, %v980_v9 }
  0xfd   : > { %v915_v16 = vadd.f32 %v1897_v37, %v844_v7  ;;  %v1010_v18 = vmax.f32 %v946_v10, 0.0  ;;  %v981_v19 = vmax.f32 %v917_v11, 0.0  ;;  %v947_v20 = vadd.f32 %v1897_v37, %v876_v12  ;;  %v1670_v25 = vpop.f32.mrb[12].mxu0 }
  0xfe   : > { %v1596_v21 = vpack.c.bf16 %v1012_v13, %v1012_v13  ;;  %v1562_v22 = vpack.c.bf16 %v978_v14, %v978_v14  ;;  %v1013_v23 = vmax.f32 %v949_v15, 0.0  ;;  %1301 = vst.msk [vmem:[%s1917_s6 + $0x28] sm:$0xf] %vm1290_vm2, %v1564_v17  ;;  %v849_v29 = vmul.f32 %v1670_v25, %v1892_v35  ;;  %v1702_v30 = vpop.f32.mrb[12].mxu1  ;;  %v621_v31 = vpop.f32.mrb[13].mxu0 }
  0xff   : > { %v979_v24 = vmax.f32 %v915_v16, 0.0  ;;  %v1594_v26 = vpack.c.bf16 %v1010_v18, %v1010_v18  ;;  %v1565_v27 = vpack.c.bf16 %v981_v19, %v981_v19  ;;  %v1011_v28 = vmax.f32 %v947_v20, 0.0  ;;  %v749_v38 = vpop.f32.mrb[13].mxu1  ;;  %v1671_v39 = vpop.f32.mrb[14].mxu0 }
 0x100   : > { %1333 = vst.msk [vmem:[%s1917_s6 + $0xa8] sm:$0xf] %vm1290_vm2, %v1596_v21  ;;  %1299 = vst.msk [vmem:[%s1917_s6 + $0x20] sm:$0xf] %vm1290_vm2, %v1562_v22  ;;  %v1597_v32 = vpack.c.bf16 %v1013_v23, %v1013_v23  ;;  %v881_v34 = vmul.f32 %v1702_v30, %v1892_v35  ;;  %v847_v36 = vmul.f32 %v1892_v35, %v621_v31  ;;  %v1703_v44 = vpop.f32.mrb[14].mxu1  ;;  %v624_v45 = vpop.f32.mrb[15].mxu0 }
 0x101   : > { %v1563_v33 = vpack.c.bf16 %v979_v24, %v979_v24  ;;  %1331 = vst.msk [vmem:[%s1917_s6 + $0xa0] sm:$0xf] %vm1290_vm2, %v1594_v26  ;;  %1302 = vst.msk [vmem:[%s1917_s6 + $0x2c] sm:$0xf] %vm1290_vm2, %v1565_v27  ;;  %v1595_v40 = vpack.c.bf16 %v1011_v28, %v1011_v28  ;;  %v920_v41 = vadd.f32 %v1897_v37, %v849_v29  ;;  %v752_v50 = vpop.f32.mrb[15].mxu1 }
 0x102   : > { %v879_v42 = vmul.f32 %v1892_v35, %v749_v38  ;;  %v850_v43 = vmul.f32 %v1671_v39, %v1892_v35  ;;  %1334 = vst.msk [vmem:[%s1917_s6 + $0xac] sm:$0xf] %vm1290_vm2, %v1597_v32  ;;  %v952_v46 = vadd.f32 %v1897_v37, %v881_v34  ;;  %v918_v47 = vadd.f32 %v1897_v37, %v847_v36 }
 0x103   : > { %1300 = vst.msk [vmem:[%s1917_s6 + $0x24] sm:$0xf] %vm1290_vm2, %v1563_v33  ;;  %v882_v48 = vmul.f32 %v1703_v44, %v1892_v35  ;;  %v848_v49 = vmul.f32 %v1892_v35, %v624_v45  ;;  %1332 = vst.msk [vmem:[%s1917_s6 + $0xa4] sm:$0xf] %vm1290_vm2, %v1595_v40  ;;  %v984_v51 = vmax.f32 %v920_v41, 0.0  ;;  %v880_v54 = vmul.f32 %v1892_v35, %v752_v50 }
 0x104   : > { %v950_v52 = vadd.f32 %v1897_v37, %v879_v42  ;;  %v921_v53 = vadd.f32 %v1897_v37, %v850_v43  ;;  %v1016_v55 = vmax.f32 %v952_v46, 0.0  ;;  %v982_v56 = vmax.f32 %v918_v47, 0.0 }
 0x105   : > { %v953_v57 = vadd.f32 %v1897_v37, %v882_v48  ;;  %v919_v58 = vadd.f32 %v1897_v37, %v848_v49  ;;  %v1568_v59 = vpack.c.bf16 %v984_v51, %v984_v51  ;;  %v951_v62 = vadd.f32 %v1897_v37, %v880_v54  ;;  %v1674_v3 = vpop.f32.mrb[16].mxu0 }
 0x106   : > { %v1014_v60 = vmax.f32 %v950_v52, 0.0  ;;  %v985_v61 = vmax.f32 %v921_v53, 0.0  ;;  %v1600_v63 = vpack.c.bf16 %v1016_v55, %v1016_v55  ;;  %v1566_v0 = vpack.c.bf16 %v982_v56, %v982_v56  ;;  %v1706_v8 = vpop.f32.mrb[16].mxu1  ;;  %v637_v9 = vpop.f32.mrb[17].mxu0 }
 0x107   : > { %v1017_v1 = vmax.f32 %v953_v57, 0.0  ;;  %v983_v2 = vmax.f32 %v919_v58, 0.0  ;;  %1305 = vst.msk [vmem:[%s1917_s6 + $0x38] sm:$0xf] %vm1290_vm2, %v1568_v59  ;;  %v1015_v6 = vmax.f32 %v951_v62, 0.0  ;;  %v853_v7 = vmul.f32 %v1674_v3, %v1892_v35  ;;  %v765_v14 = vpop.f32.mrb[17].mxu1 }
 0x108   : > { %v1598_v4 = vpack.c.bf16 %v1014_v60, %v1014_v60  ;;  %v1569_v5 = vpack.c.bf16 %v985_v61, %v985_v61  ;;  %1337 = vst.msk [vmem:[%s1917_s6 + $0xb8] sm:$0xf] %vm1290_vm2, %v1600_v63  ;;  %1303 = vst.msk [vmem:[%s1917_s6 + $0x30] sm:$0xf] %vm1290_vm2, %v1566_v0  ;;  %v885_v12 = vmul.f32 %v1706_v8, %v1892_v35  ;;  %v1675_v15 = vpop.f32.mrb[18].mxu0  ;;  %v1707_v20 = vpop.f32.mrb[18].mxu1 }
 0x109   : > { %v1601_v10 = vpack.c.bf16 %v1017_v1, %v1017_v1  ;;  %v1567_v11 = vpack.c.bf16 %v983_v2, %v983_v2  ;;  %v851_v13 = vmul.f32 %v1892_v35, %v637_v9  ;;  %v1599_v16 = vpack.c.bf16 %v1015_v6, %v1015_v6  ;;  %v640_v21 = vpop.f32.mrb[19].mxu0  ;;  %v768_v26 = vpop.f32.mrb[19].mxu1 }
 0x10a   : > { %1335 = vst.msk [vmem:[%s1917_s6 + $0xb0] sm:$0xf] %vm1290_vm2, %v1598_v4  ;;  %1306 = vst.msk [vmem:[%s1917_s6 + $0x3c] sm:$0xf] %vm1290_vm2, %v1569_v5  ;;  %v924_v17 = vadd.f32 %v1897_v37, %v853_v7  ;;  %v883_v18 = vmul.f32 %v1892_v35, %v765_v14  ;;  %v854_v19 = vmul.f32 %v1675_v15, %v1892_v35 }
 0x10b   : > { %1338 = vst.msk [vmem:[%s1917_s6 + $0xbc] sm:$0xf] %vm1290_vm2, %v1601_v10  ;;  %1304 = vst.msk [vmem:[%s1917_s6 + $0x34] sm:$0xf] %vm1290_vm2, %v1567_v11  ;;  %v956_v22 = vadd.f32 %v1897_v37, %v885_v12  ;;  %v922_v23 = vadd.f32 %v1897_v37, %v851_v13  ;;  %v886_v24 = vmul.f32 %v1707_v20, %v1892_v35 }
 0x10c   : > { %v852_v25 = vmul.f32 %v1892_v35, %v640_v21  ;;  %1336 = vst.msk [vmem:[%s1917_s6 + $0xb4] sm:$0xf] %vm1290_vm2, %v1599_v16  ;;  %v988_v27 = vmax.f32 %v924_v17, 0.0  ;;  %v954_v28 = vadd.f32 %v1897_v37, %v883_v18  ;;  %v925_v29 = vadd.f32 %v1897_v37, %v854_v19 }
 0x10d   : > { %v884_v30 = vmul.f32 %v1892_v35, %v768_v26  ;;  %v1020_v31 = vmax.f32 %v956_v22, 0.0  ;;  %v986_v32 = vmax.f32 %v922_v23, 0.0  ;;  %v957_v33 = vadd.f32 %v1897_v37, %v886_v24  ;;  %v1678_v45 = vpop.f32.mrb[20].mxu0 }
 0x10e   : > { %v923_v34 = vadd.f32 %v1897_v37, %v852_v25  ;;  %v1572_v36 = vpack.c.bf16 %v988_v27, %v988_v27  ;;  %v1018_v38 = vmax.f32 %v954_v28, 0.0  ;;  %v989_v39 = vmax.f32 %v925_v29, 0.0  ;;  %v1710_v50 = vpop.f32.mrb[20].mxu1  ;;  %v653_v51 = vpop.f32.mrb[21].mxu0 }
 0x10f   : > { %v955_v40 = vadd.f32 %v1897_v37, %v884_v30  ;;  %v1604_v41 = vpack.c.bf16 %v1020_v31, %v1020_v31  ;;  %v1570_v42 = vpack.c.bf16 %v986_v32, %v986_v32  ;;  %v1021_v43 = vmax.f32 %v957_v33, 0.0  ;;  %v781_v56 = vpop.f32.mrb[21].mxu1  ;;  %v1679_v57 = vpop.f32.mrb[22].mxu0 }
 0x110   : > { %v987_v44 = vmax.f32 %v923_v34, 0.0  ;;  %1309 = vst.msk [vmem:[%s1917_s6 + $0x48] sm:$0xf] %vm1290_vm2, %v1572_v36  ;;  %v1602_v46 = vpack.c.bf16 %v1018_v38, %v1018_v38  ;;  %v1573_v47 = vpack.c.bf16 %v989_v39, %v989_v39  ;;  %v857_v49 = vmul.f32 %v1678_v45, %v1892_v35  ;;  %v1711_v62 = vpop.f32.mrb[22].mxu1  ;;  %v656_v63 = vpop.f32.mrb[23].mxu0 }
 0x111   : > { %v1019_v48 = vmax.f32 %v955_v40, 0.0  ;;  %1341 = vst.msk [vmem:[%s1917_s6 + $0xc8] sm:$0xf] %vm1290_vm2, %v1604_v41  ;;  %1307 = vst.msk [vmem:[%s1917_s6 + $0x40] sm:$0xf] %vm1290_vm2, %v1570_v42  ;;  %v1605_v52 = vpack.c.bf16 %v1021_v43, %v1021_v43  ;;  %v889_v54 = vmul.f32 %v1710_v50, %v1892_v35  ;;  %v855_v55 = vmul.f32 %v1892_v35, %v653_v51  ;;  %v784_v4 = vpop.f32.mrb[23].mxu1 }
 0x112   : > { %v1571_v53 = vpack.c.bf16 %v987_v44, %v987_v44  ;;  %1339 = vst.msk [vmem:[%s1917_s6 + $0xc0] sm:$0xf] %vm1290_vm2, %v1602_v46  ;;  %1310 = vst.msk [vmem:[%s1917_s6 + $0x4c] sm:$0xf] %vm1290_vm2, %v1573_v47  ;;  %v928_v59 = vadd.f32 %v1897_v37, %v857_v49  ;;  %v887_v60 = vmul.f32 %v1892_v35, %v781_v56 }
 0x113   : > { %v1603_v58 = vpack.c.bf16 %v1019_v48, %v1019_v48  ;;  %v858_v61 = vmul.f32 %v1679_v57, %v1892_v35  ;;  %1342 = vst.msk [vmem:[%s1917_s6 + $0xcc] sm:$0xf] %vm1290_vm2, %v1605_v52  ;;  %v960_v0 = vadd.f32 %v1897_v37, %v889_v54  ;;  %v926_v1 = vadd.f32 %v1897_v37, %v855_v55 }
 0x114   : > { %1308 = vst.msk [vmem:[%s1917_s6 + $0x44] sm:$0xf] %vm1290_vm2, %v1571_v53  ;;  %v890_v2 = vmul.f32 %v1711_v62, %v1892_v35  ;;  %v856_v3 = vmul.f32 %v1892_v35, %v656_v63  ;;  %v992_v5 = vmax.f32 %v928_v59, 0.0  ;;  %v958_v6 = vadd.f32 %v1897_v37, %v887_v60 }
 0x115   : > { %1340 = vst.msk [vmem:[%s1917_s6 + $0xc4] sm:$0xf] %vm1290_vm2, %v1603_v58  ;;  %v929_v7 = vadd.f32 %v1897_v37, %v858_v61  ;;  %v888_v8 = vmul.f32 %v1892_v35, %v784_v4  ;;  %v1024_v9 = vmax.f32 %v960_v0, 0.0  ;;  %v990_v10 = vmax.f32 %v926_v1, 0.0  ;;  %v1682_v21 = vpop.f32.mrb[24].mxu0 }
 0x116   : > { %v961_v11 = vadd.f32 %v1897_v37, %v890_v2  ;;  %v927_v12 = vadd.f32 %v1897_v37, %v856_v3  ;;  %v1576_v13 = vpack.c.bf16 %v992_v5, %v992_v5  ;;  %v1022_v14 = vmax.f32 %v958_v6, 0.0  ;;  %v1714_v26 = vpop.f32.mrb[24].mxu1  ;;  %v669_v27 = vpop.f32.mrb[25].mxu0 }
 0x117   : > { %v993_v15 = vmax.f32 %v929_v7, 0.0  ;;  %v959_v16 = vadd.f32 %v1897_v37, %v888_v8  ;;  %v1608_v17 = vpack.c.bf16 %v1024_v9, %v1024_v9  ;;  %v1574_v18 = vpack.c.bf16 %v990_v10, %v990_v10  ;;  %v797_v32 = vpop.f32.mrb[25].mxu1  ;;  %v1683_v33 = vpop.f32.mrb[26].mxu0 }
 0x118   : > { %v1025_v19 = vmax.f32 %v961_v11, 0.0  ;;  %v991_v20 = vmax.f32 %v927_v12, 0.0  ;;  %1313 = vst.msk [vmem:[%s1917_s6 + $0x58] sm:$0xf] %vm1290_vm2, %v1576_v13  ;;  %v1606_v22 = vpack.c.bf16 %v1022_v14, %v1022_v14  ;;  %v861_v25 = vmul.f32 %v1682_v21, %v1892_v35  ;;  %v1715_v40 = vpop.f32.mrb[26].mxu1  ;;  %v672_v41 = vpop.f32.mrb[27].mxu0 }
 0x119   : > { %v1577_v23 = vpack.c.bf16 %v993_v15, %v993_v15  ;;  %v1023_v24 = vmax.f32 %v959_v16, 0.0  ;;  %1345 = vst.msk [vmem:[%s1917_s6 + $0xd8] sm:$0xf] %vm1290_vm2, %v1608_v17  ;;  %1311 = vst.msk [vmem:[%s1917_s6 + $0x50] sm:$0xf] %vm1290_vm2, %v1574_v18  ;;  %v893_v30 = vmul.f32 %v1714_v26, %v1892_v35  ;;  %v859_v31 = vmul.f32 %v1892_v35, %v669_v27  ;;  %v800_v46 = vpop.f32.mrb[27].mxu1 }
 0x11a   : > { %v1609_v28 = vpack.c.bf16 %v1025_v19, %v1025_v19  ;;  %v1575_v29 = vpack.c.bf16 %v991_v20, %v991_v20  ;;  %1343 = vst.msk [vmem:[%s1917_s6 + $0xd0] sm:$0xf] %vm1290_vm2, %v1606_v22  ;;  %v932_v36 = vadd.f32 %v1897_v37, %v861_v25  ;;  %v891_v38 = vmul.f32 %v1892_v35, %v797_v32 }
 0x11b   : > { %1314 = vst.msk [vmem:[%s1917_s6 + $0x5c] sm:$0xf] %vm1290_vm2, %v1577_v23  ;;  %v1607_v34 = vpack.c.bf16 %v1023_v24, %v1023_v24  ;;  %v862_v39 = vmul.f32 %v1683_v33, %v1892_v35  ;;  %v964_v42 = vadd.f32 %v1897_v37, %v893_v30  ;;  %v930_v43 = vadd.f32 %v1897_v37, %v859_v31 }
 0x11c   : > { %1346 = vst.msk [vmem:[%s1917_s6 + $0xdc] sm:$0xf] %vm1290_vm2, %v1609_v28  ;;  %1312 = vst.msk [vmem:[%s1917_s6 + $0x54] sm:$0xf] %vm1290_vm2, %v1575_v29  ;;  %v894_v44 = vmul.f32 %v1715_v40, %v1892_v35  ;;  %v860_v45 = vmul.f32 %v1892_v35, %v672_v41  ;;  %v996_v47 = vmax.f32 %v932_v36, 0.0  ;;  %v962_v48 = vadd.f32 %v1897_v37, %v891_v38 }
 0x11d   : > { %1344 = vst.msk [vmem:[%s1917_s6 + $0xd4] sm:$0xf] %vm1290_vm2, %v1607_v34  ;;  %v933_v49 = vadd.f32 %v1897_v37, %v862_v39  ;;  %v892_v50 = vmul.f32 %v1892_v35, %v800_v46  ;;  %v1028_v51 = vmax.f32 %v964_v42, 0.0  ;;  %v994_v52 = vmax.f32 %v930_v43, 0.0  ;;  %v1686_v63 = vpop.f32.mrb[28].mxu0 }
 0x11e   : > { %v965_v53 = vadd.f32 %v1897_v37, %v894_v44  ;;  %v931_v54 = vadd.f32 %v1897_v37, %v860_v45  ;;  %v1580_v55 = vpack.c.bf16 %v996_v47, %v996_v47  ;;  %v1026_v56 = vmax.f32 %v962_v48, 0.0  ;;  %v1718_v4 = vpop.f32.mrb[28].mxu1  ;;  %v685_v5 = vpop.f32.mrb[29].mxu0 }
 0x11f   : > { %v997_v57 = vmax.f32 %v933_v49, 0.0  ;;  %v963_v58 = vadd.f32 %v1897_v37, %v892_v50  ;;  %v1612_v59 = vpack.c.bf16 %v1028_v51, %v1028_v51  ;;  %v1578_v60 = vpack.c.bf16 %v994_v52, %v994_v52  ;;  %v813_v10 = vpop.f32.mrb[29].mxu1  ;;  %v1687_v11 = vpop.f32.mrb[30].mxu0 }
 0x120   : > { %v1029_v61 = vmax.f32 %v965_v53, 0.0  ;;  %v995_v62 = vmax.f32 %v931_v54, 0.0  ;;  %1317 = vst.msk [vmem:[%s1917_s6 + $0x68] sm:$0xf] %vm1290_vm2, %v1580_v55  ;;  %v1610_v0 = vpack.c.bf16 %v1026_v56, %v1026_v56  ;;  %v865_v3 = vmul.f32 %v1686_v63, %v1892_v35  ;;  %v1719_v16 = vpop.f32.mrb[30].mxu1  ;;  %v688_v17 = vpop.f32.mrb[31].mxu0 }
 0x121   : > { %v1581_v1 = vpack.c.bf16 %v997_v57, %v997_v57  ;;  %v1027_v2 = vmax.f32 %v963_v58, 0.0  ;;  %1349 = vst.msk [vmem:[%s1917_s6 + $0xe8] sm:$0xf] %vm1290_vm2, %v1612_v59  ;;  %1315 = vst.msk [vmem:[%s1917_s6 + $0x60] sm:$0xf] %vm1290_vm2, %v1578_v60  ;;  %v897_v8 = vmul.f32 %v1718_v4, %v1892_v35  ;;  %v863_v9 = vmul.f32 %v1892_v35, %v685_v5  ;;  %v816_v22 = vpop.f32.mrb[31].mxu1 }
 0x122   : > { %v1613_v6 = vpack.c.bf16 %v1029_v61, %v1029_v61  ;;  %v1579_v7 = vpack.c.bf16 %v995_v62, %v995_v62  ;;  %1347 = vst.msk [vmem:[%s1917_s6 + $0xe0] sm:$0xf] %vm1290_vm2, %v1610_v0  ;;  %v936_v13 = vadd.f32 %v1897_v37, %v865_v3  ;;  %v895_v14 = vmul.f32 %v1892_v35, %v813_v10 }
 0x123   : > { %1318 = vst.msk [vmem:[%s1917_s6 + $0x6c] sm:$0xf] %vm1290_vm2, %v1581_v1  ;;  %v1611_v12 = vpack.c.bf16 %v1027_v2, %v1027_v2  ;;  %v866_v15 = vmul.f32 %v1687_v11, %v1892_v35  ;;  %v968_v18 = vadd.f32 %v1897_v37, %v897_v8  ;;  %v934_v19 = vadd.f32 %v1897_v37, %v863_v9 }
 0x124   : > { %1350 = vst.msk [vmem:[%s1917_s6 + $0xec] sm:$0xf] %vm1290_vm2, %v1613_v6  ;;  %1316 = vst.msk [vmem:[%s1917_s6 + $0x64] sm:$0xf] %vm1290_vm2, %v1579_v7  ;;  %v898_v20 = vmul.f32 %v1719_v16, %v1892_v35  ;;  %v864_v21 = vmul.f32 %v1892_v35, %v688_v17  ;;  %v1000_v23 = vmax.f32 %v936_v13, 0.0  ;;  %v966_v24 = vadd.f32 %v1897_v37, %v895_v14 }
 0x125   : > { %1348 = vst.msk [vmem:[%s1917_s6 + $0xe4] sm:$0xf] %vm1290_vm2, %v1611_v12  ;;  %v937_v25 = vadd.f32 %v1897_v37, %v866_v15  ;;  %v896_v26 = vmul.f32 %v1892_v35, %v816_v22  ;;  %v1032_v27 = vmax.f32 %v968_v18, 0.0  ;;  %v998_v28 = vmax.f32 %v934_v19, 0.0 }
 0x126   : > { %v969_v29 = vadd.f32 %v1897_v37, %v898_v20  ;;  %v935_v30 = vadd.f32 %v1897_v37, %v864_v21  ;;  %v1584_v31 = vpack.c.bf16 %v1000_v23, %v1000_v23  ;;  %v1030_v32 = vmax.f32 %v966_v24, 0.0 }
 0x127   : > { %v1001_v33 = vmax.f32 %v937_v25, 0.0  ;;  %v967_v34 = vadd.f32 %v1897_v37, %v896_v26  ;;  %v1616_v36 = vpack.c.bf16 %v1032_v27, %v1032_v27  ;;  %v1582_v38 = vpack.c.bf16 %v998_v28, %v998_v28 }
 0x128   : > { %v1033_v35 = vmax.f32 %v969_v29, 0.0  ;;  %v999_v39 = vmax.f32 %v935_v30, 0.0  ;;  %1321 = vst.msk [vmem:[%s1917_s6 + $0x78] sm:$0xf] %vm1290_vm2, %v1584_v31  ;;  %v1614_v40 = vpack.c.bf16 %v1030_v32, %v1030_v32 }
 0x129   : > { %v1585_v41 = vpack.c.bf16 %v1001_v33, %v1001_v33  ;;  %v1031_v42 = vmax.f32 %v967_v34, 0.0  ;;  %1353 = vst.msk [vmem:[%s1917_s6 + $0xf8] sm:$0xf] %vm1290_vm2, %v1616_v36  ;;  %1319 = vst.msk [vmem:[%s1917_s6 + $0x70] sm:$0xf] %vm1290_vm2, %v1582_v38 }
 0x12a   : > { %v1617_v43 = vpack.c.bf16 %v1033_v35, %v1033_v35  ;;  %v1583_v44 = vpack.c.bf16 %v999_v39, %v999_v39  ;;  %1351 = vst.msk [vmem:[%s1917_s6 + $0xf0] sm:$0xf] %vm1290_vm2, %v1614_v40 }
 0x12b   : > { %1322 = vst.msk [vmem:[%s1917_s6 + $0x7c] sm:$0xf] %vm1290_vm2, %v1585_v41  ;;  %v1615_v37 = vpack.c.bf16 %v1031_v42, %v1031_v42 }
 0x12c   : > { %1354 = vst.msk [vmem:[%s1917_s6 + $0xfc] sm:$0xf] %vm1290_vm2, %v1617_v43  ;;  %1320 = vst.msk [vmem:[%s1917_s6 + $0x74] sm:$0xf] %vm1290_vm2, %v1583_v44 }
 0x12d   : > { %1352 = vst.msk [vmem:[%s1917_s6 + $0xf4] sm:$0xf] %vm1290_vm2, %v1615_v37 }
 0x12e PF: > { %s14_s15 = sadd.s32 1, %s1774_s15  }
 0x12f   : > { %p11_p4 = scmp.ge.s32.totalorder %s14_s15, 4  }
 0x131   :  { %13 = sbr.rel (!%p11_p4) target bundleno = 1 (0x1), region = 66 }

// kernel: _lambda_.25
= control target key start
LH: loop header
LB: loop body
LE: loop exit
PB: predicated region body
PF: predicated region fallthrough
CT: control target
= control target key end

     0   :  { %s374_s0 = inlined_call_operand.vmem [shape: bf16[9,16,128], index: 0, kind: input, shape index: {}]   ;;  %s375_s1 = inlined_call_operand.vmem [shape: f32[9,1,128], index: 1, kind: input, shape index: {}]   ;;  %s376_s2 = inlined_call_operand.vmem [shape: f32[1,128], index: 2, kind: input, shape index: {}]   ;;  %s377_s3 = inlined_call_operand.vmem [shape: f32[1,128], index: 3, kind: input, shape index: {}]   ;;  %s378_s4 = inlined_call_operand.vmem [shape: bf16[16,128], index: 4, kind: output, shape index: {}]  }
   0x1   :  { %v238_v0 = vld [vmem:[%s374_s0] sm:$0xff]   ;;  %v278_v2 = vld [vmem:[%s374_s0 + $0x8] sm:$0xff]   ;;  %v279_v8 = vld [vmem:[%s374_s0 + $0x10] sm:$0xff]  }
   0x2   :  { %v198_v1 = vld [vmem:[%s375_s1] ss:$0 sm:$0xff]  ;;  %v239_v3 = vunpack.c.l.bf16 %v238_v0  ;;  %v240_v4 = vunpack.c.h.bf16 %v238_v0  ;;  %v243_v5 = vunpack.c.l.bf16 %v278_v2  ;;  %v244_v6 = vunpack.c.h.bf16 %v278_v2  ;;  %v202_v7 = vld [vmem:[%s375_s1 + $0x1] ss:$0 sm:$0xff]  ;;  %v206_v9 = vld [vmem:[%s375_s1 + $0x2] ss:$0 sm:$0xff] }
   0x3   :  { %v247_v10 = vunpack.c.l.bf16 %v279_v8  ;;  %v248_v11 = vunpack.c.h.bf16 %v279_v8  ;;  %v280_v12 = vld [vmem:[%s374_s0 + $0x18] sm:$0xff]   ;;  %v281_v13 = vld [vmem:[%s374_s0 + $0x20] sm:$0xff]   ;;  %v282_v19 = vld [vmem:[%s374_s0 + $0x28] sm:$0xff]  }
   0x4   :  { %v28_v14 = vmul.f32 %v239_v3, %v198_v1  ;;  %v29_v15 = vmul.f32 %v240_v4, %v198_v1  ;;  %v43_v16 = vmul.f32 %v243_v5, %v202_v7  ;;  %v44_v17 = vmul.f32 %v244_v6, %v202_v7  ;;  %v210_v18 = vld [vmem:[%s375_s1 + $0x3] ss:$0 sm:$0xff]  ;;  %v214_v24 = vld [vmem:[%s375_s1 + $0x4] ss:$0 sm:$0xff]  ;;  %v218_v29 = vld [vmem:[%s375_s1 + $0x5] ss:$0 sm:$0xff] }
   0x5   :  { %v60_v20 = vmul.f32 %v247_v10, %v206_v9  ;;  %v61_v21 = vmul.f32 %v248_v11, %v206_v9  ;;  %v251_v22 = vunpack.c.l.bf16 %v280_v12  ;;  %v252_v23 = vunpack.c.h.bf16 %v280_v12  ;;  %v283_v30 = vld [vmem:[%s374_s0 + $0x30] sm:$0xff]   ;;  %v284_v35 = vld [vmem:[%s374_s0 + $0x38] sm:$0xff]   ;;  %v222_v40 = vld [vmem:[%s375_s1 + $0x6] ss:$0 sm:$0xff] }
   0x6   :  { %v45_v25 = vadd.f32 %v43_v16, %v28_v14  ;;  %v46_v26 = vadd.f32 %v44_v17, %v29_v15  ;;  %v255_v27 = vunpack.c.l.bf16 %v281_v13  ;;  %v256_v28 = vunpack.c.h.bf16 %v281_v13  ;;  %v285_v45 = vld [vmem:[%s374_s0 + $0x40] sm:$0xff]   ;;  %v230_v57 = vld [vmem:[%s375_s1 + $0x8] ss:$0 sm:$0xff] }
   0x7   :  { %v77_v31 = vmul.f32 %v251_v22, %v210_v18  ;;  %v78_v32 = vmul.f32 %v252_v23, %v210_v18  ;;  %v259_v33 = vunpack.c.l.bf16 %v282_v19  ;;  %v260_v34 = vunpack.c.h.bf16 %v282_v19  ;;  %v226_v52 = vld [vmem:[%s375_s1 + $0x7] ss:$0 sm:$0xff]  ;;  %v231_v4 = vld [vmem:[%s376_s2] ss:$0 sm:$0xff] }
   0x8   :  { %v62_v36 = vadd.f32 %v60_v20, %v45_v25  ;;  %v63_v37 = vadd.f32 %v61_v21, %v46_v26  ;;  %v94_v38 = vmul.f32 %v255_v27, %v214_v24  ;;  %v95_v39 = vmul.f32 %v256_v28, %v214_v24  ;;  %v232_v7 = vld [vmem:[%s377_s3] ss:$0 sm:$0xff] }
   0x9   :  { %v111_v41 = vmul.f32 %v259_v33, %v218_v29  ;;  %v112_v42 = vmul.f32 %v260_v34, %v218_v29  ;;  %v263_v43 = vunpack.c.l.bf16 %v283_v30  ;;  %v264_v44 = vunpack.c.h.bf16 %v283_v30 }
   0xa   :  { %v79_v46 = vadd.f32 %v77_v31, %v62_v36  ;;  %v80_v47 = vadd.f32 %v78_v32, %v63_v37  ;;  %v267_v48 = vunpack.c.l.bf16 %v284_v35  ;;  %v268_v49 = vunpack.c.h.bf16 %v284_v35 }
   0xb   :  { %v128_v50 = vmul.f32 %v263_v43, %v222_v40  ;;  %v129_v51 = vmul.f32 %v264_v44, %v222_v40  ;;  %v271_v55 = vunpack.c.l.bf16 %v285_v45  ;;  %v272_v56 = vunpack.c.h.bf16 %v285_v45 }
   0xc   :  { %v96_v53 = vadd.f32 %v94_v38, %v79_v46  ;;  %v97_v54 = vadd.f32 %v95_v39, %v80_v47  ;;  %v145_v60 = vmul.f32 %v267_v48, %v226_v52  ;;  %v146_v61 = vmul.f32 %v268_v49, %v226_v52 }
   0xd   :  { %v162_v0 = vmul.f32 %v271_v55, %v230_v57  ;;  %v163_v1 = vmul.f32 %v272_v56, %v230_v57 }
   0xe   :  { %v113_v58 = vadd.f32 %v111_v41, %v96_v53  ;;  %v114_v59 = vadd.f32 %v112_v42, %v97_v54 }
  0x10   :  { %v130_v62 = vadd.f32 %v128_v50, %v113_v58  ;;  %v131_v63 = vadd.f32 %v129_v51, %v114_v59 }
  0x12   :  { %v147_v2 = vadd.f32 %v145_v60, %v130_v62  ;;  %v148_v3 = vadd.f32 %v146_v61, %v131_v63 }
  0x14   :  { %v164_v5 = vadd.f32 %v162_v0, %v147_v2  ;;  %v165_v6 = vadd.f32 %v163_v1, %v148_v3 }
  0x16   :  { %v173_v8 = vmul.f32 %v231_v4, %v164_v5  ;;  %v174_v9 = vmul.f32 %v231_v4, %v165_v6 }
  0x18   :  { %v182_v10 = vadd.f32 %v232_v7, %v173_v8  ;;  %v183_v11 = vadd.f32 %v232_v7, %v174_v9 }
  0x1a   :  { %v276_v12 = vpack.c.bf16 %v183_v11, %v182_v10 }
  0x1c   :  { %277 = vst [vmem:[%s378_s4] sm:$0xff] %v276_v12  }

// kernel: _lambda_.26
= control target key start
LH: loop header
LB: loop body
LE: loop exit
PB: predicated region body
PF: predicated region fallthrough
CT: control target
= control target key end

     0   :  { %s886_s0 = inlined_call_operand.vmem [shape: bf16[25,16,128], index: 0, kind: input, shape index: {}]   ;;  %s887_s1 = inlined_call_operand.vmem [shape: f32[25,1,128], index: 1, kind: input, shape index: {}]   ;;  %s888_s2 = inlined_call_operand.vmem [shape: f32[1,128], index: 2, kind: input, shape index: {}]   ;;  %s889_s3 = inlined_call_operand.vmem [shape: f32[1,128], index: 3, kind: input, shape index: {}]   ;;  %s890_s4 = inlined_call_operand.vmem [shape: bf16[16,128], index: 4, kind: output, shape index: {}]  }
   0x1   :  { %v574_v0 = vld [vmem:[%s886_s0] sm:$0xff]   ;;  %v678_v2 = vld [vmem:[%s886_s0 + $0x8] sm:$0xff]   ;;  %v679_v8 = vld [vmem:[%s886_s0 + $0x10] sm:$0xff]  }
   0x2   :  { %v470_v1 = vld [vmem:[%s887_s1] ss:$0 sm:$0xff]  ;;  %v575_v3 = vunpack.c.l.bf16 %v574_v0  ;;  %v576_v4 = vunpack.c.h.bf16 %v574_v0  ;;  %v579_v5 = vunpack.c.l.bf16 %v678_v2  ;;  %v580_v6 = vunpack.c.h.bf16 %v678_v2  ;;  %v474_v7 = vld [vmem:[%s887_s1 + $0x1] ss:$0 sm:$0xff]  ;;  %v478_v9 = vld [vmem:[%s887_s1 + $0x2] ss:$0 sm:$0xff] }
   0x3   :  { %v583_v10 = vunpack.c.l.bf16 %v679_v8  ;;  %v584_v11 = vunpack.c.h.bf16 %v679_v8  ;;  %v680_v12 = vld [vmem:[%s886_s0 + $0x18] sm:$0xff]   ;;  %v681_v13 = vld [vmem:[%s886_s0 + $0x20] sm:$0xff]   ;;  %v682_v19 = vld [vmem:[%s886_s0 + $0x28] sm:$0xff]  }
   0x4   :  { %v28_v14 = vmul.f32 %v575_v3, %v470_v1  ;;  %v29_v15 = vmul.f32 %v576_v4, %v470_v1  ;;  %v43_v16 = vmul.f32 %v579_v5, %v474_v7  ;;  %v44_v17 = vmul.f32 %v580_v6, %v474_v7  ;;  %v482_v18 = vld [vmem:[%s887_s1 + $0x3] ss:$0 sm:$0xff]  ;;  %v486_v24 = vld [vmem:[%s887_s1 + $0x4] ss:$0 sm:$0xff]  ;;  %v490_v29 = vld [vmem:[%s887_s1 + $0x5] ss:$0 sm:$0xff] }
   0x5   :  { %v60_v20 = vmul.f32 %v583_v10, %v478_v9  ;;  %v61_v21 = vmul.f32 %v584_v11, %v478_v9  ;;  %v587_v22 = vunpack.c.l.bf16 %v680_v12  ;;  %v588_v23 = vunpack.c.h.bf16 %v680_v12  ;;  %v683_v30 = vld [vmem:[%s886_s0 + $0x30] sm:$0xff]   ;;  %v684_v35 = vld [vmem:[%s886_s0 + $0x38] sm:$0xff]   ;;  %v494_v40 = vld [vmem:[%s887_s1 + $0x6] ss:$0 sm:$0xff] }
   0x6   :  { %v45_v25 = vadd.f32 %v43_v16, %v28_v14  ;;  %v46_v26 = vadd.f32 %v44_v17, %v29_v15  ;;  %v591_v27 = vunpack.c.l.bf16 %v681_v13  ;;  %v592_v28 = vunpack.c.h.bf16 %v681_v13  ;;  %v685_v45 = vld [vmem:[%s886_s0 + $0x40] sm:$0xff]   ;;  %v686_v50 = vld [vmem:[%s886_s0 + $0x48] sm:$0xff]   ;;  %v687_v58 = vld [vmem:[%s886_s0 + $0x50] sm:$0xff]  }
   0x7   :  { %v77_v31 = vmul.f32 %v587_v22, %v482_v18  ;;  %v78_v32 = vmul.f32 %v588_v23, %v482_v18  ;;  %v595_v33 = vunpack.c.l.bf16 %v682_v19  ;;  %v596_v34 = vunpack.c.h.bf16 %v682_v19  ;;  %v498_v53 = vld [vmem:[%s887_s1 + $0x7] ss:$0 sm:$0xff]  ;;  %v502_v59 = vld [vmem:[%s887_s1 + $0x8] ss:$0 sm:$0xff]  ;;  %v506_v2 = vld [vmem:[%s887_s1 + $0x9] ss:$0 sm:$0xff] }
   0x8   :  { %v62_v36 = vadd.f32 %v60_v20, %v45_v25  ;;  %v63_v37 = vadd.f32 %v61_v21, %v46_v26  ;;  %v94_v38 = vmul.f32 %v591_v27, %v486_v24  ;;  %v95_v39 = vmul.f32 %v592_v28, %v486_v24  ;;  %v688_v5 = vld [vmem:[%s886_s0 + $0x58] sm:$0xff]   ;;  %v510_v10 = vld [vmem:[%s887_s1 + $0xa] ss:$0 sm:$0xff]  ;;  %v689_v13 = vld [vmem:[%s886_s0 + $0x60] sm:$0xff]  }
   0x9   :  { %v111_v41 = vmul.f32 %v595_v33, %v490_v29  ;;  %v112_v42 = vmul.f32 %v596_v34, %v490_v29  ;;  %v599_v43 = vunpack.c.l.bf16 %v683_v30  ;;  %v600_v44 = vunpack.c.h.bf16 %v683_v30  ;;  %v690_v18 = vld [vmem:[%s886_s0 + $0x68] sm:$0xff]   ;;  %v691_v26 = vld [vmem:[%s886_s0 + $0x70] sm:$0xff]  }
   0xa   :  { %v79_v46 = vadd.f32 %v77_v31, %v62_v36  ;;  %v80_v47 = vadd.f32 %v78_v32, %v63_v37  ;;  %v603_v48 = vunpack.c.l.bf16 %v684_v35  ;;  %v604_v49 = vunpack.c.h.bf16 %v684_v35  ;;  %v514_v21 = vld [vmem:[%s887_s1 + $0xb] ss:$0 sm:$0xff]  ;;  %v518_v27 = vld [vmem:[%s887_s1 + $0xc] ss:$0 sm:$0xff]  ;;  %v522_v34 = vld [vmem:[%s887_s1 + $0xd] ss:$0 sm:$0xff] }
   0xb   :  { %v128_v51 = vmul.f32 %v599_v43, %v494_v40  ;;  %v129_v52 = vmul.f32 %v600_v44, %v494_v40  ;;  %v607_v56 = vunpack.c.l.bf16 %v685_v45  ;;  %v608_v57 = vunpack.c.h.bf16 %v685_v45  ;;  %v692_v37 = vld [vmem:[%s886_s0 + $0x78] sm:$0xff]   ;;  %v693_v45 = vld [vmem:[%s886_s0 + $0x80] sm:$0xff]  }
   0xc   :  { %v96_v54 = vadd.f32 %v94_v38, %v79_v46  ;;  %v97_v55 = vadd.f32 %v95_v39, %v80_v47  ;;  %v611_v60 = vunpack.c.l.bf16 %v686_v50  ;;  %v612_v61 = vunpack.c.h.bf16 %v686_v50  ;;  %v694_v50 = vld [vmem:[%s886_s0 + $0x88] sm:$0xff]  }
   0xd   :  { %v145_v0 = vmul.f32 %v603_v48, %v498_v53  ;;  %v146_v1 = vmul.f32 %v604_v49, %v498_v53  ;;  %v615_v3 = vunpack.c.l.bf16 %v687_v58  ;;  %v616_v4 = vunpack.c.h.bf16 %v687_v58  ;;  %v530_v53 = vld [vmem:[%s887_s1 + $0xf] ss:$0 sm:$0xff]  ;;  %v695_v58 = vld [vmem:[%s886_s0 + $0x90] sm:$0xff]  }
   0xe   :  { %v113_v62 = vadd.f32 %v111_v41, %v96_v54  ;;  %v114_v63 = vadd.f32 %v112_v42, %v97_v55  ;;  %v162_v8 = vmul.f32 %v607_v56, %v502_v59  ;;  %v163_v9 = vmul.f32 %v608_v57, %v502_v59  ;;  %v526_v42 = vld [vmem:[%s887_s1 + $0xe] ss:$0 sm:$0xff]  ;;  %v534_v59 = vld [vmem:[%s887_s1 + $0x10] ss:$0 sm:$0xff] }
   0xf   :  { %v179_v11 = vmul.f32 %v611_v60, %v506_v2  ;;  %v180_v12 = vmul.f32 %v612_v61, %v506_v2  ;;  %v619_v16 = vunpack.c.l.bf16 %v688_v5  ;;  %v620_v17 = vunpack.c.h.bf16 %v688_v5  ;;  %v538_v2 = vld [vmem:[%s887_s1 + $0x11] ss:$0 sm:$0xff]  ;;  %v696_v5 = vld [vmem:[%s886_s0 + $0x98] sm:$0xff]  }
  0x10   :  { %v130_v6 = vadd.f32 %v128_v51, %v113_v62  ;;  %v131_v7 = vadd.f32 %v129_v52, %v114_v63  ;;  %v196_v19 = vmul.f32 %v615_v3, %v510_v10  ;;  %v197_v20 = vmul.f32 %v616_v4, %v510_v10  ;;  %v542_v10 = vld [vmem:[%s887_s1 + $0x12] ss:$0 sm:$0xff] }
  0x11   :  { %v623_v24 = vunpack.c.l.bf16 %v689_v13  ;;  %v624_v25 = vunpack.c.h.bf16 %v689_v13  ;;  %v627_v28 = vunpack.c.l.bf16 %v690_v18  ;;  %v628_v29 = vunpack.c.h.bf16 %v690_v18  ;;  %v697_v13 = vld [vmem:[%s886_s0 + $0xa0] sm:$0xff]   ;;  %v698_v18 = vld [vmem:[%s886_s0 + $0xa8] sm:$0xff]  }
  0x12   :  { %v147_v14 = vadd.f32 %v145_v0, %v130_v6  ;;  %v148_v15 = vadd.f32 %v146_v1, %v131_v7  ;;  %v213_v32 = vmul.f32 %v619_v16, %v514_v21  ;;  %v214_v33 = vmul.f32 %v620_v17, %v514_v21  ;;  %v546_v21 = vld [vmem:[%s887_s1 + $0x13] ss:$0 sm:$0xff] }
  0x13   :  { %v631_v35 = vunpack.c.l.bf16 %v691_v26  ;;  %v632_v36 = vunpack.c.h.bf16 %v691_v26  ;;  %v230_v40 = vmul.f32 %v623_v24, %v518_v27  ;;  %v231_v41 = vmul.f32 %v624_v25, %v518_v27  ;;  %v699_v26 = vld [vmem:[%s886_s0 + $0xb0] sm:$0xff]  }
  0x14   :  { %v164_v22 = vadd.f32 %v162_v8, %v147_v14  ;;  %v165_v23 = vadd.f32 %v163_v9, %v148_v15  ;;  %v247_v43 = vmul.f32 %v627_v28, %v522_v34  ;;  %v248_v44 = vmul.f32 %v628_v29, %v522_v34  ;;  %v550_v27 = vld [vmem:[%s887_s1 + $0x14] ss:$0 sm:$0xff]  ;;  %v554_v34 = vld [vmem:[%s887_s1 + $0x15] ss:$0 sm:$0xff] }
  0x15   :  { %v635_v48 = vunpack.c.l.bf16 %v692_v37  ;;  %v636_v49 = vunpack.c.h.bf16 %v692_v37  ;;  %v264_v51 = vmul.f32 %v631_v35, %v526_v42  ;;  %v265_v52 = vmul.f32 %v632_v36, %v526_v42  ;;  %v700_v37 = vld [vmem:[%s886_s0 + $0xb8] sm:$0xff]   ;;  %v558_v42 = vld [vmem:[%s887_s1 + $0x16] ss:$0 sm:$0xff] }
  0x16   :  { %v181_v30 = vadd.f32 %v179_v11, %v164_v22  ;;  %v182_v31 = vadd.f32 %v180_v12, %v165_v23  ;;  %v639_v56 = vunpack.c.l.bf16 %v693_v45  ;;  %v640_v57 = vunpack.c.h.bf16 %v693_v45  ;;  %v701_v45 = vld [vmem:[%s886_s0 + $0xc0] sm:$0xff]  }
  0x17   :  { %v643_v60 = vunpack.c.l.bf16 %v694_v50  ;;  %v644_v61 = vunpack.c.h.bf16 %v694_v50  ;;  %v281_v0 = vmul.f32 %v635_v48, %v530_v53  ;;  %v282_v1 = vmul.f32 %v636_v49, %v530_v53 }
  0x18   :  { %v198_v38 = vadd.f32 %v196_v19, %v181_v30  ;;  %v199_v39 = vadd.f32 %v197_v20, %v182_v31  ;;  %v647_v3 = vunpack.c.l.bf16 %v695_v58  ;;  %v648_v4 = vunpack.c.h.bf16 %v695_v58 }
  0x19   :  { %v298_v8 = vmul.f32 %v639_v56, %v534_v59  ;;  %v299_v9 = vmul.f32 %v640_v57, %v534_v59  ;;  %v315_v11 = vmul.f32 %v643_v60, %v538_v2  ;;  %v316_v12 = vmul.f32 %v644_v61, %v538_v2  ;;  %v566_v57 = vld [vmem:[%s887_s1 + $0x18] ss:$0 sm:$0xff] }
  0x1a   :  { %v215_v46 = vadd.f32 %v213_v32, %v198_v38  ;;  %v216_v47 = vadd.f32 %v214_v33, %v199_v39  ;;  %v651_v16 = vunpack.c.l.bf16 %v696_v5  ;;  %v652_v17 = vunpack.c.h.bf16 %v696_v5 }
  0x1b   :  { %v332_v19 = vmul.f32 %v647_v3, %v542_v10  ;;  %v333_v20 = vmul.f32 %v648_v4, %v542_v10  ;;  %v655_v24 = vunpack.c.l.bf16 %v697_v13  ;;  %v656_v25 = vunpack.c.h.bf16 %v697_v13  ;;  %v567_v4 = vld [vmem:[%s888_s2] ss:$0 sm:$0xff] }
  0x1c   :  { %v232_v54 = vadd.f32 %v230_v40, %v215_v46  ;;  %v233_v55 = vadd.f32 %v231_v41, %v216_v47  ;;  %v659_v28 = vunpack.c.l.bf16 %v698_v18  ;;  %v660_v29 = vunpack.c.h.bf16 %v698_v18 }
  0x1d   :  { %v349_v32 = vmul.f32 %v651_v16, %v546_v21  ;;  %v350_v33 = vmul.f32 %v652_v17, %v546_v21  ;;  %v663_v35 = vunpack.c.l.bf16 %v699_v26  ;;  %v664_v36 = vunpack.c.h.bf16 %v699_v26 }
  0x1e   :  { %v249_v62 = vadd.f32 %v247_v43, %v232_v54  ;;  %v250_v63 = vadd.f32 %v248_v44, %v233_v55  ;;  %v366_v40 = vmul.f32 %v655_v24, %v550_v27  ;;  %v367_v41 = vmul.f32 %v656_v25, %v550_v27 }
  0x1f   :  { %v383_v43 = vmul.f32 %v659_v28, %v554_v34  ;;  %v384_v44 = vmul.f32 %v660_v29, %v554_v34  ;;  %v667_v48 = vunpack.c.l.bf16 %v700_v37  ;;  %v668_v49 = vunpack.c.h.bf16 %v700_v37 }
  0x20   :  { %v266_v6 = vadd.f32 %v264_v51, %v249_v62  ;;  %v267_v7 = vadd.f32 %v265_v52, %v250_v63  ;;  %v400_v50 = vmul.f32 %v663_v35, %v558_v42  ;;  %v401_v51 = vmul.f32 %v664_v36, %v558_v42  ;;  %v562_v52 = vld [vmem:[%s887_s1 + $0x17] ss:$0 sm:$0xff] }
  0x21   :  { %v671_v55 = vunpack.c.l.bf16 %v701_v45  ;;  %v672_v56 = vunpack.c.h.bf16 %v701_v45  ;;  %v417_v60 = vmul.f32 %v667_v48, %v562_v52  ;;  %v418_v61 = vmul.f32 %v668_v49, %v562_v52 }
  0x22   :  { %v283_v14 = vadd.f32 %v281_v0, %v266_v6  ;;  %v284_v15 = vadd.f32 %v282_v1, %v267_v7  ;;  %v568_v7 = vld [vmem:[%s889_s3] ss:$0 sm:$0xff] }
  0x23   :  { %v434_v0 = vmul.f32 %v671_v55, %v566_v57  ;;  %v435_v1 = vmul.f32 %v672_v56, %v566_v57 }
  0x24   :  { %v300_v22 = vadd.f32 %v298_v8, %v283_v14  ;;  %v301_v23 = vadd.f32 %v299_v9, %v284_v15 }
  0x26   :  { %v317_v30 = vadd.f32 %v315_v11, %v300_v22  ;;  %v318_v31 = vadd.f32 %v316_v12, %v301_v23 }
  0x28   :  { %v334_v38 = vadd.f32 %v332_v19, %v317_v30  ;;  %v335_v39 = vadd.f32 %v333_v20, %v318_v31 }
  0x2a   :  { %v351_v46 = vadd.f32 %v349_v32, %v334_v38  ;;  %v352_v47 = vadd.f32 %v350_v33, %v335_v39 }
  0x2c   :  { %v368_v53 = vadd.f32 %v366_v40, %v351_v46  ;;  %v369_v54 = vadd.f32 %v367_v41, %v352_v47 }
  0x2e   :  { %v385_v58 = vadd.f32 %v383_v43, %v368_v53  ;;  %v386_v59 = vadd.f32 %v384_v44, %v369_v54 }
  0x30   :  { %v402_v62 = vadd.f32 %v400_v50, %v385_v58  ;;  %v403_v63 = vadd.f32 %v401_v51, %v386_v59 }
  0x32   :  { %v419_v2 = vadd.f32 %v417_v60, %v402_v62  ;;  %v420_v3 = vadd.f32 %v418_v61, %v403_v63 }
  0x34   :  { %v436_v5 = vadd.f32 %v434_v0, %v419_v2  ;;  %v437_v6 = vadd.f32 %v435_v1, %v420_v3 }
  0x36   :  { %v445_v8 = vmul.f32 %v567_v4, %v436_v5  ;;  %v446_v9 = vmul.f32 %v567_v4, %v437_v6 }
  0x38   :  { %v454_v10 = vadd.f32 %v568_v7, %v445_v8  ;;  %v455_v11 = vadd.f32 %v568_v7, %v446_v9 }
  0x3a   :  { %v676_v12 = vpack.c.bf16 %v455_v11, %v454_v10 }
  0x3c   :  { %677 = vst [vmem:[%s890_s4] sm:$0xff] %v676_v12  }

// kernel: _lambda_.27
= control target key start
LH: loop header
LB: loop body
LE: loop exit
PB: predicated region body
PF: predicated region fallthrough
CT: control target
= control target key end

     0   :  { %s742_s15 = smov 0   ;;  %s859_s0 = inlined_call_operand.vmem [shape: bf16[256,48], index: 0, kind: input, shape index: {}]   ;;  %s860_s1 = inlined_call_operand.vmem [shape: bf16[48,12], index: 1, kind: input, shape index: {}]   ;;  %s861_s2 = inlined_call_operand.vmem [shape: f32[1,12], index: 2, kind: input, shape index: {}]   ;;  %s862_s3 = inlined_call_operand.vmem [shape: f32[1,12], index: 3, kind: input, shape index: {}]   ;;  %s863_s4 = inlined_call_operand.vmem [shape: bf16[256,12], index: 4, kind: output, shape index: {}]  }
   0x1 LB: > { %s587_s16 = sadd.s32 4294967295, %s715_s15   ;;  %p591_p0 = scmp.ge.s32.totalorder %s715_s15, 1  ;;  %s715_s15 = sphi %s742_s15, %s14_s15  }
   0x2   : > { %p163_p1 = scmp.lt.s32.totalorder %s715_s15, 3 }
   0x4   : > { %p164_p2 = pnand %p591_p0, %p163_p1 }
   0x5   : > { %v698_v0 = vld [vmem:[%s860_s1] sm:$0xff] (!%p164_p2)   ;;  %s592_s19 = sshll.u32 (!%p164_p2), %s587_s16, 4  ;;  %v699_v1 = vld [vmem:[%s860_s1 + $0x8] sm:$0xff] (!%p164_p2)   ;;  %v700_v2 = vld [vmem:[%s860_s1 + $0x10] sm:$0xff] (!%p164_p2)   ;;  %vm282_vm0 = vcmask (!%p164_p2), 392192   ;;  %vm514_vm1 = vcmask (!%p164_p2), 93184  }
   0x6   : > { %167 = sbr.rel (%p164_p2) target bundleno = 249 (0xf9), region = 36  ;;  %p190_p3 = scmp.lt.s32.totalorder (!%p164_p2), %s592_s19, 31  ;;  %662 = vmatprep.subr.bf16.mxu0 (!%p164_p2), %v698_v0  ;;  %684 = vmatprep.subr.bf16.mxu1 (!%p164_p2), %v698_v0  ;;  %v778_v11 = vld [vmem:[%s861_s2] ss:$0 sm:$0xff] (!%p164_p2) }
   0x7   : > { %663 = vmatpush3.bf16.msra.mxu0 (!%p164_p2), %v698_v0  ;;  %687 = vmatpush3.bf16.msra.mxu1 (!%p164_p2), %v698_v0  ;;  %v783_v13 = vld [vmem:[%s862_s3] ss:$0 sm:$0xff] (!%p164_p2) }
   0x8   : > { %664 = vmatprep.subr.bf16.mxu0 (!%p164_p2), %v699_v1  ;;  %685 = vmatprep.subr.bf16.mxu1 (!%p164_p2), %v699_v1 }
   0xb   : > { %665 = vmatpush3.bf16.msra.mxu0 (!%p164_p2), %v699_v1  ;;  %688 = vmatpush3.bf16.msra.mxu1 (!%p164_p2), %v699_v1 }
   0xc   : > { %666 = vmatprep.subr.bf16.mxu0 (!%p164_p2), %v700_v2  ;;  %686 = vmatprep.subr.bf16.mxu1 (!%p164_p2), %v700_v2 }
   0xd   : > { %s865_s19 = smov (!%p190_p3, %s592_s19), 31 }
   0xe   : > { %s593_s24 = sshll.u32 %s865_s19, 2 }
   0xf   : > { %s193_s27 = scalar_lea.vmem %s859_s0, %s593_s24  ;;  %667 = vmatpush3.bf16.msra.mxu0 %v700_v2  ;;  %689 = vmatpush3.bf16.msra.mxu1 %v700_v2  ;;  %s798_s8 = scalar_lea.vmem %s863_s4, %s593_s24 }
  0x10   : > { %v701_v3 = vld [vmem:[%s193_s27] sm:$0xff]   ;;  %v703_v5 = vld [vmem:[%s193_s27 + $0x8] sm:$0xff]   ;;  %v705_v7 = vld [vmem:[%s193_s27 + $0x10] sm:$0xff]  }
  0x11   : > { %v702_v4 = vld [vmem:[%s193_s27 + $0x20] sm:$0xff]   ;;  %668 = vmatprep.mubr.msk.bf16.mxu0 %vm282_vm0, %v701_v3  ;;  %v704_v6 = vld [vmem:[%s193_s27 + $0x28] sm:$0xff]   ;;  %v706_v8 = vld [vmem:[%s193_s27 + $0x30] sm:$0xff]  }
  0x12   : > { %676 = vmatprep.mubr.msk.bf16.mxu1 %vm282_vm0, %v702_v4  ;;  %669 = vmatmul.mubr.msk.bf16.vlgmr.msra.gmra.mrb[0].mxu0 %vm282_vm0, %v703_v5  ;;  %v707_v9 = vld [vmem:[%s193_s27 + $0x18] sm:$0xff]  }
  0x13   : > { %677 = vmatmul.mubr.msk.bf16.vlgmr.msra.gmra.mrb[0].mxu1 %vm282_vm0, %v704_v6  ;;  %672 = vmatprep.mubr.msk.bf16.mxu0 %vm282_vm0, %v705_v7  ;;  %v708_v10 = vld [vmem:[%s193_s27 + $0x38] sm:$0xff]  }
  0x14   : > { %680 = vmatprep.mubr.msk.bf16.mxu1 %vm282_vm0, %v706_v8 }
  0x1a   : > { %673 = vmatmul.mubr.msk.bf16.gmra.mrb[4].mxu0 %vm282_vm0, %v707_v9 }
  0x1b   : > { %681 = vmatmul.mubr.msk.bf16.gmra.mrb[4].mxu1 %vm282_vm0, %v708_v10 }
  0xe5   : > { %v670_v12 = vpop.f32.mrb[0].mxu0 }
  0xe6   : > { %v678_v14 = vpop.f32.mrb[0].mxu1  ;;  %v413_v15 = vmul.f32 %v670_v12, %v778_v11  ;;  %v341_v17 = vpop.f32.mrb[1].mxu0 }
  0xe7   : > { %v421_v16 = vmul.f32 %v678_v14, %v778_v11  ;;  %v373_v18 = vpop.f32.mrb[1].mxu1  ;;  %v411_v19 = vmul.f32 %v778_v11, %v341_v17  ;;  %v671_v21 = vpop.f32.mrb[2].mxu0 }
  0xe8   : > { %v419_v20 = vmul.f32 %v778_v11, %v373_v18  ;;  %v679_v22 = vpop.f32.mrb[2].mxu1  ;;  %v436_v23 = vadd.f32 %v783_v13, %v413_v15  ;;  %v414_v25 = vmul.f32 %v671_v21, %v778_v11  ;;  %v344_v27 = vpop.f32.mrb[3].mxu0 }
  0xe9   : > { %v444_v24 = vadd.f32 %v783_v13, %v421_v16  ;;  %v422_v26 = vmul.f32 %v679_v22, %v778_v11  ;;  %v376_v28 = vpop.f32.mrb[3].mxu1  ;;  %v434_v29 = vadd.f32 %v783_v13, %v411_v19  ;;  %v412_v31 = vmul.f32 %v778_v11, %v344_v27 }
  0xea   : > { %v442_v30 = vadd.f32 %v783_v13, %v419_v20  ;;  %v420_v32 = vmul.f32 %v778_v11, %v376_v28  ;;  %v637_v33 = vpack.c.bf16 %v436_v23, %v436_v23  ;;  %v437_v35 = vadd.f32 %v783_v13, %v414_v25 }
  0xeb   : > { %v645_v34 = vpack.c.bf16 %v444_v24, %v444_v24  ;;  %v445_v36 = vadd.f32 %v783_v13, %v422_v26  ;;  %v635_v37 = vpack.c.bf16 %v434_v29, %v434_v29  ;;  %v435_v39 = vadd.f32 %v783_v13, %v412_v31 }
  0xec   : > { %v643_v38 = vpack.c.bf16 %v442_v30, %v442_v30  ;;  %v443_v40 = vadd.f32 %v783_v13, %v420_v32  ;;  %517 = vst.msk [vmem:[%s798_s8 + $0x8] sm:$0xf] %vm514_vm1, %v637_v33  ;;  %v638_v41 = vpack.c.bf16 %v437_v35, %v437_v35 }
  0xed   : > { %525 = vst.msk [vmem:[%s798_s8 + $0x28] sm:$0xf] %vm514_vm1, %v645_v34  ;;  %v646_v42 = vpack.c.bf16 %v445_v36, %v445_v36  ;;  %515 = vst.msk [vmem:[%s798_s8] sm:$0xf] %vm514_vm1, %v635_v37  ;;  %v636_v43 = vpack.c.bf16 %v435_v39, %v435_v39  ;;  %v674_v45 = vpop.f32.mrb[4].mxu0 }
  0xee   : > { %523 = vst.msk [vmem:[%s798_s8 + $0x20] sm:$0xf] %vm514_vm1, %v643_v38  ;;  %v644_v44 = vpack.c.bf16 %v443_v40, %v443_v40  ;;  %v682_v46 = vpop.f32.mrb[4].mxu1  ;;  %518 = vst.msk [vmem:[%s798_s8 + $0xc] sm:$0xf] %vm514_vm1, %v638_v41  ;;  %v417_v47 = vmul.f32 %v674_v45, %v778_v11  ;;  %v357_v49 = vpop.f32.mrb[5].mxu0 }
  0xef   : > { %526 = vst.msk [vmem:[%s798_s8 + $0x2c] sm:$0xf] %vm514_vm1, %v646_v42  ;;  %v425_v48 = vmul.f32 %v682_v46, %v778_v11  ;;  %v389_v50 = vpop.f32.mrb[5].mxu1  ;;  %516 = vst.msk [vmem:[%s798_s8 + $0x4] sm:$0xf] %vm514_vm1, %v636_v43  ;;  %v415_v51 = vmul.f32 %v778_v11, %v357_v49  ;;  %v675_v53 = vpop.f32.mrb[6].mxu0 }
  0xf0   : > { %524 = vst.msk [vmem:[%s798_s8 + $0x24] sm:$0xf] %vm514_vm1, %v644_v44  ;;  %v423_v52 = vmul.f32 %v778_v11, %v389_v50  ;;  %v683_v54 = vpop.f32.mrb[6].mxu1  ;;  %v440_v55 = vadd.f32 %v783_v13, %v417_v47  ;;  %v418_v57 = vmul.f32 %v675_v53, %v778_v11  ;;  %v360_v59 = vpop.f32.mrb[7].mxu0 }
  0xf1   : > { %v448_v56 = vadd.f32 %v783_v13, %v425_v48  ;;  %v426_v58 = vmul.f32 %v683_v54, %v778_v11  ;;  %v392_v60 = vpop.f32.mrb[7].mxu1  ;;  %v438_v61 = vadd.f32 %v783_v13, %v415_v51  ;;  %v416_v63 = vmul.f32 %v778_v11, %v360_v59 }
  0xf2   : > { %v446_v62 = vadd.f32 %v783_v13, %v423_v52  ;;  %v424_v0 = vmul.f32 %v778_v11, %v392_v60  ;;  %v641_v1 = vpack.c.bf16 %v440_v55, %v440_v55  ;;  %v441_v3 = vadd.f32 %v783_v13, %v418_v57 }
  0xf3   : > { %v649_v2 = vpack.c.bf16 %v448_v56, %v448_v56  ;;  %v449_v4 = vadd.f32 %v783_v13, %v426_v58  ;;  %v639_v5 = vpack.c.bf16 %v438_v61, %v438_v61  ;;  %v439_v7 = vadd.f32 %v783_v13, %v416_v63 }
  0xf4   : > { %v647_v6 = vpack.c.bf16 %v446_v62, %v446_v62  ;;  %v447_v8 = vadd.f32 %v783_v13, %v424_v0  ;;  %521 = vst.msk [vmem:[%s798_s8 + $0x18] sm:$0xf] %vm514_vm1, %v641_v1  ;;  %v642_v9 = vpack.c.bf16 %v441_v3, %v441_v3 }
  0xf5   : > { %529 = vst.msk [vmem:[%s798_s8 + $0x38] sm:$0xf] %vm514_vm1, %v649_v2  ;;  %v650_v10 = vpack.c.bf16 %v449_v4, %v449_v4  ;;  %519 = vst.msk [vmem:[%s798_s8 + $0x10] sm:$0xf] %vm514_vm1, %v639_v5  ;;  %v640_v11 = vpack.c.bf16 %v439_v7, %v439_v7 }
  0xf6   : > { %527 = vst.msk [vmem:[%s798_s8 + $0x30] sm:$0xf] %vm514_vm1, %v647_v6  ;;  %v648_v12 = vpack.c.bf16 %v447_v8, %v447_v8  ;;  %522 = vst.msk [vmem:[%s798_s8 + $0x1c] sm:$0xf] %vm514_vm1, %v642_v9 }
  0xf7   : > { %530 = vst.msk [vmem:[%s798_s8 + $0x3c] sm:$0xf] %vm514_vm1, %v650_v10  ;;  %520 = vst.msk [vmem:[%s798_s8 + $0x14] sm:$0xf] %vm514_vm1, %v640_v11 }
  0xf8   : > { %528 = vst.msk [vmem:[%s798_s8 + $0x34] sm:$0xf] %vm514_vm1, %v648_v12 }
  0xf9 PF: > { %s14_s15 = sadd.s32 1, %s715_s15  }
  0xfa   : > { %p11_p4 = scmp.ge.s32.totalorder %s14_s15, 4  }
  0xfc   :  { %13 = sbr.rel (!%p11_p4) target bundleno = 1 (0x1), region = 66 }

// kernel: _lambda_.28
= control target key start
LH: loop header
LB: loop body
LE: loop exit
PB: predicated region body
PF: predicated region fallthrough
CT: control target
= control target key end

     0   :  { %s928_s12 = smov 0   ;;  %s1032_s0 = inlined_call_operand.vmem [shape: bf16[256,12], index: 0, kind: input, shape index: {}]   ;;  %s1033_s1 = inlined_call_operand.vmem [shape: f32[256,1], index: 1, kind: input, shape index: {}]   ;;  %s1034_s2 = inlined_call_operand.vmem [shape: bf16[256,12], index: 2, kind: input, shape index: {}]   ;;  %s1035_s3 = inlined_call_operand.vmem [shape: bf16[256,12], index: 3, kind: output, shape index: {}]  }
   0x1 LB: > { %s683_s13 = sadd.s32 4294967295, %s905_s12   ;;  %p687_p0 = scmp.ge.s32.totalorder %s905_s12, 1  ;;  %s905_s12 = sphi %s928_s12, %s13_s12  }
   0x2   : > { %p160_p1 = scmp.lt.s32.totalorder %s905_s12, 3 }
   0x4   : > { %p161_p2 = pnand %p687_p0, %p160_p1 }
   0x5   : > { %s688_s14 = sshll.u32 (!%p161_p2), %s683_s13, 4  ;;  %v907_v0 = vmov (!%p161_p2), 0   ;;  %vm586_vm0 = vcmask (!%p161_p2), 93184  }
   0x6   : > { %164 = sbr.rel (%p161_p2) target bundleno = 209 (0xd1), region = 32  ;;  %834 = vset.pattern.permute.xlu1 (!%p161_p2), %v907_v0  ;;  %833 = vset.pattern.permute.xlu0 (!%p161_p2), %v907_v0  ;;  %p195_p3 = scmp.lt.s32.totalorder (!%p161_p2), %s688_s14, 31 }
   0xd   : > { %s1037_s14 = smov (!%p195_p3, %s688_s14), 31 }
   0xe   : > { %s691_s15 = sshll.u32 %s1037_s14, 3  ;;  %s961_s19 = sshll.u32 %s1037_s14, 2 }
   0xf   : > { %s942_s18 = scalar_lea.vmem %s1033_s1, %s691_s15  ;;  %s967_s22 = scalar_lea.vmem %s1032_s0, %s961_s19 }
  0x10   : > { %v220_v1 = vld [vmem:[%s942_s18 + $0x10] sm:$0xff]  ;;  %v218_v2 = vld [vmem:[%s942_s18] sm:$0xff]  ;;  %v221_v3 = vld [vmem:[%s942_s18 + $0x18] sm:$0xff]  ;;  %s973_s25 = scalar_lea.vmem %s1034_s2, %s961_s19  ;;  %s985_s28 = scalar_lea.vmem %s1035_s3, %s961_s19 }
  0x11   : > { %v698_v4 = vmul.f32 -1.442695, %v220_v1  ;;  %v696_v5 = vmul.f32 -1.442695, %v218_v2  ;;  %v699_v6 = vmul.f32 -1.442695, %v221_v3 }
  0x12   : > { %v219_v7 = vld [vmem:[%s942_s18 + $0x8] sm:$0xff]  ;;  %v222_v9 = vld [vmem:[%s942_s18 + $0x20] sm:$0xff]  ;;  %v225_v13 = vld [vmem:[%s942_s18 + $0x38] sm:$0xff] }
  0x13   : > { %v223_v8 = vld [vmem:[%s942_s18 + $0x28] sm:$0xff]  ;;  %835 = vpow2.f32 %v698_v4  ;;  %v697_v10 = vmul.f32 -1.442695, %v219_v7  ;;  %v700_v12 = vmul.f32 -1.442695, %v222_v9  ;;  %v224_v14 = vld [vmem:[%s942_s18 + $0x30] sm:$0xff] }
  0x14   : > { %v701_v11 = vmul.f32 -1.442695, %v223_v8  ;;  %837 = vpow2.f32 %v696_v5  ;;  %v227_v15 = vld [vmem:[%s942_s18 + $0x48] sm:$0xff]  ;;  %v703_v16 = vmul.f32 -1.442695, %v225_v13  ;;  %v226_v18 = vld [vmem:[%s942_s18 + $0x40] sm:$0xff] }
  0x15   : > { %839 = vpow2.f32 %v699_v6  ;;  %v702_v17 = vmul.f32 -1.442695, %v224_v14  ;;  %v705_v19 = vmul.f32 -1.442695, %v227_v15  ;;  %v229_v20 = vld [vmem:[%s942_s18 + $0x58] sm:$0xff]  ;;  %v228_v22 = vld [vmem:[%s942_s18 + $0x50] sm:$0xff] }
  0x16   : > { %841 = vpow2.f32 %v697_v10  ;;  %v704_v21 = vmul.f32 -1.442695, %v226_v18  ;;  %v707_v23 = vmul.f32 -1.442695, %v229_v20  ;;  %v706_v24 = vmul.f32 -1.442695, %v228_v22 }
  0x17   : > { %843 = vpow2.f32 %v701_v11  ;;  %v231_v28 = vld [vmem:[%s942_s18 + $0x68] sm:$0xff]  ;;  %v230_v45 = vld [vmem:[%s942_s18 + $0x60] sm:$0xff]  ;;  %v233_v47 = vld [vmem:[%s942_s18 + $0x78] sm:$0xff] }
  0x18   : > { %845 = vpow2.f32 %v700_v12  ;;  %v709_v35 = vmul.f32 -1.442695, %v231_v28  ;;  %v232_v50 = vld [vmem:[%s942_s18 + $0x70] sm:$0xff]  ;;  %v708_v52 = vmul.f32 -1.442695, %v230_v45  ;;  %v747_v18 = vld [vmem:[%s967_s22] sm:$0xff]  }
  0x19   : > { %847 = vpow2.f32 %v703_v16  ;;  %v711_v54 = vmul.f32 -1.442695, %v233_v47  ;;  %v710_v56 = vmul.f32 -1.442695, %v232_v50  ;;  %v748_v22 = vunpack.c.l.bf16 %v747_v18  ;;  %v812_v45 = vld [vmem:[%s967_s22 + $0x18] sm:$0xff]  }
  0x1a   : > { %849 = vpow2.f32 %v702_v17  ;;  %v810_v17 = vld [vmem:[%s967_s22 + $0x8] sm:$0xff]  }
  0x1b   : > { %851 = vpow2.f32 %v705_v19  ;;  %v817_v19 = vld [vmem:[%s973_s25 + $0x8] sm:$0xff]   ;;  %v752_v20 = vunpack.c.l.bf16 %v810_v17  ;;  %v753_v28 = vunpack.c.h.bf16 %v810_v17 }
  0x1c   : > { %853 = vpow2.f32 %v704_v21  ;;  %v779_v21 = vld [vmem:[%s973_s25] sm:$0xff]  }
  0x1d   : > { %v836_v25 = vpop.eup %835  ;;  %855 = vpow2.f32 %v707_v23  ;;  %v784_v23 = vunpack.c.l.bf16 %v817_v19 }
  0x1e   : > { %v838_v26 = vpop.eup %837  ;;  %v284_v27 = vadd.f32 1.0, %v836_v25  ;;  %857 = vpow2.f32 %v706_v24  ;;  %v780_v25 = vunpack.c.l.bf16 %v779_v21 }
  0x1f   : > { %v840_v29 = vpop.eup %839  ;;  %v282_v30 = vadd.f32 1.0, %v838_v26 }
  0x20   : > { %v842_v31 = vpop.eup %841  ;;  %859 = vrcp.f32 %v284_v27  ;;  %v285_v32 = vadd.f32 1.0, %v840_v29 }
  0x21   : > { %v844_v33 = vpop.eup %843  ;;  %861 = vrcp.f32 %v282_v30  ;;  %v283_v34 = vadd.f32 1.0, %v842_v31  ;;  %v749_v30 = vunpack.c.h.bf16 %v747_v18  ;;  %v811_v31 = vld [vmem:[%s967_s22 + $0x10] sm:$0xff]  }
  0x22   : > { %v846_v36 = vpop.eup %845  ;;  %863 = vrcp.f32 %v285_v32  ;;  %v287_v37 = vadd.f32 1.0, %v844_v33  ;;  %v785_v33 = vunpack.c.h.bf16 %v817_v19 }
  0x23   : > { %v848_v38 = vpop.eup %847  ;;  %865 = vrcp.f32 %v283_v34  ;;  %v286_v39 = vadd.f32 1.0, %v846_v36  ;;  %v781_v36 = vunpack.c.h.bf16 %v779_v21  ;;  %v821_v21 = vld [vmem:[%s973_s25 + $0x28] sm:$0xff]  }
  0x24   : > { %v850_v40 = vpop.eup %849  ;;  %v289_v42 = vadd.f32 1.0, %v848_v38  ;;  %867 = vpow2.f32 %v709_v35 }
  0x25   : > { %v852_v41 = vpop.eup %851  ;;  %869 = vrcp.f32 %v287_v37  ;;  %v288_v44 = vadd.f32 1.0, %v850_v40  ;;  %v818_v37 = vld [vmem:[%s973_s25 + $0x10] sm:$0xff]  }
  0x26   : > { %v854_v43 = vpop.eup %853  ;;  %871 = vrcp.f32 %v286_v39  ;;  %v291_v46 = vadd.f32 1.0, %v852_v41  ;;  %v757_v41 = vunpack.c.h.bf16 %v811_v31 }
  0x27   : > { %v856_v48 = vpop.eup %855  ;;  %v290_v49 = vadd.f32 1.0, %v854_v43  ;;  %873 = vrcp.f32 %v289_v42 }
  0x28   : > { %v858_v51 = vpop.eup %857  ;;  %875 = vrcp.f32 %v288_v44  ;;  %v293_v59 = vadd.f32 1.0, %v856_v48  ;;  %v756_v44 = vunpack.c.l.bf16 %v811_v31  ;;  %v789_v48 = vunpack.c.h.bf16 %v818_v37 }
  0x29   : > { %877 = vrcp.f32 %v291_v46  ;;  %v292_v61 = vadd.f32 1.0, %v858_v51 }
  0x2a   : > { %v860_v53 = vpop.eup %859  ;;  %879 = vrcp.f32 %v290_v49 }
  0x2b   : > { %v862_v55 = vpop.eup %861  ;;  %374 = vperm.xlu1 %834, %v860_v53   ;;  %881 = vpow2.f32 %v708_v52  ;;  %v788_v52 = vunpack.c.l.bf16 %v818_v37  ;;  %v819_v53 = vld [vmem:[%s973_s25 + $0x18] sm:$0xff]   ;;  %v822_v37 = vld [vmem:[%s973_s25 + $0x30] sm:$0xff]  }
  0x2c   : > { %v864_v57 = vpop.eup %863  ;;  %364 = vperm.xlu0 %833, %v862_v55   ;;  %883 = vpow2.f32 %v711_v54 }
  0x2d   : > { %v866_v58 = vpop.eup %865  ;;  %885 = vpow2.f32 %v710_v56 }
  0x2e   : > { %v868_v60 = vpop.eup %867  ;;  %887 = vrcp.f32 %v293_v59 }
  0x2f   : > { %379 = vperm.xlu1 %834, %v864_v57   ;;  %v870_v62 = vpop.eup %869  ;;  %v295_v0 = vadd.f32 1.0, %v868_v60  ;;  %889 = vrcp.f32 %v292_v61  ;;  %v761_v57 = vunpack.c.h.bf16 %v812_v45  ;;  %v760_v60 = vunpack.c.l.bf16 %v812_v45  ;;  %v813_v61 = vld [vmem:[%s967_s22 + $0x20] sm:$0xff]  }
  0x30   : > { %369 = vperm.xlu0 %833, %v866_v58   ;;  %v872_v63 = vpop.eup %871 }
  0x31   : > { %v874_v1 = vpop.eup %873  ;;  %891 = vrcp.f32 %v295_v0  ;;  %v793_v0 = vunpack.c.h.bf16 %v819_v53 }
  0x32   : > { %v876_v2 = vpop.eup %875 }
  0x33   : > { %389 = vperm.xlu1 %834, %v870_v62   ;;  %v878_v3 = vpop.eup %877 }
  0x34   : > { %384 = vperm.xlu0 %833, %v872_v63   ;;  %v880_v4 = vpop.eup %879 }
  0x35   : > { %v882_v5 = vpop.eup %881 }
  0x36   : > { %v884_v6 = vpop.eup %883  ;;  %v294_v7 = vadd.f32 1.0, %v882_v5  ;;  %v820_v5 = vld [vmem:[%s973_s25 + $0x20] sm:$0xff]  }
  0x37   : > { %399 = vperm.xlu1 %834, %v874_v1   ;;  %v886_v8 = vpop.eup %885  ;;  %v297_v9 = vadd.f32 1.0, %v884_v6 }
  0x38   : > { %394 = vperm.xlu0 %833, %v876_v2   ;;  %893 = vrcp.f32 %v294_v7  ;;  %v296_v10 = vadd.f32 1.0, %v886_v8  ;;  %v888_v11 = vpop.eup %887 }
  0x39   : > { %895 = vrcp.f32 %v297_v9  ;;  %v890_v12 = vpop.eup %889  ;;  %v765_v9 = vunpack.c.h.bf16 %v813_v61 }
  0x3a   : > { %897 = vrcp.f32 %v296_v10 }
  0x3b   : > { %409 = vperm.xlu1 %834, %v878_v3   ;;  %v892_v13 = vpop.eup %891 }
  0x3c   : > { %404 = vperm.xlu0 %833, %v880_v4   ;;  %v792_v4 = vunpack.c.l.bf16 %v819_v53 }
  0x3f   : > { %419 = vperm.xlu1 %834, %v888_v11  }
  0x40   : > { %414 = vperm.xlu0 %833, %v890_v12   ;;  %v764_v12 = vunpack.c.l.bf16 %v813_v61 }
  0x42   : > { %v894_v14 = vpop.eup %893 }
  0x43   : > { %429 = vperm.xlu1 %834, %v892_v13   ;;  %v896_v15 = vpop.eup %895  ;;  %v814_v13 = vld [vmem:[%s967_s22 + $0x28] sm:$0xff]  }
  0x44   : > { %424 = vperm.xlu0 %833, %v894_v14   ;;  %v898_v16 = vpop.eup %897 }
  0x47   : > { %439 = vperm.xlu1 %834, %v896_v15  }
  0x48   : > { %434 = vperm.xlu0 %833, %v898_v16   ;;  %v797_v16 = vunpack.c.h.bf16 %v820_v5 }
  0xaa   : > { %v375_v24 = vpop.permute.xlu1 %374 }
  0xab   : > { %v444_v26 = vmul.f32 %v752_v20, %v375_v24  ;;  %v365_v27 = vpop.permute.xlu0 %364  ;;  %v796_v20 = vunpack.c.l.bf16 %v820_v5 }
  0xac   : > { %v442_v29 = vmul.f32 %v748_v22, %v365_v27 }
  0xad   : > { %v492_v32 = vadd.f32 %v784_v23, %v444_v26 }
  0xae   : > { %v490_v34 = vadd.f32 %v780_v25, %v442_v29  ;;  %v380_v35 = vpop.permute.xlu1 %379  ;;  %v769_v25 = vunpack.c.h.bf16 %v814_v13  ;;  %v815_v29 = vld [vmem:[%s967_s22 + $0x30] sm:$0xff]  }
  0xaf   : > { %v508_v38 = vmax.f32 %v492_v32, 0.0  ;;  %v445_v39 = vmul.f32 %v753_v28, %v380_v35  ;;  %v370_v40 = vpop.permute.xlu0 %369  ;;  %v768_v28 = vunpack.c.l.bf16 %v814_v13  ;;  %v801_v32 = vunpack.c.h.bf16 %v821_v21 }
  0xb0   : > { %v506_v42 = vmax.f32 %v490_v34, 0.0  ;;  %v443_v43 = vmul.f32 %v749_v30, %v370_v40 }
  0xb1   : > { %v732_v46 = vpack.c.bf16 %v508_v38, %v508_v38  ;;  %v493_v47 = vadd.f32 %v785_v33, %v445_v39 }
  0xb2   : > { %v730_v49 = vpack.c.bf16 %v506_v42, %v506_v42  ;;  %v491_v50 = vadd.f32 %v781_v36, %v443_v43  ;;  %v390_v51 = vpop.permute.xlu1 %389  ;;  %v800_v36 = vunpack.c.l.bf16 %v821_v21 }
  0xb3   : > { %589 = vst.msk [vmem:[%s985_s28 + $0x8] sm:$0xf] %vm586_vm0, %v732_v46  ;;  %v509_v54 = vmax.f32 %v493_v47, 0.0  ;;  %v447_v55 = vmul.f32 %v757_v41, %v390_v51  ;;  %v385_v56 = vpop.permute.xlu0 %384  ;;  %v773_v41 = vunpack.c.h.bf16 %v815_v29  ;;  %v805_v47 = vunpack.c.h.bf16 %v822_v37 }
  0xb4   : > { %587 = vst.msk [vmem:[%s985_s28] sm:$0xf] %vm586_vm0, %v730_v49  ;;  %v507_v58 = vmax.f32 %v491_v50, 0.0  ;;  %v446_v59 = vmul.f32 %v756_v44, %v385_v56  ;;  %v816_v44 = vld [vmem:[%s967_s22 + $0x38] sm:$0xff]  }
  0xb5   : > { %v733_v62 = vpack.c.bf16 %v509_v54, %v509_v54  ;;  %v495_v63 = vadd.f32 %v789_v48, %v447_v55  ;;  %v772_v48 = vunpack.c.l.bf16 %v815_v29  ;;  %v804_v55 = vunpack.c.l.bf16 %v822_v37 }
  0xb6   : > { %v731_v1 = vpack.c.bf16 %v507_v58, %v507_v58  ;;  %v494_v2 = vadd.f32 %v788_v52, %v446_v59  ;;  %v400_v3 = vpop.permute.xlu1 %399  ;;  %v823_v52 = vld [vmem:[%s973_s25 + $0x38] sm:$0xff]   ;;  %v777_v56 = vunpack.c.h.bf16 %v816_v44  ;;  %v776_v59 = vunpack.c.l.bf16 %v816_v44 }
  0xb7   : > { %590 = vst.msk [vmem:[%s985_s28 + $0xc] sm:$0xf] %vm586_vm0, %v733_v62  ;;  %v511_v6 = vmax.f32 %v495_v63, 0.0  ;;  %v449_v7 = vmul.f32 %v761_v57, %v400_v3  ;;  %v395_v8 = vpop.permute.xlu0 %394  ;;  %v809_v63 = vunpack.c.h.bf16 %v823_v52  ;;  %v808_v5 = vunpack.c.l.bf16 %v823_v52 }
  0xb8   : > { %588 = vst.msk [vmem:[%s985_s28 + $0x4] sm:$0xf] %vm586_vm0, %v731_v1  ;;  %v510_v10 = vmax.f32 %v494_v2, 0.0  ;;  %v448_v11 = vmul.f32 %v760_v60, %v395_v8 }
  0xb9   : > { %v735_v14 = vpack.c.bf16 %v511_v6, %v511_v6  ;;  %v497_v15 = vadd.f32 %v793_v0, %v449_v7 }
  0xba   : > { %v734_v17 = vpack.c.bf16 %v510_v10, %v510_v10  ;;  %v496_v18 = vadd.f32 %v792_v4, %v448_v11  ;;  %v410_v19 = vpop.permute.xlu1 %409 }
  0xbb   : > { %592 = vst.msk [vmem:[%s985_s28 + $0x14] sm:$0xf] %vm586_vm0, %v735_v14  ;;  %v513_v22 = vmax.f32 %v497_v15, 0.0  ;;  %v451_v23 = vmul.f32 %v765_v9, %v410_v19  ;;  %v405_v24 = vpop.permute.xlu0 %404 }
  0xbc   : > { %591 = vst.msk [vmem:[%s985_s28 + $0x10] sm:$0xf] %vm586_vm0, %v734_v17  ;;  %v512_v26 = vmax.f32 %v496_v18, 0.0  ;;  %v450_v27 = vmul.f32 %v764_v12, %v405_v24 }
  0xbd   : > { %v737_v30 = vpack.c.bf16 %v513_v22, %v513_v22  ;;  %v499_v31 = vadd.f32 %v797_v16, %v451_v23 }
  0xbe   : > { %v736_v33 = vpack.c.bf16 %v512_v26, %v512_v26  ;;  %v498_v34 = vadd.f32 %v796_v20, %v450_v27  ;;  %v420_v35 = vpop.permute.xlu1 %419 }
  0xbf   : > { %594 = vst.msk [vmem:[%s985_s28 + $0x1c] sm:$0xf] %vm586_vm0, %v737_v30  ;;  %v515_v38 = vmax.f32 %v499_v31, 0.0  ;;  %v453_v39 = vmul.f32 %v769_v25, %v420_v35  ;;  %v415_v40 = vpop.permute.xlu0 %414 }
  0xc0   : > { %593 = vst.msk [vmem:[%s985_s28 + $0x18] sm:$0xf] %vm586_vm0, %v736_v33  ;;  %v514_v42 = vmax.f32 %v498_v34, 0.0  ;;  %v452_v43 = vmul.f32 %v768_v28, %v415_v40 }
  0xc1   : > { %v739_v45 = vpack.c.bf16 %v515_v38, %v515_v38  ;;  %v501_v46 = vadd.f32 %v801_v32, %v453_v39 }
  0xc2   : > { %v738_v49 = vpack.c.bf16 %v514_v42, %v514_v42  ;;  %v500_v50 = vadd.f32 %v800_v36, %v452_v43  ;;  %v430_v51 = vpop.permute.xlu1 %429 }
  0xc3   : > { %596 = vst.msk [vmem:[%s985_s28 + $0x24] sm:$0xf] %vm586_vm0, %v739_v45  ;;  %v517_v53 = vmax.f32 %v501_v46, 0.0  ;;  %v455_v54 = vmul.f32 %v773_v41, %v430_v51  ;;  %v425_v58 = vpop.permute.xlu0 %424 }
  0xc4   : > { %595 = vst.msk [vmem:[%s985_s28 + $0x20] sm:$0xf] %vm586_vm0, %v738_v49  ;;  %v516_v57 = vmax.f32 %v500_v50, 0.0  ;;  %v454_v62 = vmul.f32 %v772_v48, %v425_v58 }
  0xc5   : > { %v741_v60 = vpack.c.bf16 %v517_v53, %v517_v53  ;;  %v503_v61 = vadd.f32 %v805_v47, %v455_v54 }
  0xc6   : > { %v740_v0 = vpack.c.bf16 %v516_v57, %v516_v57  ;;  %v440_v1 = vpop.permute.xlu1 %439  ;;  %v502_v3 = vadd.f32 %v804_v55, %v454_v62 }
  0xc7   : > { %598 = vst.msk [vmem:[%s985_s28 + $0x2c] sm:$0xf] %vm586_vm0, %v741_v60  ;;  %v519_v2 = vmax.f32 %v503_v61, 0.0  ;;  %v457_v4 = vmul.f32 %v777_v56, %v440_v1  ;;  %v435_v6 = vpop.permute.xlu0 %434 }
  0xc8   : > { %597 = vst.msk [vmem:[%s985_s28 + $0x28] sm:$0xf] %vm586_vm0, %v740_v0  ;;  %v518_v8 = vmax.f32 %v502_v3, 0.0  ;;  %v456_v10 = vmul.f32 %v776_v59, %v435_v6 }
  0xc9   : > { %v743_v7 = vpack.c.bf16 %v519_v2, %v519_v2  ;;  %v505_v9 = vadd.f32 %v809_v63, %v457_v4 }
  0xca   : > { %v742_v11 = vpack.c.bf16 %v518_v8, %v518_v8  ;;  %v504_v13 = vadd.f32 %v808_v5, %v456_v10 }
  0xcb   : > { %600 = vst.msk [vmem:[%s985_s28 + $0x34] sm:$0xf] %vm586_vm0, %v743_v7  ;;  %v521_v12 = vmax.f32 %v505_v9, 0.0 }
  0xcc   : > { %599 = vst.msk [vmem:[%s985_s28 + $0x30] sm:$0xf] %vm586_vm0, %v742_v11  ;;  %v520_v15 = vmax.f32 %v504_v13, 0.0 }
  0xcd   : > { %v745_v14 = vpack.c.bf16 %v521_v12, %v521_v12 }
  0xce   : > { %v744_v16 = vpack.c.bf16 %v520_v15, %v520_v15 }
  0xcf   : > { %602 = vst.msk [vmem:[%s985_s28 + $0x3c] sm:$0xf] %vm586_vm0, %v745_v14 }
  0xd0   : > { %601 = vst.msk [vmem:[%s985_s28 + $0x38] sm:$0xf] %vm586_vm0, %v744_v16 }
  0xd1 PF: > { %s13_s12 = sadd.s32 1, %s905_s12  }
  0xd2   : > { %p10_p4 = scmp.ge.s32.totalorder %s13_s12, 4  }
  0xd4   :  { %12 = sbr.rel (!%p10_p4) target bundleno = 1 (0x1), region = 68 }

// kernel: _lambda_.29
= control target key start
LH: loop header
LB: loop body
LE: loop exit
PB: predicated region body
PF: predicated region fallthrough
CT: control target
= control target key end

     0   :  { %s86_s0 = inlined_call_operand.vmem [shape: bf16[9,8,128], index: 0, kind: input, shape index: {}]   ;;  %s87_s1 = inlined_call_operand.vmem [shape: bf16[8,128], index: 1, kind: output, shape index: {}]  }
   0x1   :  { %v8_v0 = vld [vmem:[%s86_s0] sm:$0xf]  ;;  %v38_v1 = vld [vmem:[%s86_s0 + $0x4] sm:$0xf]  ;;  %v39_v2 = vld [vmem:[%s86_s0 + $0x8] sm:$0xf] }
   0x2   :  { %v11_v3 = vmax.bf16 %v38_v1, %v8_v0  ;;  %v40_v4 = vld [vmem:[%s86_s0 + $0xc] sm:$0xf]  ;;  %v41_v6 = vld [vmem:[%s86_s0 + $0x10] sm:$0xf]  ;;  %v42_v8 = vld [vmem:[%s86_s0 + $0x14] sm:$0xf] }
   0x3   :  { %v43_v10 = vld [vmem:[%s86_s0 + $0x18] sm:$0xf]  ;;  %v44_v12 = vld [vmem:[%s86_s0 + $0x1c] sm:$0xf]  ;;  %v45_v14 = vld [vmem:[%s86_s0 + $0x20] sm:$0xf] }
   0x4   :  { %v14_v5 = vmax.bf16 %v39_v2, %v11_v3 }
   0x6   :  { %v17_v7 = vmax.bf16 %v40_v4, %v14_v5 }
   0x8   :  { %v20_v9 = vmax.bf16 %v41_v6, %v17_v7 }
   0xa   :  { %v23_v11 = vmax.bf16 %v42_v8, %v20_v9 }
   0xc   :  { %v26_v13 = vmax.bf16 %v43_v10, %v23_v11 }
   0xe   :  { %v29_v15 = vmax.bf16 %v44_v12, %v26_v13 }
  0x10   :  { %v32_v16 = vmax.bf16 %v45_v14, %v29_v15 }
  0x12   :  { %33 = vst [vmem:[%s87_s1] sm:$0xf] %v32_v16 }

// kernel: _lambda_.30
= control target key start
LH: loop header
LB: loop body
LE: loop exit
PB: predicated region body
PF: predicated region fallthrough
CT: control target
= control target key end

     0   :  { %s462_s15 = smov 0   ;;  %s488_s0 = inlined_call_operand.vmem [shape: bf16[64,12], index: 0, kind: input, shape index: {}]   ;;  %s489_s1 = inlined_call_operand.vmem [shape: bf16[12,16], index: 1, kind: input, shape index: {}]   ;;  %s490_s2 = inlined_call_operand.vmem [shape: f32[1,16], index: 2, kind: input, shape index: {}]   ;;  %s491_s3 = inlined_call_operand.vmem [shape: f32[1,16], index: 3, kind: input, shape index: {}]   ;;  %s492_s4 = inlined_call_operand.vmem [shape: bf16[64,16], index: 4, kind: output, shape index: {}]  }
   0x1 LB: > { %s382_s16 = sadd.s32 4294967295, %s435_s15   ;;  %p386_p0 = scmp.ge.s32.totalorder %s435_s15, 1  ;;  %s435_s15 = sphi %s462_s15, %s14_s15  }
   0x2   : > { %p163_p1 = scmp.lt.s32.totalorder %s435_s15, 3 }
   0x4   : > { %p164_p2 = pnand %p386_p0, %p163_p1 }
   0x5   : > { %v426_v0 = vld [vmem:[%s489_s1] sm:$0x3f] (!%p164_p2)   ;;  %vm230_vm0 = vcmask (!%p164_p2), 1045504   ;;  %s387_s19 = sshll.u32 (!%p164_p2), %s382_s16, 2  ;;  %vm223_vm1 = vcmask (!%p164_p2), 97280   ;;  %vm321_vm2 = vcmask (!%p164_p2), 125952  }
   0x6   : > { %167 = sbr.rel (%p164_p2) target bundleno = 240 (0xf0), region = 36  ;;  %417 = vmatprep.subr.msk.bf16.mxu0 (!%p164_p2), %vm230_vm0, %v426_v0  ;;  %v232_v1 = vsel (!%p164_p2), %vm230_vm0, %v426_v0, 0  ;;  %p190_p3 = scmp.lt.s32.totalorder (!%p164_p2), %s387_s19, 7  ;;  %v396_v4 = vld [vmem:[%s490_s2] ss:$0 sm:$0xff] (!%p164_p2) }
   0x7   : > { %412 = vmatpush3.bf16.msra.mxu0 (!%p164_p2), %v232_v1  ;;  %v397_v7 = vld [vmem:[%s491_s3] ss:$0 sm:$0xff] (!%p164_p2) }
   0xd   : > { %s494_s19 = smov (!%p190_p3, %s387_s19), 7 }
   0xe   : > { %s388_s20 = sshll.u32 %s494_s19, 2 }
   0xf   : > { %s193_s23 = scalar_lea.vmem %s488_s0, %s388_s20  ;;  %s199_s30 = scalar_lea.vmem %s492_s4, %s388_s20 }
  0x10   : > { %v427_v2 = vld [vmem:[%s193_s23] sm:$0xff]   ;;  %v428_v3 = vld [vmem:[%s193_s23 + $0x8] sm:$0xff]  }
  0x11   : > { %413 = vmatprep.mubr.msk.bf16.mxu0 %vm223_vm1, %v427_v2 }
  0x12   : > { %414 = vmatmul.mubr.msk.bf16.vlgmr.msra.gmra.mrb[0].mxu0 %vm223_vm1, %v428_v3 }
  0xe5   : > { %v415_v5 = vpop.f32.mrb[0].mxu0 }
  0xe6   : > { %v292_v6 = vmul.f32 %v415_v5, %v396_v4  ;;  %v268_v8 = vpop.f32.mrb[1].mxu0 }
  0xe7   : > { %v290_v9 = vmul.f32 %v396_v4, %v268_v8  ;;  %v416_v10 = vpop.f32.mrb[2].mxu0 }
  0xe8   : > { %v293_v11 = vmul.f32 %v416_v10, %v396_v4  ;;  %v271_v12 = vpop.f32.mrb[3].mxu0  ;;  %v303_v15 = vadd.f32 %v397_v7, %v292_v6 }
  0xe9   : > { %v301_v13 = vadd.f32 %v397_v7, %v290_v9  ;;  %v291_v14 = vmul.f32 %v396_v4, %v271_v12 }
  0xea   : > { %v304_v17 = vadd.f32 %v397_v7, %v293_v11  ;;  %v406_v20 = vpack.c.bf16 %v303_v15, %v303_v15 }
  0xeb   : > { %v404_v16 = vpack.c.bf16 %v301_v13, %v301_v13  ;;  %v302_v18 = vadd.f32 %v397_v7, %v291_v14 }
  0xec   : > { %v407_v21 = vpack.c.bf16 %v304_v17, %v304_v17  ;;  %324 = vst.msk [vmem:[%s199_s30 + $0x8] sm:$0xf] %vm321_vm2, %v406_v20 }
  0xed   : > { %322 = vst.msk [vmem:[%s199_s30] sm:$0xf] %vm321_vm2, %v404_v16  ;;  %v405_v19 = vpack.c.bf16 %v302_v18, %v302_v18 }
  0xee   : > { %325 = vst.msk [vmem:[%s199_s30 + $0xc] sm:$0xf] %vm321_vm2, %v407_v21 }
  0xef   : > { %323 = vst.msk [vmem:[%s199_s30 + $0x4] sm:$0xf] %vm321_vm2, %v405_v19 }
  0xf0 PF: > { %s14_s15 = sadd.s32 1, %s435_s15  }
  0xf1   : > { %p11_p4 = scmp.ge.s32.totalorder %s14_s15, 4  }
  0xf3   :  { %13 = sbr.rel (!%p11_p4) target bundleno = 1 (0x1), region = 66 }

// kernel: _lambda_.31
= control target key start
LH: loop header
LB: loop body
LE: loop exit
PB: predicated region body
PF: predicated region fallthrough
CT: control target
= control target key end

     0   :  { %s760_s15 = smov 0   ;;  %s877_s0 = inlined_call_operand.vmem [shape: bf16[256,36], index: 0, kind: input, shape index: {}]   ;;  %s878_s1 = inlined_call_operand.vmem [shape: bf16[36,24], index: 1, kind: input, shape index: {}]   ;;  %s879_s2 = inlined_call_operand.vmem [shape: f32[1,24], index: 2, kind: input, shape index: {}]   ;;  %s880_s3 = inlined_call_operand.vmem [shape: f32[1,24], index: 3, kind: input, shape index: {}]   ;;  %s881_s4 = inlined_call_operand.vmem [shape: bf16[256,24], index: 4, kind: output, shape index: {}]  }
   0x1 LB: > { %s603_s16 = sadd.s32 4294967295, %s733_s15   ;;  %p607_p0 = scmp.ge.s32.totalorder %s733_s15, 1  ;;  %s733_s15 = sphi %s760_s15, %s14_s15  }
   0x2   : > { %p163_p1 = scmp.lt.s32.totalorder %s733_s15, 3 }
   0x4   : > { %p164_p2 = pnand %p607_p0, %p163_p1 }
   0x5   : > { %v716_v0 = vld [vmem:[%s878_s1] sm:$0xff] (!%p164_p2)   ;;  %v717_v1 = vld [vmem:[%s878_s1 + $0x8] sm:$0xff] (!%p164_p2)   ;;  %s608_s21 = sshll.u32 (!%p164_p2), %s603_s16, 4  ;;  %v718_v2 = vld [vmem:[%s878_s1 + $0x10] ss:$0 sps:$4 sm:$0x33] (!%p164_p2)  }
   0x6   : > { %167 = sbr.rel (%p164_p2) target bundleno = 252 (0xfc), region = 36  ;;  %678 = vmatprep.subr.bf16.mxu0 (!%p164_p2), %v716_v0  ;;  %700 = vmatprep.subr.bf16.mxu1 (!%p164_p2), %v716_v0  ;;  %p190_p3 = scmp.lt.s32.totalorder (!%p164_p2), %s608_s21, 31  ;;  %vm303_vm0 = vcmask (!%p164_p2), 1041408   ;;  %vm278_vm1 = vcmask (!%p164_p2), 293888   ;;  %v796_v12 = vld [vmem:[%s879_s2] ss:$0 sm:$0xff] (!%p164_p2) }
   0x7   : > { %679 = vmatpush3.bf16.msra.mxu0 (!%p164_p2), %v716_v0  ;;  %703 = vmatpush3.bf16.msra.mxu1 (!%p164_p2), %v716_v0  ;;  %v305_v3 = vsel (!%p164_p2), %vm303_vm0, %v718_v2, 0  ;;  %v801_v14 = vld [vmem:[%s880_s3] ss:$0 sm:$0xff] (!%p164_p2)  ;;  %vm530_vm2 = vcmask (!%p164_p2), 191488  }
   0x8   : > { %680 = vmatprep.subr.bf16.mxu0 (!%p164_p2), %v717_v1  ;;  %701 = vmatprep.subr.bf16.mxu1 (!%p164_p2), %v717_v1 }
   0xb   : > { %681 = vmatpush3.bf16.msra.mxu0 (!%p164_p2), %v717_v1  ;;  %704 = vmatpush3.bf16.msra.mxu1 (!%p164_p2), %v717_v1 }
   0xc   : > { %706 = vmatprep.subr.msk.bf16.mxu0 (!%p164_p2), %vm303_vm0, %v718_v2  ;;  %707 = vmatprep.subr.msk.bf16.mxu1 (!%p164_p2), %vm303_vm0, %v718_v2 }
   0xd   : > { %s883_s21 = smov (!%p190_p3, %s608_s21), 31 }
   0xe   : > { %s609_s24 = sshll.u32 %s883_s21, 2 }
   0xf   : > { %s193_s27 = scalar_lea.vmem %s877_s0, %s609_s24  ;;  %683 = vmatpush3.bf16.msra.mxu0 %v305_v3  ;;  %705 = vmatpush3.bf16.msra.mxu1 %v305_v3  ;;  %s822_s8 = scalar_lea.vmem %s881_s4, %s609_s24 }
  0x10   : > { %v719_v4 = vld [vmem:[%s193_s27] sm:$0xff]   ;;  %v721_v6 = vld [vmem:[%s193_s27 + $0x8] sm:$0xff]   ;;  %v723_v8 = vld [vmem:[%s193_s27 + $0x10] sm:$0xff]  }
  0x11   : > { %v720_v5 = vld [vmem:[%s193_s27 + $0x20] sm:$0xff]   ;;  %684 = vmatprep.mubr.msk.bf16.mxu0 %vm278_vm1, %v719_v4  ;;  %v722_v7 = vld [vmem:[%s193_s27 + $0x28] sm:$0xff]   ;;  %v724_v9 = vld [vmem:[%s193_s27 + $0x30] sm:$0xff]  }
  0x12   : > { %692 = vmatprep.mubr.msk.bf16.mxu1 %vm278_vm1, %v720_v5  ;;  %685 = vmatmul.mubr.msk.bf16.vlgmr.msra.gmra.mrb[0].mxu0 %vm278_vm1, %v721_v6  ;;  %v725_v10 = vld [vmem:[%s193_s27 + $0x18] sm:$0xff]  }
  0x13   : > { %693 = vmatmul.mubr.msk.bf16.vlgmr.msra.gmra.mrb[0].mxu1 %vm278_vm1, %v722_v7  ;;  %688 = vmatprep.mubr.msk.bf16.mxu0 %vm278_vm1, %v723_v8  ;;  %v726_v11 = vld [vmem:[%s193_s27 + $0x38] sm:$0xff]  }
  0x14   : > { %696 = vmatprep.mubr.msk.bf16.mxu1 %vm278_vm1, %v724_v9 }
  0x1a   : > { %689 = vmatmul.mubr.msk.bf16.gmra.mrb[4].mxu0 %vm278_vm1, %v725_v10 }
  0x1b   : > { %697 = vmatmul.mubr.msk.bf16.gmra.mrb[4].mxu1 %vm278_vm1, %v726_v11 }
  0xe5   : > { %v686_v13 = vpop.f32.mrb[0].mxu0 }
  0xe6   : > { %v694_v15 = vpop.f32.mrb[0].mxu1  ;;  %v413_v16 = vmul.f32 %v686_v13, %v796_v12  ;;  %v341_v18 = vpop.f32.mrb[1].mxu0 }
  0xe7   : > { %v421_v17 = vmul.f32 %v694_v15, %v796_v12  ;;  %v373_v19 = vpop.f32.mrb[1].mxu1  ;;  %v411_v20 = vmul.f32 %v796_v12, %v341_v18  ;;  %v687_v22 = vpop.f32.mrb[2].mxu0 }
  0xe8   : > { %v419_v21 = vmul.f32 %v796_v12, %v373_v19  ;;  %v695_v23 = vpop.f32.mrb[2].mxu1  ;;  %v436_v24 = vadd.f32 %v801_v14, %v413_v16  ;;  %v414_v26 = vmul.f32 %v687_v22, %v796_v12  ;;  %v344_v28 = vpop.f32.mrb[3].mxu0 }
  0xe9   : > { %v444_v25 = vadd.f32 %v801_v14, %v421_v17  ;;  %v422_v27 = vmul.f32 %v695_v23, %v796_v12  ;;  %v376_v29 = vpop.f32.mrb[3].mxu1  ;;  %v434_v30 = vadd.f32 %v801_v14, %v411_v20  ;;  %v412_v32 = vmul.f32 %v796_v12, %v344_v28 }
  0xea   : > { %v442_v31 = vadd.f32 %v801_v14, %v419_v21  ;;  %v420_v33 = vmul.f32 %v796_v12, %v376_v29  ;;  %v452_v34 = vmax.f32 %v436_v24, 0.0  ;;  %v437_v36 = vadd.f32 %v801_v14, %v414_v26 }
  0xeb   : > { %v460_v35 = vmax.f32 %v444_v25, 0.0  ;;  %v445_v37 = vadd.f32 %v801_v14, %v422_v27  ;;  %v450_v38 = vmax.f32 %v434_v30, 0.0  ;;  %v435_v40 = vadd.f32 %v801_v14, %v412_v32 }
  0xec   : > { %v458_v39 = vmax.f32 %v442_v31, 0.0  ;;  %v443_v41 = vadd.f32 %v801_v14, %v420_v33  ;;  %v653_v42 = vpack.c.bf16 %v452_v34, %v452_v34  ;;  %v453_v44 = vmax.f32 %v437_v36, 0.0 }
  0xed   : > { %v661_v43 = vpack.c.bf16 %v460_v35, %v460_v35  ;;  %v461_v45 = vmax.f32 %v445_v37, 0.0  ;;  %v651_v46 = vpack.c.bf16 %v450_v38, %v450_v38  ;;  %v451_v48 = vmax.f32 %v435_v40, 0.0  ;;  %v690_v50 = vpop.f32.mrb[4].mxu0 }
  0xee   : > { %v659_v47 = vpack.c.bf16 %v458_v39, %v458_v39  ;;  %v459_v49 = vmax.f32 %v443_v41, 0.0  ;;  %v698_v51 = vpop.f32.mrb[4].mxu1  ;;  %533 = vst.msk [vmem:[%s822_s8 + $0x8] sm:$0xf] %vm530_vm2, %v653_v42  ;;  %v654_v52 = vpack.c.bf16 %v453_v44, %v453_v44  ;;  %v417_v54 = vmul.f32 %v690_v50, %v796_v12  ;;  %v357_v56 = vpop.f32.mrb[5].mxu0 }
  0xef   : > { %541 = vst.msk [vmem:[%s822_s8 + $0x28] sm:$0xf] %vm530_vm2, %v661_v43  ;;  %v662_v53 = vpack.c.bf16 %v461_v45, %v461_v45  ;;  %v425_v55 = vmul.f32 %v698_v51, %v796_v12  ;;  %v389_v57 = vpop.f32.mrb[5].mxu1  ;;  %531 = vst.msk [vmem:[%s822_s8] sm:$0xf] %vm530_vm2, %v651_v46  ;;  %v652_v58 = vpack.c.bf16 %v451_v48, %v451_v48  ;;  %v691_v62 = vpop.f32.mrb[6].mxu0 }
  0xf0   : > { %539 = vst.msk [vmem:[%s822_s8 + $0x20] sm:$0xf] %vm530_vm2, %v659_v47  ;;  %v660_v59 = vpack.c.bf16 %v459_v49, %v459_v49  ;;  %v415_v60 = vmul.f32 %v796_v12, %v357_v56  ;;  %v423_v61 = vmul.f32 %v796_v12, %v389_v57  ;;  %v699_v63 = vpop.f32.mrb[6].mxu1  ;;  %534 = vst.msk [vmem:[%s822_s8 + $0xc] sm:$0xf] %vm530_vm2, %v654_v52  ;;  %v360_v4 = vpop.f32.mrb[7].mxu0 }
  0xf1   : > { %542 = vst.msk [vmem:[%s822_s8 + $0x2c] sm:$0xf] %vm530_vm2, %v662_v53  ;;  %v440_v0 = vadd.f32 %v801_v14, %v417_v54  ;;  %v448_v1 = vadd.f32 %v801_v14, %v425_v55  ;;  %v418_v2 = vmul.f32 %v691_v62, %v796_v12  ;;  %v426_v3 = vmul.f32 %v699_v63, %v796_v12  ;;  %v392_v5 = vpop.f32.mrb[7].mxu1 }
  0xf2   : > { %532 = vst.msk [vmem:[%s822_s8 + $0x4] sm:$0xf] %vm530_vm2, %v652_v58  ;;  %540 = vst.msk [vmem:[%s822_s8 + $0x24] sm:$0xf] %vm530_vm2, %v660_v59  ;;  %v438_v6 = vadd.f32 %v801_v14, %v415_v60  ;;  %v446_v7 = vadd.f32 %v801_v14, %v423_v61  ;;  %v416_v8 = vmul.f32 %v796_v12, %v360_v4 }
  0xf3   : > { %v424_v9 = vmul.f32 %v796_v12, %v392_v5  ;;  %v456_v10 = vmax.f32 %v440_v0, 0.0  ;;  %v464_v11 = vmax.f32 %v448_v1, 0.0  ;;  %v441_v13 = vadd.f32 %v801_v14, %v418_v2 }
  0xf4   : > { %v449_v15 = vadd.f32 %v801_v14, %v426_v3  ;;  %v454_v16 = vmax.f32 %v438_v6, 0.0  ;;  %v462_v17 = vmax.f32 %v446_v7, 0.0  ;;  %v439_v18 = vadd.f32 %v801_v14, %v416_v8 }
  0xf5   : > { %v447_v19 = vadd.f32 %v801_v14, %v424_v9  ;;  %v657_v20 = vpack.c.bf16 %v456_v10, %v456_v10  ;;  %v665_v21 = vpack.c.bf16 %v464_v11, %v464_v11  ;;  %v457_v12 = vmax.f32 %v441_v13, 0.0 }
  0xf6   : > { %v465_v22 = vmax.f32 %v449_v15, 0.0  ;;  %v655_v23 = vpack.c.bf16 %v454_v16, %v454_v16  ;;  %v663_v24 = vpack.c.bf16 %v462_v17, %v462_v17  ;;  %v455_v25 = vmax.f32 %v439_v18, 0.0 }
  0xf7   : > { %v463_v26 = vmax.f32 %v447_v19, 0.0  ;;  %537 = vst.msk [vmem:[%s822_s8 + $0x18] sm:$0xf] %vm530_vm2, %v657_v20  ;;  %545 = vst.msk [vmem:[%s822_s8 + $0x38] sm:$0xf] %vm530_vm2, %v665_v21  ;;  %v658_v27 = vpack.c.bf16 %v457_v12, %v457_v12 }
  0xf8   : > { %v666_v28 = vpack.c.bf16 %v465_v22, %v465_v22  ;;  %535 = vst.msk [vmem:[%s822_s8 + $0x10] sm:$0xf] %vm530_vm2, %v655_v23  ;;  %543 = vst.msk [vmem:[%s822_s8 + $0x30] sm:$0xf] %vm530_vm2, %v663_v24  ;;  %v656_v14 = vpack.c.bf16 %v455_v25, %v455_v25 }
  0xf9   : > { %v664_v29 = vpack.c.bf16 %v463_v26, %v463_v26  ;;  %538 = vst.msk [vmem:[%s822_s8 + $0x1c] sm:$0xf] %vm530_vm2, %v658_v27 }
  0xfa   : > { %546 = vst.msk [vmem:[%s822_s8 + $0x3c] sm:$0xf] %vm530_vm2, %v666_v28  ;;  %536 = vst.msk [vmem:[%s822_s8 + $0x14] sm:$0xf] %vm530_vm2, %v656_v14 }
  0xfb   : > { %544 = vst.msk [vmem:[%s822_s8 + $0x34] sm:$0xf] %vm530_vm2, %v664_v29 }
  0xfc PF: > { %s14_s15 = sadd.s32 1, %s733_s15  }
  0xfd   : > { %p11_p4 = scmp.ge.s32.totalorder %s14_s15, 4  }
  0xff   :  { %13 = sbr.rel (!%p11_p4) target bundleno = 1 (0x1), region = 66 }

// kernel: _lambda_.32
= control target key start
LH: loop header
LB: loop body
LE: loop exit
PB: predicated region body
PF: predicated region fallthrough
CT: control target
= control target key end

     0   :  { %v24_v0 = vlaneseq  ;;  %s514_s0 = inlined_call_operand.vmem [shape: bf16[9,8,384], index: 0, kind: input, shape index: {}]   ;;  %s515_s1 = inlined_call_operand.vmem [shape: f32[9,1,384], index: 1, kind: input, shape index: {}]   ;;  %s516_s2 = inlined_call_operand.vmem [shape: f32[1,384], index: 2, kind: input, shape index: {}]   ;;  %s517_s3 = inlined_call_operand.vmem [shape: f32[1,384], index: 3, kind: input, shape index: {}]   ;;  %s518_s4 = inlined_call_operand.vmem [shape: bf16[8,384], index: 4, kind: output, shape index: {}]  }
   0x1   :  { %v17_v1 = vld [vmem:[%s514_s0] sm:$0xff]  ;;  %v18_v2 = vld [vmem:[%s514_s0 + $0x8] ss:$12 sps:$4 sm:$0xff]   ;;  %v341_v8 = vld [vmem:[%s514_s0 + $0xc] sm:$0xff] }
   0x2   :  { %v19_v3 = vunpack.c.l.bf16 %v17_v1  ;;  %v20_v4 = vunpack.c.h.bf16 %v17_v1  ;;  %v21_v5 = vunpack.c.l.bf16 %v18_v2  ;;  %v22_v6 = vld [vmem:[%s515_s1] sm:$0x7]  ;;  %v25_v7 = vshrl.u32 %v24_v0, 7  ;;  %v344_v9 = vld [vmem:[%s514_s0 + $0x18] sm:$0xff]  ;;  %v343_v13 = vld [vmem:[%s515_s1 + $0x3] sm:$0x7] }
   0x3   :  { %v45_v10 = vunpack.c.l.bf16 %v341_v8  ;;  %v46_v11 = vunpack.c.h.bf16 %v341_v8  ;;  %v47_v12 = vunpack.c.h.bf16 %v18_v2  ;;  %v345_v14 = vld [vmem:[%s514_s0 + $0x20] ss:$12 sps:$4 sm:$0xff]   ;;  %v75_v15 = vunpack.c.l.bf16 %v344_v9  ;;  %v347_v16 = vld [vmem:[%s514_s0 + $0x24] sm:$0xff]  ;;  %v350_v43 = vld [vmem:[%s514_s0 + $0x30] sm:$0xff] }
   0x4   :  { %v418_v17 = vsub.s32 0, %v25_v7  ;;  %v420_v18 = vsub.s32 1, %v25_v7  ;;  %v422_v19 = vsub.s32 2, %v25_v7  ;;  %v76_v20 = vunpack.c.h.bf16 %v344_v9  ;;  %v346_v21 = vld [vmem:[%s515_s1 + $0x6] sm:$0x7]  ;;  %v353_v58 = vld [vmem:[%s514_s0 + $0x3c] sm:$0xff] }
   0x5   :  { %v77_v22 = vunpack.c.l.bf16 %v345_v14  ;;  %v105_v23 = vunpack.c.l.bf16 %v347_v16  ;;  %v106_v24 = vunpack.c.h.bf16 %v347_v16  ;;  %v107_v25 = vunpack.c.h.bf16 %v345_v14  ;;  %v349_v34 = vld [vmem:[%s515_s1 + $0x9] sm:$0x7]  ;;  %v351_v52 = vld [vmem:[%s514_s0 + $0x38] ss:$12 sps:$4 sm:$0xff]   ;;  %v352_v53 = vld [vmem:[%s515_s1 + $0xc] sm:$0x7] }
   0x6   :  { %v27_v26 = vrot.slane %v22_v6, %v418_v17  ;;  %v31_v27 = vrot.slane %v22_v6, %v420_v18  ;;  %v35_v28 = vrot.slane %v22_v6, %v422_v19  ;;  %v54_v29 = vrot.slane %v343_v13, %v418_v17  ;;  %v356_v8 = vld [vmem:[%s514_s0 + $0x48] sm:$0xff] }
   0x7   :  { %v58_v30 = vrot.slane %v343_v13, %v420_v18  ;;  %v62_v31 = vrot.slane %v343_v13, %v422_v19  ;;  %v84_v32 = vrot.slane %v346_v21, %v418_v17  ;;  %v88_v33 = vrot.slane %v346_v21, %v420_v18 }
   0x8   :  { %v39_v35 = vmul.f32 %v27_v26, %v19_v3  ;;  %v40_v36 = vmul.f32 %v31_v27, %v20_v4  ;;  %v41_v37 = vmul.f32 %v35_v28, %v21_v5  ;;  %v66_v38 = vmul.f32 %v54_v29, %v45_v10  ;;  %v355_v3 = vld [vmem:[%s515_s1 + $0xf] sm:$0x7]  ;;  %v359_v26 = vld [vmem:[%s514_s0 + $0x54] sm:$0xff] }
   0x9   :  { %v67_v39 = vmul.f32 %v58_v30, %v46_v11  ;;  %v68_v40 = vmul.f32 %v62_v31, %v47_v12  ;;  %v92_v41 = vrot.slane %v346_v21, %v422_v19  ;;  %v96_v42 = vmul.f32 %v84_v32, %v75_v15  ;;  %v358_v21 = vld [vmem:[%s515_s1 + $0x12] sm:$0x7] }
   0xa   :  { %v69_v44 = vadd.f32 %v66_v38, %v39_v35  ;;  %v97_v45 = vmul.f32 %v88_v33, %v76_v20  ;;  %v114_v46 = vrot.slane %v349_v34, %v418_v17  ;;  %v118_v47 = vrot.slane %v349_v34, %v420_v18  ;;  %v357_v20 = vld [vmem:[%s514_s0 + $0x50] ss:$12 sps:$4 sm:$0xff]   ;;  %v361_v35 = vld [vmem:[%s515_s1 + $0x15] sm:$0x7] }
   0xb   :  { %v70_v48 = vadd.f32 %v67_v39, %v40_v36  ;;  %v71_v49 = vadd.f32 %v68_v40, %v41_v37  ;;  %v98_v50 = vmul.f32 %v92_v41, %v77_v22  ;;  %v122_v51 = vrot.slane %v349_v34, %v422_v19  ;;  %v362_v40 = vld [vmem:[%s514_s0 + $0x60] sm:$0xff] }
   0xc   :  { %v99_v54 = vadd.f32 %v96_v42, %v69_v44  ;;  %v126_v55 = vmul.f32 %v114_v46, %v105_v23  ;;  %v127_v56 = vmul.f32 %v118_v47, %v106_v24  ;;  %v135_v57 = vunpack.c.l.bf16 %v350_v43 }
   0xd   :  { %v100_v59 = vadd.f32 %v97_v45, %v70_v48  ;;  %v101_v60 = vadd.f32 %v98_v50, %v71_v49  ;;  %v128_v61 = vmul.f32 %v122_v51, %v107_v25  ;;  %v136_v62 = vunpack.c.h.bf16 %v350_v43  ;;  %v363_v49 = vld [vmem:[%s514_s0 + $0x68] sm:$0xf]  ;;  %v364_v50 = vld [vmem:[%s515_s1 + $0x18] sm:$0x7] }
   0xe   :  { %v129_v63 = vadd.f32 %v126_v55, %v99_v54  ;;  %v137_v0 = vunpack.c.l.bf16 %v351_v52  ;;  %v144_v1 = vrot.slane %v352_v53, %v418_v17  ;;  %v148_v2 = vrot.slane %v352_v53, %v420_v18  ;;  %v282_v55 = vld [vmem:[%s516_s2] sm:$0x7] }
   0xf   :  { %v130_v4 = vadd.f32 %v127_v56, %v100_v59  ;;  %v131_v5 = vadd.f32 %v128_v61, %v101_v60  ;;  %v152_v6 = vrot.slane %v352_v53, %v422_v19  ;;  %v165_v7 = vunpack.c.l.bf16 %v353_v58 }
  0x10   :  { %v156_v9 = vmul.f32 %v144_v1, %v135_v57  ;;  %v157_v10 = vmul.f32 %v148_v2, %v136_v62  ;;  %v166_v11 = vunpack.c.h.bf16 %v353_v58  ;;  %v167_v12 = vunpack.c.h.bf16 %v351_v52 }
  0x11   :  { %v158_v13 = vmul.f32 %v152_v6, %v137_v0  ;;  %v174_v14 = vrot.slane %v355_v3, %v418_v17  ;;  %v178_v15 = vrot.slane %v355_v3, %v420_v18  ;;  %v182_v16 = vrot.slane %v355_v3, %v422_v19  ;;  %v302_v0 = vld [vmem:[%s517_s3] sm:$0x7] }
  0x12   :  { %v159_v22 = vadd.f32 %v156_v9, %v129_v63  ;;  %v160_v23 = vadd.f32 %v157_v10, %v130_v4  ;;  %v195_v24 = vunpack.c.l.bf16 %v356_v8  ;;  %v196_v25 = vunpack.c.h.bf16 %v356_v8 }
  0x13   :  { %v161_v27 = vadd.f32 %v158_v13, %v131_v5  ;;  %v186_v28 = vmul.f32 %v174_v14, %v165_v7  ;;  %v187_v29 = vmul.f32 %v178_v15, %v166_v11  ;;  %v188_v30 = vmul.f32 %v182_v16, %v167_v12 }
  0x14   :  { %v197_v31 = vunpack.c.l.bf16 %v357_v20  ;;  %v204_v32 = vrot.slane %v358_v21, %v418_v17  ;;  %v208_v33 = vrot.slane %v358_v21, %v420_v18  ;;  %v212_v34 = vrot.slane %v358_v21, %v422_v19 }
  0x15   :  { %v189_v36 = vadd.f32 %v186_v28, %v159_v22  ;;  %v190_v37 = vadd.f32 %v187_v29, %v160_v23  ;;  %v191_v38 = vadd.f32 %v188_v30, %v161_v27  ;;  %v225_v39 = vunpack.c.l.bf16 %v359_v26 }
  0x16   :  { %v216_v41 = vmul.f32 %v204_v32, %v195_v24  ;;  %v217_v42 = vmul.f32 %v208_v33, %v196_v25  ;;  %v218_v43 = vmul.f32 %v212_v34, %v197_v31  ;;  %v226_v44 = vunpack.c.h.bf16 %v359_v26 }
  0x17   :  { %v227_v45 = vunpack.c.h.bf16 %v357_v20  ;;  %v234_v46 = vrot.slane %v361_v35, %v418_v17  ;;  %v238_v47 = vrot.slane %v361_v35, %v420_v18  ;;  %v242_v48 = vrot.slane %v361_v35, %v422_v19 }
  0x18   :  { %v219_v51 = vadd.f32 %v216_v41, %v189_v36  ;;  %v220_v52 = vadd.f32 %v217_v42, %v190_v37  ;;  %v221_v53 = vadd.f32 %v218_v43, %v191_v38  ;;  %v255_v54 = vunpack.c.l.bf16 %v362_v40 }
  0x19   :  { %v246_v56 = vmul.f32 %v234_v46, %v225_v39  ;;  %v247_v57 = vmul.f32 %v238_v47, %v226_v44  ;;  %v248_v58 = vmul.f32 %v242_v48, %v227_v45  ;;  %v256_v59 = vunpack.c.h.bf16 %v362_v40 }
  0x1a   :  { %v257_v60 = vunpack.c.l.bf16 %v363_v49  ;;  %v264_v61 = vrot.slane %v364_v50, %v418_v17  ;;  %v268_v62 = vrot.slane %v364_v50, %v420_v18  ;;  %v272_v63 = vrot.slane %v364_v50, %v422_v19 }
  0x1b   :  { %v249_v1 = vadd.f32 %v246_v56, %v219_v51  ;;  %v250_v2 = vadd.f32 %v247_v57, %v220_v52  ;;  %v251_v3 = vadd.f32 %v248_v58, %v221_v53  ;;  %v287_v4 = vrot.slane %v282_v55, %v418_v17 }
  0x1c   :  { %v276_v5 = vmul.f32 %v264_v61, %v255_v54  ;;  %v277_v6 = vmul.f32 %v268_v62, %v256_v59  ;;  %v278_v7 = vmul.f32 %v272_v63, %v257_v60  ;;  %v291_v8 = vrot.slane %v282_v55, %v420_v18 }
  0x1d   :  { %v295_v9 = vrot.slane %v282_v55, %v422_v19  ;;  %v307_v10 = vrot.slane %v302_v0, %v418_v17  ;;  %v311_v11 = vrot.slane %v302_v0, %v420_v18  ;;  %v315_v15 = vrot.slane %v302_v0, %v422_v19 }
  0x1e   :  { %v279_v12 = vadd.f32 %v276_v5, %v249_v1  ;;  %v280_v13 = vadd.f32 %v277_v6, %v250_v2  ;;  %v281_v14 = vadd.f32 %v278_v7, %v251_v3 }
  0x20   :  { %v299_v16 = vmul.f32 %v287_v4, %v279_v12  ;;  %v300_v20 = vmul.f32 %v291_v8, %v280_v13  ;;  %v301_v21 = vmul.f32 %v295_v9, %v281_v14 }
  0x22   :  { %v319_v22 = vadd.f32 %v307_v10, %v299_v16  ;;  %v320_v23 = vadd.f32 %v311_v11, %v300_v20  ;;  %v321_v24 = vadd.f32 %v315_v15, %v301_v21 }
  0x24   :  { %v367_v25 = vpack.c.bf16 %v320_v23, %v319_v22  ;;  %v368_v26 = vpack.c.bf16 %v321_v24, %v321_v24 }
  0x26   :  { %335 = vst [vmem:[%s518_s4] sm:$0xff] %v367_v25  ;;  %336 = vst [vmem:[%s518_s4 + $0x8] sm:$0xf] %v368_v26 }

// kernel: _lambda_.33
= control target key start
LH: loop header
LB: loop body
LE: loop exit
PB: predicated region body
PF: predicated region fallthrough
CT: control target
= control target key end

     0   :  { %v24_v0 = vlaneseq  ;;  %s1210_s0 = inlined_call_operand.vmem [shape: bf16[25,8,384], index: 0, kind: input, shape index: {}]   ;;  %s1211_s1 = inlined_call_operand.vmem [shape: f32[25,1,384], index: 1, kind: input, shape index: {}]   ;;  %s1212_s2 = inlined_call_operand.vmem [shape: f32[1,384], index: 2, kind: input, shape index: {}]   ;;  %s1213_s3 = inlined_call_operand.vmem [shape: f32[1,384], index: 3, kind: input, shape index: {}]   ;;  %s1214_s4 = inlined_call_operand.vmem [shape: bf16[8,384], index: 4, kind: output, shape index: {}]  }
   0x1   :  { %v17_v1 = vld [vmem:[%s1210_s0] sm:$0xff]  ;;  %v18_v2 = vld [vmem:[%s1210_s0 + $0x8] ss:$12 sps:$4 sm:$0xff]   ;;  %v821_v8 = vld [vmem:[%s1210_s0 + $0xc] sm:$0xff] }
   0x2   :  { %v19_v3 = vunpack.c.l.bf16 %v17_v1  ;;  %v20_v4 = vunpack.c.h.bf16 %v17_v1  ;;  %v21_v5 = vunpack.c.l.bf16 %v18_v2  ;;  %v22_v6 = vld [vmem:[%s1211_s1] sm:$0x7]  ;;  %v25_v7 = vshrl.u32 %v24_v0, 7  ;;  %v824_v9 = vld [vmem:[%s1210_s0 + $0x18] sm:$0xff]  ;;  %v823_v13 = vld [vmem:[%s1211_s1 + $0x3] sm:$0x7] }
   0x3   :  { %v45_v10 = vunpack.c.l.bf16 %v821_v8  ;;  %v46_v11 = vunpack.c.h.bf16 %v821_v8  ;;  %v47_v12 = vunpack.c.h.bf16 %v18_v2  ;;  %v825_v14 = vld [vmem:[%s1210_s0 + $0x20] ss:$12 sps:$4 sm:$0xff]   ;;  %v75_v15 = vunpack.c.l.bf16 %v824_v9  ;;  %v827_v16 = vld [vmem:[%s1210_s0 + $0x24] sm:$0xff]  ;;  %v830_v43 = vld [vmem:[%s1210_s0 + $0x30] sm:$0xff] }
   0x4   :  { %v946_v17 = vsub.s32 0, %v25_v7  ;;  %v948_v18 = vsub.s32 1, %v25_v7  ;;  %v950_v19 = vsub.s32 2, %v25_v7  ;;  %v76_v20 = vunpack.c.h.bf16 %v824_v9  ;;  %v826_v21 = vld [vmem:[%s1211_s1 + $0x6] sm:$0x7]  ;;  %v833_v58 = vld [vmem:[%s1210_s0 + $0x3c] sm:$0xff] }
   0x5   :  { %v77_v22 = vunpack.c.l.bf16 %v825_v14  ;;  %v105_v23 = vunpack.c.l.bf16 %v827_v16  ;;  %v106_v24 = vunpack.c.h.bf16 %v827_v16  ;;  %v107_v25 = vunpack.c.h.bf16 %v825_v14  ;;  %v829_v34 = vld [vmem:[%s1211_s1 + $0x9] sm:$0x7]  ;;  %v831_v52 = vld [vmem:[%s1210_s0 + $0x38] ss:$12 sps:$4 sm:$0xff]   ;;  %v832_v53 = vld [vmem:[%s1211_s1 + $0xc] sm:$0x7] }
   0x6   :  { %v27_v26 = vrot.slane %v22_v6, %v946_v17  ;;  %v31_v27 = vrot.slane %v22_v6, %v948_v18  ;;  %v35_v28 = vrot.slane %v22_v6, %v950_v19  ;;  %v54_v29 = vrot.slane %v823_v13, %v946_v17  ;;  %v836_v8 = vld [vmem:[%s1210_s0 + $0x48] sm:$0xff] }
   0x7   :  { %v58_v30 = vrot.slane %v823_v13, %v948_v18  ;;  %v62_v31 = vrot.slane %v823_v13, %v950_v19  ;;  %v84_v32 = vrot.slane %v826_v21, %v946_v17  ;;  %v88_v33 = vrot.slane %v826_v21, %v948_v18 }
   0x8   :  { %v39_v35 = vmul.f32 %v27_v26, %v19_v3  ;;  %v40_v36 = vmul.f32 %v31_v27, %v20_v4  ;;  %v41_v37 = vmul.f32 %v35_v28, %v21_v5  ;;  %v66_v38 = vmul.f32 %v54_v29, %v45_v10  ;;  %v835_v3 = vld [vmem:[%s1211_s1 + $0xf] sm:$0x7]  ;;  %v839_v26 = vld [vmem:[%s1210_s0 + $0x54] sm:$0xff] }
   0x9   :  { %v67_v39 = vmul.f32 %v58_v30, %v46_v11  ;;  %v68_v40 = vmul.f32 %v62_v31, %v47_v12  ;;  %v92_v41 = vrot.slane %v826_v21, %v950_v19  ;;  %v96_v42 = vmul.f32 %v84_v32, %v75_v15  ;;  %v838_v21 = vld [vmem:[%s1211_s1 + $0x12] sm:$0x7] }
   0xa   :  { %v69_v44 = vadd.f32 %v66_v38, %v39_v35  ;;  %v97_v45 = vmul.f32 %v88_v33, %v76_v20  ;;  %v114_v46 = vrot.slane %v829_v34, %v946_v17  ;;  %v118_v47 = vrot.slane %v829_v34, %v948_v18  ;;  %v837_v20 = vld [vmem:[%s1210_s0 + $0x50] ss:$12 sps:$4 sm:$0xff]   ;;  %v841_v35 = vld [vmem:[%s1211_s1 + $0x15] sm:$0x7] }
   0xb   :  { %v70_v48 = vadd.f32 %v67_v39, %v40_v36  ;;  %v71_v49 = vadd.f32 %v68_v40, %v41_v37  ;;  %v98_v50 = vmul.f32 %v92_v41, %v77_v22  ;;  %v122_v51 = vrot.slane %v829_v34, %v950_v19  ;;  %v842_v40 = vld [vmem:[%s1210_s0 + $0x60] sm:$0xff] }
   0xc   :  { %v99_v54 = vadd.f32 %v96_v42, %v69_v44  ;;  %v126_v55 = vmul.f32 %v114_v46, %v105_v23  ;;  %v127_v56 = vmul.f32 %v118_v47, %v106_v24  ;;  %v135_v57 = vunpack.c.l.bf16 %v830_v43 }
   0xd   :  { %v100_v59 = vadd.f32 %v97_v45, %v70_v48  ;;  %v101_v60 = vadd.f32 %v98_v50, %v71_v49  ;;  %v128_v61 = vmul.f32 %v122_v51, %v107_v25  ;;  %v136_v62 = vunpack.c.h.bf16 %v830_v43  ;;  %v843_v49 = vld [vmem:[%s1210_s0 + $0x68] ss:$12 sps:$4 sm:$0xff]   ;;  %v844_v50 = vld [vmem:[%s1211_s1 + $0x18] sm:$0x7] }
   0xe   :  { %v129_v63 = vadd.f32 %v126_v55, %v99_v54  ;;  %v137_v0 = vunpack.c.l.bf16 %v831_v52  ;;  %v144_v1 = vrot.slane %v832_v53, %v946_v17  ;;  %v148_v2 = vrot.slane %v832_v53, %v948_v18  ;;  %v845_v55 = vld [vmem:[%s1210_s0 + $0x6c] sm:$0xff] }
   0xf   :  { %v130_v4 = vadd.f32 %v127_v56, %v100_v59  ;;  %v131_v5 = vadd.f32 %v128_v61, %v101_v60  ;;  %v152_v6 = vrot.slane %v832_v53, %v950_v19  ;;  %v165_v7 = vunpack.c.l.bf16 %v833_v58 }
  0x10   :  { %v156_v9 = vmul.f32 %v144_v1, %v135_v57  ;;  %v157_v10 = vmul.f32 %v148_v2, %v136_v62  ;;  %v166_v11 = vunpack.c.h.bf16 %v833_v58  ;;  %v167_v12 = vunpack.c.h.bf16 %v831_v52 }
  0x11   :  { %v158_v13 = vmul.f32 %v152_v6, %v137_v0  ;;  %v174_v14 = vrot.slane %v835_v3, %v946_v17  ;;  %v178_v15 = vrot.slane %v835_v3, %v948_v18  ;;  %v182_v16 = vrot.slane %v835_v3, %v950_v19  ;;  %v847_v0 = vld [vmem:[%s1211_s1 + $0x1b] sm:$0x7] }
  0x12   :  { %v159_v22 = vadd.f32 %v156_v9, %v129_v63  ;;  %v160_v23 = vadd.f32 %v157_v10, %v130_v4  ;;  %v195_v24 = vunpack.c.l.bf16 %v836_v8  ;;  %v196_v25 = vunpack.c.h.bf16 %v836_v8 }
  0x13   :  { %v161_v27 = vadd.f32 %v158_v13, %v131_v5  ;;  %v186_v28 = vmul.f32 %v174_v14, %v165_v7  ;;  %v187_v29 = vmul.f32 %v178_v15, %v166_v11  ;;  %v188_v30 = vmul.f32 %v182_v16, %v167_v12  ;;  %v848_v5 = vld [vmem:[%s1210_s0 + $0x78] sm:$0xff]  ;;  %v849_v14 = vld [vmem:[%s1210_s0 + $0x80] ss:$12 sps:$4 sm:$0xff]  }
  0x14   :  { %v197_v31 = vunpack.c.l.bf16 %v837_v20  ;;  %v204_v32 = vrot.slane %v838_v21, %v946_v17  ;;  %v208_v33 = vrot.slane %v838_v21, %v948_v18  ;;  %v212_v34 = vrot.slane %v838_v21, %v950_v19  ;;  %v850_v15 = vld [vmem:[%s1211_s1 + $0x1e] sm:$0x7] }
  0x15   :  { %v189_v36 = vadd.f32 %v186_v28, %v159_v22  ;;  %v190_v37 = vadd.f32 %v187_v29, %v160_v23  ;;  %v191_v38 = vadd.f32 %v188_v30, %v161_v27  ;;  %v225_v39 = vunpack.c.l.bf16 %v839_v26  ;;  %v851_v23 = vld [vmem:[%s1210_s0 + $0x84] sm:$0xff] }
  0x16   :  { %v216_v41 = vmul.f32 %v204_v32, %v195_v24  ;;  %v217_v42 = vmul.f32 %v208_v33, %v196_v25  ;;  %v218_v43 = vmul.f32 %v212_v34, %v197_v31  ;;  %v226_v44 = vunpack.c.h.bf16 %v839_v26  ;;  %v853_v32 = vld [vmem:[%s1211_s1 + $0x21] sm:$0x7] }
  0x17   :  { %v227_v45 = vunpack.c.h.bf16 %v837_v20  ;;  %v234_v46 = vrot.slane %v841_v35, %v946_v17  ;;  %v238_v47 = vrot.slane %v841_v35, %v948_v18  ;;  %v242_v48 = vrot.slane %v841_v35, %v950_v19 }
  0x18   :  { %v219_v51 = vadd.f32 %v216_v41, %v189_v36  ;;  %v220_v52 = vadd.f32 %v217_v42, %v190_v37  ;;  %v221_v53 = vadd.f32 %v218_v43, %v191_v38  ;;  %v255_v54 = vunpack.c.l.bf16 %v842_v40  ;;  %v854_v37 = vld [vmem:[%s1210_s0 + $0x90] sm:$0xff] }
  0x19   :  { %v246_v56 = vmul.f32 %v234_v46, %v225_v39  ;;  %v247_v57 = vmul.f32 %v238_v47, %v226_v44  ;;  %v248_v58 = vmul.f32 %v242_v48, %v227_v45  ;;  %v256_v59 = vunpack.c.h.bf16 %v842_v40  ;;  %v855_v46 = vld [vmem:[%s1210_s0 + $0x98] ss:$12 sps:$4 sm:$0xff]  }
  0x1a   :  { %v257_v60 = vunpack.c.l.bf16 %v843_v49  ;;  %v264_v61 = vrot.slane %v844_v50, %v946_v17  ;;  %v268_v62 = vrot.slane %v844_v50, %v948_v18  ;;  %v272_v63 = vrot.slane %v844_v50, %v950_v19  ;;  %v856_v47 = vld [vmem:[%s1211_s1 + $0x24] sm:$0x7] }
  0x1b   :  { %v249_v1 = vadd.f32 %v246_v56, %v219_v51  ;;  %v250_v2 = vadd.f32 %v247_v57, %v220_v52  ;;  %v251_v3 = vadd.f32 %v248_v58, %v221_v53  ;;  %v285_v4 = vunpack.c.l.bf16 %v845_v55  ;;  %v857_v52 = vld [vmem:[%s1210_s0 + $0x9c] sm:$0xff] }
  0x1c   :  { %v276_v6 = vmul.f32 %v264_v61, %v255_v54  ;;  %v277_v7 = vmul.f32 %v268_v62, %v256_v59  ;;  %v278_v8 = vmul.f32 %v272_v63, %v257_v60  ;;  %v286_v9 = vunpack.c.h.bf16 %v845_v55  ;;  %v859_v61 = vld [vmem:[%s1211_s1 + $0x27] sm:$0x7] }
  0x1d   :  { %v287_v10 = vunpack.c.h.bf16 %v843_v49  ;;  %v294_v11 = vrot.slane %v847_v0, %v946_v17  ;;  %v298_v12 = vrot.slane %v847_v0, %v948_v18  ;;  %v302_v13 = vrot.slane %v847_v0, %v950_v19 }
  0x1e   :  { %v279_v16 = vadd.f32 %v276_v6, %v249_v1  ;;  %v280_v20 = vadd.f32 %v277_v7, %v250_v2  ;;  %v281_v21 = vadd.f32 %v278_v8, %v251_v3  ;;  %v315_v22 = vunpack.c.l.bf16 %v848_v5  ;;  %v860_v2 = vld [vmem:[%s1210_s0 + $0xa8] sm:$0xff] }
  0x1f   :  { %v306_v24 = vmul.f32 %v294_v11, %v285_v4  ;;  %v307_v25 = vmul.f32 %v298_v12, %v286_v9  ;;  %v308_v26 = vmul.f32 %v302_v13, %v287_v10  ;;  %v316_v27 = vunpack.c.h.bf16 %v848_v5  ;;  %v861_v11 = vld [vmem:[%s1210_s0 + $0xb0] ss:$12 sps:$4 sm:$0xff]   ;;  %v862_v12 = vld [vmem:[%s1211_s1 + $0x2a] sm:$0x7] }
  0x20   :  { %v317_v28 = vunpack.c.l.bf16 %v849_v14  ;;  %v324_v29 = vrot.slane %v850_v15, %v946_v17  ;;  %v328_v30 = vrot.slane %v850_v15, %v948_v18  ;;  %v332_v31 = vrot.slane %v850_v15, %v950_v19 }
  0x21   :  { %v309_v33 = vadd.f32 %v306_v24, %v279_v16  ;;  %v310_v34 = vadd.f32 %v307_v25, %v280_v20  ;;  %v311_v35 = vadd.f32 %v308_v26, %v281_v21  ;;  %v345_v36 = vunpack.c.l.bf16 %v851_v23  ;;  %v863_v20 = vld [vmem:[%s1210_s0 + $0xb4] sm:$0xff] }
  0x22   :  { %v336_v38 = vmul.f32 %v324_v29, %v315_v22  ;;  %v337_v39 = vmul.f32 %v328_v30, %v316_v27  ;;  %v338_v40 = vmul.f32 %v332_v31, %v317_v28  ;;  %v346_v41 = vunpack.c.h.bf16 %v851_v23  ;;  %v865_v29 = vld [vmem:[%s1211_s1 + $0x2d] sm:$0x7] }
  0x23   :  { %v347_v42 = vunpack.c.h.bf16 %v849_v14  ;;  %v354_v43 = vrot.slane %v853_v32, %v946_v17  ;;  %v358_v44 = vrot.slane %v853_v32, %v948_v18  ;;  %v362_v45 = vrot.slane %v853_v32, %v950_v19 }
  0x24   :  { %v339_v48 = vadd.f32 %v336_v38, %v309_v33  ;;  %v340_v49 = vadd.f32 %v337_v39, %v310_v34  ;;  %v341_v50 = vadd.f32 %v338_v40, %v311_v35  ;;  %v375_v51 = vunpack.c.l.bf16 %v854_v37  ;;  %v866_v34 = vld [vmem:[%s1210_s0 + $0xc0] sm:$0xff] }
  0x25   :  { %v366_v53 = vmul.f32 %v354_v43, %v345_v36  ;;  %v367_v54 = vmul.f32 %v358_v44, %v346_v41  ;;  %v368_v55 = vmul.f32 %v362_v45, %v347_v42  ;;  %v376_v56 = vunpack.c.h.bf16 %v854_v37  ;;  %v867_v43 = vld [vmem:[%s1210_s0 + $0xc8] ss:$12 sps:$4 sm:$0xff]   ;;  %v868_v44 = vld [vmem:[%s1211_s1 + $0x30] sm:$0x7] }
  0x26   :  { %v377_v57 = vunpack.c.l.bf16 %v855_v46  ;;  %v384_v58 = vrot.slane %v856_v47, %v946_v17  ;;  %v388_v59 = vrot.slane %v856_v47, %v948_v18  ;;  %v392_v60 = vrot.slane %v856_v47, %v950_v19 }
  0x27   :  { %v369_v62 = vadd.f32 %v366_v53, %v339_v48  ;;  %v370_v63 = vadd.f32 %v367_v54, %v340_v49  ;;  %v371_v0 = vadd.f32 %v368_v55, %v341_v50  ;;  %v405_v1 = vunpack.c.l.bf16 %v857_v52  ;;  %v869_v49 = vld [vmem:[%s1210_s0 + $0xcc] sm:$0xff] }
  0x28   :  { %v396_v3 = vmul.f32 %v384_v58, %v375_v51  ;;  %v397_v4 = vmul.f32 %v388_v59, %v376_v56  ;;  %v398_v5 = vmul.f32 %v392_v60, %v377_v57  ;;  %v406_v6 = vunpack.c.h.bf16 %v857_v52  ;;  %v871_v58 = vld [vmem:[%s1211_s1 + $0x33] sm:$0x7] }
  0x29   :  { %v407_v7 = vunpack.c.h.bf16 %v855_v46  ;;  %v414_v8 = vrot.slane %v859_v61, %v946_v17  ;;  %v418_v9 = vrot.slane %v859_v61, %v948_v18  ;;  %v422_v10 = vrot.slane %v859_v61, %v950_v19 }
  0x2a   :  { %v399_v13 = vadd.f32 %v396_v3, %v369_v62  ;;  %v400_v14 = vadd.f32 %v397_v4, %v370_v63  ;;  %v401_v15 = vadd.f32 %v398_v5, %v371_v0  ;;  %v435_v16 = vunpack.c.l.bf16 %v860_v2  ;;  %v872_v63 = vld [vmem:[%s1210_s0 + $0xd8] sm:$0xff] }
  0x2b   :  { %v426_v21 = vmul.f32 %v414_v8, %v405_v1  ;;  %v427_v22 = vmul.f32 %v418_v9, %v406_v6  ;;  %v428_v23 = vmul.f32 %v422_v10, %v407_v7  ;;  %v436_v24 = vunpack.c.h.bf16 %v860_v2  ;;  %v873_v8 = vld [vmem:[%s1210_s0 + $0xe0] ss:$12 sps:$4 sm:$0xff]   ;;  %v874_v9 = vld [vmem:[%s1211_s1 + $0x36] sm:$0x7] }
  0x2c   :  { %v437_v25 = vunpack.c.l.bf16 %v861_v11  ;;  %v444_v26 = vrot.slane %v862_v12, %v946_v17  ;;  %v448_v27 = vrot.slane %v862_v12, %v948_v18  ;;  %v452_v28 = vrot.slane %v862_v12, %v950_v19 }
  0x2d   :  { %v429_v30 = vadd.f32 %v426_v21, %v399_v13  ;;  %v430_v31 = vadd.f32 %v427_v22, %v400_v14  ;;  %v431_v32 = vadd.f32 %v428_v23, %v401_v15  ;;  %v465_v33 = vunpack.c.l.bf16 %v863_v20  ;;  %v875_v14 = vld [vmem:[%s1210_s0 + $0xe4] sm:$0xff] }
  0x2e   :  { %v456_v35 = vmul.f32 %v444_v26, %v435_v16  ;;  %v457_v36 = vmul.f32 %v448_v27, %v436_v24  ;;  %v458_v37 = vmul.f32 %v452_v28, %v437_v25  ;;  %v466_v38 = vunpack.c.h.bf16 %v863_v20  ;;  %v877_v26 = vld [vmem:[%s1211_s1 + $0x39] sm:$0x7] }
  0x2f   :  { %v467_v39 = vunpack.c.h.bf16 %v861_v11  ;;  %v474_v40 = vrot.slane %v865_v29, %v946_v17  ;;  %v478_v41 = vrot.slane %v865_v29, %v948_v18  ;;  %v482_v42 = vrot.slane %v865_v29, %v950_v19 }
  0x30   :  { %v459_v45 = vadd.f32 %v456_v35, %v429_v30  ;;  %v460_v46 = vadd.f32 %v457_v36, %v430_v31  ;;  %v461_v47 = vadd.f32 %v458_v37, %v431_v32  ;;  %v495_v48 = vunpack.c.l.bf16 %v866_v34  ;;  %v878_v31 = vld [vmem:[%s1210_s0 + $0xf0] sm:$0xff] }
  0x31   :  { %v486_v50 = vmul.f32 %v474_v40, %v465_v33  ;;  %v487_v51 = vmul.f32 %v478_v41, %v466_v38  ;;  %v488_v52 = vmul.f32 %v482_v42, %v467_v39  ;;  %v496_v53 = vunpack.c.h.bf16 %v866_v34  ;;  %v879_v40 = vld [vmem:[%s1210_s0 + $0xf8] ss:$12 sps:$4 sm:$0xff]   ;;  %v880_v41 = vld [vmem:[%s1211_s1 + $0x3c] sm:$0x7] }
  0x32   :  { %v497_v54 = vunpack.c.l.bf16 %v867_v43  ;;  %v504_v55 = vrot.slane %v868_v44, %v946_v17  ;;  %v508_v56 = vrot.slane %v868_v44, %v948_v18  ;;  %v512_v57 = vrot.slane %v868_v44, %v950_v19 }
  0x33   :  { %v489_v59 = vadd.f32 %v486_v50, %v459_v45  ;;  %v490_v60 = vadd.f32 %v487_v51, %v460_v46  ;;  %v491_v61 = vadd.f32 %v488_v52, %v461_v47  ;;  %v525_v62 = vunpack.c.l.bf16 %v869_v49  ;;  %v881_v46 = vld [vmem:[%s1210_s0 + $0xfc] sm:$0xff] }
  0x34   :  { %v516_v0 = vmul.f32 %v504_v55, %v495_v48  ;;  %v517_v1 = vmul.f32 %v508_v56, %v496_v53  ;;  %v518_v2 = vmul.f32 %v512_v57, %v497_v54  ;;  %v526_v3 = vunpack.c.h.bf16 %v869_v49  ;;  %v883_v55 = vld [vmem:[%s1211_s1 + $0x3f] sm:$0x7] }
  0x35   :  { %v527_v4 = vunpack.c.h.bf16 %v867_v43  ;;  %v534_v5 = vrot.slane %v871_v58, %v946_v17  ;;  %v538_v6 = vrot.slane %v871_v58, %v948_v18  ;;  %v542_v7 = vrot.slane %v871_v58, %v950_v19 }
  0x36   :  { %v519_v10 = vadd.f32 %v516_v0, %v489_v59  ;;  %v520_v11 = vadd.f32 %v517_v1, %v490_v60  ;;  %v521_v12 = vadd.f32 %v518_v2, %v491_v61  ;;  %v555_v13 = vunpack.c.l.bf16 %v872_v63  ;;  %v884_v60 = vld [vmem:[%s1210_s0 + $0x108] sm:$0xff] }
  0x37   :  { %v546_v15 = vmul.f32 %v534_v5, %v525_v62  ;;  %v547_v16 = vmul.f32 %v538_v6, %v526_v3  ;;  %v548_v20 = vmul.f32 %v542_v7, %v527_v4  ;;  %v556_v21 = vunpack.c.h.bf16 %v872_v63  ;;  %v885_v5 = vld [vmem:[%s1210_s0 + $0x110] ss:$12 sps:$4 sm:$0xff]   ;;  %v886_v6 = vld [vmem:[%s1211_s1 + $0x42] sm:$0x7] }
  0x38   :  { %v557_v22 = vunpack.c.l.bf16 %v873_v8  ;;  %v564_v23 = vrot.slane %v874_v9, %v946_v17  ;;  %v568_v24 = vrot.slane %v874_v9, %v948_v18  ;;  %v572_v25 = vrot.slane %v874_v9, %v950_v19 }
  0x39   :  { %v549_v27 = vadd.f32 %v546_v15, %v519_v10  ;;  %v550_v28 = vadd.f32 %v547_v16, %v520_v11  ;;  %v551_v29 = vadd.f32 %v548_v20, %v521_v12  ;;  %v585_v30 = vunpack.c.l.bf16 %v875_v14  ;;  %v887_v11 = vld [vmem:[%s1210_s0 + $0x114] sm:$0xff] }
  0x3a   :  { %v576_v32 = vmul.f32 %v564_v23, %v555_v13  ;;  %v577_v33 = vmul.f32 %v568_v24, %v556_v21  ;;  %v578_v34 = vmul.f32 %v572_v25, %v557_v22  ;;  %v586_v35 = vunpack.c.h.bf16 %v875_v14  ;;  %v889_v23 = vld [vmem:[%s1211_s1 + $0x45] sm:$0x7] }
  0x3b   :  { %v587_v36 = vunpack.c.h.bf16 %v873_v8  ;;  %v594_v37 = vrot.slane %v877_v26, %v946_v17  ;;  %v598_v38 = vrot.slane %v877_v26, %v948_v18  ;;  %v602_v39 = vrot.slane %v877_v26, %v950_v19 }
  0x3c   :  { %v579_v42 = vadd.f32 %v576_v32, %v549_v27  ;;  %v580_v43 = vadd.f32 %v577_v33, %v550_v28  ;;  %v581_v44 = vadd.f32 %v578_v34, %v551_v29  ;;  %v615_v45 = vunpack.c.l.bf16 %v878_v31  ;;  %v890_v28 = vld [vmem:[%s1210_s0 + $0x120] sm:$0xff] }
  0x3d   :  { %v606_v47 = vmul.f32 %v594_v37, %v585_v30  ;;  %v607_v48 = vmul.f32 %v598_v38, %v586_v35  ;;  %v608_v49 = vmul.f32 %v602_v39, %v587_v36  ;;  %v616_v50 = vunpack.c.h.bf16 %v878_v31  ;;  %v891_v37 = vld [vmem:[%s1210_s0 + $0x128] sm:$0xf] }
  0x3e   :  { %v617_v51 = vunpack.c.l.bf16 %v879_v40  ;;  %v624_v52 = vrot.slane %v880_v41, %v946_v17  ;;  %v628_v53 = vrot.slane %v880_v41, %v948_v18  ;;  %v632_v54 = vrot.slane %v880_v41, %v950_v19  ;;  %v892_v38 = vld [vmem:[%s1211_s1 + $0x48] sm:$0x7] }
  0x3f   :  { %v609_v56 = vadd.f32 %v606_v47, %v579_v42  ;;  %v610_v57 = vadd.f32 %v607_v48, %v580_v43  ;;  %v611_v58 = vadd.f32 %v608_v49, %v581_v44  ;;  %v645_v59 = vunpack.c.l.bf16 %v881_v46  ;;  %v762_v43 = vld [vmem:[%s1212_s2] sm:$0x7] }
  0x40   :  { %v636_v61 = vmul.f32 %v624_v52, %v615_v45  ;;  %v637_v62 = vmul.f32 %v628_v53, %v616_v50  ;;  %v638_v63 = vmul.f32 %v632_v54, %v617_v51  ;;  %v646_v0 = vunpack.c.h.bf16 %v881_v46  ;;  %v782_v52 = vld [vmem:[%s1213_s3] sm:$0x7] }
  0x41   :  { %v647_v1 = vunpack.c.h.bf16 %v879_v40  ;;  %v654_v2 = vrot.slane %v883_v55, %v946_v17  ;;  %v658_v3 = vrot.slane %v883_v55, %v948_v18  ;;  %v662_v4 = vrot.slane %v883_v55, %v950_v19 }
  0x42   :  { %v639_v7 = vadd.f32 %v636_v61, %v609_v56  ;;  %v640_v8 = vadd.f32 %v637_v62, %v610_v57  ;;  %v641_v9 = vadd.f32 %v638_v63, %v611_v58  ;;  %v675_v10 = vunpack.c.l.bf16 %v884_v60 }
  0x43   :  { %v666_v12 = vmul.f32 %v654_v2, %v645_v59  ;;  %v667_v13 = vmul.f32 %v658_v3, %v646_v0  ;;  %v668_v14 = vmul.f32 %v662_v4, %v647_v1  ;;  %v676_v15 = vunpack.c.h.bf16 %v884_v60 }
  0x44   :  { %v677_v16 = vunpack.c.l.bf16 %v885_v5  ;;  %v684_v20 = vrot.slane %v886_v6, %v946_v17  ;;  %v688_v21 = vrot.slane %v886_v6, %v948_v18  ;;  %v692_v22 = vrot.slane %v886_v6, %v950_v19 }
  0x45   :  { %v669_v24 = vadd.f32 %v666_v12, %v639_v7  ;;  %v670_v25 = vadd.f32 %v667_v13, %v640_v8  ;;  %v671_v26 = vadd.f32 %v668_v14, %v641_v9  ;;  %v705_v27 = vunpack.c.l.bf16 %v887_v11 }
  0x46   :  { %v696_v29 = vmul.f32 %v684_v20, %v675_v10  ;;  %v697_v30 = vmul.f32 %v688_v21, %v676_v15  ;;  %v698_v31 = vmul.f32 %v692_v22, %v677_v16  ;;  %v706_v32 = vunpack.c.h.bf16 %v887_v11 }
  0x47   :  { %v707_v33 = vunpack.c.h.bf16 %v885_v5  ;;  %v714_v34 = vrot.slane %v889_v23, %v946_v17  ;;  %v718_v35 = vrot.slane %v889_v23, %v948_v18  ;;  %v722_v36 = vrot.slane %v889_v23, %v950_v19 }
  0x48   :  { %v699_v39 = vadd.f32 %v696_v29, %v669_v24  ;;  %v700_v40 = vadd.f32 %v697_v30, %v670_v25  ;;  %v701_v41 = vadd.f32 %v698_v31, %v671_v26  ;;  %v735_v42 = vunpack.c.l.bf16 %v890_v28 }
  0x49   :  { %v726_v44 = vmul.f32 %v714_v34, %v705_v27  ;;  %v727_v45 = vmul.f32 %v718_v35, %v706_v32  ;;  %v728_v46 = vmul.f32 %v722_v36, %v707_v33  ;;  %v736_v47 = vunpack.c.h.bf16 %v890_v28 }
  0x4a   :  { %v737_v48 = vunpack.c.l.bf16 %v891_v37  ;;  %v744_v49 = vrot.slane %v892_v38, %v946_v17  ;;  %v748_v50 = vrot.slane %v892_v38, %v948_v18  ;;  %v752_v51 = vrot.slane %v892_v38, %v950_v19 }
  0x4b   :  { %v729_v53 = vadd.f32 %v726_v44, %v699_v39  ;;  %v730_v54 = vadd.f32 %v727_v45, %v700_v40  ;;  %v731_v55 = vadd.f32 %v728_v46, %v701_v41  ;;  %v767_v56 = vrot.slane %v762_v43, %v946_v17 }
  0x4c   :  { %v756_v57 = vmul.f32 %v744_v49, %v735_v42  ;;  %v757_v58 = vmul.f32 %v748_v50, %v736_v47  ;;  %v758_v59 = vmul.f32 %v752_v51, %v737_v48  ;;  %v771_v60 = vrot.slane %v762_v43, %v948_v18 }
  0x4d   :  { %v775_v61 = vrot.slane %v762_v43, %v950_v19  ;;  %v787_v62 = vrot.slane %v782_v52, %v946_v17  ;;  %v791_v63 = vrot.slane %v782_v52, %v948_v18  ;;  %v795_v3 = vrot.slane %v782_v52, %v950_v19 }
  0x4e   :  { %v759_v0 = vadd.f32 %v756_v57, %v729_v53  ;;  %v760_v1 = vadd.f32 %v757_v58, %v730_v54  ;;  %v761_v2 = vadd.f32 %v758_v59, %v731_v55 }
  0x50   :  { %v779_v4 = vmul.f32 %v767_v56, %v759_v0  ;;  %v780_v5 = vmul.f32 %v771_v60, %v760_v1  ;;  %v781_v6 = vmul.f32 %v775_v61, %v761_v2 }
  0x52   :  { %v799_v7 = vadd.f32 %v787_v62, %v779_v4  ;;  %v800_v8 = vadd.f32 %v791_v63, %v780_v5  ;;  %v801_v9 = vadd.f32 %v795_v3, %v781_v6 }
  0x54   :  { %v895_v10 = vpack.c.bf16 %v800_v8, %v799_v7  ;;  %v896_v11 = vpack.c.bf16 %v801_v9, %v801_v9 }
  0x56   :  { %815 = vst [vmem:[%s1214_s4] sm:$0xff] %v895_v10  ;;  %816 = vst [vmem:[%s1214_s4 + $0x8] sm:$0xf] %v896_v11 }

// kernel: _lambda_.34
= control target key start
LH: loop header
LB: loop body
LE: loop exit
PB: predicated region body
PF: predicated region fallthrough
CT: control target
= control target key end

     0   :  { %s511_s15 = smov 0   ;;  %s556_s0 = inlined_call_operand.vmem [shape: bf16[64,72], index: 0, kind: input, shape index: {}]   ;;  %s557_s1 = inlined_call_operand.vmem [shape: bf16[72,16], index: 1, kind: input, shape index: {}]   ;;  %s558_s2 = inlined_call_operand.vmem [shape: f32[1,16], index: 2, kind: input, shape index: {}]   ;;  %s559_s3 = inlined_call_operand.vmem [shape: f32[1,16], index: 3, kind: input, shape index: {}]   ;;  %s560_s4 = inlined_call_operand.vmem [shape: bf16[64,16], index: 4, kind: output, shape index: {}]  }
   0x1 LB: > { %s411_s16 = sadd.s32 4294967295, %s484_s15   ;;  %p415_p0 = scmp.ge.s32.totalorder %s484_s15, 1  ;;  %s484_s15 = sphi %s511_s15, %s14_s15  }
   0x2   : > { %p163_p1 = scmp.lt.s32.totalorder %s484_s15, 3 }
   0x4   : > { %p164_p2 = pnand %p415_p0, %p163_p1 }
   0x5   : > { %v471_v0 = vld [vmem:[%s557_s1] sm:$0xff] (!%p164_p2)   ;;  %v472_v1 = vld [vmem:[%s557_s1 + $0x8] sm:$0xff] (!%p164_p2)   ;;  %s416_s21 = sshll.u32 (!%p164_p2), %s411_s16, 2  ;;  %v473_v2 = vld [vmem:[%s557_s1 + $0x10] sm:$0xff] (!%p164_p2)   ;;  %vm252_vm0 = vcmask (!%p164_p2), 588800   ;;  %vm259_vm1 = vcmask (!%p164_p2), 1043456  }
   0x6   : > { %167 = sbr.rel (%p164_p2) target bundleno = 248 (0xf8), region = 36  ;;  %448 = vmatprep.subr.bf16.mxu0 (!%p164_p2), %v471_v0  ;;  %p190_p3 = scmp.lt.s32.totalorder (!%p164_p2), %s416_s21, 7  ;;  %v474_v3 = vld [vmem:[%s557_s1 + $0x18] sm:$0xff] (!%p164_p2)   ;;  %v475_v5 = vld [vmem:[%s557_s1 + $0x20] ss:$0 sps:$4 sm:$0xff] (!%p164_p2)   ;;  %vm350_vm2 = vcmask (!%p164_p2), 125952  }
   0x7   : > { %449 = vmatpush3.bf16.msra.mxu0 (!%p164_p2), %v471_v0  ;;  %v261_v6 = vsel (!%p164_p2), %vm259_vm1, %v475_v5, 0  ;;  %v429_v8 = vld [vmem:[%s558_s2] ss:$0 sm:$0xff] (!%p164_p2) }
   0x8   : > { %450 = vmatprep.subr.bf16.mxu0 (!%p164_p2), %v472_v1  ;;  %v430_v11 = vld [vmem:[%s559_s3] ss:$0 sm:$0xff] (!%p164_p2) }
   0xb   : > { %451 = vmatpush3.bf16.msra.mxu0 (!%p164_p2), %v472_v1 }
   0xc   : > { %452 = vmatprep.subr.bf16.mxu0 (!%p164_p2), %v473_v2 }
   0xd   : > { %s562_s21 = smov (!%p190_p3, %s416_s21), 7 }
   0xe   : > { %s417_s24 = sshll.u32 %s562_s21, 2 }
   0xf   : > { %s193_s29 = scalar_lea.vmem %s556_s0, %s417_s24  ;;  %453 = vmatpush3.bf16.msra.mxu0 %v473_v2  ;;  %s199_s12 = scalar_lea.vmem %s560_s4, %s417_s24 }
  0x10   : > { %v476_v4 = vld [vmem:[%s193_s29] sm:$0xff]   ;;  %454 = vmatprep.subr.bf16.mxu0 %v474_v3  ;;  %v477_v7 = vld [vmem:[%s193_s29 + $0x8] sm:$0xff]  }
  0x11   : > { %458 = vmatprep.mubr.msk.bf16.mxu0 %vm252_vm0, %v476_v4 }
  0x13   : > { %455 = vmatpush3.bf16.msra.mxu0 %v474_v3 }
  0x14   : > { %462 = vmatprep.subr.msk.bf16.mxu0 %vm259_vm1, %v475_v5 }
  0x17   : > { %457 = vmatpush3.bf16.msra.mxu0 %v261_v6 }
  0x1a   : > { %459 = vmatmul.mubr.msk.bf16.vlgmr.msra.gmra.mrb[0].mxu0 %vm252_vm0, %v477_v7 }
  0xed   : > { %v460_v9 = vpop.f32.mrb[0].mxu0 }
  0xee   : > { %v321_v10 = vmul.f32 %v460_v9, %v429_v8  ;;  %v297_v12 = vpop.f32.mrb[1].mxu0 }
  0xef   : > { %v319_v13 = vmul.f32 %v429_v8, %v297_v12  ;;  %v461_v14 = vpop.f32.mrb[2].mxu0 }
  0xf0   : > { %v322_v15 = vmul.f32 %v461_v14, %v429_v8  ;;  %v300_v16 = vpop.f32.mrb[3].mxu0  ;;  %v332_v19 = vadd.f32 %v430_v11, %v321_v10 }
  0xf1   : > { %v330_v17 = vadd.f32 %v430_v11, %v319_v13  ;;  %v320_v18 = vmul.f32 %v429_v8, %v300_v16 }
  0xf2   : > { %v333_v21 = vadd.f32 %v430_v11, %v322_v15  ;;  %v439_v24 = vpack.c.bf16 %v332_v19, %v332_v19 }
  0xf3   : > { %v437_v20 = vpack.c.bf16 %v330_v17, %v330_v17  ;;  %v331_v22 = vadd.f32 %v430_v11, %v320_v18 }
  0xf4   : > { %v440_v25 = vpack.c.bf16 %v333_v21, %v333_v21  ;;  %353 = vst.msk [vmem:[%s199_s12 + $0x8] sm:$0xf] %vm350_vm2, %v439_v24 }
  0xf5   : > { %351 = vst.msk [vmem:[%s199_s12] sm:$0xf] %vm350_vm2, %v437_v20  ;;  %v438_v23 = vpack.c.bf16 %v331_v22, %v331_v22 }
  0xf6   : > { %354 = vst.msk [vmem:[%s199_s12 + $0xc] sm:$0xf] %vm350_vm2, %v440_v25 }
  0xf7   : > { %352 = vst.msk [vmem:[%s199_s12 + $0x4] sm:$0xf] %vm350_vm2, %v438_v23 }
  0xf8 PF: > { %s14_s15 = sadd.s32 1, %s484_s15  }
  0xf9   : > { %p11_p4 = scmp.ge.s32.totalorder %s14_s15, 4  }
  0xfb   :  { %13 = sbr.rel (!%p11_p4) target bundleno = 1 (0x1), region = 66 }

// kernel: _lambda_.35
= control target key start
LH: loop header
LB: loop body
LE: loop exit
PB: predicated region body
PF: predicated region fallthrough
CT: control target
= control target key end

     0   :  { %s496_s12 = smov 0   ;;  %s523_s0 = inlined_call_operand.vmem [shape: bf16[64,16], index: 0, kind: input, shape index: {}]   ;;  %s524_s1 = inlined_call_operand.vmem [shape: f32[64,1], index: 1, kind: input, shape index: {}]   ;;  %s525_s2 = inlined_call_operand.vmem [shape: bf16[64,16], index: 2, kind: input, shape index: {}]   ;;  %s526_s3 = inlined_call_operand.vmem [shape: bf16[64,16], index: 3, kind: output, shape index: {}]  }
   0x1 LB: > { %s395_s13 = sadd.s32 4294967295, %s473_s12   ;;  %p399_p0 = scmp.ge.s32.totalorder %s473_s12, 1  ;;  %s473_s12 = sphi %s496_s12, %s13_s12  }
   0x2   : > { %p160_p1 = scmp.lt.s32.totalorder %s473_s12, 3 }
   0x4   : > { %p161_p2 = pnand %p399_p0, %p160_p1 }
   0x5   : > { %s400_s14 = sshll.u32 (!%p161_p2), %s395_s13, 2  ;;  %v475_v0 = vmov (!%p161_p2), 0   ;;  %vm310_vm0 = vcmask (!%p161_p2), 125952  }
   0x6   : > { %164 = sbr.rel (%p161_p2) target bundleno = 187 (0xbb), region = 32  ;;  %450 = vset.pattern.permute.xlu1 (!%p161_p2), %v475_v0  ;;  %449 = vset.pattern.permute.xlu0 (!%p161_p2), %v475_v0  ;;  %p195_p3 = scmp.lt.s32.totalorder (!%p161_p2), %s400_s14, 7 }
   0xd   : > { %s528_s14 = smov (!%p195_p3, %s400_s14), 7 }
   0xe   : > { %s403_s15 = sshll.u32 %s528_s14, 3  ;;  %s401_s19 = sshll.u32 %s528_s14, 2 }
   0xf   : > { %s204_s18 = scalar_lea.vmem %s524_s1, %s403_s15  ;;  %s198_s22 = scalar_lea.vmem %s523_s0, %s401_s19 }
  0x10   : > { %v220_v1 = vld [vmem:[%s204_s18 + $0x10] sm:$0xff]  ;;  %v221_v2 = vld [vmem:[%s204_s18 + $0x18] sm:$0xff]  ;;  %v219_v3 = vld [vmem:[%s204_s18 + $0x8] sm:$0xff]  ;;  %s210_s25 = scalar_lea.vmem %s525_s2, %s401_s19  ;;  %s216_s28 = scalar_lea.vmem %s526_s3, %s401_s19 }
  0x11   : > { %v410_v4 = vmul.f32 -1.442695, %v220_v1  ;;  %v411_v5 = vmul.f32 -1.442695, %v221_v2  ;;  %v409_v6 = vmul.f32 -1.442695, %v219_v3 }
  0x12   : > { %v218_v7 = vld [vmem:[%s204_s18] sm:$0xff]  ;;  %v438_v21 = vld [vmem:[%s198_s22 + $0x8] sm:$0xff]  }
  0x13   : > { %451 = vpow2.f32 %v410_v4  ;;  %v408_v8 = vmul.f32 -1.442695, %v218_v7  ;;  %v423_v22 = vld [vmem:[%s198_s22] sm:$0xff]   ;;  %v428_v23 = vunpack.c.l.bf16 %v438_v21  ;;  %v439_v26 = vld [vmem:[%s210_s25 + $0x8] sm:$0xff]   ;;  %v429_v28 = vunpack.c.h.bf16 %v438_v21 }
  0x14   : > { %453 = vpow2.f32 %v411_v5  ;;  %v431_v24 = vld [vmem:[%s210_s25] sm:$0xff]   ;;  %v424_v27 = vunpack.c.l.bf16 %v423_v22  ;;  %v436_v31 = vunpack.c.l.bf16 %v439_v26  ;;  %v437_v35 = vunpack.c.h.bf16 %v439_v26 }
  0x15   : > { %455 = vpow2.f32 %v409_v6  ;;  %v432_v29 = vunpack.c.l.bf16 %v431_v24  ;;  %v425_v36 = vunpack.c.h.bf16 %v423_v22  ;;  %v433_v39 = vunpack.c.h.bf16 %v431_v24 }
  0x16   : > { %457 = vpow2.f32 %v408_v8 }
  0x1d   : > { %v452_v9 = vpop.eup %451 }
  0x1e   : > { %v454_v10 = vpop.eup %453  ;;  %v236_v11 = vadd.f32 1.0, %v452_v9 }
  0x1f   : > { %v456_v12 = vpop.eup %455  ;;  %v237_v13 = vadd.f32 1.0, %v454_v10 }
  0x20   : > { %v458_v14 = vpop.eup %457  ;;  %459 = vrcp.f32 %v236_v11  ;;  %v235_v16 = vadd.f32 1.0, %v456_v12 }
  0x21   : > { %v234_v15 = vadd.f32 1.0, %v458_v14  ;;  %461 = vrcp.f32 %v237_v13 }
  0x23   : > { %463 = vrcp.f32 %v234_v15 }
  0x24   : > { %465 = vrcp.f32 %v235_v16 }
  0x2a   : > { %v460_v17 = vpop.eup %459 }
  0x2b   : > { %266 = vperm.xlu1 %450, %v460_v17   ;;  %v462_v18 = vpop.eup %461 }
  0x2d   : > { %v464_v19 = vpop.eup %463 }
  0x2e   : > { %256 = vperm.xlu0 %449, %v464_v19   ;;  %v466_v20 = vpop.eup %465 }
  0x2f   : > { %271 = vperm.xlu1 %450, %v462_v18  }
  0x32   : > { %261 = vperm.xlu0 %449, %v466_v20  }
  0xaa   : > { %v267_v25 = vpop.permute.xlu1 %266 }
  0xab   : > { %v276_v30 = vmul.f32 %v428_v23, %v267_v25 }
  0xad   : > { %v257_v32 = vpop.permute.xlu0 %256  ;;  %v288_v40 = vadd.f32 %v436_v31, %v276_v30 }
  0xae   : > { %v274_v33 = vmul.f32 %v424_v27, %v257_v32  ;;  %v272_v34 = vpop.permute.xlu1 %271 }
  0xaf   : > { %v277_v37 = vmul.f32 %v429_v28, %v272_v34  ;;  %v292_v47 = vmax.f32 %v288_v40, 0.0 }
  0xb0   : > { %v286_v38 = vadd.f32 %v432_v29, %v274_v33 }
  0xb1   : > { %v262_v41 = vpop.permute.xlu0 %261  ;;  %v289_v43 = vadd.f32 %v437_v35, %v277_v37  ;;  %v420_v51 = vpack.c.bf16 %v292_v47, %v292_v47 }
  0xb2   : > { %v290_v42 = vmax.f32 %v286_v38, 0.0  ;;  %v275_v44 = vmul.f32 %v425_v36, %v262_v41 }
  0xb3   : > { %v293_v48 = vmax.f32 %v289_v43, 0.0  ;;  %313 = vst.msk [vmem:[%s216_s28 + $0x8] sm:$0xf] %vm310_vm0, %v420_v51 }
  0xb4   : > { %v418_v45 = vpack.c.bf16 %v290_v42, %v290_v42  ;;  %v287_v46 = vadd.f32 %v433_v39, %v275_v44 }
  0xb5   : > { %v421_v52 = vpack.c.bf16 %v293_v48, %v293_v48 }
  0xb6   : > { %311 = vst.msk [vmem:[%s216_s28] sm:$0xf] %vm310_vm0, %v418_v45  ;;  %v291_v49 = vmax.f32 %v287_v46, 0.0 }
  0xb7   : > { %314 = vst.msk [vmem:[%s216_s28 + $0xc] sm:$0xf] %vm310_vm0, %v421_v52 }
  0xb8   : > { %v419_v50 = vpack.c.bf16 %v291_v49, %v291_v49 }
  0xba   : > { %312 = vst.msk [vmem:[%s216_s28 + $0x4] sm:$0xf] %vm310_vm0, %v419_v50 }
  0xbb PF: > { %s13_s12 = sadd.s32 1, %s473_s12  }
  0xbc   : > { %p10_p4 = scmp.ge.s32.totalorder %s13_s12, 4  }
  0xbe   :  { %12 = sbr.rel (!%p10_p4) target bundleno = 1 (0x1), region = 68 }

// kernel: _lambda_.37
= control target key start
LH: loop header
LB: loop body
LE: loop exit
PB: predicated region body
PF: predicated region fallthrough
CT: control target
= control target key end

     0   :  { %v132_v0 = vmov 0.0   ;;  %vm133_vm0 = vmmov 0   ;;  %vm33_vm1 = vcmask 130048   ;;  %vm104_vm2 = vcmask 158720   ;;  %s177_s1 = inlined_call_operand.vmem [shape: bf16[16,20], index: 1, kind: input, shape index: {}]   ;;  %s178_s0 = inlined_call_operand.vmem [shape: bf16[16,16], index: 0, kind: input, shape index: {}]   ;;  %s179_s2 = inlined_call_operand.vmem [shape: f32[1,20], index: 2, kind: input, shape index: {}]   ;;  %s180_s3 = inlined_call_operand.vmem [shape: f32[1,20], index: 3, kind: input, shape index: {}]   ;;  %s181_s4 = inlined_call_operand.vmem [shape: bf16[16,20], index: 4, kind: output, shape index: {}]  }
   0x1   :  { %122 = vmatprep.subr.bf16.mxu0 %v132_v0  ;;  %v130_v1 = vld [vmem:[%s177_s1] sm:$0xff]   ;;  %124 = vmatprep.mubr.msk.bf16.mxu0 %vm133_vm0, %v132_v0 }
   0x2   :  { %v131_v2 = vld [vmem:[%s178_s0] sm:$0xff]   ;;  %123 = vmatpush3.bf16.msra.mxu0 %v130_v1 }
   0x3   :  { %v114_v3 = vld [vmem:[%s179_s2] ss:$0 sm:$0xff] }
   0x4   :  { %v115_v5 = vld [vmem:[%s180_s3] ss:$0 sm:$0xff] }
   0x5   :  { %125 = vmatmul.mubr.msk.bf16.vlgmr.msra.gmra.mrb[0].mxu0 %vm33_vm1, %v131_v2 }
  0xd8   :  { %v71_v4 = vpop.f32.mrb[0].mxu0 }
  0xd9   :  { %v85_v6 = vmul.f32 %v114_v3, %v71_v4  ;;  %v126_v7 = vpop.f32.mrb[1].mxu0 }
  0xda   :  { %v74_v8 = vpop.f32.mrb[2].mxu0 }
  0xdb   :  { %v94_v9 = vadd.f32 %v115_v5, %v85_v6  ;;  %v86_v10 = vmul.f32 %v114_v3, %v74_v8  ;;  %v127_v11 = vpop.f32.mrb[3].mxu0 }
  0xdd   :  { %v118_v12 = vpack.c.bf16 %v94_v9, %v94_v9  ;;  %v95_v13 = vadd.f32 %v115_v5, %v86_v10 }
  0xdf   :  { %105 = vst.msk [vmem:[%s181_s4] sm:$0xf] %vm104_vm2, %v118_v12  ;;  %v119_v14 = vpack.c.bf16 %v95_v13, %v95_v13 }
  0xe1   :  { %106 = vst.msk [vmem:[%s181_s4 + $0x4] sm:$0xf] %vm104_vm2, %v119_v14 }

// kernel: _lambda_.38
= control target key start
LH: loop header
LB: loop body
LE: loop exit
PB: predicated region body
PF: predicated region fallthrough
CT: control target
= control target key end

     0   :  { %s488_s15 = smov 0   ;;  %s523_s0 = inlined_call_operand.vmem [shape: bf16[64,48], index: 0, kind: input, shape index: {}]   ;;  %s524_s1 = inlined_call_operand.vmem [shape: bf16[48,32], index: 1, kind: input, shape index: {}]   ;;  %s525_s2 = inlined_call_operand.vmem [shape: f32[1,32], index: 2, kind: input, shape index: {}]   ;;  %s526_s3 = inlined_call_operand.vmem [shape: f32[1,32], index: 3, kind: input, shape index: {}]   ;;  %s527_s4 = inlined_call_operand.vmem [shape: bf16[64,32], index: 4, kind: output, shape index: {}]  }
   0x1 LB: > { %s399_s16 = sadd.s32 4294967295, %s461_s15   ;;  %p403_p0 = scmp.ge.s32.totalorder %s461_s15, 1  ;;  %s461_s15 = sphi %s488_s15, %s14_s15  }
   0x2   : > { %p163_p1 = scmp.lt.s32.totalorder %s461_s15, 3 }
   0x4   : > { %p164_p2 = pnand %p403_p0, %p163_p1 }
   0x5   : > { %v450_v0 = vld [vmem:[%s524_s1] sm:$0xff] (!%p164_p2)   ;;  %s404_s19 = sshll.u32 (!%p164_p2), %s399_s16, 2  ;;  %v451_v1 = vld [vmem:[%s524_s1 + $0x8] sm:$0xff] (!%p164_p2)   ;;  %v452_v2 = vld [vmem:[%s524_s1 + $0x10] sm:$0xff] (!%p164_p2)   ;;  %vm240_vm0 = vcmask (!%p164_p2), 392192   ;;  %vm338_vm1 = vcmask (!%p164_p2), 257024  }
   0x6   : > { %167 = sbr.rel (%p164_p2) target bundleno = 242 (0xf2), region = 36  ;;  %p190_p3 = scmp.lt.s32.totalorder (!%p164_p2), %s404_s19, 7  ;;  %432 = vmatprep.subr.bf16.mxu0 (!%p164_p2), %v450_v0  ;;  %v415_v5 = vld [vmem:[%s525_s2] ss:$0 sm:$0xff] (!%p164_p2) }
   0x7   : > { %433 = vmatpush3.bf16.msra.mxu0 (!%p164_p2), %v450_v0  ;;  %v416_v7 = vld [vmem:[%s526_s3] ss:$0 sm:$0xff] (!%p164_p2) }
   0x8   : > { %434 = vmatprep.subr.bf16.mxu0 (!%p164_p2), %v451_v1 }
   0xb   : > { %435 = vmatpush3.bf16.msra.mxu0 (!%p164_p2), %v451_v1 }
   0xc   : > { %436 = vmatprep.subr.bf16.mxu0 (!%p164_p2), %v452_v2 }
   0xd   : > { %s529_s19 = smov (!%p190_p3, %s404_s19), 7 }
   0xe   : > { %s405_s24 = sshll.u32 %s529_s19, 2 }
   0xf   : > { %s193_s27 = scalar_lea.vmem %s523_s0, %s405_s24  ;;  %437 = vmatpush3.bf16.msra.mxu0 %v452_v2  ;;  %s199_s8 = scalar_lea.vmem %s527_s4, %s405_s24 }
  0x10   : > { %v453_v3 = vld [vmem:[%s193_s27] sm:$0xff]   ;;  %v454_v4 = vld [vmem:[%s193_s27 + $0x8] sm:$0xff]  }
  0x11   : > { %438 = vmatprep.mubr.msk.bf16.mxu0 %vm240_vm0, %v453_v3 }
  0x12   : > { %439 = vmatmul.mubr.msk.bf16.vlgmr.msra.gmra.mrb[0].mxu0 %vm240_vm0, %v454_v4 }
  0xe5   : > { %v440_v6 = vpop.f32.mrb[0].mxu0 }
  0xe6   : > { %v305_v8 = vmul.f32 %v440_v6, %v415_v5  ;;  %v281_v9 = vpop.f32.mrb[1].mxu0 }
  0xe7   : > { %v303_v10 = vmul.f32 %v415_v5, %v281_v9  ;;  %v441_v11 = vpop.f32.mrb[2].mxu0 }
  0xe8   : > { %v316_v12 = vadd.f32 %v416_v7, %v305_v8  ;;  %v306_v13 = vmul.f32 %v441_v11, %v415_v5  ;;  %v284_v14 = vpop.f32.mrb[3].mxu0 }
  0xe9   : > { %v314_v15 = vadd.f32 %v416_v7, %v303_v10  ;;  %v304_v16 = vmul.f32 %v415_v5, %v284_v14 }
  0xea   : > { %v317_v17 = vadd.f32 %v416_v7, %v306_v13  ;;  %v320_v20 = vmax.f32 %v316_v12, 0.0 }
  0xeb   : > { %v318_v18 = vmax.f32 %v314_v15, 0.0  ;;  %v315_v19 = vadd.f32 %v416_v7, %v304_v16 }
  0xec   : > { %v321_v22 = vmax.f32 %v317_v17, 0.0  ;;  %v425_v25 = vpack.c.bf16 %v320_v20, %v320_v20 }
  0xed   : > { %v423_v21 = vpack.c.bf16 %v318_v18, %v318_v18  ;;  %v319_v23 = vmax.f32 %v315_v19, 0.0 }
  0xee   : > { %v426_v26 = vpack.c.bf16 %v321_v22, %v321_v22  ;;  %341 = vst.msk [vmem:[%s199_s8 + $0x8] sm:$0xf] %vm338_vm1, %v425_v25 }
  0xef   : > { %339 = vst.msk [vmem:[%s199_s8] sm:$0xf] %vm338_vm1, %v423_v21  ;;  %v424_v24 = vpack.c.bf16 %v319_v23, %v319_v23 }
  0xf0   : > { %342 = vst.msk [vmem:[%s199_s8 + $0xc] sm:$0xf] %vm338_vm1, %v426_v26 }
  0xf1   : > { %340 = vst.msk [vmem:[%s199_s8 + $0x4] sm:$0xf] %vm338_vm1, %v424_v24 }
  0xf2 PF: > { %s14_s15 = sadd.s32 1, %s461_s15  }
  0xf3   : > { %p11_p4 = scmp.ge.s32.totalorder %s14_s15, 4  }
  0xf5   :  { %13 = sbr.rel (!%p11_p4) target bundleno = 1 (0x1), region = 66 }

// kernel: _lambda_.39
= control target key start
LH: loop header
LB: loop body
LE: loop exit
PB: predicated region body
PF: predicated region fallthrough
CT: control target
= control target key end

     0   :  { %s260_s0 = inlined_call_operand.vmem [shape: bf16[9,8,128], index: 0, kind: input, shape index: {}]   ;;  %s261_s1 = inlined_call_operand.vmem [shape: f32[9,1,128], index: 1, kind: input, shape index: {}]   ;;  %s262_s2 = inlined_call_operand.vmem [shape: f32[1,128], index: 2, kind: input, shape index: {}]   ;;  %s263_s3 = inlined_call_operand.vmem [shape: f32[1,128], index: 3, kind: input, shape index: {}]   ;;  %s264_s4 = inlined_call_operand.vmem [shape: bf16[8,128], index: 4, kind: output, shape index: {}]  }
   0x1   :  { %v181_v0 = vld [vmem:[%s260_s0] sm:$0xff]   ;;  %v157_v5 = vld [vmem:[%s260_s0 + $0x8] sm:$0xff]   ;;  %v163_v10 = vld [vmem:[%s260_s0 + $0x10] sm:$0xff]  }
   0x2   :  { %v153_v1 = vld [vmem:[%s261_s1] ss:$0 sm:$0xff]  ;;  %v156_v2 = vld [vmem:[%s261_s1 + $0x1] ss:$0 sm:$0xff]  ;;  %v182_v3 = vunpack.c.l.bf16 %v181_v0  ;;  %v183_v4 = vunpack.c.h.bf16 %v181_v0  ;;  %v159_v6 = vld [vmem:[%s261_s1 + $0x2] ss:$0 sm:$0xff]  ;;  %v42_v7 = vunpack.c.l.bf16 %v157_v5  ;;  %v55_v8 = vunpack.c.h.bf16 %v157_v5 }
   0x3   :  { %v162_v9 = vld [vmem:[%s261_s1 + $0x3] ss:$0 sm:$0xff]  ;;  %v68_v13 = vunpack.c.l.bf16 %v163_v10  ;;  %v165_v15 = vld [vmem:[%s261_s1 + $0x4] ss:$0 sm:$0xff]  ;;  %v169_v16 = vld [vmem:[%s260_s0 + $0x18] sm:$0xff]   ;;  %v81_v19 = vunpack.c.h.bf16 %v163_v10 }
   0x4   :  { %v26_v11 = vmul.f32 %v182_v3, %v153_v1  ;;  %v38_v12 = vmul.f32 %v183_v4, %v156_v2  ;;  %v51_v14 = vmul.f32 %v159_v6, %v42_v7  ;;  %v64_v18 = vmul.f32 %v162_v9, %v55_v8  ;;  %v168_v20 = vld [vmem:[%s261_s1 + $0x5] ss:$0 sm:$0xff]  ;;  %v171_v24 = vld [vmem:[%s261_s1 + $0x6] ss:$0 sm:$0xff]  ;;  %v175_v25 = vld [vmem:[%s260_s0 + $0x20] sm:$0xf] }
   0x5   :  { %v77_v22 = vmul.f32 %v165_v15, %v68_v13  ;;  %v94_v23 = vunpack.c.l.bf16 %v169_v16  ;;  %v90_v27 = vmul.f32 %v168_v20, %v81_v19  ;;  %v107_v28 = vunpack.c.h.bf16 %v169_v16  ;;  %v174_v29 = vld [vmem:[%s261_s1 + $0x7] ss:$0 sm:$0xff]  ;;  %v177_v33 = vld [vmem:[%s261_s1 + $0x8] ss:$0 sm:$0xff]  ;;  %v178_v39 = vld [vmem:[%s262_s2] ss:$0 sm:$0xff] }
   0x6   :  { %v39_v17 = vadd.f32 %v38_v12, %v26_v11  ;;  %v120_v32 = vunpack.c.l.bf16 %v175_v25  ;;  %v179_v41 = vld [vmem:[%s263_s3] ss:$0 sm:$0xff] }
   0x7   :  { %v103_v31 = vmul.f32 %v171_v24, %v94_v23  ;;  %v116_v35 = vmul.f32 %v174_v29, %v107_v28 }
   0x8   :  { %v52_v21 = vadd.f32 %v51_v14, %v39_v17  ;;  %v129_v37 = vmul.f32 %v177_v33, %v120_v32 }
   0xa   :  { %v65_v26 = vadd.f32 %v64_v18, %v52_v21 }
   0xc   :  { %v78_v30 = vadd.f32 %v77_v22, %v65_v26 }
   0xe   :  { %v91_v34 = vadd.f32 %v90_v27, %v78_v30 }
  0x10   :  { %v104_v36 = vadd.f32 %v103_v31, %v91_v34 }
  0x12   :  { %v117_v38 = vadd.f32 %v116_v35, %v104_v36 }
  0x14   :  { %v130_v40 = vadd.f32 %v129_v37, %v117_v38 }
  0x16   :  { %v138_v42 = vmul.f32 %v178_v39, %v130_v40 }
  0x18   :  { %v146_v43 = vadd.f32 %v179_v41, %v138_v42 }
  0x1a   :  { %v147_v44 = vpack.c.bf16 %v146_v43, %v146_v43 }
  0x1c   :  { %148 = vst [vmem:[%s264_s4] sm:$0xf] %v147_v44 }

// kernel: _lambda_.41
= control target key start
LH: loop header
LB: loop body
LE: loop exit
PB: predicated region body
PF: predicated region fallthrough
CT: control target
= control target key end

     0   :  { %v173_v1 = vmov 0.0   ;;  %vm42_vm0 = vcmask 1041408   ;;  %vm174_vm1 = vmmov 0   ;;  %s230_s0 = inlined_call_operand.vmem [shape: bf16[16,20], index: 0, kind: input, shape index: {}]   ;;  %s231_s1 = inlined_call_operand.vmem [shape: bf16[20,10], index: 1, kind: input, shape index: {}]   ;;  %s232_s2 = inlined_call_operand.vmem [shape: f32[1,10], index: 2, kind: input, shape index: {}]   ;;  %s233_s3 = inlined_call_operand.vmem [shape: f32[1,10], index: 3, kind: input, shape index: {}]   ;;  %s234_s4 = inlined_call_operand.hbm [shape: f32[16,10], index: 4, kind: output, shape index: {}]  }
   0x1   :  { %v146_v0 = vld [vmem:[%s231_s1] sm:$0xff]   ;;  %133 = vmatprep.subr.bf16.mxu0 %v173_v1  ;;  %v147_v2 = vld [vmem:[%s231_s1 + $0x8] ss:$0 sps:$4 sm:$0x33]   ;;  %137 = vmatprep.mubr.msk.bf16.mxu0 %vm174_vm1, %v173_v1 }
   0x2   :  { %134 = vmatpush3.bf16.msra.mxu0 %v146_v0  ;;  %v44_v3 = vsel %vm42_vm0, %v147_v2, 0 }
   0x3   :  { %135 = vmatprep.subr.bf16.mxu0 %v173_v1 }
   0x4   :  { %9 = vsyncpa [#allocation3], 0  ;;  %v148_v4 = vld [vmem:[%s230_s0] sm:$0xff]   ;;  %vm38_vm2 = vcmask 162816   ;;  %s175_s24 = smov [#allocation2]   ;;  %vm105_vm3 = vcmask 80896  }
   0x5   :  { %v128_v5 = vld [vmem:[%s232_s2] ss:$0 sm:$0xff]  ;;  %s113_s25 = sshll.u32 %s175_s24, 4  ;;  %s114_s25 = int_to_ptr.vmem [resolvable:$true] %s113_s25 }
   0x6   :  { %136 = vmatpush3.bf16.msra.mxu0 %v44_v3  ;;  %v129_v7 = vld [vmem:[%s233_s3] ss:$0 sm:$0xff]  ;;  %s149_s0 = scalar_lea.vmem %s114_s25, 256  ;;  %p154_p1 = scmp.lt.s32.totalorder %s114_s25, %s114_s25 }
   0x7   :  { %p150_p0 = scmp.ne.s32.totalorder %s114_s25, %s149_s0  ;;  %p155_p2 = scmp.lt.s32.totalorder %s149_s0, %s149_s0 }
   0x9   :  { %138 = vmatmul.mubr.msk.bf16.vlgmr.msra.gmra.mrb[0].mxu0 %vm38_vm2, %v148_v4  ;;  %p156_p3 = por %p155_p2, %p154_p1 }
   0xb   :  { %p157_p4 = pnand %p156_p3, %p150_p0 }
  0xdc   :  { %v80_v6 = vpop.f32.mrb[0].mxu0 }
  0xdd   :  { %v94_v8 = vmul.f32 %v128_v5, %v80_v6  ;;  %v139_v9 = vpop.f32.mrb[1].mxu0 }
  0xde   :  { %v83_v10 = vpop.f32.mrb[2].mxu0 }
  0xdf   :  { %v103_v11 = vadd.f32 %v129_v7, %v94_v8  ;;  %v95_v12 = vmul.f32 %v128_v5, %v83_v10  ;;  %v140_v13 = vpop.f32.mrb[3].mxu0 }
  0xe1   :  { %106 = vst.msk [vmem:[#allocation2] sm:$0xff] %vm105_vm3, %v103_v11  ;;  %v104_v14 = vadd.f32 %v129_v7, %v95_v12 }
  0xe3   :  { %107 = vst.msk [vmem:[#allocation2 + $0x8] sm:$0xff] %vm105_vm3, %v104_v14 }
  0xe4   :  { %160 = shalt.err (!%p157_p4)
}
  0xe5   :  { %s161_s26 = scalar_lea.hbm %s234_s4, 256 }
  0xe6   :  { %p162_p5 = scmp.ne.s32.totalorder %s234_s4, %s161_s26  ;;  %p165_p6 = scmp.lt.u32.totalorder %s161_s26, %s234_s4 }
  0xe8   :  { %p167_p7 = pnand %p165_p6, %p162_p5 }
  0xea   :  { %170 = shalt.err (!%p167_p7)
}
  0xeb   :  { %s176_s5 = smov 128   ;;  %s177_s6 = smov 8  }
  0xec   :  { %119 = dma.vmem_to_hbm [thread:$0]  %s114_s25, 256, %s234_s4, [#allocation3], %s176_s5, %s176_s5, %s177_s6  }
  0xed   :  { %171 = dma.done.wait [#allocation3], 256  }
  0xee   :  { %172 = vsyncadd [#allocation3], 4294967040 }
  0xef   :  { %123 = vsyncpa [#allocation3], 1 }

// kernel: _lambda_.40
= control target key start
LH: loop header
LB: loop body
LE: loop exit
PB: predicated region body
PF: predicated region fallthrough
CT: control target
= control target key end

     0   :  { %v212_v0 = vmov 0.0   ;;  %vm213_vm0 = vmmov 0   ;;  %vm76_vm1 = vcmask 785408   ;;  %vm155_vm2 = vcmask 158720   ;;  %s280_s1 = inlined_call_operand.vmem [shape: bf16[96,20], index: 1, kind: input, shape index: {}]   ;;  %s281_s0 = inlined_call_operand.vmem [shape: bf16[16,96], index: 0, kind: input, shape index: {}]   ;;  %s282_s2 = inlined_call_operand.vmem [shape: f32[1,20], index: 2, kind: input, shape index: {}]   ;;  %s283_s4 = inlined_call_operand.vmem [shape: bf16[16,20], index: 4, kind: input, shape index: {}]   ;;  %s284_s3 = inlined_call_operand.vmem [shape: f32[1,20], index: 3, kind: input, shape index: {}]   ;;  %s285_s5 = inlined_call_operand.vmem [shape: bf16[16,20], index: 5, kind: output, shape index: {}]  }
   0x1   :  { %187 = vmatprep.subr.bf16.mxu0 %v212_v0  ;;  %v205_v1 = vld [vmem:[%s280_s1] sm:$0xff]   ;;  %199 = vmatprep.mubr.msk.bf16.mxu0 %vm213_vm0, %v212_v0  ;;  %v206_v2 = vld [vmem:[%s280_s1 + $0x8] sm:$0xff]   ;;  %v207_v3 = vld [vmem:[%s280_s1 + $0x10] sm:$0xff]  }
   0x2   :  { %188 = vmatpush3.bf16.msra.mxu0 %v205_v1  ;;  %v208_v4 = vld [vmem:[%s280_s1 + $0x18] sm:$0xff]   ;;  %v209_v5 = vld [vmem:[%s280_s1 + $0x20] sm:$0xff]   ;;  %v210_v6 = vld [vmem:[%s280_s1 + $0x28] sm:$0xff]  }
   0x3   :  { %189 = vmatprep.subr.bf16.mxu0 %v212_v0  ;;  %v211_v7 = vld [vmem:[%s281_s0] sm:$0xff]  }
   0x4   :  { %v170_v8 = vld [vmem:[%s282_s2] ss:$0 sm:$0xff] }
   0x5   :  { %v177_v9 = vld [vmem:[%s283_s4] sm:$0xff]  }
   0x6   :  { %190 = vmatpush3.bf16.msra.mxu0 %v206_v2  ;;  %v171_v11 = vld [vmem:[%s284_s3] ss:$0 sm:$0xff]  ;;  %v178_v13 = vunpack.c.l.bf16 %v177_v9  ;;  %v179_v18 = vunpack.c.h.bf16 %v177_v9 }
   0x7   :  { %191 = vmatprep.subr.bf16.mxu0 %v212_v0 }
   0xa   :  { %192 = vmatpush3.bf16.msra.mxu0 %v207_v3 }
   0xb   :  { %193 = vmatprep.subr.bf16.mxu0 %v212_v0 }
   0xe   :  { %194 = vmatpush3.bf16.msra.mxu0 %v208_v4 }
   0xf   :  { %195 = vmatprep.subr.bf16.mxu0 %v212_v0 }
  0x12   :  { %196 = vmatpush3.bf16.msra.mxu0 %v209_v5 }
  0x13   :  { %197 = vmatprep.subr.bf16.mxu0 %v212_v0 }
  0x16   :  { %198 = vmatpush3.bf16.msra.mxu0 %v210_v6 }
  0x19   :  { %200 = vmatmul.mubr.msk.bf16.vlgmr.msra.gmra.mrb[0].mxu0 %vm76_vm1, %v211_v7 }
  0xec   :  { %v114_v10 = vpop.f32.mrb[0].mxu0 }
  0xed   :  { %v128_v12 = vmul.f32 %v170_v8, %v114_v10  ;;  %v201_v14 = vpop.f32.mrb[1].mxu0 }
  0xee   :  { %v117_v15 = vpop.f32.mrb[2].mxu0 }
  0xef   :  { %v137_v16 = vadd.f32 %v171_v11, %v128_v12  ;;  %v129_v17 = vmul.f32 %v170_v8, %v117_v15  ;;  %v202_v19 = vpop.f32.mrb[3].mxu0 }
  0xf1   :  { %v143_v20 = vadd.f32 %v178_v13, %v137_v16  ;;  %v138_v21 = vadd.f32 %v171_v11, %v129_v17 }
  0xf3   :  { %v145_v22 = vmax.f32 %v143_v20, 0.0  ;;  %v144_v23 = vadd.f32 %v179_v18, %v138_v21 }
  0xf5   :  { %v174_v24 = vpack.c.bf16 %v145_v22, %v145_v22  ;;  %v146_v25 = vmax.f32 %v144_v23, 0.0 }
  0xf7   :  { %156 = vst.msk [vmem:[%s285_s5] sm:$0xf] %vm155_vm2, %v174_v24  ;;  %v175_v26 = vpack.c.bf16 %v146_v25, %v146_v25 }
  0xf9   :  { %157 = vst.msk [vmem:[%s285_s5 + $0x4] sm:$0xf] %vm155_vm2, %v175_v26 }

</bundles_post_ra>
